<compile_context>
chip_gen: v6e
topology: v6e:2x2x1
jax: 0.10.0
libtpu: 0.0.40
codegen_flags: <defaults>
</compile_context>

<pallas_src>
import functools

import jax
import jax.numpy as jnp
from jax.experimental import pallas as pl
from jax.experimental.pallas import tpu as pltpu


def deepset_kernel(x_ref, w1_ref, b1_ref, w2_ref, b2_ref, w3_ref, b3_ref, o_ref,
                   *, b_tile, set_size):
    # x_ref: (b_tile*set_size, D) bf16; weights bf16; biases f32; o_ref: (T, b_tile) f32.
    # Layer 1: Linear (bf16 operands, f32 accumulate) + ReLU
    h = jnp.dot(x_ref[...], w1_ref[...], preferred_element_type=jnp.float32) + b1_ref[...]
    h = jnp.maximum(h, 0.0)
    # Layer 2: Linear + ReLU
    h = jnp.dot(h.astype(jnp.bfloat16), w2_ref[...],
                preferred_element_type=jnp.float32) + b2_ref[...]
    h = jnp.maximum(h, 0.0)
    # Output layer: Linear + final_activation (ReLU)
    h = jnp.dot(h.astype(jnp.bfloat16), w3_ref[...],
                preferred_element_type=jnp.float32) + b3_ref[...]
    h = jnp.maximum(h, 0.0)
    t = h.shape[-1]
    # DeepSet pooling: mean over each set's `set_size` rows.
    # (b_tile*set_size, t) -> (b_tile, set_size, t) is a tile-aligned row-group split;
    # the sum over axis=1 is a cheap cross-sublane reduce.
    pooled = h.reshape(b_tile, set_size, t).sum(axis=1) * (1.0 / set_size)  # (b_tile, t)
    # Lane-dense store: last dim of the output block is b_tile (multiple of 128).
    o_ref[...] = jnp.transpose(pooled, (1, 0))


def deepset_forward(x, params, *, b_tile=256):
    """x: (B, N, D) float32. Returns (B, target_size) float32.

    Each set x[b] (shape (N, D)) is mapped exactly like the PyTorch DeepSetModel:
    SimpleDenseNet MLP -> final ReLU -> mean over the set dimension.
    """
    B, N, D = x.shape
    assert B % b_tile == 0, "demo keeps the number of sets a multiple of b_tile"
    w1, b1 = params["w1"], params["b1"]
    w2, b2 = params["w2"], params["b2"]
    w3, b3 = params["w3"], params["b3"]
    H1, H2, T = w1.shape[1], w2.shape[1], w3.shape[1]

    # bf16 MXU operands; accumulation stays f32 inside the kernel.
    x_flat = x.reshape(B * N, D).astype(jnp.bfloat16)
    w1b = w1.astype(jnp.bfloat16)
    w2b = w2.astype(jnp.bfloat16)
    w3b = w3.astype(jnp.bfloat16)

    rows = b_tile * N
    grid = (B // b_tile,)

    def resident(shape):
        # Same block every grid step -> Pallas keeps it VMEM-resident (one DMA per call).
        return pl.BlockSpec(shape, lambda i: (0,) * len(shape))

    flops = 2 * B * N * (D * H1 + H1 * H2 + H2 * T)
    bytes_accessed = (x_flat.size * 2
                      + (w1b.size + w2b.size + w3b.size) * 2
                      + (b1.size + b2.size + b3.size) * 4
                      + B * T * 4)

    out_t = pl.pallas_call(
        functools.partial(deepset_kernel, b_tile=b_tile, set_size=N),
        out_shape=jax.ShapeDtypeStruct((T, B), jnp.float32),
        grid=grid,
        in_specs=[
            pl.BlockSpec((rows, D), lambda i: (i, 0)),   # x: new block each grid step
            resident((D, H1)), resident((1, H1)),        # weights/biases: resident
            resident((H1, H2)), resident((1, H2)),
            resident((H2, T)), resident((1, T)),
        ],
        out_specs=pl.BlockSpec((T, b_tile), lambda i: (0, i)),
        compiler_params=pltpu.CompilerParams(
            dimension_semantics=("parallel",),          # megacore sharding on v7x
            vmem_limit_bytes=32 * 1024 * 1024,          # fits v5e/v6e/v7x scoped VMEM
        ),
        cost_estimate=pl.CostEstimate(
            flops=flops, transcendentals=0, bytes_accessed=bytes_accessed),
    )(x_flat, w1b, b1, w2b, b2, w3b, b3)

    return out_t.T  # (B, T)


def init_params(key, input_size, hidden_dims, target_size):
    dims = [input_size, *hidden_dims, target_size]
    params = {}
    keys = jax.random.split(key, 2 * (len(dims) - 1))
    for i in range(len(dims) - 1):
        fan_in = dims[i]
        bound = 1.0 / (fan_in ** 0.5)  # matches nn.Linear default init range
        params[f"w{i + 1}"] = jax.random.uniform(
            keys[2 * i], (dims[i], dims[i + 1]), minval=-bound, maxval=bound,
            dtype=jnp.float32)
        params[f"b{i + 1}"] = jax.random.uniform(
            keys[2 * i + 1], (1, dims[i + 1]), minval=-bound, maxval=bound,
            dtype=jnp.float32)
    return params


def reference_forward(x, params, *, mixed_bf16=False):
    """Batched reference: applies the module independently to every set x[b]."""
    B, N, D = x.shape
    cast = (lambda a: a.astype(jnp.bfloat16)) if mixed_bf16 else (lambda a: a)
    h = x.reshape(B * N, D)
    h = jnp.maximum(jnp.dot(cast(h), cast(params["w1"]),
                            preferred_element_type=jnp.float32) + params["b1"], 0.0)
    h = jnp.maximum(jnp.dot(cast(h), cast(params["w2"]),
                            preferred_element_type=jnp.float32) + params["b2"], 0.0)
    h = jnp.maximum(jnp.dot(cast(h), cast(params["w3"]),
                            preferred_element_type=jnp.float32) + params["b3"], 0.0)
    T = params["w3"].shape[1]
    return h.reshape(B, N, T).sum(axis=1) * (1.0 / N)


if __name__ == "__main__":
    input_size = 16
    hidden_dims = [32, 32]
    target_size = 8
    set_size = 8        # N: elements per set (reduced by the mean, dim 0 of each set)
    num_sets = 1024     # B: independent sets batched behind the grid
    b_tile = 256        # sets per grid step -> grid = (4,)

    key = jax.random.PRNGKey(0)
    k_x, k_p = jax.random.split(key)
    x = jax.random.normal(k_x, (num_sets, set_size, input_size), dtype=jnp.float32)
    params = init_params(k_p, input_size, hidden_dims, target_size)

    out = deepset_forward(x, params, b_tile=b_tile)
    out = jax.block_until_ready(out)
    assert out.shape == (num_sets, target_size), out.shape

    # Tight check against a reference mirroring the kernel's bf16/f32 mixed precision.
    ref_mixed = reference_forward(x, params, mixed_bf16=True)
    assert jnp.allclose(out, ref_mixed, atol=1e-4, rtol=1e-4)
    # Semantic check against the pure-f32 PyTorch-module math (bf16 tolerance).
    ref_f32 = reference_forward(x, params, mixed_bf16=False)
    assert jnp.allclose(out, ref_f32, atol=3e-2, rtol=3e-2)

    print("KERNEL_OK")
</pallas_src>

<mosaic_0001>
module attributes {stable_mosaic.version = 11 : i64} {
  func.func @deepset_kernel(%arg0: i32, %arg1: memref<2048x16xbf16, #tpu.memory_space<vmem>>, %arg2: memref<16x32xbf16, #tpu.memory_space<vmem>>, %arg3: memref<1x32xf32, #tpu.memory_space<vmem>>, %arg4: memref<32x32xbf16, #tpu.memory_space<vmem>>, %arg5: memref<1x32xf32, #tpu.memory_space<vmem>>, %arg6: memref<32x8xbf16, #tpu.memory_space<vmem>>, %arg7: memref<1x8xf32, #tpu.memory_space<vmem>>, %arg8: memref<8x256xf32, #tpu.memory_space<vmem>>) attributes {dimension_semantics = [#tpu.dimension_semantics<parallel>], iteration_bounds = array<i64: 4>, scalar_prefetch = 0 : i64, scratch_operands = 0 : i64, tpu.core_type = #tpu.core_type<tc>, window_params = [{transform_indices = @transform_0, window_bounds = array<i64: 2048, 16>}, {pipeline_mode = #tpu.pipeline_mode<synchronous>, transform_indices = @transform_1, window_bounds = array<i64: 16, 32>}, {pipeline_mode = #tpu.pipeline_mode<synchronous>, transform_indices = @transform_2, window_bounds = array<i64: 1, 32>}, {pipeline_mode = #tpu.pipeline_mode<synchronous>, transform_indices = @transform_3, window_bounds = array<i64: 32, 32>}, {pipeline_mode = #tpu.pipeline_mode<synchronous>, transform_indices = @transform_4, window_bounds = array<i64: 1, 32>}, {pipeline_mode = #tpu.pipeline_mode<synchronous>, transform_indices = @transform_5, window_bounds = array<i64: 32, 8>}, {pipeline_mode = #tpu.pipeline_mode<synchronous>, transform_indices = @transform_6, window_bounds = array<i64: 1, 8>}, {transform_indices = @transform_7, window_bounds = array<i64: 8, 256>}]} {
    %c0 = arith.constant 0 : index
    %c0_0 = arith.constant 0 : index
    %0 = vector.load %arg1[%c0, %c0_0] : memref<2048x16xbf16, #tpu.memory_space<vmem>>, vector<2048x16xbf16>
    %c0_1 = arith.constant 0 : index
    %c0_2 = arith.constant 0 : index
    %1 = vector.load %arg2[%c0_1, %c0_2] : memref<16x32xbf16, #tpu.memory_space<vmem>>, vector<16x32xbf16>
    %cst = arith.constant dense<0.000000e+00> : vector<2048x32xf32>
    %2 = tpu.matmul %0, %1, %cst {dimension_numbers = #tpu.dot_dimension_numbers<[1], [0], [0], [1], [0, 0, 1, 1], [], []>} : vector<2048x16xbf16>, vector<16x32xbf16>, vector<2048x32xf32> -> vector<2048x32xf32>
    %c0_3 = arith.constant 0 : index
    %c0_4 = arith.constant 0 : index
    %3 = vector.load %arg3[%c0_3, %c0_4] : memref<1x32xf32, #tpu.memory_space<vmem>>, vector<1x32xf32>
    %4 = vector.broadcast %3 : vector<1x32xf32> to vector<2048x32xf32>
    %5 = arith.addf %2, %4 : vector<2048x32xf32>
    %cst_5 = arith.constant 0.000000e+00 : f32
    %6 = vector.broadcast %cst_5 : f32 to vector<2048x32xf32>
    %7 = arith.maximumf %5, %6 : vector<2048x32xf32>
    %8 = arith.truncf %7 : vector<2048x32xf32> to vector<2048x32xbf16>
    %c0_6 = arith.constant 0 : index
    %c0_7 = arith.constant 0 : index
    %9 = vector.load %arg4[%c0_6, %c0_7] : memref<32x32xbf16, #tpu.memory_space<vmem>>, vector<32x32xbf16>
    %cst_8 = arith.constant dense<0.000000e+00> : vector<2048x32xf32>
    %10 = tpu.matmul %8, %9, %cst_8 {dimension_numbers = #tpu.dot_dimension_numbers<[1], [0], [0], [1], [0, 0, 1, 1], [], []>} : vector<2048x32xbf16>, vector<32x32xbf16>, vector<2048x32xf32> -> vector<2048x32xf32>
    %c0_9 = arith.constant 0 : index
    %c0_10 = arith.constant 0 : index
    %11 = vector.load %arg5[%c0_9, %c0_10] : memref<1x32xf32, #tpu.memory_space<vmem>>, vector<1x32xf32>
    %12 = vector.broadcast %11 : vector<1x32xf32> to vector<2048x32xf32>
    %13 = arith.addf %10, %12 : vector<2048x32xf32>
    %cst_11 = arith.constant 0.000000e+00 : f32
    %14 = vector.broadcast %cst_11 : f32 to vector<2048x32xf32>
    %15 = arith.maximumf %13, %14 : vector<2048x32xf32>
    %16 = arith.truncf %15 : vector<2048x32xf32> to vector<2048x32xbf16>
    %c0_12 = arith.constant 0 : index
    %c0_13 = arith.constant 0 : index
    %17 = vector.load %arg6[%c0_12, %c0_13] : memref<32x8xbf16, #tpu.memory_space<vmem>>, vector<32x8xbf16>
    %cst_14 = arith.constant dense<0.000000e+00> : vector<2048x8xf32>
    %18 = tpu.matmul %16, %17, %cst_14 {dimension_numbers = #tpu.dot_dimension_numbers<[1], [0], [0], [1], [0, 0, 1, 1], [], []>} : vector<2048x32xbf16>, vector<32x8xbf16>, vector<2048x8xf32> -> vector<2048x8xf32>
    %c0_15 = arith.constant 0 : index
    %c0_16 = arith.constant 0 : index
    %19 = vector.load %arg7[%c0_15, %c0_16] : memref<1x8xf32, #tpu.memory_space<vmem>>, vector<1x8xf32>
    %20 = vector.broadcast %19 : vector<1x8xf32> to vector<2048x8xf32>
    %21 = arith.addf %18, %20 : vector<2048x8xf32>
    %cst_17 = arith.constant 0.000000e+00 : f32
    %22 = vector.broadcast %cst_17 : f32 to vector<2048x8xf32>
    %23 = arith.maximumf %21, %22 : vector<2048x8xf32>
    %24 = vector.shape_cast %23 : vector<2048x8xf32> to vector<256x8x8xf32>
    %cst_18 = arith.constant dense<0.000000e+00> : vector<256x8xf32>
    %25 = vector.multi_reduction <add>, %24, %cst_18 [1] : vector<256x8x8xf32> to vector<256x8xf32>
    %cst_19 = arith.constant 1.250000e-01 : f32
    %26 = vector.broadcast %cst_19 : f32 to vector<256x8xf32>
    %27 = arith.mulf %25, %26 : vector<256x8xf32>
    %28 = tpu.transpose %27, [1, 0] : vector<256x8xf32> -> vector<8x256xf32>
    %c0_20 = arith.constant 0 : index
    %c0_21 = arith.constant 0 : index
    %29 = vector.load %arg8[%c0_20, %c0_21] : memref<8x256xf32, #tpu.memory_space<vmem>>, vector<8x256xf32>
    tpu.vector_store %arg8[%c0_20, %c0_21], %28 {strides = array<i32>} : memref<8x256xf32, #tpu.memory_space<vmem>>, vector<8x256xf32>,
    return
  }
  func.func @transform_0(%arg0: i32) -> (i32, i32) {
    %c0_i32 = arith.constant 0 : i32
    %c0_i32_0 = arith.constant 0 : i32
    return %arg0, %c0_i32 : i32, i32
  }
  func.func @transform_1(%arg0: i32) -> (i32, i32) {
    %c0_i32 = arith.constant 0 : i32
    %c0_i32_0 = arith.constant 0 : i32
    %c0_i32_1 = arith.constant 0 : i32
    return %c0_i32, %c0_i32_0 : i32, i32
  }
  func.func @transform_2(%arg0: i32) -> (i32, i32) {
    %c0_i32 = arith.constant 0 : i32
    %c0_i32_0 = arith.constant 0 : i32
    %c0_i32_1 = arith.constant 0 : i32
    return %c0_i32, %c0_i32_0 : i32, i32
  }
  func.func @transform_3(%arg0: i32) -> (i32, i32) {
    %c0_i32 = arith.constant 0 : i32
    %c0_i32_0 = arith.constant 0 : i32
    %c0_i32_1 = arith.constant 0 : i32
    return %c0_i32, %c0_i32_0 : i32, i32
  }
  func.func @transform_4(%arg0: i32) -> (i32, i32) {
    %c0_i32 = arith.constant 0 : i32
    %c0_i32_0 = arith.constant 0 : i32
    %c0_i32_1 = arith.constant 0 : i32
    return %c0_i32, %c0_i32_0 : i32, i32
  }
  func.func @transform_5(%arg0: i32) -> (i32, i32) {
    %c0_i32 = arith.constant 0 : i32
    %c0_i32_0 = arith.constant 0 : i32
    %c0_i32_1 = arith.constant 0 : i32
    return %c0_i32, %c0_i32_0 : i32, i32
  }
  func.func @transform_6(%arg0: i32) -> (i32, i32) {
    %c0_i32 = arith.constant 0 : i32
    %c0_i32_0 = arith.constant 0 : i32
    %c0_i32_1 = arith.constant 0 : i32
    return %c0_i32, %c0_i32_0 : i32, i32
  }
  func.func @transform_7(%arg0: i32) -> (i32, i32) {
    %c0_i32 = arith.constant 0 : i32
    %c0_i32_0 = arith.constant 0 : i32
    return %c0_i32, %arg0 : i32, i32
  }
}

</mosaic_0001>

<bundles_post_ra>
// kernel: tpu_custom_call.1
= control target key start
LH: loop header
LB: loop body
LE: loop exit
PB: predicated region body
PF: predicated region fallthrough
CT: control target
= control target key end

     0   :  { %12 = vsyncpa [#allocation3], 0  ;;  %s15804_s0 = inlined_call_operand.vmem [shape: bf16[8192,16], index: 0, kind: input, shape index: {}]   ;;  %s15805_s1 = inlined_call_operand.vmem [shape: bf16[16,32], index: 1, kind: input, shape index: {}]   ;;  %s15806_s2 = inlined_call_operand.vmem [shape: f32[1,32], index: 2, kind: input, shape index: {}]   ;;  %s15807_s3 = inlined_call_operand.vmem [shape: bf16[32,32], index: 3, kind: input, shape index: {}]   ;;  %s15808_s4 = inlined_call_operand.vmem [shape: f32[1,32], index: 4, kind: input, shape index: {}]   ;;  %s15809_s5 = inlined_call_operand.vmem [shape: bf16[32,8], index: 5, kind: input, shape index: {}]   ;;  %s15810_s6 = inlined_call_operand.vmem [shape: f32[1,8], index: 6, kind: input, shape index: {}]   ;;  %s15811_s7 = inlined_call_operand.hbm [shape: f32[8,1024], index: 7, kind: output, shape index: {}]  }
   0x1   :  { %14 = vsyncpa [#allocation3 + $0x1], 0  ;;  %s11285_s24 = smov 0   ;;  %s11287_s25 = smov 0  }
   0x2   :  { %s11289_s26 = smov 0   ;;  %s11291_s27 = smov 0  }
   0x3 LB: > { %s9294_s28 = sadd.s32 4294967295, %s11242_s27   ;;  %s9295_s29 = sadd.s32 4294967294, %s11242_s27   ;;  %s11242_s27 = sphi %s11291_s27, %s16124_s27   ;;  %s11238_s26 = sphi %s11289_s26, %s16123_s26   ;;  %s11234_s25 = sphi %s11287_s25, %s16122_s25   ;;  %s11230_s24 = sphi %s11285_s24, %s16121_s24  }
   0x4   : > { %s11308_s30 = sadd.s32 1, %s11242_s27   ;;  %s179_s8 = sadd.s32 1, %s11238_s26 }
   0x5   : > { %s176_s9 = ssub.s32 %s11242_s27, %s11308_s30  ;;  %p189_p0 = scmp.ne.s32.totalorder %s11238_s26, %s11234_s25 }
   0x6   : > { %p177_p1 = scmp.eq.s32.totalorder %s176_s9, 0  ;;  %p190_p2 = scmp.eq.s32.totalorder %s9294_s28, 3 }
   0x7   : > { %p195_p3 = scmp.ne.s32.totalorder %s11234_s25, %s11230_s24  ;;  %p196_p4 = scmp.eq.s32.totalorder %s9295_s29, 3 }
   0x8   : > { %s11318_s10 = scalar_select %p177_p1, %s11238_s26, %s179_s8  }
   0x9   : > { %p11320_p5 = por %p190_p2, %p189_p0  ;;  %p11324_p6 = por %p196_p4, %p195_p3 }
   0xa   : > { %p9298_p7 = scmp.ge.s32.totalorder %s11242_s27, 1  ;;  %p241_p8 = scmp.lt.s32.totalorder %s11242_s27, 5 }
   0xc   : > { %p242_p9 = pnand %p9298_p7, %p241_p8 }
   0xe   : > { %245 = sbr.rel (%p242_p9) target bundleno = 1562 (0x61a), region = 48 }
  0x13   : > { %v11036_v0 = vld [vmem:[%s15805_s1] sm:$0xff]   ;;  %s11333_s15 = sshll.u32 %s9294_s28, 8  ;;  %v11038_v1 = vld [vmem:[%s15807_s3 + $0x8] sm:$0xff]   ;;  %vm1192_vm0 = vcmask 130048   ;;  %vm3041_vm1 = vcmask 261120   ;;  %vm6587_vm2 = vcmask 64512  }
  0x14   : > { %p274_p10 = scmp.lt.s32.totalorder %s11333_s15, 1023  ;;  %10995 = vmatprep.subr.bf16.mxu1 %v11036_v0  ;;  %10217 = vmatprep.subr.bf16.mxu0 %v11036_v0  ;;  %v11093_v2 = vld [vmem:[%s15807_s3] sm:$0xff]   ;;  %v11133_v51 = vld [vmem:[%s15809_s5 + $0x8] sm:$0xff]   ;;  %vm8892_vm3 = vcmask 1041409   ;;  %vm8894_vm4 = vcmask 1042434   ;;  %vm8896_vm5 = vcmask 1043459   ;;  %s9234_s29 = scalar_lea.hbm %s15811_s7, %s11333_s15 }
  0x15   : > { %10996 = vmatpush3.bf16.msra.mxu1 %v11036_v0  ;;  %10218 = vmatpush3.bf16.msra.mxu0 %v11036_v0  ;;  %vm8898_vm6 = vcmask 1044484   ;;  %vm8900_vm7 = vcmask 1045509   ;;  %vm8902_vm8 = vcmask 1046534   ;;  %vm8904_vm9 = vcmask 1047559   ;;  %s11244_s13 = smov [#allocation2]  }
  0x16   : > { %s275_s18 = scalar_select %p274_p10, %s11333_s15, 1023  ;;  %10475 = vmatprep.subr.bf16.mxu1 %v11038_v1  ;;  %10735 = vmatprep.subr.bf16.mxu0 %v11133_v51 }
  0x17   : > { %s11186_s14 = sshll.u32 %s11244_s13, 4  ;;  %s11187_s14 = int_to_ptr.vmem [resolvable:$false] %s11186_s14 }
  0x18   : > { %s9301_s19 = sshll.u32 %s275_s18, 2  ;;  %s11188_s16 = scalar_lea.vmem %s11187_s14, 512 }
  0x19   : > { %s11343_s22 = scalar_lea.vmem %s15804_s0, %s9301_s19  ;;  %s270_s19 = sand.u32 1, %s11234_s25  }
  0x1a   : > { %v11037_v3 = vld [vmem:[%s11343_s22 + $0x200] sm:$0xff]   ;;  %v11039_v4 = vld [vmem:[%s11343_s22 + $0x208] sm:$0xff]   ;;  %v11040_v5 = vld [vmem:[%s11343_s22 + $0x210] sm:$0xff]   ;;  %s9299_s20 = sshll.u32 %s270_s19, 4  ;;  %s9222_s8 = scalar_lea.sflag [#allocation3], %s270_s19 }
  0x1b   : > { %10347 = vmatprep.mubr.msk.bf16.mxu1 %vm1192_vm0, %v11037_v3  ;;  %v11041_v6 = vld [vmem:[%s11343_s22 + $0x218] sm:$0xff]   ;;  %v11042_v7 = vld [vmem:[%s11343_s22 + $0x220] sm:$0xff]   ;;  %v11051_v9 = vld [vmem:[%s11343_s22 + $0x8] sm:$0xff]   ;;  %s15660_s21 = scalar_lea.vmem [#allocation2], %s9299_s20 }
  0x1c   : > { %10348 = vmatmul.mubr.msk.bf16.vlgmr.msra.gmra.mxu1 %vm1192_vm0, %v11039_v4  ;;  %v11050_v8 = vld [vmem:[%s11343_s22] sm:$0xff]   ;;  %v11043_v10 = vld [vmem:[%s11343_s22 + $0x228] sm:$0xff]   ;;  %v11044_v11 = vld [vmem:[%s11343_s22 + $0x230] sm:$0xff]  }
  0x1d   : > { %10476 = vmatpush3.bf16.msra.mxu1 %v11038_v1  ;;  %10351 = vmatprep.mubr.msk.bf16.mxu1 %vm1192_vm0, %v11040_v5  ;;  %v11054_v12 = vld [vmem:[%s11343_s22 + $0x10] sm:$0xff]   ;;  %v11055_v13 = vld [vmem:[%s11343_s22 + $0x18] sm:$0xff]   ;;  %v11058_v14 = vld [vmem:[%s11343_s22 + $0x20] sm:$0xff]  }
  0x1e   : > { %10477 = vmatprep.subr.bf16.mxu1 %v11093_v2  ;;  %10219 = vmatprep.mubr.msk.bf16.mxu0 %vm1192_vm0, %v11050_v8  ;;  %v11045_v15 = vld [vmem:[%s11343_s22 + $0x238] sm:$0xff]   ;;  %v11046_v16 = vld [vmem:[%s11343_s22 + $0x240] sm:$0xff]   ;;  %v11059_v17 = vld [vmem:[%s11343_s22 + $0x28] sm:$0xff]  }
  0x1f   : > { %10220 = vmatmul.mubr.msk.bf16.vlgmr.msra.gmra.mxu0 %vm1192_vm0, %v11051_v9  ;;  %v11062_v18 = vld [vmem:[%s11343_s22 + $0x30] sm:$0xff]   ;;  %v11047_v19 = vld [vmem:[%s11343_s22 + $0x248] sm:$0xff]   ;;  %v11063_v21 = vld [vmem:[%s11343_s22 + $0x38] sm:$0xff]  }
  0x20   : > { %10223 = vmatprep.mubr.msk.bf16.mxu0 %vm1192_vm0, %v11054_v12  ;;  %v11048_v20 = vld [vmem:[%s11343_s22 + $0x250] sm:$0xff]   ;;  %v11066_v22 = vld [vmem:[%s11343_s22 + $0x40] sm:$0xff]   ;;  %v11049_v23 = vld [vmem:[%s11343_s22 + $0x258] sm:$0xff]   ;;  %10736 = vmatpush3.bf16.msra.mxu0 %v11133_v51 }
  0x21   : > { %10478 = vmatpush3.bf16.msra.mxu1 %v11093_v2  ;;  %v11052_v24 = vld [vmem:[%s11343_s22 + $0x260] sm:$0xff]   ;;  %v11067_v25 = vld [vmem:[%s11343_s22 + $0x48] sm:$0xff]   ;;  %v11070_v26 = vld [vmem:[%s11343_s22 + $0x50] sm:$0xff]  }
  0x22   : > { %v11053_v27 = vld [vmem:[%s11343_s22 + $0x268] sm:$0xff]   ;;  %v11056_v28 = vld [vmem:[%s11343_s22 + $0x270] sm:$0xff]   ;;  %v11071_v29 = vld [vmem:[%s11343_s22 + $0x58] sm:$0xff]  }
  0x23   : > { %v11074_v30 = vld [vmem:[%s11343_s22 + $0x60] sm:$0xff]   ;;  %v11057_v31 = vld [vmem:[%s11343_s22 + $0x278] sm:$0xff]   ;;  %v11075_v33 = vld [vmem:[%s11343_s22 + $0x68] sm:$0xff]  }
  0x24   : > { %10352 = vmatmul.mubr.msk.bf16.gmra.mxu1 %vm1192_vm0, %v11041_v6  ;;  %v11060_v32 = vld [vmem:[%s11343_s22 + $0x280] sm:$0xff]   ;;  %v11078_v34 = vld [vmem:[%s11343_s22 + $0x70] sm:$0xff]   ;;  %v11061_v35 = vld [vmem:[%s11343_s22 + $0x288] sm:$0xff]  }
  0x25   : > { %10355 = vmatprep.mubr.msk.bf16.mxu1 %vm1192_vm0, %v11042_v7  ;;  %v11064_v36 = vld [vmem:[%s11343_s22 + $0x290] sm:$0xff]   ;;  %v11079_v37 = vld [vmem:[%s11343_s22 + $0x78] sm:$0xff]   ;;  %v11082_v38 = vld [vmem:[%s11343_s22 + $0x80] sm:$0xff]  }
  0x26   : > { %v11065_v39 = vld [vmem:[%s11343_s22 + $0x298] sm:$0xff]   ;;  %v11068_v40 = vld [vmem:[%s11343_s22 + $0x2a0] sm:$0xff]   ;;  %v11083_v41 = vld [vmem:[%s11343_s22 + $0x88] sm:$0xff]  }
  0x27   : > { %10224 = vmatmul.mubr.msk.bf16.gmra.mxu0 %vm1192_vm0, %v11055_v13  ;;  %v11086_v42 = vld [vmem:[%s11343_s22 + $0x90] sm:$0xff]   ;;  %v11069_v43 = vld [vmem:[%s11343_s22 + $0x2a8] sm:$0xff]   ;;  %v11087_v45 = vld [vmem:[%s11343_s22 + $0x98] sm:$0xff]  }
  0x28   : > { %10227 = vmatprep.mubr.msk.bf16.mxu0 %vm1192_vm0, %v11058_v14  ;;  %v11072_v44 = vld [vmem:[%s11343_s22 + $0x2b0] sm:$0xff]   ;;  %v11090_v46 = vld [vmem:[%s11343_s22 + $0xa0] sm:$0xff]   ;;  %v11073_v47 = vld [vmem:[%s11343_s22 + $0x2b8] sm:$0xff]  }
  0x29   : > { %v11076_v48 = vld [vmem:[%s11343_s22 + $0x2c0] sm:$0xff]   ;;  %v11091_v49 = vld [vmem:[%s11343_s22 + $0xa8] sm:$0xff]   ;;  %v11095_v50 = vld [vmem:[%s11343_s22 + $0xb0] sm:$0xff]  }
  0x2a   : > { %v11077_v52 = vld [vmem:[%s11343_s22 + $0x2c8] sm:$0xff]   ;;  %v11080_v53 = vld [vmem:[%s11343_s22 + $0x2d0] sm:$0xff]   ;;  %v11096_v54 = vld [vmem:[%s11343_s22 + $0xb8] sm:$0xff]  }
  0x2b   : > { %v11099_v55 = vld [vmem:[%s11343_s22 + $0xc0] sm:$0xff]   ;;  %v11081_v56 = vld [vmem:[%s11343_s22 + $0x2d8] sm:$0xff]   ;;  %v11100_v58 = vld [vmem:[%s11343_s22 + $0xc8] sm:$0xff]  }
  0x2c   : > { %10356 = vmatmul.mubr.msk.bf16.gmra.mxu1 %vm1192_vm0, %v11043_v10  ;;  %v11084_v57 = vld [vmem:[%s11343_s22 + $0x2e0] sm:$0xff]   ;;  %v11103_v59 = vld [vmem:[%s11343_s22 + $0xd0] sm:$0xff]   ;;  %v11085_v60 = vld [vmem:[%s11343_s22 + $0x2e8] sm:$0xff]  }
  0x2d   : > { %10359 = vmatprep.mubr.msk.bf16.mxu1 %vm1192_vm0, %v11044_v11  ;;  %v11088_v61 = vld [vmem:[%s11343_s22 + $0x2f0] sm:$0xff]   ;;  %v11104_v62 = vld [vmem:[%s11343_s22 + $0xd8] sm:$0xff]   ;;  %v11107_v63 = vld [vmem:[%s11343_s22 + $0xe0] sm:$0xff]  }
  0x2e   : > { %v11089_v0 = vld [vmem:[%s11343_s22 + $0x2f8] sm:$0xff]   ;;  %v11092_v1 = vld [vmem:[%s11343_s22 + $0x300] sm:$0xff]   ;;  %v11108_v2 = vld [vmem:[%s11343_s22 + $0xe8] sm:$0xff]  }
  0x2f   : > { %10228 = vmatmul.mubr.msk.bf16.gmra.mxu0 %vm1192_vm0, %v11059_v17  ;;  %v11111_v3 = vld [vmem:[%s11343_s22 + $0xf0] sm:$0xff]   ;;  %v11094_v4 = vld [vmem:[%s11343_s22 + $0x308] sm:$0xff]   ;;  %v11112_v6 = vld [vmem:[%s11343_s22 + $0xf8] sm:$0xff]  }
  0x30   : > { %10231 = vmatprep.mubr.msk.bf16.mxu0 %vm1192_vm0, %v11062_v18  ;;  %v11097_v5 = vld [vmem:[%s11343_s22 + $0x310] sm:$0xff]   ;;  %v11115_v7 = vld [vmem:[%s11343_s22 + $0x100] sm:$0xff]   ;;  %v11098_v8 = vld [vmem:[%s11343_s22 + $0x318] sm:$0xff]  }
  0x31   : > { %v11101_v9 = vld [vmem:[%s11343_s22 + $0x320] sm:$0xff]   ;;  %v11116_v10 = vld [vmem:[%s11343_s22 + $0x108] sm:$0xff]   ;;  %v11119_v11 = vld [vmem:[%s11343_s22 + $0x110] sm:$0xff]  }
  0x32   : > { %v11102_v12 = vld [vmem:[%s11343_s22 + $0x328] sm:$0xff]   ;;  %v11105_v13 = vld [vmem:[%s11343_s22 + $0x330] sm:$0xff]   ;;  %v11120_v14 = vld [vmem:[%s11343_s22 + $0x118] sm:$0xff]  }
  0x33   : > { %v11109_v17 = vld [vmem:[%s11343_s22 + $0x340] sm:$0xff]   ;;  %v11124_v18 = vld [vmem:[%s11343_s22 + $0x128] sm:$0xff]  }
  0x34   : > { %10360 = vmatmul.mubr.msk.bf16.gmra.mxu1 %vm1192_vm0, %v11045_v15  ;;  %v11123_v15 = vld [vmem:[%s11343_s22 + $0x120] sm:$0xff]  }
  0x35   : > { %10363 = vmatprep.mubr.msk.bf16.mxu1 %vm1192_vm0, %v11046_v16  ;;  %v11106_v16 = vld [vmem:[%s11343_s22 + $0x338] sm:$0xff]  }
  0x37   : > { %10232 = vmatmul.mubr.msk.bf16.gmra.mxu0 %vm1192_vm0, %v11063_v21  ;;  %v11113_v21 = vld [vmem:[%s11343_s22 + $0x350] sm:$0xff]  }
  0x38   : > { %10235 = vmatprep.mubr.msk.bf16.mxu0 %vm1192_vm0, %v11066_v22  ;;  %v11128_v22 = vld [vmem:[%s11343_s22 + $0x138] sm:$0xff]  }
  0x3c   : > { %10364 = vmatmul.mubr.msk.bf16.gmra.mxu1 %vm1192_vm0, %v11047_v19  ;;  %v11127_v19 = vld [vmem:[%s11343_s22 + $0x130] sm:$0xff]  }
  0x3d   : > { %10367 = vmatprep.mubr.msk.bf16.mxu1 %vm1192_vm0, %v11048_v20  ;;  %v11110_v20 = vld [vmem:[%s11343_s22 + $0x348] sm:$0xff]  }
  0x3f   : > { %10236 = vmatmul.mubr.msk.bf16.gmra.mxu0 %vm1192_vm0, %v11067_v25  ;;  %v11117_v25 = vld [vmem:[%s11343_s22 + $0x360] sm:$0xff]  }
  0x40   : > { %10239 = vmatprep.mubr.msk.bf16.mxu0 %vm1192_vm0, %v11070_v26  ;;  %v11132_v26 = vld [vmem:[%s11343_s22 + $0x148] sm:$0xff]  }
  0x44   : > { %10368 = vmatmul.mubr.msk.bf16.gmra.mxu1 %vm1192_vm0, %v11049_v23  ;;  %v11131_v23 = vld [vmem:[%s11343_s22 + $0x140] sm:$0xff]  }
  0x45   : > { %10371 = vmatprep.mubr.msk.bf16.mxu1 %vm1192_vm0, %v11052_v24  ;;  %v11114_v24 = vld [vmem:[%s11343_s22 + $0x358] sm:$0xff]  }
  0x47   : > { %10240 = vmatmul.mubr.msk.bf16.gmra.mxu0 %vm1192_vm0, %v11071_v29  ;;  %v11121_v29 = vld [vmem:[%s11343_s22 + $0x370] sm:$0xff]  }
  0x48   : > { %10243 = vmatprep.mubr.msk.bf16.mxu0 %vm1192_vm0, %v11074_v30  ;;  %v11137_v30 = vld [vmem:[%s11343_s22 + $0x158] sm:$0xff]  }
  0x4c   : > { %10372 = vmatmul.mubr.msk.bf16.gmra.mxu1 %vm1192_vm0, %v11053_v27  ;;  %v11136_v27 = vld [vmem:[%s11343_s22 + $0x150] sm:$0xff]  }
  0x4d   : > { %10375 = vmatprep.mubr.msk.bf16.mxu1 %vm1192_vm0, %v11056_v28  ;;  %v11118_v28 = vld [vmem:[%s11343_s22 + $0x368] sm:$0xff]  }
  0x4f   : > { %10244 = vmatmul.mubr.msk.bf16.gmra.mxu0 %vm1192_vm0, %v11075_v33  ;;  %v11125_v33 = vld [vmem:[%s11343_s22 + $0x380] sm:$0xff]  }
  0x50   : > { %10247 = vmatprep.mubr.msk.bf16.mxu0 %vm1192_vm0, %v11078_v34  ;;  %v11141_v34 = vld [vmem:[%s11343_s22 + $0x168] sm:$0xff]  }
  0x54   : > { %10376 = vmatmul.mubr.msk.bf16.gmra.mxu1 %vm1192_vm0, %v11057_v31  ;;  %v11140_v31 = vld [vmem:[%s11343_s22 + $0x160] sm:$0xff]  }
  0x55   : > { %10379 = vmatprep.mubr.msk.bf16.mxu1 %vm1192_vm0, %v11060_v32  ;;  %v11122_v32 = vld [vmem:[%s11343_s22 + $0x378] sm:$0xff]  }
  0x57   : > { %10248 = vmatmul.mubr.msk.bf16.gmra.mxu0 %vm1192_vm0, %v11079_v37  ;;  %v11129_v37 = vld [vmem:[%s11343_s22 + $0x390] sm:$0xff]  }
  0x58   : > { %10251 = vmatprep.mubr.msk.bf16.mxu0 %vm1192_vm0, %v11082_v38  ;;  %v11548_v38 = vld [vmem:[%s15806_s2] ss:$0 sm:$0xff] }
  0x5c   : > { %10380 = vmatmul.mubr.msk.bf16.gmra.mxu1 %vm1192_vm0, %v11061_v35  ;;  %v11144_v35 = vld [vmem:[%s11343_s22 + $0x170] sm:$0xff]  }
  0x5d   : > { %10383 = vmatprep.mubr.msk.bf16.mxu1 %vm1192_vm0, %v11064_v36  ;;  %v11126_v36 = vld [vmem:[%s11343_s22 + $0x388] sm:$0xff]  }
  0x5f   : > { %10252 = vmatmul.mubr.msk.bf16.gmra.mxu0 %vm1192_vm0, %v11083_v41  ;;  %v11148_v41 = vld [vmem:[%s11343_s22 + $0x180] sm:$0xff]  }
  0x60   : > { %10255 = vmatprep.mubr.msk.bf16.mxu0 %vm1192_vm0, %v11086_v42 }
  0x64   : > { %10384 = vmatmul.mubr.msk.bf16.gmra.mxu1 %vm1192_vm0, %v11065_v39 }
  0x65   : > { %10387 = vmatprep.mubr.msk.bf16.mxu1 %vm1192_vm0, %v11068_v40  ;;  %v11145_v40 = vld [vmem:[%s11343_s22 + $0x178] sm:$0xff]  }
  0x67   : > { %10256 = vmatmul.mubr.msk.bf16.gmra.mxu0 %vm1192_vm0, %v11087_v45  ;;  %v11130_v45 = vld [vmem:[%s11343_s22 + $0x398] sm:$0xff]  }
  0x68   : > { %10259 = vmatprep.mubr.msk.bf16.mxu0 %vm1192_vm0, %v11090_v46 }
  0x6c   : > { %10388 = vmatmul.mubr.msk.bf16.gmra.mxu1 %vm1192_vm0, %v11069_v43 }
  0x6d   : > { %10391 = vmatprep.mubr.msk.bf16.mxu1 %vm1192_vm0, %v11072_v44 }
  0x6f   : > { %10260 = vmatmul.mubr.msk.bf16.gmra.mxu0 %vm1192_vm0, %v11091_v49 }
  0x70   : > { %10263 = vmatprep.mubr.msk.bf16.mxu0 %vm1192_vm0, %v11095_v50 }
  0x74   : > { %10392 = vmatmul.mubr.msk.bf16.gmra.mxu1 %vm1192_vm0, %v11073_v47 }
  0x75   : > { %10395 = vmatprep.mubr.msk.bf16.mxu1 %vm1192_vm0, %v11076_v48  ;;  %v11134_v48 = vld [vmem:[%s11343_s22 + $0x3a0] sm:$0xff]  }
  0x77   : > { %10264 = vmatmul.mubr.msk.bf16.gmra.mxu0 %vm1192_vm0, %v11096_v54  ;;  %v11149_v54 = vld [vmem:[%s11343_s22 + $0x188] sm:$0xff]  }
  0x78   : > { %10267 = vmatprep.mubr.msk.bf16.mxu0 %vm1192_vm0, %v11099_v55 }
  0x7c   : > { %10396 = vmatmul.mubr.msk.bf16.gmra.mxu1 %vm1192_vm0, %v11077_v52 }
  0x7d   : > { %10399 = vmatprep.mubr.msk.bf16.mxu1 %vm1192_vm0, %v11080_v53 }
  0x7f   : > { %10268 = vmatmul.mubr.msk.bf16.gmra.mxu0 %vm1192_vm0, %v11100_v58  ;;  %v11152_v58 = vld [vmem:[%s11343_s22 + $0x190] sm:$0xff]  }
  0x80   : > { %10271 = vmatprep.mubr.msk.bf16.mxu0 %vm1192_vm0, %v11103_v59 }
  0x84   : > { %10400 = vmatmul.mubr.msk.bf16.gmra.mxu1 %vm1192_vm0, %v11081_v56 }
  0x85   : > { %10403 = vmatprep.mubr.msk.bf16.mxu1 %vm1192_vm0, %v11084_v57 }
  0x87   : > { %10272 = vmatmul.mubr.msk.bf16.gmra.mxu0 %vm1192_vm0, %v11104_v62 }
  0x88   : > { %10275 = vmatprep.mubr.msk.bf16.mxu0 %vm1192_vm0, %v11107_v63  ;;  %v11135_v63 = vld [vmem:[%s11343_s22 + $0x3a8] sm:$0xff]  }
  0x8c   : > { %10404 = vmatmul.mubr.msk.bf16.gmra.mxu1 %vm1192_vm0, %v11085_v60 }
  0x8d   : > { %10407 = vmatprep.mubr.msk.bf16.mxu1 %vm1192_vm0, %v11088_v61 }
  0x8f   : > { %10276 = vmatmul.mubr.msk.bf16.gmra.mxu0 %vm1192_vm0, %v11108_v2 }
  0x90   : > { %10279 = vmatprep.mubr.msk.bf16.mxu0 %vm1192_vm0, %v11111_v3  ;;  %v11138_v3 = vld [vmem:[%s11343_s22 + $0x3b0] sm:$0xff]  }
  0x94   : > { %10408 = vmatmul.mubr.msk.bf16.gmra.mxu1 %vm1192_vm0, %v11089_v0 }
  0x95   : > { %10411 = vmatprep.mubr.msk.bf16.mxu1 %vm1192_vm0, %v11092_v1 }
  0x97   : > { %10280 = vmatmul.mubr.msk.bf16.gmra.mxu0 %vm1192_vm0, %v11112_v6 }
  0x98   : > { %10283 = vmatprep.mubr.msk.bf16.mxu0 %vm1192_vm0, %v11115_v7 }
  0x9c   : > { %10412 = vmatmul.mubr.msk.bf16.gmra.mxu1 %vm1192_vm0, %v11094_v4 }
  0x9d   : > { %10415 = vmatprep.mubr.msk.bf16.mxu1 %vm1192_vm0, %v11097_v5 }
  0x9f   : > { %10284 = vmatmul.mubr.msk.bf16.gmra.mxu0 %vm1192_vm0, %v11116_v10 }
  0xa0   : > { %10287 = vmatprep.mubr.msk.bf16.mxu0 %vm1192_vm0, %v11119_v11  ;;  %v11153_v11 = vld [vmem:[%s11343_s22 + $0x198] sm:$0xff]  }
  0xa4   : > { %10416 = vmatmul.mubr.msk.bf16.gmra.mxu1 %vm1192_vm0, %v11098_v8 }
  0xa5   : > { %10419 = vmatprep.mubr.msk.bf16.mxu1 %vm1192_vm0, %v11101_v9 }
  0xa7   : > { %10288 = vmatmul.mubr.msk.bf16.gmra.mxu0 %vm1192_vm0, %v11120_v14 }
  0xa8   : > { %10291 = vmatprep.mubr.msk.bf16.mxu0 %vm1192_vm0, %v11123_v15  ;;  %v11156_v15 = vld [vmem:[%s11343_s22 + $0x1a0] sm:$0xff]  }
  0xac   : > { %10420 = vmatmul.mubr.msk.bf16.gmra.mxu1 %vm1192_vm0, %v11102_v12 }
  0xad   : > { %10423 = vmatprep.mubr.msk.bf16.mxu1 %vm1192_vm0, %v11105_v13 }
  0xaf   : > { %10292 = vmatmul.mubr.msk.bf16.gmra.mxu0 %vm1192_vm0, %v11124_v18 }
  0xb0   : > { %10295 = vmatprep.mubr.msk.bf16.mxu0 %vm1192_vm0, %v11127_v19 }
  0xb4   : > { %10424 = vmatmul.mubr.msk.bf16.gmra.mxu1 %vm1192_vm0, %v11106_v16  ;;  %v11168_v16 = vld [vmem:[%s15809_s5] sm:$0xff]  }
  0xb5   : > { %10427 = vmatprep.mubr.msk.bf16.mxu1 %vm1192_vm0, %v11109_v17  ;;  %10737 = vmatprep.subr.bf16.mxu0 %v11168_v16 }
  0xb6   : > { %10738 = vmatpush3.bf16.msra.mxu0 %v11168_v16 }
  0xb7   : > { %10296 = vmatmul.mubr.msk.bf16.gmra.mxu0 %vm1192_vm0, %v11128_v22  ;;  %v11139_v22 = vld [vmem:[%s11343_s22 + $0x3b8] sm:$0xff]  }
  0xb8   : > { %10299 = vmatprep.mubr.msk.bf16.mxu0 %vm1192_vm0, %v11131_v23 }
  0xbc   : > { %10428 = vmatmul.mubr.msk.bf16.gmra.mxu1 %vm1192_vm0, %v11110_v20 }
  0xbd   : > { %10431 = vmatprep.mubr.msk.bf16.mxu1 %vm1192_vm0, %v11113_v21 }
  0xbf   : > { %10300 = vmatmul.mubr.msk.bf16.gmra.mxu0 %vm1192_vm0, %v11132_v26  ;;  %v11142_v26 = vld [vmem:[%s11343_s22 + $0x3c0] sm:$0xff]  }
  0xc0   : > { %10303 = vmatprep.mubr.msk.bf16.mxu0 %vm1192_vm0, %v11136_v27 }
  0xc4   : > { %10432 = vmatmul.mubr.msk.bf16.gmra.mxu1 %vm1192_vm0, %v11114_v24 }
  0xc5   : > { %10435 = vmatprep.mubr.msk.bf16.mxu1 %vm1192_vm0, %v11117_v25 }
  0xc7   : > { %10304 = vmatmul.mubr.msk.bf16.gmra.mxu0 %vm1192_vm0, %v11137_v30 }
  0xc8   : > { %10307 = vmatprep.mubr.msk.bf16.mxu0 %vm1192_vm0, %v11140_v31 }
  0xcc   : > { %10436 = vmatmul.mubr.msk.bf16.gmra.mxu1 %vm1192_vm0, %v11118_v28 }
  0xcd   : > { %10439 = vmatprep.mubr.msk.bf16.mxu1 %vm1192_vm0, %v11121_v29 }
  0xcf   : > { %10308 = vmatmul.mubr.msk.bf16.gmra.mxu0 %vm1192_vm0, %v11141_v34  ;;  %v11157_v34 = vld [vmem:[%s11343_s22 + $0x1a8] sm:$0xff]  }
  0xd0   : > { %10311 = vmatprep.mubr.msk.bf16.mxu0 %vm1192_vm0, %v11144_v35 }
  0xd4   : > { %10440 = vmatmul.mubr.msk.bf16.gmra.mxu1 %vm1192_vm0, %v11122_v32 }
  0xd5   : > { %10443 = vmatprep.mubr.msk.bf16.mxu1 %vm1192_vm0, %v11125_v33 }
  0xd7   : > { %10312 = vmatmul.mubr.msk.bf16.gmra.mxu0 %vm1192_vm0, %v11145_v40 }
  0xd8   : > { %10315 = vmatprep.mubr.msk.bf16.mxu0 %vm1192_vm0, %v11148_v41 }
  0xdc   : > { %v10349_v39 = vpop.f32.mrf.mxu1  ;;  %10444 = vmatmul.mubr.msk.bf16.gmra.mxu1 %vm1192_vm0, %v11126_v36 }
  0xdd   : > { %10447 = vmatprep.mubr.msk.bf16.mxu1 %vm1192_vm0, %v11129_v37  ;;  %v2132_v43 = vadd.f32 %v10349_v39, %v11548_v38  ;;  %v11158_v39 = vld [vmem:[%s11343_s22 + $0x1b0] sm:$0xff]  }
  0xde   : > { %v2123_v42 = vpop.f32.mrf.mxu1 }
  0xdf   : > { %v2124_v46 = vadd.f32 %v11548_v38, %v2123_v42  ;;  %v2764_v50 = vmax.f32 %v2132_v43, 0.0  ;;  %v11572_v0 = vpop.f32.mrf.mxu0  ;;  %10316 = vmatmul.mubr.msk.bf16.gmra.mxu0 %vm1192_vm0, %v11149_v54 }
  0xe0   : > { %v10350_v44 = vpop.f32.mrf.mxu1  ;;  %10319 = vmatprep.mubr.msk.bf16.mxu0 %vm1192_vm0, %v11152_v58  ;;  %v11159_v58 = vld [vmem:[%s11343_s22 + $0x1b8] sm:$0xff]  }
  0xe1   : > { %v2135_v47 = vadd.f32 %v10350_v44, %v11548_v38  ;;  %v2762_v55 = vmax.f32 %v2124_v46, 0.0  ;;  %v11579_v5 = vpop.f32.mrf.mxu0 }
  0xe2   : > { %v2126_v49 = vpop.f32.mrf.mxu1 }
  0xe3   : > { %v2765_v51 = vmax.f32 %v2135_v47, 0.0  ;;  %v2127_v52 = vadd.f32 %v11548_v38, %v2126_v49  ;;  %v11583_v10 = vpop.f32.mrf.mxu0  ;;  %v11146_v49 = vld [vmem:[%s11343_s22 + $0x3d0] sm:$0xff]  }
  0xe4   : > { %v10353_v53 = vpop.f32.mrf.mxu1  ;;  %10448 = vmatmul.mubr.msk.bf16.gmra.mxu1 %vm1192_vm0, %v11130_v45  ;;  %v11143_v45 = vld [vmem:[%s11343_s22 + $0x3c8] sm:$0xff]  }
  0xe5   : > { %v11564_v56 = vpack.c.bf16 %v2765_v51, %v2764_v50  ;;  %v2763_v57 = vmax.f32 %v2127_v52, 0.0  ;;  %10451 = vmatprep.mubr.msk.bf16.mxu1 %vm1192_vm0, %v11134_v48  ;;  %v2148_v61 = vadd.f32 %v10353_v53, %v11548_v38  ;;  %v11593_v18 = vpop.f32.mrf.mxu0 }
  0xe6   : > { %v2139_v59 = vpop.f32.mrf.mxu1 }
  0xe7   : > { %v11568_v60 = vpack.c.bf16 %v2763_v57, %v2762_v55  ;;  %v2140_v1 = vadd.f32 %v11548_v38, %v2139_v59  ;;  %v2768_v6 = vmax.f32 %v2148_v61, 0.0  ;;  %v11599_v23 = vpop.f32.mrf.mxu0  ;;  %10320 = vmatmul.mubr.msk.bf16.gmra.mxu0 %vm1192_vm0, %v11153_v11 }
  0xe8   : > { %v10354_v62 = vpop.f32.mrf.mxu1  ;;  %10323 = vmatprep.mubr.msk.bf16.mxu0 %vm1192_vm0, %v11156_v15 }
  0xe9   : > { %v2151_v2 = vadd.f32 %v10354_v62, %v11548_v38  ;;  %v2766_v12 = vmax.f32 %v2140_v1, 0.0  ;;  %v11606_v28 = vpop.f32.mrf.mxu0 }
  0xea   : > { %v2142_v4 = vpop.f32.mrf.mxu1 }
  0xeb   : > { %v2769_v7 = vmax.f32 %v2151_v2, 0.0  ;;  %v2143_v8 = vadd.f32 %v11548_v38, %v2142_v4  ;;  %v11610_v33 = vpop.f32.mrf.mxu0 }
  0xec   : > { %v10357_v9 = vpop.f32.mrf.mxu1  ;;  %10452 = vmatmul.mubr.msk.bf16.gmra.mxu1 %vm1192_vm0, %v11135_v63  ;;  %v11160_v63 = vld [vmem:[%s11343_s22 + $0x1c0] sm:$0xff]  }
  0xed   : > { %v11586_v13 = vpack.c.bf16 %v2769_v7, %v2768_v6  ;;  %v2767_v14 = vmax.f32 %v2143_v8, 0.0  ;;  %10455 = vmatprep.mubr.msk.bf16.mxu1 %vm1192_vm0, %v11138_v3  ;;  %v2164_v20 = vadd.f32 %v10357_v9, %v11548_v38  ;;  %v11617_v41 = vpop.f32.mrf.mxu0  ;;  %v11147_v7 = vld [vmem:[%s11343_s22 + $0x3d8] sm:$0xff]  }
  0xee   : > { %v2155_v17 = vpop.f32.mrf.mxu1 }
  0xef   : > { %v11595_v19 = vpack.c.bf16 %v2767_v14, %v2766_v12  ;;  %v2156_v24 = vadd.f32 %v11548_v38, %v2155_v17  ;;  %v2772_v29 = vmax.f32 %v2164_v20, 0.0  ;;  %v11623_v46 = vpop.f32.mrf.mxu0  ;;  %10324 = vmatmul.mubr.msk.bf16.gmra.mxu0 %vm1192_vm0, %v11157_v34  ;;  %v11150_v12 = vld [vmem:[%s11343_s22 + $0x3e0] sm:$0xff]  }
  0xf0   : > { %v10358_v21 = vpop.f32.mrf.mxu1  ;;  %10327 = vmatprep.mubr.msk.bf16.mxu0 %vm1192_vm0, %v11158_v39  ;;  %v11151_v39 = vld [vmem:[%s11343_s22 + $0x3e8] sm:$0xff]  }
  0xf1   : > { %v2167_v25 = vadd.f32 %v10358_v21, %v11548_v38  ;;  %v2770_v35 = vmax.f32 %v2156_v24, 0.0  ;;  %v11630_v51 = vpop.f32.mrf.mxu0  ;;  %v11161_v24 = vld [vmem:[%s11343_s22 + $0x1c8] sm:$0xff]  }
  0xf2   : > { %v2158_v27 = vpop.f32.mrf.mxu1 }
  0xf3   : > { %v2773_v30 = vmax.f32 %v2167_v25, 0.0  ;;  %v2159_v31 = vadd.f32 %v11548_v38, %v2158_v27  ;;  %v11634_v57 = vpop.f32.mrf.mxu0 }
  0xf4   : > { %v10361_v32 = vpop.f32.mrf.mxu1  ;;  %10456 = vmatmul.mubr.msk.bf16.gmra.mxu1 %vm1192_vm0, %v11139_v22 }
  0xf5   : > { %v11613_v36 = vpack.c.bf16 %v2773_v30, %v2772_v29  ;;  %v2771_v37 = vmax.f32 %v2159_v31, 0.0  ;;  %10459 = vmatprep.mubr.msk.bf16.mxu1 %vm1192_vm0, %v11142_v26  ;;  %v2180_v43 = vadd.f32 %v10361_v32, %v11548_v38  ;;  %v11641_v2 = vpop.f32.mrf.mxu0  ;;  %v11162_v29 = vld [vmem:[%s11343_s22 + $0x1d0] sm:$0xff]  }
  0xf6   : > { %v2171_v40 = vpop.f32.mrf.mxu1 }
  0xf7   : > { %v11619_v42 = vpack.c.bf16 %v2771_v37, %v2770_v35  ;;  %v2172_v47 = vadd.f32 %v11548_v38, %v2171_v40  ;;  %v2776_v52 = vmax.f32 %v2180_v43, 0.0  ;;  %v11647_v8 = vpop.f32.mrf.mxu0  ;;  %10328 = vmatmul.mubr.msk.bf16.gmra.mxu0 %vm1192_vm0, %v11159_v58  ;;  %v1612_v37 = vadd.f32 %v11548_v38, %v11579_v5  ;;  %v11163_v58 = vld [vmem:[%s11343_s22 + $0x1d8] sm:$0xff]  }
  0xf8   : > { %v10362_v44 = vpop.f32.mrf.mxu1  ;;  %10331 = vmatprep.mubr.msk.bf16.mxu0 %vm1192_vm0, %v11160_v63 }
  0xf9   : > { %v2183_v48 = vadd.f32 %v10362_v44, %v11548_v38  ;;  %v2774_v59 = vmax.f32 %v2172_v47, 0.0  ;;  %v11654_v15 = vpop.f32.mrf.mxu0  ;;  %v11154_v47 = vld [vmem:[%s11343_s22 + $0x3f0] sm:$0xff]  }
  0xfa   : > { %v2174_v50 = vpop.f32.mrf.mxu1 }
  0xfb   : > { %v2777_v53 = vmax.f32 %v2183_v48, 0.0  ;;  %v2175_v54 = vadd.f32 %v11548_v38, %v2174_v50  ;;  %v11658_v22 = vpop.f32.mrf.mxu0 }
  0xfc   : > { %v10365_v55 = vpop.f32.mrf.mxu1  ;;  %10460 = vmatmul.mubr.msk.bf16.gmra.mxu1 %vm1192_vm0, %v11143_v45  ;;  %v1615_v45 = vadd.f32 %v11548_v38, %v11593_v18 }
  0xfd   : > { %v11637_v61 = vpack.c.bf16 %v2777_v53, %v2776_v52  ;;  %v2775_v62 = vmax.f32 %v2175_v54, 0.0  ;;  %10463 = vmatprep.mubr.msk.bf16.mxu1 %vm1192_vm0, %v11146_v49  ;;  %v2196_v4 = vadd.f32 %v10365_v55, %v11548_v38  ;;  %v11665_v31 = vpop.f32.mrf.mxu0  ;;  %v2634_v53 = vmax.f32 %v1612_v37, 0.0 }
  0xfe   : > { %v2187_v1 = vpop.f32.mrf.mxu1  ;;  %v2635_v63 = vmax.f32 %v1615_v45, 0.0 }
  0xff   : > { %v11643_v3 = vpack.c.bf16 %v2775_v62, %v2774_v59  ;;  %v2188_v9 = vadd.f32 %v11548_v38, %v2187_v1  ;;  %v2780_v16 = vmax.f32 %v2196_v4, 0.0  ;;  %v11673_v40 = vpop.f32.mrf.mxu0  ;;  %10332 = vmatmul.mubr.msk.bf16.gmra.mxu0 %vm1192_vm0, %v11161_v24  ;;  %v11164_v1 = vld [vmem:[%s11343_s22 + $0x1e0] sm:$0xff]   ;;  %v1631_v24 = vadd.f32 %v11548_v38, %v11617_v41 }
 0x100   : > { %v10366_v6 = vpop.f32.mrf.mxu1  ;;  %10335 = vmatprep.mubr.msk.bf16.mxu0 %vm1192_vm0, %v11162_v29 }
 0x101   : > { %v2199_v11 = vadd.f32 %v10366_v6, %v11548_v38  ;;  %v2778_v25 = vmax.f32 %v2188_v9, 0.0  ;;  %v11682_v49 = vpop.f32.mrf.mxu0  ;;  %v2639_v45 = vmax.f32 %v1631_v24, 0.0 }
 0x102   : > { %v2190_v14 = vpop.f32.mrf.mxu1 }
 0x103   : > { %v2781_v17 = vmax.f32 %v2199_v11, 0.0  ;;  %v2191_v20 = vadd.f32 %v11548_v38, %v2190_v14  ;;  %v11686_v55 = vpop.f32.mrf.mxu0  ;;  %v11155_v14 = vld [vmem:[%s11343_s22 + $0x3f8] sm:$0xff]  }
 0x104   : > { %v10369_v21 = vpop.f32.mrf.mxu1  ;;  %10464 = vmatmul.mubr.msk.bf16.gmra.mxu1 %vm1192_vm0, %v11147_v7 }
 0x105   : > { %v11661_v26 = vpack.c.bf16 %v2781_v17, %v2780_v16  ;;  %v2779_v27 = vmax.f32 %v2191_v20, 0.0  ;;  %10467 = vmatprep.mubr.msk.bf16.mxu1 %vm1192_vm0, %v11150_v12  ;;  %v2212_v34 = vadd.f32 %v10369_v21, %v11548_v38  ;;  %v11693_v6 = vpop.f32.mrf.mxu0  ;;  %v1628_v12 = vadd.f32 %v11548_v38, %v11606_v28 }
 0x106   : > { %v2203_v30 = vpop.f32.mrf.mxu1  ;;  %v2890_v17 = vpack.c.bf16 %v2635_v63, %v2634_v53  ;;  %v1623_v28 = vadd.f32 %v11583_v10, %v11548_v38 }
 0x107   : > { %v11667_v32 = vpack.c.bf16 %v2779_v27, %v2778_v25  ;;  %v2204_v43 = vadd.f32 %v11548_v38, %v2203_v30  ;;  %v2784_v5 = vmax.f32 %v2212_v34, 0.0  ;;  %v11701_v16 = vpop.f32.mrf.mxu0  ;;  %10336 = vmatmul.mubr.msk.bf16.gmra.mxu0 %vm1192_vm0, %v11163_v58  ;;  %v1620_v25 = vadd.f32 %v11572_v0, %v11548_v38 }
 0x108   : > { %v10370_v35 = vpop.f32.mrf.mxu1  ;;  %10339 = vmatprep.mubr.msk.bf16.mxu0 %vm1192_vm0, %v11164_v1  ;;  %v2638_v37 = vmax.f32 %v1628_v12, 0.0  ;;  %v1636_v12 = vadd.f32 %v11599_v23, %v11548_v38 }
 0x109   : > { %v2215_v44 = vadd.f32 %v10370_v35, %v11548_v38  ;;  %v2782_v18 = vmax.f32 %v2204_v43, 0.0  ;;  %v11713_v29 = vpop.f32.mrf.mxu0  ;;  %v11165_v43 = vld [vmem:[%s11343_s22 + $0x1e8] sm:$0xff]  }
 0x10a   : > { %v2206_v48 = vpop.f32.mrf.mxu1  ;;  %v2892_v63 = vpack.c.bf16 %v2639_v45, %v2638_v37 }
 0x10b   : > { %v2785_v50 = vmax.f32 %v2215_v44, 0.0  ;;  %v2207_v52 = vadd.f32 %v11548_v38, %v2206_v48  ;;  %v11717_v41 = vpop.f32.mrf.mxu0  ;;  %v2636_v48 = vmax.f32 %v1620_v25, 0.0 }
 0x10c   : > { %v10373_v54 = vpop.f32.mrf.mxu1  ;;  %10468 = vmatmul.mubr.msk.bf16.gmra.mxu1 %vm1192_vm0, %v11151_v39 }
 0x10d   : > { %v11689_v59 = vpack.c.bf16 %v2785_v50, %v2784_v5  ;;  %v2783_v62 = vmax.f32 %v2207_v52, 0.0  ;;  %10471 = vmatprep.mubr.msk.bf16.mxu1 %vm1192_vm0, %v11154_v47  ;;  %v2228_v9 = vadd.f32 %v10373_v54, %v11548_v38  ;;  %v11166_v47 = vld [vmem:[%s11343_s22 + $0x1f0] sm:$0xff]   ;;  %v2637_v5 = vmax.f32 %v1623_v28, 0.0  ;;  %v11724_v52 = vpop.f32.mrf.mxu0 }
 0x10e   : > { %v2219_v4 = vpop.f32.mrf.mxu1 }
 0x10f   : > { %v11695_v7 = vpack.c.bf16 %v2783_v62, %v2782_v18  ;;  %v2220_v20 = vadd.f32 %v11548_v38, %v2219_v4  ;;  %v2788_v30 = vmax.f32 %v2228_v9, 0.0  ;;  %v1644_v18 = vadd.f32 %v11548_v38, %v11630_v51  ;;  %v11731_v62 = vpop.f32.mrf.mxu0  ;;  %10340 = vmatmul.mubr.msk.bf16.gmra.mxu0 %vm1192_vm0, %v11165_v43 }
 0x110   : > { %v10374_v11 = vpop.f32.mrf.mxu1  ;;  %v1647_v9 = vadd.f32 %v11548_v38, %v11641_v2  ;;  %10343 = vmatprep.mubr.msk.bf16.mxu0 %vm1192_vm0, %v11166_v47  ;;  %v1639_v51 = vadd.f32 %v11610_v33, %v11548_v38  ;;  %v1660_v47 = vadd.f32 %v11548_v38, %v11654_v15 }
 0x111   : > { %v2231_v21 = vadd.f32 %v10374_v11, %v11548_v38  ;;  %v2786_v0 = vmax.f32 %v2220_v20, 0.0  ;;  %v2891_v11 = vpack.c.bf16 %v2637_v5, %v2636_v48  ;;  %v2642_v25 = vmax.f32 %v1644_v18, 0.0 }
 0x112   : > { %v2222_v27 = vpop.f32.mrf.mxu1  ;;  %v2643_v33 = vmax.f32 %v1647_v9, 0.0  ;;  %v2641_v37 = vmax.f32 %v1639_v51, 0.0  ;;  %v2646_v51 = vmax.f32 %v1660_v47, 0.0  ;;  %v1679_v47 = vadd.f32 %v11548_v38, %v11693_v6 }
 0x113   : > { %v2789_v34 = vmax.f32 %v2231_v21, 0.0  ;;  %v2223_v35 = vadd.f32 %v11548_v38, %v2222_v27  ;;  %v11167_v27 = vld [vmem:[%s11343_s22 + $0x1f8] sm:$0xff]   ;;  %s9236_s22 = sshll.u32 %s15660_s21, 4  ;;  %s15762_s22 = int_to_ptr.vmem [resolvable:$true] %s9236_s22 }
 0x114   : > { %v10377_v39 = vpop.f32.mrf.mxu1  ;;  %10472 = vmatmul.mubr.msk.bf16.gmra.mxu1 %vm1192_vm0, %v11155_v14  ;;  %v2894_v5 = vpack.c.bf16 %v2643_v33, %v2642_v25  ;;  %s11182_s9 = scalar_lea.vmem %s15762_s22, 256  ;;  %p11189_p0 = scmp.lt.s32.totalorder %s15762_s22, %s11187_s14 }
 0x115   : > { %v11720_v44 = vpack.c.bf16 %v2789_v34, %v2788_v30  ;;  %v2787_v10 = vmax.f32 %v2223_v35, 0.0  ;;  %10479 = vmatprep.mubr.msk.bf16.mxu1 %vm3041_vm1, %v2890_v17  ;;  %v2244_v54 = vadd.f32 %v10377_v39, %v11548_v38  ;;  %v11743_v17 = vpop.f32.mrf.mxu0  ;;  %v2640_v35 = vmax.f32 %v1636_v12, 0.0  ;;  %p11183_p11 = scmp.ne.s32.totalorder %s15762_s22, %s11182_s9  ;;  %p11190_p1 = scmp.lt.s32.totalorder %s11188_s16, %s11182_s9 }
 0x116   : > { %v2235_v50 = vpop.f32.mrf.mxu1 }
 0x117   : > { %v11726_v53 = vpack.c.bf16 %v2787_v10, %v2786_v0  ;;  %v2236_v1 = vadd.f32 %v11548_v38, %v2235_v50  ;;  %v2792_v20 = vmax.f32 %v2244_v54, 0.0  ;;  %v11747_v2 = vpop.f32.mrf.mxu0  ;;  %10344 = vmatmul.mubr.msk.bf16.gmra.mxu0 %vm1192_vm0, %v11167_v27  ;;  %v2893_v18 = vpack.c.bf16 %v2641_v37, %v2640_v35  ;;  %p11184_p12 = pnand %p11183_p11, %p11320_p5  ;;  %p11191_p2 = por %p11190_p1, %p11189_p0 }
 0x118   : > { %v10378_v58 = vpop.f32.mrf.mxu1  ;;  %v1676_v35 = vadd.f32 %v11548_v38, %v11682_v49 }
 0x119   : > { %v2247_v4 = vadd.f32 %v10378_v58, %v11548_v38  ;;  %v2790_v30 = vmax.f32 %v2236_v1, 0.0  ;;  %v11753_v43 = vpop.f32.mrf.mxu0  ;;  %v1663_v58 = vadd.f32 %v11548_v38, %v11665_v31  ;;  %v1655_v1 = vadd.f32 %v11634_v57, %v11548_v38  ;;  %p11185_p13 = pneg %p11184_p12 }
 0x11a   : > { %v2238_v14 = vpop.f32.mrf.mxu1 }
 0x11b   : > { %v2793_v21 = vmax.f32 %v2247_v4, 0.0  ;;  %v2239_v24 = vadd.f32 %v11548_v38, %v2238_v14  ;;  %v11760_v48 = vpop.f32.mrf.mxu0  ;;  %v2647_v57 = vmax.f32 %v1663_v58, 0.0  ;;  %v2645_v25 = vmax.f32 %v1655_v1, 0.0  ;;  %p11192_p3 = pnand %p11191_p2, %p11185_p13 }
 0x11c   : > { %v10381_v28 = vpop.f32.mrf.mxu1  ;;  %10480 = vmatmul.mubr.msk.bf16.vlgmr.msra.gmra.mxu1 %vm3041_vm1, %v2891_v11 }
 0x11d   : > { %v11750_v34 = vpack.c.bf16 %v2793_v21, %v2792_v20  ;;  %v2791_v23 = vmax.f32 %v2239_v24, 0.0  ;;  %10483 = vmatprep.mubr.msk.bf16.mxu1 %vm3041_vm1, %v2892_v63  ;;  %v2260_v10 = vadd.f32 %v10381_v28, %v11548_v38  ;;  %v1652_v63 = vadd.f32 %v11623_v46, %v11548_v38  ;;  %v11771_v4 = vpop.f32.mrf.mxu0 }
 0x11e   : > { %v2251_v39 = vpop.f32.mrf.mxu1 }
 0x11f   : > { %v11755_v0 = vpack.c.bf16 %v2791_v23, %v2790_v30  ;;  %v2252_v50 = vadd.f32 %v11548_v38, %v2251_v39  ;;  %v2796_v9 = vmax.f32 %v2260_v10, 0.0  ;;  %v11775_v20 = vpop.f32.mrf.mxu0  ;;  %v2644_v24 = vmax.f32 %v1652_v63, 0.0 }
 0x120   : > { %v10382_v45 = vpop.f32.mrf.mxu1  ;;  %v2896_v39 = vpack.c.bf16 %v2647_v57, %v2646_v51 }
 0x121   : > { %v2263_v54 = vadd.f32 %v10382_v45, %v11548_v38  ;;  %v2794_v31 = vmax.f32 %v2252_v50, 0.0  ;;  %v11780_v27 = vpop.f32.mrf.mxu0  ;;  %v1668_v50 = vadd.f32 %v11647_v8, %v11548_v38 }
 0x122   : > { %v2254_v15 = vpop.f32.mrf.mxu1 }
 0x123   : > { %v2797_v11 = vmax.f32 %v2263_v54, 0.0  ;;  %v2255_v12 = vadd.f32 %v11548_v38, %v2254_v15  ;;  %v11787_v37 = vpop.f32.mrf.mxu0  ;;  %v1671_v54 = vadd.f32 %v11658_v22, %v11548_v38  ;;  %v2650_v15 = vmax.f32 %v1676_v35, 0.0 }
 0x124   : > { %v10385_v14 = vpop.f32.mrf.mxu1  ;;  %10484 = vmatmul.mubr.msk.bf16.gmra.mxu1 %vm3041_vm1, %v2893_v18  ;;  %v2651_v22 = vmax.f32 %v1679_v47, 0.0  ;;  %v2648_v51 = vmax.f32 %v1668_v50, 0.0  ;;  %v1684_v47 = vadd.f32 %v11673_v40, %v11548_v38 }
 0x125   : > { %v11777_v21 = vpack.c.bf16 %v2797_v11, %v2796_v9  ;;  %v2795_v46 = vmax.f32 %v2255_v12, 0.0  ;;  %10487 = vmatprep.mubr.msk.bf16.mxu1 %vm3041_vm1, %v2894_v5  ;;  %v2276_v23 = vadd.f32 %v10385_v14, %v11548_v38  ;;  %v2895_v5 = vpack.c.bf16 %v2645_v25, %v2644_v24  ;;  %v11797_v18 = vpop.f32.mrf.mxu0 }
 0x126   : > { %v2267_v28 = vpop.f32.mrf.mxu1  ;;  %v2649_v14 = vmax.f32 %v1671_v54, 0.0 }
 0x127   : > { %v11782_v30 = vpack.c.bf16 %v2795_v46, %v2794_v31  ;;  %v2268_v10 = vadd.f32 %v11548_v38, %v2267_v28  ;;  %v2800_v49 = vmax.f32 %v2276_v23, 0.0  ;;  %v11801_v11 = vpop.f32.mrf.mxu0  ;;  %v1692_v28 = vadd.f32 %v11548_v38, %v11713_v29 }
 0x128   : > { %v10386_v33 = vpop.f32.mrf.mxu1 }
 0x129   : > { %v2279_v45 = vadd.f32 %v10386_v33, %v11548_v38  ;;  %v2798_v6 = vmax.f32 %v2268_v10, 0.0  ;;  %v11806_v46 = vpop.f32.mrf.mxu0  ;;  %v2898_v33 = vpack.c.bf16 %v2651_v22, %v2650_v15  ;;  %v1695_v10 = vadd.f32 %v11548_v38, %v11724_v52 }
 0x12a   : > { %v2270_v58 = vpop.f32.mrf.mxu1 }
 0x12b   : > { %v2801_v63 = vmax.f32 %v2279_v45, 0.0  ;;  %v2271_v1 = vadd.f32 %v11548_v38, %v2270_v58  ;;  %v11813_v23 = vpop.f32.mrf.mxu0  ;;  %v2897_v45 = vpack.c.bf16 %v2649_v14, %v2648_v51 }
 0x12c   : > { %v10389_v9 = vpop.f32.mrf.mxu1  ;;  %10488 = vmatmul.mubr.msk.bf16.gmra.mxu1 %vm3041_vm1, %v2895_v5  ;;  %v1687_v5 = vadd.f32 %v11686_v55, %v11548_v38  ;;  %v2655_v55 = vmax.f32 %v1695_v10, 0.0  ;;  %v1711_v10 = vadd.f32 %v11548_v38, %v11753_v43 }
 0x12d   : > { %v11803_v12 = vpack.c.bf16 %v2801_v63, %v2800_v49  ;;  %v2799_v8 = vmax.f32 %v2271_v1, 0.0  ;;  %10491 = vmatprep.mubr.msk.bf16.mxu1 %vm3041_vm1, %v2896_v39  ;;  %v2292_v24 = vadd.f32 %v10389_v9, %v11548_v38  ;;  %v11823_v54 = vpop.f32.mrf.mxu0  ;;  %v2654_v63 = vmax.f32 %v1692_v28, 0.0 }
 0x12e   : > { %v2283_v31 = vpop.f32.mrf.mxu1 }
 0x12f   : > { %v11808_v57 = vpack.c.bf16 %v2799_v8, %v2798_v6  ;;  %v2284_v35 = vadd.f32 %v11548_v38, %v2283_v31  ;;  %v2804_v29 = vmax.f32 %v2292_v24, 0.0  ;;  %v11827_v15 = vpop.f32.mrf.mxu0  ;;  %v2652_v6 = vmax.f32 %v1684_v47, 0.0 }
 0x130   : > { %v10390_v25 = vpop.f32.mrf.mxu1  ;;  %v2653_v8 = vmax.f32 %v1687_v5, 0.0  ;;  %v1700_v47 = vadd.f32 %v11701_v16, %v11548_v38  ;;  %v1703_v5 = vadd.f32 %v11717_v41, %v11548_v38  ;;  %v2659_v41 = vmax.f32 %v1711_v10, 0.0 }
 0x131   : > { %v2295_v39 = vadd.f32 %v10390_v25, %v11548_v38  ;;  %v2802_v52 = vmax.f32 %v2284_v35, 0.0  ;;  %v11832_v51 = vpop.f32.mrf.mxu0  ;;  %v1708_v25 = vadd.f32 %v11548_v38, %v11743_v17  ;;  %v2900_v35 = vpack.c.bf16 %v2655_v55, %v2654_v63 }
 0x132   : > { %v2286_v50 = vpop.f32.mrf.mxu1  ;;  %v2656_v55 = vmax.f32 %v1700_v47, 0.0  ;;  %v1727_v10 = vadd.f32 %v11548_v38, %v11780_v27 }
 0x133   : > { %v2805_v58 = vmax.f32 %v2295_v39, 0.0  ;;  %v2287_v49 = vadd.f32 %v11548_v38, %v2286_v50  ;;  %v11839_v28 = vpop.f32.mrf.mxu0  ;;  %v2658_v63 = vmax.f32 %v1708_v25, 0.0 }
 0x134   : > { %v10393_v1 = vpop.f32.mrf.mxu1  ;;  %10492 = vmatmul.mubr.msk.bf16.gmra.mxu1 %vm3041_vm1, %v2897_v45  ;;  %v2899_v45 = vpack.c.bf16 %v2653_v8, %v2652_v6  ;;  %v2657_v6 = vmax.f32 %v1703_v5, 0.0  ;;  %v1716_v5 = vadd.f32 %v11731_v62, %v11548_v38 }
 0x135   : > { %v11829_v9 = vpack.c.bf16 %v2805_v58, %v2804_v29  ;;  %v2803_v40 = vmax.f32 %v2287_v49, 0.0  ;;  %10495 = vmatprep.mubr.msk.bf16.mxu1 %vm3041_vm1, %v2898_v33  ;;  %v2308_v31 = vadd.f32 %v10393_v1, %v11548_v38  ;;  %v11849_v29 = vpop.f32.mrf.mxu0 }
 0x136   : > { %v2299_v22 = vpop.f32.mrf.mxu1  ;;  %v2901_v47 = vpack.c.bf16 %v2657_v6, %v2656_v55  ;;  %v2660_v6 = vmax.f32 %v1716_v5, 0.0 }
 0x137   : > { %v11834_v14 = vpack.c.bf16 %v2803_v40, %v2802_v52  ;;  %v2300_v39 = vadd.f32 %v11548_v38, %v2299_v22  ;;  %v2808_v17 = vmax.f32 %v2308_v31, 0.0  ;;  %v11853_v52 = vpop.f32.mrf.mxu0 }
 0x138   : > { %v10394_v24 = vpop.f32.mrf.mxu1 }
 0x139   : > { %v2311_v33 = vadd.f32 %v10394_v24, %v11548_v38  ;;  %v2806_v43 = vmax.f32 %v2300_v39, 0.0  ;;  %v11858_v22 = vpop.f32.mrf.mxu0 }
 0x13a   : > { %v2302_v50 = vpop.f32.mrf.mxu1 }
 0x13b   : > { %v2809_v58 = vmax.f32 %v2311_v33, 0.0  ;;  %v2303_v49 = vadd.f32 %v11548_v38, %v2302_v50  ;;  %v1724_v33 = vadd.f32 %v11548_v38, %v11771_v4  ;;  %v11865_v39 = vpop.f32.mrf.mxu0 }
 0x13c   : > { %v10397_v1 = vpop.f32.mrf.mxu1  ;;  %10496 = vmatmul.mubr.msk.bf16.gmra.mxu1 %vm3041_vm1, %v2899_v45  ;;  %v2902_v45 = vpack.c.bf16 %v2659_v41, %v2658_v63 }
 0x13d   : > { %v11855_v40 = vpack.c.bf16 %v2809_v58, %v2808_v17  ;;  %v2807_v16 = vmax.f32 %v2303_v49, 0.0  ;;  %10499 = vmatprep.mubr.msk.bf16.mxu1 %vm3041_vm1, %v2900_v35  ;;  %v2324_v24 = vadd.f32 %v10397_v1, %v11548_v38  ;;  %v1719_v17 = vadd.f32 %v11747_v2, %v11548_v38  ;;  %v11875_v49 = vpop.f32.mrf.mxu0 }
 0x13e   : > { %v2315_v8 = vpop.f32.mrf.mxu1  ;;  %v2663_v2 = vmax.f32 %v1727_v10, 0.0  ;;  %v1743_v10 = vadd.f32 %v11548_v38, %v11806_v46 }
 0x13f   : > { %v11860_v31 = vpack.c.bf16 %v2807_v16, %v2806_v43  ;;  %v2316_v50 = vadd.f32 %v11548_v38, %v2315_v8  ;;  %v2812_v4 = vmax.f32 %v2324_v24, 0.0  ;;  %v2662_v43 = vmax.f32 %v1724_v33, 0.0  ;;  %v11879_v41 = vpop.f32.mrf.mxu0 }
 0x140   : > { %v10398_v25 = vpop.f32.mrf.mxu1  ;;  %v2661_v8 = vmax.f32 %v1719_v17, 0.0  ;;  %v1732_v17 = vadd.f32 %v11760_v48, %v11548_v38 }
 0x141   : > { %v2327_v35 = vadd.f32 %v10398_v25, %v11548_v38  ;;  %v2810_v27 = vmax.f32 %v2316_v50, 0.0  ;;  %v11884_v24 = vpop.f32.mrf.mxu0 }
 0x142   : > { %v2318_v58 = vpop.f32.mrf.mxu1  ;;  %v2903_v5 = vpack.c.bf16 %v2661_v8, %v2660_v6  ;;  %v2664_v8 = vmax.f32 %v1732_v17, 0.0 }
 0x143   : > { %v2813_v1 = vmax.f32 %v2327_v35, 0.0  ;;  %v2319_v63 = vadd.f32 %v11548_v38, %v2318_v58  ;;  %v11891_v50 = vpop.f32.mrf.mxu0 }
 0x144   : > { %v10401_v16 = vpop.f32.mrf.mxu1  ;;  %10500 = vmatmul.mubr.msk.bf16.gmra.mxu1 %vm3041_vm1, %v2901_v47  ;;  %v1740_v47 = vadd.f32 %v11548_v38, %v11797_v18 }
 0x145   : > { %v11881_v55 = vpack.c.bf16 %v2813_v1, %v2812_v4  ;;  %v2811_v62 = vmax.f32 %v2319_v63, 0.0  ;;  %10503 = vmatprep.mubr.msk.bf16.mxu1 %vm3041_vm1, %v2902_v45  ;;  %v2340_v33 = vadd.f32 %v10401_v16, %v11548_v38  ;;  %v2904_v4 = vpack.c.bf16 %v2663_v2, %v2662_v43 }
 0x146   : > { %v2331_v25 = vpop.f32.mrf.mxu1  ;;  %v1735_v63 = vadd.f32 %v11775_v20, %v11548_v38  ;;  %v2666_v2 = vmax.f32 %v1740_v47, 0.0  ;;  %v2667_v20 = vmax.f32 %v1743_v10, 0.0  ;;  %v1759_v10 = vadd.f32 %v11548_v38, %v11832_v51 }
 0x147   : > { %15814 = vst [vmem:[#allocation5_spill] sm:$0xff] %v11881_v55  ;;  %v11886_v35 = vpack.c.bf16 %v2811_v62, %v2810_v27  ;;  %v2332_v1 = vadd.f32 %v11548_v38, %v2331_v25  ;;  %v11901_v27 = vpop.f32.mrf.mxu0  ;;  %v2816_v18 = vmax.f32 %v2340_v33, 0.0 }
 0x148   : > { %v10402_v58 = vpop.f32.mrf.mxu1  ;;  %v2665_v55 = vmax.f32 %v1735_v63, 0.0  ;;  %v1748_v63 = vadd.f32 %v11787_v37, %v11548_v38 }
 0x149   : > { %15815 = vst [vmem:[#allocation6_spill] sm:$0xff] %v11886_v35  ;;  %v2343_v45 = vadd.f32 %v10402_v58, %v11548_v38  ;;  %v11905_v58 = vpop.f32.mrf.mxu0  ;;  %v2814_v46 = vmax.f32 %v2332_v1, 0.0 }
 0x14a   : > { %v2334_v16 = vpop.f32.mrf.mxu1  ;;  %v2905_v17 = vpack.c.bf16 %v2665_v55, %v2664_v8  ;;  %v2668_v8 = vmax.f32 %v1748_v63, 0.0 }
 0x14b   : > { %v2817_v62 = vmax.f32 %v2343_v45, 0.0  ;;  %v2335_v43 = vadd.f32 %v11548_v38, %v2334_v16  ;;  %v11910_v33 = vpop.f32.mrf.mxu0 }
 0x14c   : > { %v10405_v25 = vpop.f32.mrf.mxu1  ;;  %10504 = vmatmul.mubr.msk.bf16.gmra.mxu1 %vm3041_vm1, %v2903_v5  ;;  %v1756_v5 = vadd.f32 %v11548_v38, %v11823_v54 }
 0x14d   : > { %v11907_v6 = vpack.c.bf16 %v2817_v62, %v2816_v18  ;;  %v2815_v48 = vmax.f32 %v2335_v43, 0.0  ;;  %10507 = vmatprep.mubr.msk.bf16.mxu1 %vm3041_vm1, %v2904_v4  ;;  %v2356_v47 = vadd.f32 %v10405_v25, %v11548_v38  ;;  %v11917_v1 = vpop.f32.mrf.mxu0  ;;  %v2906_v18 = vpack.c.bf16 %v2667_v20, %v2666_v2 }
 0x14e   : > { %v2347_v35 = vpop.f32.mrf.mxu1  ;;  %v1751_v43 = vadd.f32 %v11801_v11, %v11548_v38  ;;  %v2671_v11 = vmax.f32 %v1759_v10, 0.0  ;;  %v1775_v10 = vadd.f32 %v11548_v38, %v11858_v22 }
 0x14f   : > { %15816 = vst [vmem:[#allocation7_spill] sm:$0xff] %v11907_v6  ;;  %v11912_v45 = vpack.c.bf16 %v2815_v48, %v2814_v46  ;;  %v2348_v62 = vadd.f32 %v11548_v38, %v2347_v35  ;;  %v11927_v46 = vpop.f32.mrf.mxu0  ;;  %v2820_v54 = vmax.f32 %v2356_v47, 0.0  ;;  %v2670_v35 = vmax.f32 %v1756_v5, 0.0 }
 0x150   : > { %v10406_v16 = vpop.f32.mrf.mxu1  ;;  %v2669_v6 = vmax.f32 %v1751_v43, 0.0  ;;  %v1764_v43 = vadd.f32 %v11813_v23, %v11548_v38 }
 0x151   : > { %15817 = vst [vmem:[#allocation8_spill] sm:$0xff] %v11912_v45  ;;  %v2359_v4 = vadd.f32 %v10406_v16, %v11548_v38  ;;  %v11931_v16 = vpop.f32.mrf.mxu0  ;;  %v2818_v51 = vmax.f32 %v2348_v62, 0.0 }
 0x152   : > { %v2350_v25 = vpop.f32.mrf.mxu1  ;;  %v2907_v63 = vpack.c.bf16 %v2669_v6, %v2668_v8  ;;  %v2672_v8 = vmax.f32 %v1764_v43, 0.0 }
 0x153   : > { %v2821_v48 = vmax.f32 %v2359_v4, 0.0  ;;  %v2351_v2 = vadd.f32 %v11548_v38, %v2350_v25  ;;  %v11936_v47 = vpop.f32.mrf.mxu0 }
 0x154   : > { %v10409_v20 = vpop.f32.mrf.mxu1  ;;  %10508 = vmatmul.mubr.msk.bf16.gmra.mxu1 %vm3041_vm1, %v2905_v17  ;;  %v1772_v17 = vadd.f32 %v11548_v38, %v11849_v29 }
 0x155   : > { %v11933_v55 = vpack.c.bf16 %v2821_v48, %v2820_v54  ;;  %v2819_v37 = vmax.f32 %v2351_v2, 0.0  ;;  %10511 = vmatprep.mubr.msk.bf16.mxu1 %vm3041_vm1, %v2906_v18  ;;  %v2372_v5 = vadd.f32 %v10409_v20, %v11548_v38  ;;  %v11943_v62 = vpop.f32.mrf.mxu0  ;;  %v2908_v54 = vpack.c.bf16 %v2671_v11, %v2670_v35 }
 0x156   : > { %v2363_v45 = vpop.f32.mrf.mxu1  ;;  %v1767_v2 = vadd.f32 %v11827_v15, %v11548_v38  ;;  %v2675_v15 = vmax.f32 %v1775_v10, 0.0  ;;  %v1791_v10 = vadd.f32 %v11548_v38, %v11884_v24 }
 0x157   : > { %15818 = vst [vmem:[#allocation9_spill] sm:$0xff] %v11933_v55  ;;  %v11938_v4 = vpack.c.bf16 %v2819_v37, %v2818_v51  ;;  %v2364_v48 = vadd.f32 %v11548_v38, %v2363_v45  ;;  %v11953_v51 = vpop.f32.mrf.mxu0  ;;  %v2824_v29 = vmax.f32 %v2372_v5, 0.0  ;;  %v2674_v45 = vmax.f32 %v1772_v17, 0.0 }
 0x158   : > { %v10410_v25 = vpop.f32.mrf.mxu1  ;;  %v2673_v55 = vmax.f32 %v1767_v2, 0.0  ;;  %v1780_v2 = vadd.f32 %v11839_v28, %v11548_v38 }
 0x159   : > { %15819 = vst [vmem:[#allocation10_spill] sm:$0xff] %v11938_v4  ;;  %v2375_v18 = vadd.f32 %v10410_v25, %v11548_v38  ;;  %v11957_v25 = vpop.f32.mrf.mxu0  ;;  %v2822_v22 = vmax.f32 %v2364_v48, 0.0 }
 0x15a   : > { %v2366_v20 = vpop.f32.mrf.mxu1  ;;  %v2909_v43 = vpack.c.bf16 %v2673_v55, %v2672_v8  ;;  %v2676_v8 = vmax.f32 %v1780_v2, 0.0 }
 0x15b   : > { %v2825_v37 = vmax.f32 %v2375_v18, 0.0  ;;  %v2367_v35 = vadd.f32 %v11548_v38, %v2366_v20  ;;  %v11962_v5 = vpop.f32.mrf.mxu0 }
 0x15c   : > { %v10413_v11 = vpop.f32.mrf.mxu1  ;;  %10512 = vmatmul.mubr.msk.bf16.gmra.mxu1 %vm3041_vm1, %v2907_v63  ;;  %v1788_v63 = vadd.f32 %v11548_v38, %v11875_v49 }
 0x15d   : > { %v11959_v6 = vpack.c.bf16 %v2825_v37, %v2824_v29  ;;  %v2823_v23 = vmax.f32 %v2367_v35, 0.0  ;;  %10515 = vmatprep.mubr.msk.bf16.mxu1 %vm3041_vm1, %v2908_v54  ;;  %v2388_v17 = vadd.f32 %v10413_v11, %v11548_v38  ;;  %v11969_v48 = vpop.f32.mrf.mxu0  ;;  %v2910_v29 = vpack.c.bf16 %v2675_v15, %v2674_v45 }
 0x15e   : > { %v2379_v4 = vpop.f32.mrf.mxu1  ;;  %v1783_v35 = vadd.f32 %v11853_v52, %v11548_v38  ;;  %v2679_v52 = vmax.f32 %v1791_v10, 0.0  ;;  %v12002_v10 = vld [vmem:[%s15806_s2] ss:$0 sm:$0xff] }
 0x15f   : > { %15820 = vst [vmem:[#allocation11_spill] sm:$0xff] %v11959_v6  ;;  %v11964_v18 = vpack.c.bf16 %v2823_v23, %v2822_v22  ;;  %v2380_v37 = vadd.f32 %v11548_v38, %v2379_v4  ;;  %v11979_v22 = vpop.f32.mrf.mxu0  ;;  %v2828_v49 = vmax.f32 %v2388_v17, 0.0  ;;  %v2678_v4 = vmax.f32 %v1788_v63, 0.0 }
 0x160   : > { %v10414_v20 = vpop.f32.mrf.mxu1  ;;  %v2677_v6 = vmax.f32 %v1783_v35, 0.0  ;;  %v1807_v2 = vadd.f32 %v12002_v10, %v11910_v33 }
 0x161   : > { %15821 = vst [vmem:[#allocation12_spill] sm:$0xff] %v11964_v18  ;;  %v2391_v54 = vadd.f32 %v10414_v20, %v11548_v38  ;;  %v11983_v20 = vpop.f32.mrf.mxu0  ;;  %v2826_v24 = vmax.f32 %v2380_v37, 0.0 }
 0x162   : > { %v2382_v11 = vpop.f32.mrf.mxu1  ;;  %v2911_v35 = vpack.c.bf16 %v2677_v6, %v2676_v8 }
 0x163   : > { %v2829_v23 = vmax.f32 %v2391_v54, 0.0  ;;  %v2383_v45 = vadd.f32 %v11548_v38, %v2382_v11  ;;  %v11988_v17 = vpop.f32.mrf.mxu0 }
 0x164   : > { %v10417_v15 = vpop.f32.mrf.mxu1  ;;  %10516 = vmatmul.mubr.msk.bf16.gmra.mxu1 %vm3041_vm1, %v2909_v43  ;;  %v1804_v43 = vadd.f32 %v11548_v38, %v11901_v27  ;;  %v1799_v27 = vadd.f32 %v12002_v10, %v11879_v41  ;;  %v2683_v41 = vmax.f32 %v1807_v2, 0.0  ;;  %v1823_v2 = vadd.f32 %v12002_v10, %v11936_v47 }
 0x165   : > { %v11985_v55 = vpack.c.bf16 %v2829_v23, %v2828_v49  ;;  %v2827_v28 = vmax.f32 %v2383_v45, 0.0  ;;  %10519 = vmatprep.mubr.msk.bf16.mxu1 %vm3041_vm1, %v2910_v29  ;;  %v2404_v63 = vadd.f32 %v10417_v15, %v11548_v38  ;;  %v11995_v37 = vpop.f32.mrf.mxu0  ;;  %v2912_v49 = vpack.c.bf16 %v2679_v52, %v2678_v4 }
 0x166   : > { %v2395_v18 = vpop.f32.mrf.mxu1  ;;  %v1796_v45 = vadd.f32 %v12002_v10, %v11865_v39 }
 0x167   : > { %15822 = vst [vmem:[#allocation13_spill] sm:$0xff] %v11985_v55  ;;  %v11990_v54 = vpack.c.bf16 %v2827_v28, %v2826_v24  ;;  %v2396_v23 = vadd.f32 %v11548_v38, %v2395_v18  ;;  %v12010_v15 = vpop.f32.mrf.mxu0  ;;  %v2832_v18 = vmax.f32 %v2404_v63, 0.0  ;;  %v2682_v28 = vmax.f32 %v1804_v43, 0.0 }
 0x168   : > { %v10418_v11 = vpop.f32.mrf.mxu1  ;;  %v2680_v8 = vmax.f32 %v1796_v45, 0.0  ;;  %v2681_v55 = vmax.f32 %v1799_v27, 0.0  ;;  %v1812_v27 = vadd.f32 %v12002_v10, %v11891_v50 }
 0x169   : > { %15823 = vst [vmem:[#allocation14_spill] sm:$0xff] %v11990_v54  ;;  %v2407_v29 = vadd.f32 %v10418_v11, %v11548_v38  ;;  %v12014_v11 = vpop.f32.mrf.mxu0  ;;  %v2830_v33 = vmax.f32 %v2396_v23, 0.0 }
 0x16a   : > { %v2398_v4 = vpop.f32.mrf.mxu1  ;;  %v2913_v45 = vpack.c.bf16 %v2681_v55, %v2680_v8  ;;  %v2684_v8 = vmax.f32 %v1812_v27, 0.0 }
 0x16b   : > { %v2833_v38 = vmax.f32 %v2407_v29, 0.0  ;;  %v2399_v24 = vadd.f32 %v12002_v10, %v2398_v4  ;;  %v12019_v63 = vpop.f32.mrf.mxu0 }
 0x16c   : > { %v10421_v52 = vpop.f32.mrf.mxu1  ;;  %10520 = vmatmul.mubr.msk.bf16.gmra.mxu1 %vm3041_vm1, %v2911_v35  ;;  %v1820_v35 = vadd.f32 %v12002_v10, %v11927_v46 }
 0x16d   : > { %v12016_v6 = vpack.c.bf16 %v2833_v38, %v2832_v18  ;;  %v2831_v39 = vmax.f32 %v2399_v24, 0.0  ;;  %10523 = vmatprep.mubr.msk.bf16.mxu1 %vm3041_vm1, %v2912_v49  ;;  %v2420_v43 = vadd.f32 %v12002_v10, %v10421_v52  ;;  %v12026_v23 = vpop.f32.mrf.mxu0  ;;  %v2914_v18 = vpack.c.bf16 %v2683_v41, %v2682_v28 }
 0x16e   : > { %v2411_v54 = vpop.f32.mrf.mxu1  ;;  %v1815_v24 = vadd.f32 %v12002_v10, %v11905_v58  ;;  %v2687_v58 = vmax.f32 %v1823_v2, 0.0  ;;  %v1839_v2 = vadd.f32 %v12002_v10, %v11962_v5 }
 0x16f   : > { %15824 = vst [vmem:[#allocation15_spill] sm:$0xff] %v12016_v6  ;;  %v12021_v29 = vpack.c.bf16 %v2831_v39, %v2830_v33  ;;  %v2412_v38 = vadd.f32 %v12002_v10, %v2411_v54  ;;  %v12036_v33 = vpop.f32.mrf.mxu0  ;;  %v2836_v46 = vmax.f32 %v2420_v43, 0.0  ;;  %v2686_v54 = vmax.f32 %v1820_v35, 0.0 }
 0x170   : > { %v10422_v4 = vpop.f32.mrf.mxu1  ;;  %v2685_v6 = vmax.f32 %v1815_v24, 0.0  ;;  %v1828_v24 = vadd.f32 %v12002_v10, %v11917_v1 }
 0x171   : > { %15825 = vst [vmem:[#allocation16_spill] sm:$0xff] %v12021_v29  ;;  %v2423_v49 = vadd.f32 %v12002_v10, %v10422_v4  ;;  %v12040_v4 = vpop.f32.mrf.mxu0  ;;  %v2834_v47 = vmax.f32 %v2412_v38, 0.0 }
 0x172   : > { %v2414_v52 = vpop.f32.mrf.mxu1  ;;  %v2915_v27 = vpack.c.bf16 %v2685_v6, %v2684_v8  ;;  %v2688_v8 = vmax.f32 %v1828_v24, 0.0 }
 0x173   : > { %v2837_v39 = vmax.f32 %v2423_v49, 0.0  ;;  %v2415_v28 = vadd.f32 %v12002_v10, %v2414_v52  ;;  %v12045_v43 = vpop.f32.mrf.mxu0 }
 0x174   : > { %v10425_v41 = vpop.f32.mrf.mxu1  ;;  %10524 = vmatmul.mubr.msk.bf16.gmra.mxu1 %vm3041_vm1, %v2913_v45  ;;  %v1836_v45 = vadd.f32 %v12002_v10, %v11953_v51 }
 0x175   : > { %v12042_v55 = vpack.c.bf16 %v2837_v39, %v2836_v46  ;;  %v2835_v50 = vmax.f32 %v2415_v28, 0.0  ;;  %10527 = vmatprep.mubr.msk.bf16.mxu1 %vm3041_vm1, %v2914_v18  ;;  %v2436_v35 = vadd.f32 %v12002_v10, %v10425_v41  ;;  %v12052_v38 = vpop.f32.mrf.mxu0  ;;  %v2916_v46 = vpack.c.bf16 %v2687_v58, %v2686_v54 }
 0x176   : > { %v2427_v29 = vpop.f32.mrf.mxu1  ;;  %v1831_v28 = vadd.f32 %v12002_v10, %v11931_v16  ;;  %v2691_v16 = vmax.f32 %v1839_v2, 0.0  ;;  %v1855_v2 = vadd.f32 %v12002_v10, %v11988_v17 }
 0x177   : > { %15826 = vst [vmem:[#allocation17_spill] sm:$0xff] %v12042_v55  ;;  %v12047_v49 = vpack.c.bf16 %v2835_v50, %v2834_v47  ;;  %v2428_v39 = vadd.f32 %v12002_v10, %v2427_v29  ;;  %v12062_v47 = vpop.f32.mrf.mxu0  ;;  %v2840_v51 = vmax.f32 %v2436_v35, 0.0  ;;  %v2690_v29 = vmax.f32 %v1836_v45, 0.0 }
 0x178   : > { %v10426_v52 = vpop.f32.mrf.mxu1  ;;  %v2689_v55 = vmax.f32 %v1831_v28, 0.0  ;;  %v1844_v28 = vadd.f32 %v12002_v10, %v11943_v62 }
 0x179   : > { %15827 = vst [vmem:[#allocation18_spill] sm:$0xff] %v12047_v49  ;;  %v2439_v18 = vadd.f32 %v12002_v10, %v10426_v52  ;;  %v12066_v52 = vpop.f32.mrf.mxu0  ;;  %v2838_v5 = vmax.f32 %v2428_v39, 0.0 }
 0x17a   : > { %v2430_v41 = vpop.f32.mrf.mxu1  ;;  %v2917_v24 = vpack.c.bf16 %v2689_v55, %v2688_v8  ;;  %v2692_v8 = vmax.f32 %v1844_v28, 0.0 }
 0x17b   : > { %v2841_v50 = vmax.f32 %v2439_v18, 0.0  ;;  %v2431_v54 = vadd.f32 %v12002_v10, %v2430_v41  ;;  %v12071_v35 = vpop.f32.mrf.mxu0 }
 0x17c   : > { %v10429_v58 = vpop.f32.mrf.mxu1  ;;  %10528 = vmatmul.mubr.msk.bf16.gmra.mxu1 %vm3041_vm1, %v2915_v27  ;;  %v1852_v27 = vadd.f32 %v12002_v10, %v11979_v22 }
 0x17d   : > { %v12068_v6 = vpack.c.bf16 %v2841_v50, %v2840_v51  ;;  %v2839_v1 = vmax.f32 %v2431_v54, 0.0  ;;  %10531 = vmatprep.mubr.msk.bf16.mxu1 %vm3041_vm1, %v2916_v46  ;;  %v2452_v45 = vadd.f32 %v12002_v10, %v10429_v58  ;;  %v12078_v39 = vpop.f32.mrf.mxu0  ;;  %v2918_v51 = vpack.c.bf16 %v2691_v16, %v2690_v29 }
 0x17e   : > { %v2443_v49 = vpop.f32.mrf.mxu1  ;;  %v1847_v54 = vadd.f32 %v12002_v10, %v11957_v25  ;;  %v2695_v25 = vmax.f32 %v1855_v2, 0.0  ;;  %v1871_v2 = vadd.f32 %v12002_v10, %v12019_v63 }
 0x17f   : > { %15828 = vst [vmem:[#allocation19_spill] sm:$0xff] %v12068_v6  ;;  %v12073_v18 = vpack.c.bf16 %v2839_v1, %v2838_v5  ;;  %v2444_v50 = vadd.f32 %v12002_v10, %v2443_v49  ;;  %v12088_v5 = vpop.f32.mrf.mxu0  ;;  %v2844_v22 = vmax.f32 %v2452_v45, 0.0  ;;  %v2694_v49 = vmax.f32 %v1852_v27, 0.0 }
 0x180   : > { %v10430_v41 = vpop.f32.mrf.mxu1  ;;  %v2693_v6 = vmax.f32 %v1847_v54, 0.0  ;;  %v1860_v54 = vadd.f32 %v12002_v10, %v11969_v48 }
 0x181   : > { %15829 = vst [vmem:[#allocation20_spill] sm:$0xff] %v12073_v18  ;;  %v2455_v46 = vadd.f32 %v12002_v10, %v10430_v41  ;;  %v12092_v41 = vpop.f32.mrf.mxu0  ;;  %v2842_v17 = vmax.f32 %v2444_v50, 0.0 }
 0x182   : > { %v2446_v58 = vpop.f32.mrf.mxu1  ;;  %v2919_v28 = vpack.c.bf16 %v2693_v6, %v2692_v8  ;;  %v2696_v8 = vmax.f32 %v1860_v54, 0.0 }
 0x183   : > { %v2845_v1 = vmax.f32 %v2455_v46, 0.0  ;;  %v2447_v29 = vadd.f32 %v12002_v10, %v2446_v58  ;;  %v12097_v45 = vpop.f32.mrf.mxu0 }
 0x184   : > { %v10433_v16 = vpop.f32.mrf.mxu1  ;;  %10532 = vmatmul.mubr.msk.bf16.gmra.mxu1 %vm3041_vm1, %v2917_v24  ;;  %v1868_v24 = vadd.f32 %v12002_v10, %v12010_v15 }
 0x185   : > { %v12094_v55 = vpack.c.bf16 %v2845_v1, %v2844_v22  ;;  %v2843_v62 = vmax.f32 %v2447_v29, 0.0  ;;  %10535 = vmatprep.mubr.msk.bf16.mxu1 %vm3041_vm1, %v2918_v51  ;;  %v2468_v27 = vadd.f32 %v12002_v10, %v10433_v16  ;;  %v12104_v50 = vpop.f32.mrf.mxu0  ;;  %v2920_v22 = vpack.c.bf16 %v2695_v25, %v2694_v49 }
 0x186   : > { %v2459_v18 = vpop.f32.mrf.mxu1  ;;  %v1863_v29 = vadd.f32 %v12002_v10, %v11983_v20  ;;  %v2699_v20 = vmax.f32 %v1871_v2, 0.0  ;;  %v1887_v2 = vadd.f32 %v12002_v10, %v12045_v43 }
 0x187   : > { %15830 = vst [vmem:[#allocation21_spill] sm:$0xff] %v12094_v55  ;;  %v12099_v46 = vpack.c.bf16 %v2843_v62, %v2842_v17  ;;  %v2460_v1 = vadd.f32 %v12002_v10, %v2459_v18  ;;  %v12114_v17 = vpop.f32.mrf.mxu0  ;;  %v2848_v15 = vmax.f32 %v2468_v27, 0.0  ;;  %v2698_v18 = vmax.f32 %v1868_v24, 0.0 }
 0x188   : > { %v10434_v58 = vpop.f32.mrf.mxu1  ;;  %v2697_v55 = vmax.f32 %v1863_v29, 0.0  ;;  %v1876_v29 = vadd.f32 %v12002_v10, %v11995_v37 }
 0x189   : > { %15831 = vst [vmem:[#allocation22_spill] sm:$0xff] %v12099_v46  ;;  %v2471_v51 = vadd.f32 %v12002_v10, %v10434_v58  ;;  %v12118_v58 = vpop.f32.mrf.mxu0  ;;  %v2846_v63 = vmax.f32 %v2460_v1, 0.0 }
 0x18a   : > { %v2462_v16 = vpop.f32.mrf.mxu1  ;;  %v2921_v54 = vpack.c.bf16 %v2697_v55, %v2696_v8  ;;  %v2700_v8 = vmax.f32 %v1876_v29, 0.0 }
 0x18b   : > { %v2849_v62 = vmax.f32 %v2471_v51, 0.0  ;;  %v2463_v49 = vadd.f32 %v12002_v10, %v2462_v16  ;;  %v12123_v27 = vpop.f32.mrf.mxu0 }
 0x18c   : > { %v10437_v25 = vpop.f32.mrf.mxu1  ;;  %10536 = vmatmul.mubr.msk.bf16.gmra.mxu1 %vm3041_vm1, %v2919_v28  ;;  %v1884_v28 = vadd.f32 %v12002_v10, %v12036_v33 }
 0x18d   : > { %v12120_v6 = vpack.c.bf16 %v2849_v62, %v2848_v15  ;;  %v2847_v48 = vmax.f32 %v2463_v49, 0.0  ;;  %10539 = vmatprep.mubr.msk.bf16.mxu1 %vm3041_vm1, %v2920_v22  ;;  %v2484_v24 = vadd.f32 %v12002_v10, %v10437_v25  ;;  %v12130_v1 = vpop.f32.mrf.mxu0  ;;  %v2922_v15 = vpack.c.bf16 %v2699_v20, %v2698_v18 }
 0x18e   : > { %v2475_v46 = vpop.f32.mrf.mxu1  ;;  %v1879_v49 = vadd.f32 %v12002_v10, %v12014_v11  ;;  %v2703_v11 = vmax.f32 %v1887_v2, 0.0  ;;  %v1903_v2 = vadd.f32 %v12002_v10, %v12071_v35 }
 0x18f   : > { %15832 = vst [vmem:[#allocation23_spill] sm:$0xff] %v12120_v6  ;;  %v12125_v51 = vpack.c.bf16 %v2847_v48, %v2846_v63  ;;  %v2476_v62 = vadd.f32 %v12002_v10, %v2475_v46  ;;  %v12140_v63 = vpop.f32.mrf.mxu0  ;;  %v2852_v33 = vmax.f32 %v2484_v24, 0.0  ;;  %v2702_v46 = vmax.f32 %v1884_v28, 0.0 }
 0x190   : > { %v10438_v16 = vpop.f32.mrf.mxu1  ;;  %v2701_v6 = vmax.f32 %v1879_v49, 0.0  ;;  %v1892_v49 = vadd.f32 %v12002_v10, %v12026_v23 }
 0x191   : > { %15833 = vst [vmem:[#allocation24_spill] sm:$0xff] %v12125_v51  ;;  %v2487_v22 = vadd.f32 %v12002_v10, %v10438_v16  ;;  %v12144_v16 = vpop.f32.mrf.mxu0  ;;  %v2850_v43 = vmax.f32 %v2476_v62, 0.0 }
 0x192   : > { %v2478_v25 = vpop.f32.mrf.mxu1  ;;  %v2923_v29 = vpack.c.bf16 %v2701_v6, %v2700_v8  ;;  %v2704_v8 = vmax.f32 %v1892_v49, 0.0 }
 0x193   : > { %v2853_v48 = vmax.f32 %v2487_v22, 0.0  ;;  %v2479_v18 = vadd.f32 %v12002_v10, %v2478_v25  ;;  %v12149_v24 = vpop.f32.mrf.mxu0 }
 0x194   : > { %v10441_v20 = vpop.f32.mrf.mxu1  ;;  %10540 = vmatmul.mubr.msk.bf16.gmra.mxu1 %vm3041_vm1, %v2921_v54  ;;  %v1900_v54 = vadd.f32 %v12002_v10, %v12062_v47 }
 0x195   : > { %v12146_v55 = vpack.c.bf16 %v2853_v48, %v2852_v33  ;;  %v2851_v37 = vmax.f32 %v2479_v18, 0.0  ;;  %10543 = vmatprep.mubr.msk.bf16.mxu1 %vm3041_vm1, %v2922_v15  ;;  %v2500_v28 = vadd.f32 %v12002_v10, %v10441_v20  ;;  %v12156_v62 = vpop.f32.mrf.mxu0  ;;  %v2924_v33 = vpack.c.bf16 %v2703_v11, %v2702_v46 }
 0x196   : > { %v2491_v51 = vpop.f32.mrf.mxu1  ;;  %v1895_v18 = vadd.f32 %v12002_v10, %v12040_v4  ;;  %v2707_v4 = vmax.f32 %v1903_v2, 0.0  ;;  %v1919_v2 = vadd.f32 %v12002_v10, %v12097_v45 }
 0x197   : > { %15834 = vst [vmem:[#allocation25_spill] sm:$0xff] %v12146_v55  ;;  %v12151_v22 = vpack.c.bf16 %v2851_v37, %v2850_v43  ;;  %v2492_v48 = vadd.f32 %v12002_v10, %v2491_v51  ;;  %v12166_v43 = vpop.f32.mrf.mxu0  ;;  %v2856_v47 = vmax.f32 %v2500_v28, 0.0  ;;  %v2706_v51 = vmax.f32 %v1900_v54, 0.0 }
 0x198   : > { %v10442_v25 = vpop.f32.mrf.mxu1  ;;  %v2705_v55 = vmax.f32 %v1895_v18, 0.0  ;;  %v1908_v18 = vadd.f32 %v12002_v10, %v12052_v38 }
 0x199   : > { %15835 = vst [vmem:[#allocation26_spill] sm:$0xff] %v12151_v22  ;;  %v2503_v15 = vadd.f32 %v12002_v10, %v10442_v25  ;;  %v12170_v25 = vpop.f32.mrf.mxu0  ;;  %v2854_v35 = vmax.f32 %v2492_v48, 0.0 }
 0x19a   : > { %v2494_v20 = vpop.f32.mrf.mxu1  ;;  %v2925_v49 = vpack.c.bf16 %v2705_v55, %v2704_v8  ;;  %v2708_v8 = vmax.f32 %v1908_v18, 0.0 }
 0x19b   : > { %v2857_v37 = vmax.f32 %v2503_v15, 0.0  ;;  %v2495_v46 = vadd.f32 %v12002_v10, %v2494_v20  ;;  %v12175_v28 = vpop.f32.mrf.mxu0 }
 0x19c   : > { %v10445_v11 = vpop.f32.mrf.mxu1  ;;  %10544 = vmatmul.mubr.msk.bf16.gmra.mxu1 %vm3041_vm1, %v2923_v29  ;;  %v1916_v29 = vadd.f32 %v12002_v10, %v12088_v5 }
 0x19d   : > { %v12172_v6 = vpack.c.bf16 %v2857_v37, %v2856_v47  ;;  %v2855_v23 = vmax.f32 %v2495_v46, 0.0  ;;  %10547 = vmatprep.mubr.msk.bf16.mxu1 %vm3041_vm1, %v2924_v33  ;;  %v2516_v54 = vadd.f32 %v12002_v10, %v10445_v11  ;;  %v12182_v48 = vpop.f32.mrf.mxu0  ;;  %v2926_v47 = vpack.c.bf16 %v2707_v4, %v2706_v51 }
 0x19e   : > { %v2507_v22 = vpop.f32.mrf.mxu1  ;;  %v1911_v46 = vadd.f32 %v12002_v10, %v12066_v52  ;;  %v2711_v52 = vmax.f32 %v1919_v2, 0.0  ;;  %v1935_v2 = vadd.f32 %v12002_v10, %v12123_v27 }
 0x19f   : > { %15836 = vst [vmem:[#allocation27_spill] sm:$0xff] %v12172_v6  ;;  %v12177_v15 = vpack.c.bf16 %v2855_v23, %v2854_v35  ;;  %v2508_v37 = vadd.f32 %v12002_v10, %v2507_v22  ;;  %v12192_v35 = vpop.f32.mrf.mxu0  ;;  %v2860_v5 = vmax.f32 %v2516_v54, 0.0  ;;  %v2710_v22 = vmax.f32 %v1916_v29, 0.0 }
 0x1a0   : > { %v10446_v20 = vpop.f32.mrf.mxu1  ;;  %v2709_v6 = vmax.f32 %v1911_v46, 0.0  ;;  %v1924_v46 = vadd.f32 %v12002_v10, %v12078_v39 }
 0x1a1   : > { %15837 = vst [vmem:[#allocation28_spill] sm:$0xff] %v12177_v15  ;;  %v2519_v33 = vadd.f32 %v12002_v10, %v10446_v20  ;;  %v12196_v20 = vpop.f32.mrf.mxu0  ;;  %v2858_v45 = vmax.f32 %v2508_v37, 0.0 }
 0x1a2   : > { %v2510_v11 = vpop.f32.mrf.mxu1  ;;  %v2927_v18 = vpack.c.bf16 %v2709_v6, %v2708_v8  ;;  %v2712_v8 = vmax.f32 %v1924_v46, 0.0 }
 0x1a3   : > { %v2861_v23 = vmax.f32 %v2519_v33, 0.0  ;;  %v2511_v51 = vadd.f32 %v12002_v10, %v2510_v11  ;;  %v12201_v54 = vpop.f32.mrf.mxu0 }
 0x1a4   : > { %v10449_v4 = vpop.f32.mrf.mxu1  ;;  %10548 = vmatmul.mubr.msk.bf16.gmra.mxu1 %vm3041_vm1, %v2925_v49  ;;  %v1932_v49 = vadd.f32 %v12002_v10, %v12114_v17 }
 0x1a5   : > { %v12198_v55 = vpack.c.bf16 %v2861_v23, %v2860_v5  ;;  %v2859_v38 = vmax.f32 %v2511_v51, 0.0  ;;  %10551 = vmatprep.mubr.msk.bf16.mxu1 %vm3041_vm1, %v2926_v47  ;;  %v2532_v29 = vadd.f32 %v12002_v10, %v10449_v4  ;;  %v12208_v37 = vpop.f32.mrf.mxu0  ;;  %v2928_v5 = vpack.c.bf16 %v2711_v52, %v2710_v22 }
 0x1a6   : > { %v2523_v15 = vpop.f32.mrf.mxu1  ;;  %v1927_v51 = vadd.f32 %v12002_v10, %v12092_v41  ;;  %v2715_v41 = vmax.f32 %v1935_v2, 0.0  ;;  %v1951_v2 = vadd.f32 %v12002_v10, %v12149_v24 }
 0x1a7   : > { %15838 = vst [vmem:[#allocation29_spill] sm:$0xff] %v12198_v55  ;;  %v12203_v33 = vpack.c.bf16 %v2859_v38, %v2858_v45  ;;  %v2524_v23 = vadd.f32 %v12002_v10, %v2523_v15  ;;  %v12218_v45 = vpop.f32.mrf.mxu0  ;;  %v2864_v17 = vmax.f32 %v2532_v29, 0.0  ;;  %v2714_v15 = vmax.f32 %v1932_v49, 0.0 }
 0x1a8   : > { %v10450_v11 = vpop.f32.mrf.mxu1  ;;  %v2713_v55 = vmax.f32 %v1927_v51, 0.0  ;;  %v1940_v51 = vadd.f32 %v12002_v10, %v12104_v50 }
 0x1a9   : > { %15839 = vst [vmem:[#allocation30_spill] sm:$0xff] %v12203_v33  ;;  %v2535_v47 = vadd.f32 %v12002_v10, %v10450_v11  ;;  %v12222_v11 = vpop.f32.mrf.mxu0  ;;  %v2862_v27 = vmax.f32 %v2524_v23, 0.0 }
 0x1aa   : > { %v2526_v4 = vpop.f32.mrf.mxu1  ;;  %v2929_v46 = vpack.c.bf16 %v2713_v55, %v2712_v8  ;;  %v2716_v8 = vmax.f32 %v1940_v51, 0.0 }
 0x1ab   : > { %v2865_v38 = vmax.f32 %v2535_v47, 0.0  ;;  %v2527_v22 = vadd.f32 %v12002_v10, %v2526_v4  ;;  %v12227_v29 = vpop.f32.mrf.mxu0 }
 0x1ac   : > { %v10453_v52 = vpop.f32.mrf.mxu1  ;;  %10552 = vmatmul.mubr.msk.bf16.gmra.mxu1 %vm3041_vm1, %v2927_v18  ;;  %v1948_v18 = vadd.f32 %v12002_v10, %v12140_v63 }
 0x1ad   : > { %v12224_v6 = vpack.c.bf16 %v2865_v38, %v2864_v17  ;;  %v2863_v39 = vmax.f32 %v2527_v22, 0.0  ;;  %10555 = vmatprep.mubr.msk.bf16.mxu1 %vm3041_vm1, %v2928_v5  ;;  %v2548_v49 = vadd.f32 %v12002_v10, %v10453_v52  ;;  %v12234_v23 = vpop.f32.mrf.mxu0  ;;  %v2930_v17 = vpack.c.bf16 %v2715_v41, %v2714_v15 }
 0x1ae   : > { %v2539_v33 = vpop.f32.mrf.mxu1  ;;  %v1943_v22 = vadd.f32 %v12002_v10, %v12118_v58  ;;  %v2719_v58 = vmax.f32 %v1951_v2, 0.0  ;;  %v1967_v2 = vadd.f32 %v12002_v10, %v12175_v28 }
 0x1af   : > { %15840 = vst [vmem:[#allocation31_spill] sm:$0xff] %v12224_v6  ;;  %v12229_v47 = vpack.c.bf16 %v2863_v39, %v2862_v27  ;;  %v2540_v38 = vadd.f32 %v12002_v10, %v2539_v33  ;;  %v12244_v27 = vpop.f32.mrf.mxu0  ;;  %v2868_v63 = vmax.f32 %v2548_v49, 0.0  ;;  %v2718_v33 = vmax.f32 %v1948_v18, 0.0 }
 0x1b0   : > { %v10454_v4 = vpop.f32.mrf.mxu1  ;;  %v2717_v6 = vmax.f32 %v1943_v22, 0.0  ;;  %v1956_v22 = vadd.f32 %v12002_v10, %v12130_v1 }
 0x1b1   : > { %15841 = vst [vmem:[#allocation32_spill] sm:$0xff] %v12229_v47  ;;  %v2551_v5 = vadd.f32 %v12002_v10, %v10454_v4  ;;  %v12248_v4 = vpop.f32.mrf.mxu0  ;;  %v2866_v24 = vmax.f32 %v2540_v38, 0.0 }
 0x1b2   : > { %v2542_v52 = vpop.f32.mrf.mxu1  ;;  %v2931_v51 = vpack.c.bf16 %v2717_v6, %v2716_v8  ;;  %v2720_v8 = vmax.f32 %v1956_v22, 0.0 }
 0x1b3   : > { %v2869_v39 = vmax.f32 %v2551_v5, 0.0  ;;  %v2543_v15 = vadd.f32 %v12002_v10, %v2542_v52  ;;  %v12253_v49 = vpop.f32.mrf.mxu0 }
 0x1b4   : > { %v10457_v41 = vpop.f32.mrf.mxu1  ;;  %10556 = vmatmul.mubr.msk.bf16.gmra.mxu1 %vm3041_vm1, %v2929_v46  ;;  %v1964_v46 = vadd.f32 %v12002_v10, %v12166_v43 }
 0x1b5   : > { %v12250_v55 = vpack.c.bf16 %v2869_v39, %v2868_v63  ;;  %v2867_v50 = vmax.f32 %v2543_v15, 0.0  ;;  %10559 = vmatprep.mubr.msk.bf16.mxu1 %vm3041_vm1, %v2930_v17  ;;  %v2564_v18 = vadd.f32 %v12002_v10, %v10457_v41  ;;  %v12260_v38 = vpop.f32.mrf.mxu0  ;;  %v2932_v63 = vpack.c.bf16 %v2719_v58, %v2718_v33 }
 0x1b6   : > { %v2555_v47 = vpop.f32.mrf.mxu1  ;;  %v1959_v15 = vadd.f32 %v12002_v10, %v12144_v16  ;;  %v2723_v16 = vmax.f32 %v1967_v2, 0.0  ;;  %v1983_v2 = vadd.f32 %v12002_v10, %v12201_v54 }
 0x1b7   : > { %15842 = vst [vmem:[#allocation33_spill] sm:$0xff] %v12250_v55  ;;  %v12255_v5 = vpack.c.bf16 %v2867_v50, %v2866_v24  ;;  %v2556_v39 = vadd.f32 %v12002_v10, %v2555_v47  ;;  %v12270_v24 = vpop.f32.mrf.mxu0  ;;  %v2872_v43 = vmax.f32 %v2564_v18, 0.0  ;;  %v2722_v47 = vmax.f32 %v1964_v46, 0.0 }
 0x1b8   : > { %v10458_v52 = vpop.f32.mrf.mxu1  ;;  %v2721_v55 = vmax.f32 %v1959_v15, 0.0  ;;  %v1972_v15 = vadd.f32 %v12002_v10, %v12156_v62 }
 0x1b9   : > { %15843 = vst [vmem:[#allocation34_spill] sm:$0xff] %v12255_v5  ;;  %v2567_v17 = vadd.f32 %v12002_v10, %v10458_v52  ;;  %v12274_v52 = vpop.f32.mrf.mxu0  ;;  %v2870_v28 = vmax.f32 %v2556_v39, 0.0 }
 0x1ba   : > { %v2558_v41 = vpop.f32.mrf.mxu1  ;;  %v2933_v22 = vpack.c.bf16 %v2721_v55, %v2720_v8  ;;  %v2724_v8 = vmax.f32 %v1972_v15, 0.0 }
 0x1bb   : > { %v2873_v50 = vmax.f32 %v2567_v17, 0.0  ;;  %v2559_v33 = vadd.f32 %v12002_v10, %v2558_v41  ;;  %v12279_v18 = vpop.f32.mrf.mxu0 }
 0x1bc   : > { %v10461_v58 = vpop.f32.mrf.mxu1  ;;  %10560 = vmatmul.mubr.msk.bf16.gmra.mxu1 %vm3041_vm1, %v2931_v51  ;;  %v1980_v51 = vadd.f32 %v12002_v10, %v12192_v35 }
 0x1bd   : > { %v12276_v6 = vpack.c.bf16 %v2873_v50, %v2872_v43  ;;  %v2871_v1 = vmax.f32 %v2559_v33, 0.0  ;;  %10563 = vmatprep.mubr.msk.bf16.mxu1 %vm3041_vm1, %v2932_v63  ;;  %v2580_v46 = vadd.f32 %v12002_v10, %v10461_v58  ;;  %v12286_v39 = vpop.f32.mrf.mxu0  ;;  %v2934_v43 = vpack.c.bf16 %v2723_v16, %v2722_v47 }
 0x1be   : > { %v2571_v5 = vpop.f32.mrf.mxu1  ;;  %v1975_v33 = vadd.f32 %v12002_v10, %v12170_v25  ;;  %v2727_v25 = vmax.f32 %v1983_v2, 0.0  ;;  %v1999_v2 = vadd.f32 %v12002_v10, %v12227_v29 }
 0x1bf   : > { %15844 = vst [vmem:[#allocation35_spill] sm:$0xff] %v12276_v6  ;;  %v12281_v17 = vpack.c.bf16 %v2871_v1, %v2870_v28  ;;  %v2572_v50 = vadd.f32 %v12002_v10, %v2571_v5  ;;  %v12296_v28 = vpop.f32.mrf.mxu0  ;;  %v2876_v35 = vmax.f32 %v2580_v46, 0.0  ;;  %v2726_v5 = vmax.f32 %v1980_v51, 0.0 }
 0x1c0   : > { %v10462_v41 = vpop.f32.mrf.mxu1  ;;  %v2725_v6 = vmax.f32 %v1975_v33, 0.0  ;;  %v1988_v33 = vadd.f32 %v12002_v10, %v12182_v48 }
 0x1c1   : > { %15845 = vst [vmem:[#allocation36_spill] sm:$0xff] %v12281_v17  ;;  %v2583_v63 = vadd.f32 %v12002_v10, %v10462_v41  ;;  %v12300_v41 = vpop.f32.mrf.mxu0  ;;  %v2874_v54 = vmax.f32 %v2572_v50, 0.0 }
 0x1c2   : > { %v2574_v58 = vpop.f32.mrf.mxu1  ;;  %v2935_v15 = vpack.c.bf16 %v2725_v6, %v2724_v8  ;;  %v2728_v8 = vmax.f32 %v1988_v33, 0.0  ;;  %v2004_v33 = vadd.f32 %v12002_v10, %v12208_v37 }
 0x1c3   : > { %v2877_v1 = vmax.f32 %v2583_v63, 0.0  ;;  %v2575_v47 = vadd.f32 %v12002_v10, %v2574_v58  ;;  %v12305_v46 = vpop.f32.mrf.mxu0 }
 0x1c4   : > { %v10465_v16 = vpop.f32.mrf.mxu1  ;;  %10564 = vmatmul.mubr.msk.bf16.gmra.mxu1 %vm3041_vm1, %v2933_v22  ;;  %v1996_v22 = vadd.f32 %v12002_v10, %v12218_v45 }
 0x1c5   : > { %v12302_v55 = vpack.c.bf16 %v2877_v1, %v2876_v35  ;;  %v2875_v62 = vmax.f32 %v2575_v47, 0.0  ;;  %10567 = vmatprep.mubr.msk.bf16.mxu1 %vm3041_vm1, %v2934_v43  ;;  %v2596_v51 = vadd.f32 %v12002_v10, %v10465_v16  ;;  %v12312_v50 = vpop.f32.mrf.mxu0  ;;  %v2936_v35 = vpack.c.bf16 %v2727_v25, %v2726_v5 }
 0x1c6   : > { %v2587_v17 = vpop.f32.mrf.mxu1  ;;  %v1991_v47 = vadd.f32 %v12002_v10, %v12196_v20  ;;  %v2731_v20 = vmax.f32 %v1999_v2, 0.0 }
 0x1c7   : > { %15846 = vst [vmem:[#allocation37_spill] sm:$0xff] %v12302_v55  ;;  %v12307_v63 = vpack.c.bf16 %v2875_v62, %v2874_v54  ;;  %v2588_v1 = vadd.f32 %v12002_v10, %v2587_v17  ;;  %v12322_v54 = vpop.f32.mrf.mxu0  ;;  %v2880_v45 = vmax.f32 %v2596_v51, 0.0  ;;  %v2730_v17 = vmax.f32 %v1996_v22, 0.0 }
 0x1c8   : > { %v10466_v58 = vpop.f32.mrf.mxu1  ;;  %v2729_v55 = vmax.f32 %v1991_v47, 0.0  ;;  %v2007_v47 = vadd.f32 %v12002_v10, %v12222_v11 }
 0x1c9   : > { %15847 = vst [vmem:[#allocation38_spill] sm:$0xff] %v12307_v63  ;;  %v2599_v43 = vadd.f32 %v12002_v10, %v10466_v58  ;;  %v12326_v58 = vpop.f32.mrf.mxu0  ;;  %v2878_v29 = vmax.f32 %v2588_v1, 0.0  ;;  %v2938_v1 = vpack.c.bf16 %v2731_v20, %v2730_v17 }
 0x1ca   : > { %v2590_v16 = vpop.f32.mrf.mxu1  ;;  %v2937_v2 = vpack.c.bf16 %v2729_v55, %v2728_v8  ;;  %v2732_v8 = vmax.f32 %v2004_v33, 0.0  ;;  %v2733_v11 = vmax.f32 %v2007_v47, 0.0  ;;  %v2020_v47 = vadd.f32 %v12002_v10, %v12234_v23 }
 0x1cb   : > { %v2881_v62 = vmax.f32 %v2599_v43, 0.0  ;;  %v2591_v5 = vadd.f32 %v12002_v10, %v2590_v16  ;;  %v12331_v51 = vpop.f32.mrf.mxu0 }
 0x1cc   : > { %v10469_v25 = vpop.f32.mrf.mxu1  ;;  %10568 = vmatmul.mubr.msk.bf16.gmra.mxu1 %vm3041_vm1, %v2935_v15  ;;  %v2012_v15 = vadd.f32 %v12002_v10, %v12244_v27  ;;  %v2939_v33 = vpack.c.bf16 %v2733_v11, %v2732_v8  ;;  %v2736_v23 = vmax.f32 %v2020_v47, 0.0  ;;  %v2047_v47 = vadd.f32 %v12002_v10, %v12305_v46 }
 0x1cd   : > { %v12328_v6 = vpack.c.bf16 %v2881_v62, %v2880_v45  ;;  %v2879_v48 = vmax.f32 %v2591_v5, 0.0  ;;  %10571 = vmatprep.mubr.msk.bf16.mxu1 %vm3041_vm1, %v2936_v35  ;;  %v2612_v22 = vadd.f32 %v12002_v10, %v10469_v25  ;;  %v2015_v35 = vadd.f32 %v12002_v10, %v12253_v49  ;;  %v12346_v25 = vpop.f32.mrf.mxu0 }
 0x1ce   : > { %v2603_v63 = vpop.f32.mrf.mxu1 }
 0x1cf   : > { %15848 = vst [vmem:[#allocation39_spill] sm:$0xff] %v12328_v6  ;;  %v12333_v43 = vpack.c.bf16 %v2879_v48, %v2878_v29  ;;  %v2604_v45 = vadd.f32 %v12002_v10, %v2603_v63  ;;  %v2884_v29 = vmax.f32 %v2612_v22, 0.0  ;;  %v2734_v63 = vmax.f32 %v2012_v15, 0.0  ;;  %v12353_v6 = vpop.f32.mrf.mxu0 }
 0x1d0   : > { %v10470_v16 = vpop.f32.mrf.mxu1  ;;  %v2735_v37 = vmax.f32 %v2015_v35, 0.0 }
 0x1d1   : > { %v2615_v62 = vadd.f32 %v12002_v10, %v10470_v16  ;;  %v2882_v20 = vmax.f32 %v2604_v45, 0.0  ;;  %v2031_v45 = vadd.f32 %v12002_v10, %v12279_v18 }
 0x1d2   : > { %v2606_v5 = vpop.f32.mrf.mxu1 }
 0x1d3   : > { %v2885_v27 = vmax.f32 %v2615_v62, 0.0  ;;  %v2607_v17 = vadd.f32 %v12002_v10, %v2606_v5  ;;  %v2940_v5 = vpack.c.bf16 %v2735_v37, %v2734_v63 }
 0x1d4   : > { %v10473_v48 = vpop.f32.mrf.mxu1  ;;  %10572 = vmatmul.mubr.msk.bf16.gmra.mxu1 %vm3041_vm1, %v2937_v2  ;;  %v2028_v2 = vadd.f32 %v12002_v10, %v12270_v24 }
 0x1d5   : > { %v12350_v49 = vpack.c.bf16 %v2885_v27, %v2884_v29  ;;  %v2883_v55 = vmax.f32 %v2607_v17, 0.0  ;;  %10575 = vmatprep.mubr.msk.bf16.mxu1 %vm3041_vm1, %v2938_v1  ;;  %v2628_v62 = vadd.f32 %v12002_v10, %v10473_v48  ;;  %v2023_v29 = vadd.f32 %v12002_v10, %v12248_v4  ;;  %v12368_v17 = vpop.f32.mrf.mxu0 }
 0x1d6   : > { %v2619_v16 = vpop.f32.mrf.mxu1  ;;  %v2738_v18 = vmax.f32 %v2028_v2, 0.0  ;;  %v12382_v2 = vld [vmem:[%s15808_s4] ss:$0 sm:$0xff] }
 0x1d7   : > { %15849 = vst [vmem:[#allocation40_spill] sm:$0xff] %v12350_v49  ;;  %v12355_v22 = vpack.c.bf16 %v2883_v55, %v2882_v20  ;;  %v2620_v1 = vadd.f32 %v12002_v10, %v2619_v16  ;;  %v2888_v48 = vmax.f32 %v2628_v62, 0.0  ;;  %v2739_v55 = vmax.f32 %v2031_v45, 0.0 }
 0x1d8   : > { %v10474_v15 = vpop.f32.mrf.mxu1  ;;  %v2737_v4 = vmax.f32 %v2023_v29, 0.0 }
 0x1d9   : > { %v2631_v35 = vadd.f32 %v12002_v10, %v10474_v15  ;;  %v2886_v37 = vmax.f32 %v2620_v1, 0.0  ;;  %v12375_v15 = vpop.f32.mrf.mxu0 }
 0x1da   : > { %v2622_v27 = vpop.f32.mrf.mxu1  ;;  %v2941_v29 = vpack.c.bf16 %v2737_v4, %v2736_v23 }
 0x1db   : > { %v2889_v24 = vmax.f32 %v2631_v35, 0.0  ;;  %v2623_v20 = vadd.f32 %v12002_v10, %v2622_v27  ;;  %v2942_v35 = vpack.c.bf16 %v2739_v55, %v2738_v18  ;;  %v2036_v27 = vadd.f32 %v12002_v10, %v12260_v38  ;;  %v12395_v18 = vpop.f32.mrf.mxu0 }
 0x1dc   : > { %v10481_v63 = vpop.f32.mrf.mxu1  ;;  %10576 = vmatmul.mubr.msk.bf16.gmra.mxu1 %vm3041_vm1, %v2939_v33  ;;  %v2743_v38 = vmax.f32 %v2047_v47, 0.0 }
 0x1dd   : > { %v12372_v8 = vpack.c.bf16 %v2889_v24, %v2888_v48  ;;  %v2887_v11 = vmax.f32 %v2623_v20, 0.0  ;;  %10579 = vmatprep.mubr.msk.bf16.mxu1 %vm3041_vm1, %v2940_v5  ;;  %v2044_v5 = vadd.f32 %v12002_v10, %v12296_v28  ;;  %v2039_v48 = vadd.f32 %v12002_v10, %v12274_v52 }
 0x1de   : > { %v3460_v16 = vpop.f32.mrf.mxu1  ;;  %v3469_v24 = vadd.f32 %v10481_v63, %v12382_v2  ;;  %v2740_v4 = vmax.f32 %v2036_v27, 0.0  ;;  %v12400_v63 = vpop.f32.mrf.mxu0  ;;  %v2052_v27 = vadd.f32 %v12002_v10, %v12286_v39 }
 0x1df   : > { %15850 = vst [vmem:[#allocation41_spill] sm:$0xff] %v12372_v8  ;;  %v12377_v62 = vpack.c.bf16 %v2887_v11, %v2886_v37  ;;  %v3461_v1 = vadd.f32 %v12382_v2, %v3460_v16  ;;  %v2742_v46 = vmax.f32 %v2044_v5, 0.0  ;;  %v2741_v16 = vmax.f32 %v2039_v48, 0.0 }
 0x1e0   : > { %v10482_v45 = vpop.f32.mrf.mxu1  ;;  %v4485_v52 = vmax.f32 %v3469_v24, 0.0  ;;  %v2055_v48 = vadd.f32 %v12002_v10, %v12300_v41  ;;  %v2744_v41 = vmax.f32 %v2052_v27, 0.0 }
 0x1e1   : > { %15851 = vst [vmem:[#allocation42_spill] sm:$0xff] %v12377_v62  ;;  %v3472_v33 = vadd.f32 %v10482_v45, %v12382_v2  ;;  %v4483_v28 = vmax.f32 %v3461_v1, 0.0  ;;  %v2063_v1 = vadd.f32 %v12002_v10, %v12331_v51  ;;  %v2944_v5 = vpack.c.bf16 %v2743_v38, %v2742_v46  ;;  %v12415_v51 = vpop.f32.mrf.mxu0 }
 0x1e2   : > { %v3463_v20 = vpop.f32.mrf.mxu1  ;;  %v2943_v47 = vpack.c.bf16 %v2741_v16, %v2740_v4  ;;  %v2745_v46 = vmax.f32 %v2055_v48, 0.0 }
 0x1e3   : > { %v3464_v55 = vadd.f32 %v12382_v2, %v3463_v20  ;;  %v4486_v37 = vmax.f32 %v3472_v33, 0.0  ;;  %v2060_v33 = vadd.f32 %v12002_v10, %v12322_v54  ;;  %v2094_v38 = vpop.f32.mrf.mxu0 }
 0x1e4   : > { %v10485_v11 = vpop.f32.mrf.mxu1  ;;  %10580 = vmatmul.mubr.msk.bf16.gmra.mxu1 %vm3041_vm1, %v2941_v29 }
 0x1e5   : > { %v4484_v23 = vmax.f32 %v3464_v55, 0.0  ;;  %10583 = vmatprep.mubr.msk.bf16.mxu1 %vm3041_vm1, %v2942_v35  ;;  %v4740_v62 = vpack.c.bf16 %v4486_v37, %v4485_v52  ;;  %v3485_v24 = vadd.f32 %v10485_v11, %v12382_v2 }
 0x1e6   : > { %v3476_v45 = vpop.f32.mrf.mxu1 }
 0x1e7   : > { %v4739_v8 = vpack.c.bf16 %v4484_v23, %v4483_v28  ;;  %v3477_v29 = vadd.f32 %v12382_v2, %v3476_v45  ;;  %v4489_v11 = vmax.f32 %v3485_v24, 0.0  ;;  %v12433_v24 = vpop.f32.mrf.mxu0 }
 0x1e8   : > { %v10486_v49 = vpop.f32.mrf.mxu1 }
 0x1e9   : > { %v3488_v35 = vadd.f32 %v10486_v49, %v12382_v2  ;;  %10739 = vmatprep.mubr.msk.bf16.mxu0 %vm3041_vm1, %v4739_v8  ;;  %v2746_v49 = vmax.f32 %v2060_v33, 0.0  ;;  %v2747_v8 = vmax.f32 %v2063_v1, 0.0  ;;  %v4487_v28 = vmax.f32 %v3477_v29, 0.0 }
 0x1ea   : > { %v3479_v54 = vpop.f32.mrf.mxu1  ;;  %10740 = vmatmul.mubr.msk.bf16.vlgmr.msra.gmra.mxu0 %vm3041_vm1, %v4740_v62  ;;  %v2076_v1 = vadd.f32 %v12002_v10, %v12353_v6  ;;  %v2945_v29 = vpack.c.bf16 %v2745_v46, %v2744_v41 }
 0x1eb   : > { %v3480_v20 = vadd.f32 %v12382_v2, %v3479_v54  ;;  %v4490_v55 = vmax.f32 %v3488_v35, 0.0  ;;  %v2946_v16 = vpack.c.bf16 %v2747_v8, %v2746_v49  ;;  %v2068_v35 = vadd.f32 %v12002_v10, %v12312_v50 }
 0x1ec   : > { %v10489_v37 = vpop.f32.mrf.mxu1  ;;  %10584 = vmatmul.mubr.msk.bf16.gmra.mxu1 %vm3041_vm1, %v2943_v47  ;;  %v2071_v47 = vadd.f32 %v12002_v10, %v12326_v58 }
 0x1ed   : > { %v4488_v39 = vmax.f32 %v3480_v20, 0.0  ;;  %10587 = vmatprep.mubr.msk.bf16.mxu1 %vm3041_vm1, %v2944_v5  ;;  %v4742_v4 = vpack.c.bf16 %v4490_v55, %v4489_v11  ;;  %v2079_v5 = vadd.f32 %v12002_v10, %v12375_v15  ;;  %v3501_v27 = vadd.f32 %v10489_v37, %v12382_v2  ;;  %v12441_v11 = vld [vmem:[%s15806_s2] ss:$0 sm:$0xff] }
 0x1ee   : > { %v3492_v23 = vpop.f32.mrf.mxu1  ;;  %v2750_v55 = vmax.f32 %v2076_v1, 0.0  ;;  %v2748_v10 = vmax.f32 %v2068_v35, 0.0  ;;  %v2749_v58 = vmax.f32 %v2071_v47, 0.0  ;;  %v2087_v1 = vadd.f32 %v12441_v11, %v12368_v17 }
 0x1ef   : > { %v4741_v62 = vpack.c.bf16 %v4488_v39, %v4487_v28  ;;  %v3493_v45 = vadd.f32 %v12382_v2, %v3492_v23  ;;  %v2751_v50 = vmax.f32 %v2079_v5, 0.0  ;;  %v4493_v37 = vmax.f32 %v3501_v27, 0.0  ;;  %v2107_v28 = vpop.f32.mrf.mxu0 }
 0x1f0   : > { %v10490_v52 = vpop.f32.mrf.mxu1  ;;  %v2092_v23 = vadd.f32 %v12441_v11, %v12400_v63  ;;  %v2753_v17 = vmax.f32 %v2087_v1, 0.0 }
 0x1f1   : > { %v3504_v33 = vadd.f32 %v10490_v52, %v12382_v2  ;;  %10743 = vmatprep.mubr.msk.bf16.mxu0 %vm3041_vm1, %v4741_v62  ;;  %v4491_v15 = vmax.f32 %v3493_v45, 0.0  ;;  %v2095_v62 = vadd.f32 %v12441_v11, %v2094_v38  ;;  %v2947_v45 = vpack.c.bf16 %v2749_v58, %v2748_v10  ;;  %v10346_v63 = vpop.f32.mrf.mxu0 }
 0x1f2   : > { %v3495_v48 = vpop.f32.mrf.mxu1  ;;  %10744 = vmatmul.mubr.msk.bf16.gmra.mxu0 %vm3041_vm1, %v4742_v4  ;;  %v2948_v4 = vpack.c.bf16 %v2751_v50, %v2750_v55  ;;  %v2754_v47 = vmax.f32 %v2092_v23, 0.0  ;;  %v2100_v23 = vadd.f32 %v12441_v11, %v12395_v18 }
 0x1f3   : > { %v3496_v54 = vadd.f32 %v12382_v2, %v3495_v48  ;;  %v4494_v6 = vmax.f32 %v3504_v33, 0.0  ;;  %v2084_v33 = vadd.f32 %v12441_v11, %v12346_v25  ;;  %v2755_v48 = vmax.f32 %v2095_v62, 0.0  ;;  %v2110_v55 = vpop.f32.mrf.mxu0 }
 0x1f4   : > { %v10493_v20 = vpop.f32.mrf.mxu1  ;;  %10588 = vmatmul.mubr.msk.bf16.gmra.mxu1 %vm3041_vm1, %v2945_v29  ;;  %v2103_v62 = vadd.f32 %v12441_v11, %v12415_v51 }
 0x1f5   : > { %v4492_v49 = vmax.f32 %v3496_v54, 0.0  ;;  %10591 = vmatprep.mubr.msk.bf16.mxu1 %vm3041_vm1, %v2946_v16  ;;  %v4744_v41 = vpack.c.bf16 %v4494_v6, %v4493_v37  ;;  %v3517_v5 = vadd.f32 %v10493_v20, %v12382_v2  ;;  %v2752_v25 = vmax.f32 %v2084_v33, 0.0 }
 0x1f6   : > { %v3508_v8 = vpop.f32.mrf.mxu1  ;;  %v2950_v10 = vpack.c.bf16 %v2755_v48, %v2754_v47 }
 0x1f7   : > { %v4743_v39 = vpack.c.bf16 %v4492_v49, %v4491_v15  ;;  %v3509_v16 = vadd.f32 %v12382_v2, %v3508_v8  ;;  %v4497_v15 = vmax.f32 %v3517_v5, 0.0 }
 0x1f8   : > { %v10494_v46 = vpop.f32.mrf.mxu1 }
 0x1f9   : > { %v3520_v52 = vadd.f32 %v10494_v46, %v12382_v2  ;;  %10747 = vmatprep.mubr.msk.bf16.mxu0 %vm3041_vm1, %v4743_v39  ;;  %v4495_v54 = vmax.f32 %v3509_v16, 0.0  ;;  %v2108_v39 = vadd.f32 %v12441_v11, %v2107_v28  ;;  %v2949_v46 = vpack.c.bf16 %v2753_v17, %v2752_v25 }
 0x1fa   : > { %v3511_v29 = vpop.f32.mrf.mxu1  ;;  %10748 = vmatmul.mubr.msk.bf16.gmra.mxu0 %vm3041_vm1, %v4744_v41  ;;  %v2111_v41 = vadd.f32 %v12441_v11, %v2110_v55 }
 0x1fb   : > { %v3512_v38 = vadd.f32 %v12382_v2, %v3511_v29  ;;  %v4498_v35 = vmax.f32 %v3520_v52, 0.0  ;;  %v2758_v1 = vmax.f32 %v2108_v39, 0.0  ;;  %v2756_v29 = vmax.f32 %v2100_v23, 0.0 }
 0x1fc   : > { %v10497_v27 = vpop.f32.mrf.mxu1  ;;  %10592 = vmatmul.mubr.msk.bf16.gmra.mxu1 %vm3041_vm1, %v2947_v45  ;;  %v2759_v18 = vmax.f32 %v2111_v41, 0.0 }
 0x1fd   : > { %v4496_v6 = vmax.f32 %v3512_v38, 0.0  ;;  %10595 = vmatprep.mubr.msk.bf16.mxu1 %vm3041_vm1, %v2948_v4  ;;  %v4746_v50 = vpack.c.bf16 %v4498_v35, %v4497_v15  ;;  %v3533_v4 = vadd.f32 %v10497_v27, %v12382_v2  ;;  %v2757_v38 = vmax.f32 %v2103_v62, 0.0 }
 0x1fe   : > { %v3524_v20 = vpop.f32.mrf.mxu1  ;;  %v2116_v15 = vadd.f32 %v12441_v11, %v12433_v24 }
 0x1ff   : > { %v4745_v49 = vpack.c.bf16 %v4496_v6, %v4495_v54  ;;  %v3525_v37 = vadd.f32 %v12382_v2, %v3524_v20  ;;  %v4501_v51 = vmax.f32 %v3533_v4, 0.0  ;;  %v2952_v54 = vpack.c.bf16 %v2759_v18, %v2758_v1 }
 0x200   : > { %v10498_v58 = vpop.f32.mrf.mxu1  ;;  %v2951_v17 = vpack.c.bf16 %v2757_v38, %v2756_v29  ;;  %v2119_v20 = vadd.f32 %v12441_v11, %v10346_v63  ;;  %v2760_v39 = vmax.f32 %v2116_v15, 0.0 }
 0x201   : > { %v3536_v8 = vadd.f32 %v10498_v58, %v12382_v2  ;;  %10751 = vmatprep.mubr.msk.bf16.mxu0 %vm3041_vm1, %v4745_v49  ;;  %v4499_v28 = vmax.f32 %v3525_v37, 0.0 }
 0x202   : > { %v3527_v16 = vpop.f32.mrf.mxu1  ;;  %10752 = vmatmul.mubr.msk.bf16.gmra.mxu0 %vm3041_vm1, %v4746_v50  ;;  %v2761_v41 = vmax.f32 %v2119_v20, 0.0 }
 0x203   : > { %v3528_v52 = vadd.f32 %v12382_v2, %v3527_v16  ;;  %v4502_v45 = vmax.f32 %v3536_v8, 0.0 }
 0x204   : > { %v10501_v33 = vpop.f32.mrf.mxu1  ;;  %10596 = vmatmul.mubr.msk.bf16.gmra.mxu1 %vm3041_vm1, %v2949_v46  ;;  %v2953_v16 = vpack.c.bf16 %v2761_v41, %v2760_v39 }
 0x205   : > { %v4500_v5 = vmax.f32 %v3528_v52, 0.0  ;;  %10599 = vmatprep.mubr.msk.bf16.mxu1 %vm3041_vm1, %v2950_v10  ;;  %v4748_v27 = vpack.c.bf16 %v4502_v45, %v4501_v51  ;;  %v3549_v55 = vadd.f32 %v10501_v33, %v12382_v2 }
 0x206   : > { %v3540_v35 = vpop.f32.mrf.mxu1 }
 0x207   : > { %v4747_v47 = vpack.c.bf16 %v4500_v5, %v4499_v28  ;;  %v3541_v6 = vadd.f32 %v12382_v2, %v3540_v35  ;;  %v4505_v24 = vmax.f32 %v3549_v55, 0.0 }
 0x208   : > { %v10502_v48 = vpop.f32.mrf.mxu1 }
 0x209   : > { %v3552_v25 = vadd.f32 %v10502_v48, %v12382_v2  ;;  %10755 = vmatprep.mubr.msk.bf16.mxu0 %vm3041_vm1, %v4747_v47  ;;  %v4503_v37 = vmax.f32 %v3541_v6, 0.0 }
 0x20a   : > { %v3543_v49 = vpop.f32.mrf.mxu1  ;;  %10756 = vmatmul.mubr.msk.bf16.gmra.mxu0 %vm3041_vm1, %v4748_v27 }
 0x20b   : > { %v3544_v50 = vadd.f32 %v12382_v2, %v3543_v49  ;;  %v4506_v10 = vmax.f32 %v3552_v25, 0.0 }
 0x20c   : > { %v10505_v58 = vpop.f32.mrf.mxu1  ;;  %10600 = vmatmul.mubr.msk.bf16.gmra.mxu1 %vm3041_vm1, %v2951_v17 }
 0x20d   : > { %v4504_v8 = vmax.f32 %v3544_v50, 0.0  ;;  %10603 = vmatprep.mubr.msk.bf16.mxu1 %vm3041_vm1, %v2952_v54  ;;  %v4750_v63 = vpack.c.bf16 %v4506_v10, %v4505_v24  ;;  %v3565_v52 = vadd.f32 %v10505_v58, %v12382_v2 }
 0x20e   : > { %v3556_v46 = vpop.f32.mrf.mxu1 }
 0x20f   : > { %v4749_v11 = vpack.c.bf16 %v4504_v8, %v4503_v37  ;;  %v3557_v62 = vadd.f32 %v12382_v2, %v3556_v46  ;;  %v4509_v29 = vmax.f32 %v3565_v52, 0.0 }
 0x210   : > { %v10506_v23 = vpop.f32.mrf.mxu1 }
 0x211   : > { %v3568_v4 = vadd.f32 %v10506_v23, %v12382_v2  ;;  %10759 = vmatprep.mubr.msk.bf16.mxu0 %vm3041_vm1, %v4749_v11  ;;  %v4507_v5 = vmax.f32 %v3557_v62, 0.0 }
 0x212   : > { %v3559_v45 = vpop.f32.mrf.mxu1  ;;  %10760 = vmatmul.mubr.msk.bf16.gmra.mxu0 %vm3041_vm1, %v4750_v63 }
 0x213   : > { %v3560_v33 = vadd.f32 %v12382_v2, %v3559_v45  ;;  %v4510_v28 = vmax.f32 %v3568_v4, 0.0 }
 0x214   : > { %v10509_v1 = vpop.f32.mrf.mxu1  ;;  %10604 = vmatmul.mubr.msk.bf16.gmra.mxu1 %vm3041_vm1, %v2953_v16 }
 0x215   : > { %v4508_v18 = vmax.f32 %v3560_v33, 0.0  ;;  %10607 = vmatprep.mubr.msk.bf16.mxu1 %vm3041_vm1, %v11568_v60  ;;  %v4752_v35 = vpack.c.bf16 %v4510_v28, %v4509_v29  ;;  %v3581_v54 = vadd.f32 %v10509_v1, %v12382_v2 }
 0x216   : > { %v3572_v38 = vpop.f32.mrf.mxu1 }
 0x217   : > { %v4751_v51 = vpack.c.bf16 %v4508_v18, %v4507_v5  ;;  %v3573_v27 = vadd.f32 %v12382_v2, %v3572_v38  ;;  %v4513_v55 = vmax.f32 %v3581_v54, 0.0 }
 0x218   : > { %v10510_v47 = vpop.f32.mrf.mxu1 }
 0x219   : > { %v3584_v48 = vadd.f32 %v10510_v47, %v12382_v2  ;;  %10763 = vmatprep.mubr.msk.bf16.mxu0 %vm3041_vm1, %v4751_v51  ;;  %v4511_v15 = vmax.f32 %v3573_v27, 0.0 }
 0x21a   : > { %v3575_v6 = vpop.f32.mrf.mxu1  ;;  %10764 = vmatmul.mubr.msk.bf16.gmra.mxu0 %vm3041_vm1, %v4752_v35 }
 0x21b   : > { %v3576_v25 = vadd.f32 %v12382_v2, %v3575_v6  ;;  %v4514_v17 = vmax.f32 %v3584_v48, 0.0 }
 0x21c   : > { %v10513_v60 = vpop.f32.mrf.mxu1  ;;  %10608 = vmatmul.mubr.msk.bf16.gmra.mxu1 %vm3041_vm1, %v11564_v56 }
 0x21d   : > { %v4512_v20 = vmax.f32 %v3576_v25, 0.0  ;;  %10611 = vmatprep.mubr.msk.bf16.mxu1 %vm3041_vm1, %v11595_v19  ;;  %v4754_v10 = vpack.c.bf16 %v4514_v17, %v4513_v55  ;;  %v3597_v39 = vadd.f32 %v10513_v60, %v12382_v2 }
 0x21e   : > { %v3588_v49 = vpop.f32.mrf.mxu1 }
 0x21f   : > { %v4753_v50 = vpack.c.bf16 %v4512_v20, %v4511_v15  ;;  %v3589_v37 = vadd.f32 %v12382_v2, %v3588_v49  ;;  %v4517_v63 = vmax.f32 %v3597_v39, 0.0 }
 0x220   : > { %v10514_v58 = vpop.f32.mrf.mxu1 }
 0x221   : > { %v3600_v8 = vadd.f32 %v10514_v58, %v12382_v2  ;;  %10767 = vmatprep.mubr.msk.bf16.mxu0 %vm3041_vm1, %v4753_v50  ;;  %v4515_v46 = vmax.f32 %v3589_v37, 0.0 }
 0x222   : > { %v3591_v41 = vpop.f32.mrf.mxu1  ;;  %10768 = vmatmul.mubr.msk.bf16.gmra.mxu0 %vm3041_vm1, %v4754_v10 }
 0x223   : > { %v3592_v56 = vadd.f32 %v12382_v2, %v3591_v41  ;;  %v4518_v24 = vmax.f32 %v3600_v8, 0.0 }
 0x224   : > { %v10517_v19 = vpop.f32.mrf.mxu1  ;;  %10612 = vmatmul.mubr.msk.bf16.gmra.mxu1 %vm3041_vm1, %v11586_v13 }
 0x225   : > { %v4516_v11 = vmax.f32 %v3592_v56, 0.0  ;;  %10615 = vmatprep.mubr.msk.bf16.mxu1 %vm3041_vm1, %v11619_v42  ;;  %v4756_v4 = vpack.c.bf16 %v4518_v24, %v4517_v63  ;;  %v3613_v33 = vadd.f32 %v10517_v19, %v12382_v2 }
 0x226   : > { %v3604_v23 = vpop.f32.mrf.mxu1 }
 0x227   : > { %v4755_v62 = vpack.c.bf16 %v4516_v11, %v4515_v46  ;;  %v3605_v52 = vadd.f32 %v12382_v2, %v3604_v23  ;;  %v4521_v29 = vmax.f32 %v3613_v33, 0.0 }
 0x228   : > { %v10518_v16 = vpop.f32.mrf.mxu1 }
 0x229   : > { %v3616_v45 = vadd.f32 %v10518_v16, %v12382_v2  ;;  %10771 = vmatprep.mubr.msk.bf16.mxu0 %vm3041_vm1, %v4755_v62  ;;  %v4519_v5 = vmax.f32 %v3605_v52, 0.0 }
 0x22a   : > { %v3607_v28 = vpop.f32.mrf.mxu1  ;;  %10772 = vmatmul.mubr.msk.bf16.gmra.mxu0 %vm3041_vm1, %v4756_v4 }
 0x22b   : > { %v3608_v13 = vadd.f32 %v12382_v2, %v3607_v28  ;;  %v4522_v1 = vmax.f32 %v3616_v45, 0.0 }
 0x22c   : > { %v10521_v42 = vpop.f32.mrf.mxu1  ;;  %10616 = vmatmul.mubr.msk.bf16.gmra.mxu1 %vm3041_vm1, %v11613_v36 }
 0x22d   : > { %v4520_v18 = vmax.f32 %v3608_v13, 0.0  ;;  %10619 = vmatprep.mubr.msk.bf16.mxu1 %vm3041_vm1, %v11643_v3  ;;  %v4758_v35 = vpack.c.bf16 %v4522_v1, %v4521_v29  ;;  %v3629_v54 = vadd.f32 %v10521_v42, %v12382_v2 }
 0x22e   : > { %v3620_v38 = vpop.f32.mrf.mxu1 }
 0x22f   : > { %v4757_v51 = vpack.c.bf16 %v4520_v18, %v4519_v5  ;;  %v3621_v27 = vadd.f32 %v12382_v2, %v3620_v38  ;;  %v4525_v15 = vmax.f32 %v3629_v54, 0.0 }
 0x230   : > { %v10522_v47 = vpop.f32.mrf.mxu1 }
 0x231   : > { %v3632_v48 = vadd.f32 %v10522_v47, %v12382_v2  ;;  %10775 = vmatprep.mubr.msk.bf16.mxu0 %vm3041_vm1, %v4757_v51  ;;  %v4523_v17 = vmax.f32 %v3621_v27, 0.0 }
 0x232   : > { %v3623_v6 = vpop.f32.mrf.mxu1  ;;  %10776 = vmatmul.mubr.msk.bf16.gmra.mxu0 %vm3041_vm1, %v4758_v35 }
 0x233   : > { %v3624_v36 = vadd.f32 %v12382_v2, %v3623_v6  ;;  %v4526_v25 = vmax.f32 %v3632_v48, 0.0 }
 0x234   : > { %v10525_v3 = vpop.f32.mrf.mxu1  ;;  %10620 = vmatmul.mubr.msk.bf16.gmra.mxu1 %vm3041_vm1, %v11637_v61 }
 0x235   : > { %v4524_v60 = vmax.f32 %v3624_v36, 0.0  ;;  %10623 = vmatprep.mubr.msk.bf16.mxu1 %vm3041_vm1, %v11667_v32  ;;  %v4760_v49 = vpack.c.bf16 %v4526_v25, %v4525_v15  ;;  %v3645_v37 = vadd.f32 %v10525_v3, %v12382_v2 }
 0x236   : > { %v3636_v20 = vpop.f32.mrf.mxu1 }
 0x237   : > { %v4759_v55 = vpack.c.bf16 %v4524_v60, %v4523_v17  ;;  %v3637_v10 = vadd.f32 %v12382_v2, %v3636_v20  ;;  %v4529_v24 = vmax.f32 %v3645_v37, 0.0 }
 0x238   : > { %v10526_v50 = vpop.f32.mrf.mxu1 }
 0x239   : > { %v3648_v58 = vadd.f32 %v10526_v50, %v12382_v2  ;;  %10779 = vmatprep.mubr.msk.bf16.mxu0 %vm3041_vm1, %v4759_v55  ;;  %v4527_v41 = vmax.f32 %v3637_v10, 0.0 }
 0x23a   : > { %v3639_v8 = vpop.f32.mrf.mxu1  ;;  %10780 = vmatmul.mubr.msk.bf16.gmra.mxu0 %vm3041_vm1, %v4760_v49 }
 0x23b   : > { %v3640_v61 = vadd.f32 %v12382_v2, %v3639_v8  ;;  %v4530_v39 = vmax.f32 %v3648_v58, 0.0 }
 0x23c   : > { %v10529_v32 = vpop.f32.mrf.mxu1  ;;  %10624 = vmatmul.mubr.msk.bf16.gmra.mxu1 %vm3041_vm1, %v11661_v26 }
 0x23d   : > { %v4528_v56 = vmax.f32 %v3640_v61, 0.0  ;;  %10627 = vmatprep.mubr.msk.bf16.mxu1 %vm3041_vm1, %v11695_v7  ;;  %v4762_v11 = vpack.c.bf16 %v4530_v39, %v4529_v24  ;;  %v3661_v4 = vadd.f32 %v10529_v32, %v12382_v2 }
 0x23e   : > { %v3652_v19 = vpop.f32.mrf.mxu1 }
 0x23f   : > { %v4761_v46 = vpack.c.bf16 %v4528_v56, %v4527_v41  ;;  %v3653_v23 = vadd.f32 %v12382_v2, %v3652_v19  ;;  %v4533_v28 = vmax.f32 %v3661_v4, 0.0 }
 0x240   : > { %v10530_v63 = vpop.f32.mrf.mxu1 }
 0x241   : > { %v3664_v62 = vadd.f32 %v10530_v63, %v12382_v2  ;;  %10783 = vmatprep.mubr.msk.bf16.mxu0 %vm3041_vm1, %v4761_v46  ;;  %v4531_v45 = vmax.f32 %v3653_v23, 0.0 }
 0x242   : > { %v3655_v16 = vpop.f32.mrf.mxu1  ;;  %10784 = vmatmul.mubr.msk.bf16.gmra.mxu0 %vm3041_vm1, %v4762_v11 }
 0x243   : > { %v3656_v26 = vadd.f32 %v12382_v2, %v3655_v16  ;;  %v4534_v52 = vmax.f32 %v3664_v62, 0.0 }
 0x244   : > { %v10533_v7 = vpop.f32.mrf.mxu1  ;;  %10628 = vmatmul.mubr.msk.bf16.gmra.mxu1 %vm3041_vm1, %v11689_v59 }
 0x245   : > { %v4532_v33 = vmax.f32 %v3656_v26, 0.0  ;;  %10631 = vmatprep.mubr.msk.bf16.mxu1 %vm3041_vm1, %v11726_v53  ;;  %v4764_v42 = vpack.c.bf16 %v4534_v52, %v4533_v28  ;;  %v3677_v38 = vadd.f32 %v10533_v7, %v12382_v2 }
 0x246   : > { %v3668_v13 = vpop.f32.mrf.mxu1 }
 0x247   : > { %v4763_v1 = vpack.c.bf16 %v4532_v33, %v4531_v45  ;;  %v3669_v18 = vadd.f32 %v12382_v2, %v3668_v13  ;;  %v4537_v48 = vmax.f32 %v3677_v38, 0.0 }
 0x248   : > { %v10534_v5 = vpop.f32.mrf.mxu1 }
 0x249   : > { %v3680_v29 = vadd.f32 %v10534_v5, %v12382_v2  ;;  %10787 = vmatprep.mubr.msk.bf16.mxu0 %vm3041_vm1, %v4763_v1  ;;  %v4535_v47 = vmax.f32 %v3669_v18, 0.0 }
 0x24a   : > { %v3671_v51 = vpop.f32.mrf.mxu1  ;;  %10788 = vmatmul.mubr.msk.bf16.gmra.mxu0 %vm3041_vm1, %v4764_v42 }
 0x24b   : > { %v3672_v59 = vadd.f32 %v12382_v2, %v3671_v51  ;;  %v4538_v35 = vmax.f32 %v3680_v29, 0.0 }
 0x24c   : > { %v10537_v53 = vpop.f32.mrf.mxu1  ;;  %10632 = vmatmul.mubr.msk.bf16.gmra.mxu1 %vm3041_vm1, %v11720_v44 }
 0x24d   : > { %v4536_v27 = vmax.f32 %v3672_v59, 0.0  ;;  %10635 = vmatprep.mubr.msk.bf16.mxu1 %vm3041_vm1, %v11755_v0  ;;  %v4766_v36 = vpack.c.bf16 %v4538_v35, %v4537_v48  ;;  %v3693_v60 = vadd.f32 %v10537_v53, %v12382_v2 }
 0x24e   : > { %v3684_v54 = vpop.f32.mrf.mxu1 }
 0x24f   : > { %v4765_v6 = vpack.c.bf16 %v4536_v27, %v4535_v47  ;;  %v3685_v3 = vadd.f32 %v12382_v2, %v3684_v54  ;;  %v4541_v50 = vmax.f32 %v3693_v60, 0.0 }
 0x250   : > { %v10538_v25 = vpop.f32.mrf.mxu1 }
 0x251   : > { %v3696_v17 = vadd.f32 %v10538_v25, %v12382_v2  ;;  %10791 = vmatprep.mubr.msk.bf16.mxu0 %vm3041_vm1, %v4765_v6  ;;  %v4539_v55 = vmax.f32 %v3685_v3, 0.0 }
 0x252   : > { %v3687_v15 = vpop.f32.mrf.mxu1  ;;  %10792 = vmatmul.mubr.msk.bf16.gmra.mxu0 %vm3041_vm1, %v4766_v36 }
 0x253   : > { %v3688_v44 = vadd.f32 %v12382_v2, %v3687_v15  ;;  %v4542_v20 = vmax.f32 %v3696_v17, 0.0 }
 0x254   : > { %v10541_v0 = vpop.f32.mrf.mxu1  ;;  %10636 = vmatmul.mubr.msk.bf16.gmra.mxu1 %vm3041_vm1, %v11750_v34 }
 0x255   : > { %v4540_v49 = vmax.f32 %v3688_v44, 0.0  ;;  %10639 = vmatprep.mubr.msk.bf16.mxu1 %vm3041_vm1, %v11782_v30  ;;  %v4768_v37 = vpack.c.bf16 %v4542_v20, %v4541_v50  ;;  %v3709_v32 = vadd.f32 %v10541_v0, %v12382_v2  ;;  %v15852_v20 = vld [vmem:[#allocation6_spill] sm:$0xff] }
 0x256   : > { %v3700_v10 = vpop.f32.mrf.mxu1 }
 0x257   : > { %v4767_v58 = vpack.c.bf16 %v4540_v49, %v4539_v55  ;;  %v3701_v61 = vadd.f32 %v12382_v2, %v3700_v10  ;;  %v4545_v46 = vmax.f32 %v3709_v32, 0.0 }
 0x258   : > { %v10542_v8 = vpop.f32.mrf.mxu1 }
 0x259   : > { %v3712_v39 = vadd.f32 %v10542_v8, %v12382_v2  ;;  %10795 = vmatprep.mubr.msk.bf16.mxu0 %vm3041_vm1, %v4767_v58  ;;  %v4543_v24 = vmax.f32 %v3701_v61, 0.0 }
 0x25a   : > { %v3703_v41 = vpop.f32.mrf.mxu1  ;;  %10796 = vmatmul.mubr.msk.bf16.gmra.mxu0 %vm3041_vm1, %v4768_v37 }
 0x25b   : > { %v3704_v34 = vadd.f32 %v12382_v2, %v3703_v41  ;;  %v4546_v56 = vmax.f32 %v3712_v39, 0.0  ;;  %v15853_v41 = vld [vmem:[#allocation5_spill] sm:$0xff] }
 0x25c   : > { %v10545_v30 = vpop.f32.mrf.mxu1  ;;  %10640 = vmatmul.mubr.msk.bf16.gmra.mxu1 %vm3041_vm1, %v11777_v21 }
 0x25d   : > { %v4544_v19 = vmax.f32 %v3704_v34, 0.0  ;;  %10643 = vmatprep.mubr.msk.bf16.mxu1 %vm3041_vm1, %v11808_v57  ;;  %v4770_v23 = vpack.c.bf16 %v4546_v56, %v4545_v46  ;;  %v3725_v26 = vadd.f32 %v10545_v30, %v12382_v2  ;;  %v15854_v30 = vld [vmem:[#allocation8_spill] sm:$0xff] }
 0x25e   : > { %v3716_v11 = vpop.f32.mrf.mxu1 }
 0x25f   : > { %v4769_v63 = vpack.c.bf16 %v4544_v19, %v4543_v24  ;;  %v3717_v4 = vadd.f32 %v12382_v2, %v3716_v11  ;;  %v4549_v28 = vmax.f32 %v3725_v26, 0.0 }
 0x260   : > { %v10546_v62 = vpop.f32.mrf.mxu1 }
 0x261   : > { %v3728_v16 = vadd.f32 %v10546_v62, %v12382_v2  ;;  %10799 = vmatprep.mubr.msk.bf16.mxu0 %vm3041_vm1, %v4769_v63  ;;  %v4547_v45 = vmax.f32 %v3717_v4, 0.0 }
 0x262   : > { %v3719_v52 = vpop.f32.mrf.mxu1  ;;  %10800 = vmatmul.mubr.msk.bf16.gmra.mxu0 %vm3041_vm1, %v4770_v23 }
 0x263   : > { %v3720_v21 = vadd.f32 %v12382_v2, %v3719_v52  ;;  %v4550_v7 = vmax.f32 %v3728_v16, 0.0 }
 0x264   : > { %v10549_v57 = vpop.f32.mrf.mxu1  ;;  %10644 = vmatmul.mubr.msk.bf16.gmra.mxu1 %vm3041_vm1, %v11803_v12 }
 0x265   : > { %v4548_v33 = vmax.f32 %v3720_v21, 0.0  ;;  %10647 = vmatprep.mubr.msk.bf16.mxu1 %vm3041_vm1, %v11834_v14  ;;  %v4772_v42 = vpack.c.bf16 %v4550_v7, %v4549_v28  ;;  %v3741_v38 = vadd.f32 %v10549_v57, %v12382_v2  ;;  %v15855_v7 = vld [vmem:[#allocation7_spill] sm:$0xff] }
 0x266   : > { %v3732_v13 = vpop.f32.mrf.mxu1 }
 0x267   : > { %v4771_v1 = vpack.c.bf16 %v4548_v33, %v4547_v45  ;;  %v3733_v18 = vadd.f32 %v12382_v2, %v3732_v13  ;;  %v4553_v47 = vmax.f32 %v3741_v38, 0.0  ;;  %v15856_v33 = vld [vmem:[#allocation10_spill] sm:$0xff] }
 0x268   : > { %v10550_v5 = vpop.f32.mrf.mxu1 }
 0x269   : > { %v3744_v29 = vadd.f32 %v10550_v5, %v12382_v2  ;;  %10803 = vmatprep.mubr.msk.bf16.mxu0 %vm3041_vm1, %v4771_v1  ;;  %v4551_v35 = vmax.f32 %v3733_v18, 0.0 }
 0x26a   : > { %v3735_v51 = vpop.f32.mrf.mxu1  ;;  %10804 = vmatmul.mubr.msk.bf16.gmra.mxu0 %vm3041_vm1, %v4772_v42 }
 0x26b   : > { %v3736_v12 = vadd.f32 %v12382_v2, %v3735_v51  ;;  %v4554_v59 = vmax.f32 %v3744_v29, 0.0 }
 0x26c   : > { %v10553_v14 = vpop.f32.mrf.mxu1  ;;  %10648 = vmatmul.mubr.msk.bf16.gmra.mxu1 %vm3041_vm1, %v11829_v9 }
 0x26d   : > { %v4552_v53 = vmax.f32 %v3736_v12, 0.0  ;;  %10651 = vmatprep.mubr.msk.bf16.mxu1 %vm3041_vm1, %v11860_v31  ;;  %v4774_v54 = vpack.c.bf16 %v4554_v59, %v4553_v47  ;;  %v3757_v3 = vadd.f32 %v10553_v14, %v12382_v2 }
 0x26e   : > { %v3748_v27 = vpop.f32.mrf.mxu1 }
 0x26f   : > { %v4773_v48 = vpack.c.bf16 %v4552_v53, %v4551_v35  ;;  %v3749_v36 = vadd.f32 %v12382_v2, %v3748_v27  ;;  %v4557_v0 = vmax.f32 %v3757_v3, 0.0  ;;  %v15857_v35 = vld [vmem:[#allocation9_spill] sm:$0xff]  ;;  %v15858_v27 = vld [vmem:[#allocation12_spill] sm:$0xff] }
 0x270   : > { %v10554_v6 = vpop.f32.mrf.mxu1 }
 0x271   : > { %v3760_v25 = vadd.f32 %v10554_v6, %v12382_v2  ;;  %10807 = vmatprep.mubr.msk.bf16.mxu0 %vm3041_vm1, %v4773_v48  ;;  %v4555_v15 = vmax.f32 %v3749_v36, 0.0 }
 0x272   : > { %v3751_v17 = vpop.f32.mrf.mxu1  ;;  %10808 = vmatmul.mubr.msk.bf16.gmra.mxu0 %vm3041_vm1, %v4774_v54 }
 0x273   : > { %v3752_v9 = vadd.f32 %v12382_v2, %v3751_v17  ;;  %v4558_v60 = vmax.f32 %v3760_v25, 0.0 }
 0x274   : > { %v10557_v31 = vpop.f32.mrf.mxu1  ;;  %10652 = vmatmul.mubr.msk.bf16.gmra.mxu1 %vm3041_vm1, %v11855_v40 }
 0x275   : > { %v4556_v44 = vmax.f32 %v3752_v9, 0.0  ;;  %10655 = vmatprep.mubr.msk.bf16.mxu1 %vm3041_vm1, %v15852_v20  ;;  %v4776_v50 = vpack.c.bf16 %v4558_v60, %v4557_v0  ;;  %v3773_v8 = vadd.f32 %v10557_v31, %v12382_v2  ;;  %v15859_v20 = vld [vmem:[#allocation11_spill] sm:$0xff] }
 0x276   : > { %v3764_v55 = vpop.f32.mrf.mxu1 }
 0x277   : > { %v4775_v49 = vpack.c.bf16 %v4556_v44, %v4555_v15  ;;  %v3765_v58 = vadd.f32 %v12382_v2, %v3764_v55  ;;  %v4561_v24 = vmax.f32 %v3773_v8, 0.0 }
 0x278   : > { %v10558_v10 = vpop.f32.mrf.mxu1 }
 0x279   : > { %v3776_v37 = vadd.f32 %v10558_v10, %v12382_v2  ;;  %10811 = vmatprep.mubr.msk.bf16.mxu0 %vm3041_vm1, %v4775_v49  ;;  %v4559_v34 = vmax.f32 %v3765_v58, 0.0  ;;  %v15860_v49 = vld [vmem:[#allocation14_spill] sm:$0xff] }
 0x27a   : > { %v3767_v61 = vpop.f32.mrf.mxu1  ;;  %10812 = vmatmul.mubr.msk.bf16.gmra.mxu0 %vm3041_vm1, %v4776_v50 }
 0x27b   : > { %v3768_v40 = vadd.f32 %v12382_v2, %v3767_v61  ;;  %v4562_v39 = vmax.f32 %v3776_v37, 0.0 }
 0x27c   : > { %v10561_v32 = vpop.f32.mrf.mxu1  ;;  %10656 = vmatmul.mubr.msk.bf16.gmra.mxu1 %vm3041_vm1, %v15853_v41 }
 0x27d   : > { %v4560_v56 = vmax.f32 %v3768_v40, 0.0  ;;  %10659 = vmatprep.mubr.msk.bf16.mxu1 %vm3041_vm1, %v15854_v30  ;;  %v4778_v11 = vpack.c.bf16 %v4562_v39, %v4561_v24  ;;  %v3789_v4 = vadd.f32 %v10561_v32, %v12382_v2  ;;  %v15861_v30 = vld [vmem:[#allocation13_spill] sm:$0xff] }
 0x27e   : > { %v3780_v19 = vpop.f32.mrf.mxu1 }
 0x27f   : > { %v4777_v46 = vpack.c.bf16 %v4560_v56, %v4559_v34  ;;  %v3781_v23 = vadd.f32 %v12382_v2, %v3780_v19  ;;  %v4565_v28 = vmax.f32 %v3789_v4, 0.0 }
 0x280   : > { %v10562_v63 = vpop.f32.mrf.mxu1 }
 0x281   : > { %v3792_v62 = vadd.f32 %v10562_v63, %v12382_v2  ;;  %10815 = vmatprep.mubr.msk.bf16.mxu0 %vm3041_vm1, %v4777_v46  ;;  %v4563_v57 = vmax.f32 %v3781_v23, 0.0  ;;  %v15862_v46 = vld [vmem:[#allocation16_spill] sm:$0xff] }
 0x282   : > { %v3783_v16 = vpop.f32.mrf.mxu1  ;;  %10816 = vmatmul.mubr.msk.bf16.gmra.mxu0 %vm3041_vm1, %v4778_v11 }
 0x283   : > { %v3784_v26 = vadd.f32 %v12382_v2, %v3783_v16  ;;  %v4566_v52 = vmax.f32 %v3792_v62, 0.0 }
 0x284   : > { %v10565_v21 = vpop.f32.mrf.mxu1  ;;  %10660 = vmatmul.mubr.msk.bf16.gmra.mxu1 %vm3041_vm1, %v15855_v7 }
 0x285   : > { %v4564_v45 = vmax.f32 %v3784_v26, 0.0  ;;  %10663 = vmatprep.mubr.msk.bf16.mxu1 %vm3041_vm1, %v15856_v33  ;;  %v4780_v42 = vpack.c.bf16 %v4566_v52, %v4565_v28  ;;  %v3805_v38 = vadd.f32 %v10565_v21, %v12382_v2  ;;  %v15863_v33 = vld [vmem:[#allocation15_spill] sm:$0xff] }
 0x286   : > { %v3796_v13 = vpop.f32.mrf.mxu1 }
 0x287   : > { %v4779_v1 = vpack.c.bf16 %v4564_v45, %v4563_v57  ;;  %v3797_v18 = vadd.f32 %v12382_v2, %v3796_v13  ;;  %v4569_v48 = vmax.f32 %v3805_v38, 0.0 }
 0x288   : > { %v10566_v5 = vpop.f32.mrf.mxu1 }
 0x289   : > { %v3808_v29 = vadd.f32 %v10566_v5, %v12382_v2  ;;  %10819 = vmatprep.mubr.msk.bf16.mxu0 %vm3041_vm1, %v4779_v1  ;;  %v4567_v53 = vmax.f32 %v3797_v18, 0.0  ;;  %v15864_v1 = vld [vmem:[#allocation18_spill] sm:$0xff] }
 0x28a   : > { %v3799_v51 = vpop.f32.mrf.mxu1  ;;  %10820 = vmatmul.mubr.msk.bf16.gmra.mxu0 %vm3041_vm1, %v4780_v42 }
 0x28b   : > { %v3800_v12 = vadd.f32 %v12382_v2, %v3799_v51  ;;  %v4570_v59 = vmax.f32 %v3808_v29, 0.0  ;;  %v12675_v51 = vld [vmem:[%s15810_s6] ss:$0 sm:$0xff] }
 0x28c   : > { %v10569_v14 = vpop.f32.mrf.mxu1  ;;  %10664 = vmatmul.mubr.msk.bf16.gmra.mxu1 %vm3041_vm1, %v15857_v35 }
 0x28d   : > { %v4568_v47 = vmax.f32 %v3800_v12, 0.0  ;;  %10667 = vmatprep.mubr.msk.bf16.mxu1 %vm3041_vm1, %v15858_v27  ;;  %v4782_v36 = vpack.c.bf16 %v4570_v59, %v4569_v48  ;;  %v3821_v9 = vadd.f32 %v10569_v14, %v12382_v2 }
 0x28e   : > { %v3812_v54 = vpop.f32.mrf.mxu1 }
 0x28f   : > { %v4781_v6 = vpack.c.bf16 %v4568_v47, %v4567_v53  ;;  %v3813_v3 = vadd.f32 %v12382_v2, %v3812_v54  ;;  %v4573_v50 = vmax.f32 %v3821_v9, 0.0  ;;  %v15866_v9 = vld [vmem:[#allocation20_spill] sm:$0xff] }
 0x290   : > { %v10570_v25 = vpop.f32.mrf.mxu1 }
 0x291   : > { %v3824_v17 = vadd.f32 %v10570_v25, %v12382_v2  ;;  %10823 = vmatprep.mubr.msk.bf16.mxu0 %vm3041_vm1, %v4781_v6  ;;  %v4571_v0 = vmax.f32 %v3813_v3, 0.0  ;;  %v15865_v6 = vld [vmem:[#allocation17_spill] sm:$0xff] }
 0x292   : > { %v3815_v60 = vpop.f32.mrf.mxu1  ;;  %10824 = vmatmul.mubr.msk.bf16.gmra.mxu0 %vm3041_vm1, %v4782_v36 }
 0x293   : > { %v3816_v31 = vadd.f32 %v12382_v2, %v3815_v60  ;;  %v4574_v15 = vmax.f32 %v3824_v17, 0.0 }
 0x294   : > { %v10573_v44 = vpop.f32.mrf.mxu1  ;;  %10668 = vmatmul.mubr.msk.bf16.gmra.mxu1 %vm3041_vm1, %v15859_v20 }
 0x295   : > { %v4572_v55 = vmax.f32 %v3816_v31, 0.0  ;;  %10671 = vmatprep.mubr.msk.bf16.mxu1 %vm3041_vm1, %v15860_v49  ;;  %v4784_v37 = vpack.c.bf16 %v4574_v15, %v4573_v50  ;;  %v3837_v39 = vadd.f32 %v10573_v44, %v12382_v2 }
 0x296   : > { %v3828_v10 = vpop.f32.mrf.mxu1 }
 0x297   : > { %v4783_v58 = vpack.c.bf16 %v4572_v55, %v4571_v0  ;;  %v3829_v61 = vadd.f32 %v12382_v2, %v3828_v10  ;;  %v4577_v11 = vmax.f32 %v3837_v39, 0.0 }
 0x298   : > { %v10574_v8 = vpop.f32.mrf.mxu1 }
 0x299   : > { %v3840_v40 = vadd.f32 %v10574_v8, %v12382_v2  ;;  %10827 = vmatprep.mubr.msk.bf16.mxu0 %vm3041_vm1, %v4783_v58  ;;  %v4575_v24 = vmax.f32 %v3829_v61, 0.0 }
 0x29a   : > { %v3831_v32 = vpop.f32.mrf.mxu1  ;;  %10828 = vmatmul.mubr.msk.bf16.gmra.mxu0 %vm3041_vm1, %v4784_v37 }
 0x29b   : > { %v3832_v41 = vadd.f32 %v12382_v2, %v3831_v32  ;;  %v4578_v34 = vmax.f32 %v3840_v40, 0.0 }
 0x29c   : > { %v10577_v56 = vpop.f32.mrf.mxu1  ;;  %10672 = vmatmul.mubr.msk.bf16.gmra.mxu1 %vm3041_vm1, %v15861_v30 }
 0x29d   : > { %v4576_v19 = vmax.f32 %v3832_v41, 0.0  ;;  %10675 = vmatprep.mubr.msk.bf16.mxu1 %vm3041_vm1, %v15862_v46  ;;  %v4786_v62 = vpack.c.bf16 %v4578_v34, %v4577_v11  ;;  %v3853_v52 = vadd.f32 %v10577_v56, %v12382_v2 }
 0x29e   : > { %v3844_v63 = vpop.f32.mrf.mxu1 }
 0x29f   : > { %v4785_v23 = vpack.c.bf16 %v4576_v19, %v4575_v24  ;;  %v3845_v16 = vadd.f32 %v12382_v2, %v3844_v63  ;;  %v4581_v42 = vmax.f32 %v3853_v52, 0.0 }
 0x2a0   : > { %v10578_v4 = vpop.f32.mrf.mxu1 }
 0x2a1   : > { %v3856_v26 = vadd.f32 %v10578_v4, %v12382_v2  ;;  %10831 = vmatprep.mubr.msk.bf16.mxu0 %vm3041_vm1, %v4785_v23  ;;  %v4579_v28 = vmax.f32 %v3845_v16, 0.0 }
 0x2a2   : > { %v3847_v21 = vpop.f32.mrf.mxu1  ;;  %10832 = vmatmul.mubr.msk.bf16.gmra.mxu0 %vm3041_vm1, %v4786_v62 }
 0x2a3   : > { %v3848_v7 = vadd.f32 %v12382_v2, %v3847_v21  ;;  %v4582_v57 = vmax.f32 %v3856_v26, 0.0  ;;  %v12680_v2 = vld [vmem:[%s15808_s4] ss:$0 sm:$0xff]  ;;  %v15867_v26 = vld [vmem:[#allocation19_spill] sm:$0xff] }
 0x2a4   : > { %v10581_v45 = vpop.f32.mrf.mxu1  ;;  %10676 = vmatmul.mubr.msk.bf16.gmra.mxu1 %vm3041_vm1, %v15863_v33  ;;  %v15868_v33 = vld [vmem:[#allocation22_spill] sm:$0xff] }
 0x2a5   : > { %v4580_v13 = vmax.f32 %v3848_v7, 0.0  ;;  %10679 = vmatprep.mubr.msk.bf16.mxu1 %vm3041_vm1, %v15864_v1  ;;  %v4788_v29 = vpack.c.bf16 %v4582_v57, %v4581_v42  ;;  %v3869_v14 = vadd.f32 %v12680_v2, %v10581_v45 }
 0x2a6   : > { %v3860_v5 = vpop.f32.mrf.mxu1 }
 0x2a7   : > { %v4787_v18 = vpack.c.bf16 %v4580_v13, %v4579_v28  ;;  %v3861_v12 = vadd.f32 %v12680_v2, %v3860_v5  ;;  %v4585_v60 = vmax.f32 %v3869_v14, 0.0 }
 0x2a8   : > { %v10582_v38 = vpop.f32.mrf.mxu1 }
 0x2a9   : > { %v3872_v59 = vadd.f32 %v12680_v2, %v10582_v38  ;;  %10835 = vmatprep.mubr.msk.bf16.mxu0 %vm3041_vm1, %v4787_v18  ;;  %v4583_v25 = vmax.f32 %v3861_v12, 0.0 }
 0x2aa   : > { %v3863_v35 = vpop.f32.mrf.mxu1  ;;  %v10741_v53 = vpop.f32.mrf.mxu0  ;;  %10836 = vmatmul.mubr.msk.bf16.gmra.mxu0 %vm3041_vm1, %v4788_v29 }
 0x2ab   : > { %v3864_v47 = vadd.f32 %v12680_v2, %v3863_v35  ;;  %v5317_v27 = vadd.f32 %v10741_v53, %v12675_v51  ;;  %v4586_v48 = vmax.f32 %v3872_v59, 0.0 }
 0x2ac   : > { %v10585_v54 = vpop.f32.mrf.mxu1  ;;  %10680 = vmatmul.mubr.msk.bf16.gmra.mxu1 %vm3041_vm1, %v15865_v6  ;;  %v5308_v36 = vpop.f32.mrf.mxu0 }
 0x2ad   : > { %v4584_v3 = vmax.f32 %v3864_v47, 0.0  ;;  %v6333_v17 = vmax.f32 %v5317_v27, 0.0  ;;  %10683 = vmatprep.mubr.msk.bf16.mxu1 %vm3041_vm1, %v15866_v9  ;;  %v5309_v31 = vadd.f32 %v12675_v51, %v5308_v36  ;;  %v3885_v55 = vadd.f32 %v12680_v2, %v10585_v54 }
 0x2ae   : > { %v3876_v15 = vpop.f32.mrf.mxu1  ;;  %v10742_v44 = vpop.f32.mrf.mxu0  ;;  %v4790_v49 = vpack.c.bf16 %v4586_v48, %v4585_v60 }
 0x2af   : > { %v4789_v20 = vpack.c.bf16 %v4584_v3, %v4583_v25  ;;  %v6602_v0 = vsel %vm6587_vm2, %v6333_v17, 0.0  ;;  %v6331_v10 = vmax.f32 %v5309_v31, 0.0  ;;  %v5320_v58 = vadd.f32 %v10742_v44, %v12675_v51 }
 0x2b0   : > { %v6603_v50 = vrot.slane %v6602_v0, 4  ;;  %v10586_v37 = vpop.f32.mrf.mxu1  ;;  %v5311_v8 = vpop.f32.mrf.mxu0  ;;  %v3877_v61 = vadd.f32 %v12680_v2, %v3876_v15  ;;  %v4589_v24 = vmax.f32 %v3885_v55, 0.0 }
 0x2b1   : > { %v3888_v40 = vadd.f32 %v12680_v2, %v10586_v37  ;;  %v5312_v39 = vadd.f32 %v12675_v51, %v5311_v8  ;;  %10839 = vmatprep.mubr.msk.bf16.mxu0 %vm3041_vm1, %v4789_v20  ;;  %v6588_v41 = vsel %vm6587_vm2, %v6331_v10, 0.0  ;;  %v6334_v34 = vmax.f32 %v5320_v58, 0.0 }
 0x2b2   : > { %v6604_v32 = vadd.f32 %v6603_v50, %v6602_v0  ;;  %v3879_v56 = vpop.f32.mrf.mxu1  ;;  %v10745_v30 = vpop.f32.mrf.mxu0  ;;  %10840 = vmatmul.mubr.msk.bf16.gmra.mxu0 %vm3041_vm1, %v4790_v49  ;;  %v6589_v19 = vrot.slane %v6588_v41, 4  ;;  %v4587_v7 = vmax.f32 %v3877_v61, 0.0  ;;  %v15869_v50 = vld [vmem:[#allocation21_spill] sm:$0xff]  ;;  %v15870_v61 = vld [vmem:[#allocation24_spill] sm:$0xff] }
 0x2b3   : > { %v6332_v46 = vmax.f32 %v5312_v39, 0.0  ;;  %v3880_v11 = vadd.f32 %v12680_v2, %v3879_v56  ;;  %v6609_v23 = vsel %vm6587_vm2, %v6334_v34, 0.0  ;;  %v4590_v62 = vmax.f32 %v3888_v40, 0.0 }
 0x2b4   : > { %v6605_v63 = vrot.slane %v6604_v32, 2  ;;  %v5333_v4 = vadd.f32 %v10745_v30, %v12675_v51  ;;  %v10589_v16 = vpop.f32.mrf.mxu1  ;;  %10684 = vmatmul.mubr.msk.bf16.gmra.mxu1 %vm3041_vm1, %v15867_v26  ;;  %v5324_v52 = vpop.f32.mrf.mxu0  ;;  %v6590_v21 = vadd.f32 %v6589_v19, %v6588_v41  ;;  %v6610_v57 = vrot.slane %v6609_v23, 4 }
 0x2b5   : > { %v6595_v45 = vsel %vm6587_vm2, %v6332_v46, 0.0  ;;  %10687 = vmatprep.mubr.msk.bf16.mxu1 %vm3041_vm1, %v15868_v33  ;;  %v4588_v1 = vmax.f32 %v3880_v11, 0.0  ;;  %v5325_v12 = vadd.f32 %v12675_v51, %v5324_v52  ;;  %v4792_v59 = vpack.c.bf16 %v4590_v62, %v4589_v24 }
 0x2b6   : > { %v6606_v28 = vadd.f32 %v6605_v63, %v6604_v32  ;;  %v6596_v13 = vrot.slane %v6595_v45, 4  ;;  %v6337_v42 = vmax.f32 %v5333_v4, 0.0  ;;  %v3892_v5 = vpop.f32.mrf.mxu1  ;;  %v10746_v18 = vpop.f32.mrf.mxu0  ;;  %v6591_v29 = vrot.slane %v6590_v21, 2 }
 0x2b7   : > { %v6611_v38 = vadd.f32 %v6610_v57, %v6609_v23  ;;  %v4791_v35 = vpack.c.bf16 %v4588_v1, %v4587_v7  ;;  %v6335_v3 = vmax.f32 %v5325_v12, 0.0  ;;  %v12715_v15 = vadd.f32 %v12680_v2, %v10589_v16 }
 0x2b8   : > { %v6597_v14 = vadd.f32 %v6596_v13, %v6595_v45  ;;  %v6630_v53 = vsel %vm6587_vm2, %v6337_v42, 0.0  ;;  %v10590_v47 = vpop.f32.mrf.mxu1  ;;  %v5327_v27 = vpop.f32.mrf.mxu0  ;;  %v6607_v48 = vrot.slane %v6606_v28, 1  ;;  %v6592_v54 = vadd.f32 %v6591_v29, %v6590_v21 }
 0x2b9   : > { %v6612_v6 = vrot.slane %v6611_v38, 2  ;;  %v6631_v36 = vrot.slane %v6630_v53, 4  ;;  %10843 = vmatprep.mubr.msk.bf16.mxu0 %vm3041_vm1, %v4791_v35  ;;  %v5336_v44 = vadd.f32 %v10746_v18, %v12675_v51  ;;  %v6616_v55 = vsel %vm6587_vm2, %v6335_v3, 0.0  ;;  %v15871_v35 = vld [vmem:[#allocation23_spill] sm:$0xff] }
 0x2ba   : > { %v6598_v25 = vrot.slane %v6597_v14, 2  ;;  %v3895_v17 = vpop.f32.mrf.mxu1  ;;  %v10749_v9 = vpop.f32.mrf.mxu0  ;;  %10844 = vmatmul.mubr.msk.bf16.gmra.mxu0 %vm3041_vm1, %v4792_v59  ;;  %v6593_v20 = vrot.slane %v6592_v54, 1  ;;  %v6608_v58 = vadd.f32 %v6607_v48, %v6606_v28  ;;  %v6617_v8 = vrot.slane %v6616_v55, 4 }
 0x2bb   : > { %v6613_v60 = vadd.f32 %v6612_v6, %v6611_v38  ;;  %v6632_v31 = vadd.f32 %v6631_v36, %v6630_v53  ;;  %v3893_v39 = vadd.f32 %v12680_v2, %v3892_v5  ;;  %v6338_v32 = vmax.f32 %v5336_v44, 0.0  ;;  %v15872_v6 = vld [vmem:[#allocation26_spill] sm:$0xff] }
 0x2bc   : > { %v6599_v0 = vadd.f32 %v6598_v25, %v6597_v14  ;;  %v10593_v49 = vpop.f32.mrf.mxu1  ;;  %10688 = vmatmul.mubr.msk.bf16.gmra.mxu1 %vm3041_vm1, %v15869_v50  ;;  %v5340_v10 = vpop.f32.mrf.mxu0  ;;  %v5328_v41 = vadd.f32 %v12675_v51, %v5327_v27  ;;  %v4593_v30 = vmax.f32 %v12715_v15, 0.0  ;;  %v6618_v24 = vadd.f32 %v6617_v8, %v6616_v55 }
 0x2bd   : > { %v6614_v37 = vrot.slane %v6613_v60, 1  ;;  %10691 = vmatprep.mubr.msk.bf16.mxu1 %vm3041_vm1, %v15870_v61  ;;  %v6633_v40 = vrot.slane %v6632_v31, 2  ;;  %v3904_v19 = vadd.f32 %v12680_v2, %v10590_v47  ;;  %v6594_v46 = vadd.f32 %v6593_v20, %v6592_v54 }
 0x2be   : > { %v3908_v34 = vpop.f32.mrf.mxu1  ;;  %v10750_v56 = vpop.f32.mrf.mxu0  ;;  %v6600_v11 = vrot.slane %v6599_v0, 1  ;;  %v6637_v63 = vsel %vm6587_vm2, %v6338_v32, 0.0  ;;  %v6336_v23 = vmax.f32 %v5328_v41, 0.0  ;;  %v12729_v16 = vmul.f32 0.125, %v6608_v58 }
 0x2bf   : > { %v6615_v26 = vadd.f32 %v6614_v37, %v6613_v60  ;;  %v6619_v52 = vrot.slane %v6618_v24, 2  ;;  %v6638_v21 = vrot.slane %v6637_v63, 4  ;;  %v12731_v7 = vadd.f32 %v6633_v40, %v6632_v31 }
 0x2c0   : > { %v10594_v62 = vpop.f32.mrf.mxu1  ;;  %v5343_v4 = vpop.f32.mrf.mxu0  ;;  %v4591_v57 = vmax.f32 %v3893_v39, 0.0  ;;  %v6623_v45 = vsel %vm6587_vm2, %v6336_v23, 0.0  ;;  %v3896_v33 = vadd.f32 %v12680_v2, %v3895_v17  ;;  %v4594_v5 = vmax.f32 %v3904_v19, 0.0 }
 0x2c1   : > { %v6620_v1 = vadd.f32 %v6619_v52, %v6618_v24  ;;  %v12735_v42 = vadd.f32 %v6638_v21, %v6637_v63  ;;  %v5349_v18 = vadd.f32 %v10749_v9, %v12675_v51  ;;  %v12738_v29 = vmul.f32 0.125, %v6594_v46  ;;  %v15873_v52 = vld [vmem:[#allocation25_spill] sm:$0xff] }
 0x2c2   : > { %v3911_v28 = vpop.f32.mrf.mxu1  ;;  %v10753_v13 = vpop.f32.mrf.mxu0  ;;  %v12740_v38 = vadd.f32 %v6600_v11, %v6599_v0  ;;  %v4592_v12 = vmax.f32 %v3896_v33, 0.0  ;;  %v5341_v59 = vadd.f32 %v12675_v51, %v5340_v10  ;;  %v12747_v47 = vmul.f32 0.125, %v6615_v26 }
 0x2c3   : > { %v6624_v27 = vrot.slane %v6623_v45, 4  ;;  %v6341_v48 = vmax.f32 %v5349_v18, 0.0  ;;  %v3917_v54 = vadd.f32 %v12680_v2, %v10593_v49  ;;  %v6635_v36 = vrot.slane %v12731_v7, 1 }
 0x2c4   : > { %v12743_v14 = vpop.f32.mrf.mxu1  ;;  %10692 = vmatmul.mubr.msk.bf16.gmra.mxu1 %vm3041_vm1, %v15871_v35  ;;  %v5356_v53 = vpop.f32.mrf.mxu0  ;;  %v4793_v25 = vpack.c.bf16 %v4592_v12, %v4591_v57  ;;  %v6339_v3 = vmax.f32 %v5341_v59, 0.0  ;;  %v3909_v17 = vadd.f32 %v12680_v2, %v3908_v34  ;;  %v6621_v31 = vrot.slane %v6620_v1, 1 }
 0x2c5   : > { %10695 = vmatprep.mubr.msk.bf16.mxu1 %vm3041_vm1, %v15872_v6  ;;  %v6640_v15 = vrot.slane %v12735_v42, 2  ;;  %v4794_v44 = vpack.c.bf16 %v4594_v5, %v4593_v30  ;;  %v6658_v20 = vsel %vm6587_vm2, %v6341_v48, 0.0  ;;  %v5352_v49 = vadd.f32 %v10750_v56, %v12675_v51  ;;  %v15874_v5 = vld [vmem:[#allocation28_spill] sm:$0xff] }
 0x2c6   : > { %v12754_v9 = vpop.f32.mrf.mxu1  ;;  %v12756_v60 = vpop.f32.mrf.mxu0  ;;  %v6659_v0 = vrot.slane %v6658_v20, 4  ;;  %v6644_v55 = vsel %vm6587_vm2, %v6339_v3, 0.0  ;;  %v3920_v50 = vadd.f32 %v12680_v2, %v10594_v62  ;;  %10847 = vmatprep.mubr.msk.bf16.mxu0 %vm3041_vm1, %v4793_v25  ;;  %v6625_v37 = vadd.f32 %v6624_v27, %v6623_v45 }
 0x2c7   : > { %v4597_v8 = vmax.f32 %v3917_v54, 0.0  ;;  %v6645_v61 = vrot.slane %v6644_v55, 4  ;;  %v5344_v40 = vadd.f32 %v12675_v51, %v5343_v4  ;;  %10848 = vmatmul.mubr.msk.bf16.gmra.mxu0 %vm3041_vm1, %v4794_v44  ;;  %v4595_v32 = vmax.f32 %v3909_v17, 0.0 }
 0x2c8   : > { %v12764_v10 = vpop.f32.mrf.mxu1  ;;  %v12766_v58 = vpop.f32.mrf.mxu0  ;;  %v6660_v39 = vadd.f32 %v6659_v0, %v6658_v20  ;;  %v6342_v41 = vmax.f32 %v5352_v49, 0.0  ;;  %v3912_v34 = vadd.f32 %v12680_v2, %v3911_v28  ;;  %v4598_v19 = vmax.f32 %v3920_v50, 0.0 }
 0x2c9   : > { %v6646_v24 = vadd.f32 %v6645_v61, %v6644_v55  ;;  %v6340_v46 = vmax.f32 %v5344_v40, 0.0  ;;  %v5365_v11 = vadd.f32 %v10753_v13, %v12675_v51  ;;  %v6622_v63 = vadd.f32 %v6621_v31, %v6620_v1 }
 0x2ca   : > { %v12771_v56 = vpop.f32.mrf.mxu1  ;;  %v12773_v30 = vpop.f32.mrf.mxu0  ;;  %v6661_v23 = vrot.slane %v6660_v39, 2  ;;  %v6665_v62 = vsel %vm6587_vm2, %v6342_v41, 0.0  ;;  %v4596_v4 = vmax.f32 %v3912_v34, 0.0  ;;  %v6626_v13 = vrot.slane %v6625_v37, 2 }
 0x2cb   : > { %v6647_v57 = vrot.slane %v6646_v24, 2  ;;  %v6666_v45 = vrot.slane %v6665_v62, 4  ;;  %v6651_v33 = vsel %vm6587_vm2, %v6340_v46, 0.0  ;;  %v6345_v28 = vmax.f32 %v5365_v11, 0.0 }
 0x2cc   : > { %v12777_v26 = vpop.f32.mrf.mxu1  ;;  %10696 = vmatmul.mubr.msk.bf16.gmra.mxu1 %vm3041_vm1, %v15873_v52  ;;  %v12781_v21 = vpop.f32.mrf.mxu0  ;;  %v6662_v1 = vadd.f32 %v6661_v23, %v6660_v39  ;;  %v6652_v18 = vrot.slane %v6651_v33, 4  ;;  %v4795_v12 = vpack.c.bf16 %v4596_v4, %v4595_v32  ;;  %v4796_v48 = vpack.c.bf16 %v4598_v19, %v4597_v8  ;;  %v15876_v4 = vld [vmem:[#allocation30_spill] sm:$0xff] }
 0x2cd   : > { %10699 = vmatprep.mubr.msk.bf16.mxu1 %vm3041_vm1, %v15874_v5  ;;  %v6667_v27 = vadd.f32 %v6666_v45, %v6665_v62  ;;  %v6686_v54 = vsel %vm6587_vm2, %v6345_v28, 0.0  ;;  %v5357_v6 = vadd.f32 %v12675_v51, %v5356_v53  ;;  %v12793_v25 = vmul.f32 0.125, %v12740_v38 }
 0x2ce   : > { %v12786_v59 = vpop.f32.mrf.mxu1  ;;  %v12788_v35 = vpop.f32.mrf.mxu0  ;;  %v6648_v3 = vadd.f32 %v6647_v57, %v6646_v24  ;;  %v6653_v17 = vadd.f32 %v6652_v18, %v6651_v33  ;;  %v6687_v31 = vrot.slane %v6686_v54, 4  ;;  %10851 = vmatprep.mubr.msk.bf16.mxu0 %vm3041_vm1, %v4795_v12  ;;  %v12801_v0 = vadd.f32 %v6640_v15, %v12735_v42 }
 0x2cf   : > { %v6663_v55 = vrot.slane %v6662_v1, 1  ;;  %v6668_v49 = vrot.slane %v6667_v27, 2  ;;  %v6343_v50 = vmax.f32 %v5357_v6, 0.0  ;;  %10852 = vmatmul.mubr.msk.bf16.gmra.mxu0 %vm3041_vm1, %v4796_v48  ;;  %v12804_v53 = vmul.f32 0.125, %v6622_v63 }
 0x2d0   : > { %v12796_v44 = vpop.f32.mrf.mxu1  ;;  %v12798_v20 = vpop.f32.mrf.mxu0  ;;  %v6654_v38 = vrot.slane %v6653_v17, 2  ;;  %v6688_v8 = vadd.f32 %v6687_v31, %v6686_v54  ;;  %v5368_v61 = vadd.f32 %v12756_v60, %v12675_v51  ;;  %v12812_v32 = vadd.f32 %v6626_v13, %v6625_v37  ;;  %v15875_v60 = vld [vmem:[#allocation27_spill] sm:$0xff] }
 0x2d1   : > { %v6669_v42 = vadd.f32 %v6668_v49, %v6667_v27  ;;  %v3933_v15 = vadd.f32 %v12680_v2, %v12743_v14  ;;  %v6672_v41 = vsel %vm6587_vm2, %v6343_v50, 0.0  ;;  %v6649_v34 = vrot.slane %v6648_v3, 1 }
 0x2d2   : > { %v12808_v40 = vpop.f32.mrf.mxu1  ;;  %v12810_v39 = vpop.f32.mrf.mxu0  ;;  %v6655_v24 = vadd.f32 %v6654_v38, %v6653_v17  ;;  %v6673_v19 = vrot.slane %v6672_v41, 4  ;;  %v3925_v46 = vadd.f32 %v12680_v2, %v12754_v9  ;;  %v6664_v37 = vadd.f32 %v6663_v55, %v6662_v1 }
 0x2d3   : > { %v6689_v23 = vrot.slane %v6688_v8, 2  ;;  %v6346_v62 = vmax.f32 %v5368_v61, 0.0  ;;  %v3936_v14 = vadd.f32 %v12680_v2, %v12764_v10  ;;  %v6670_v52 = vrot.slane %v6669_v42, 1 }
 0x2d4   : > { %v12819_v11 = vpop.f32.mrf.mxu1  ;;  %10700 = vmatmul.mubr.msk.bf16.gmra.mxu1 %vm3041_vm1, %v15875_v60  ;;  %v12823_v63 = vpop.f32.mrf.mxu0  ;;  %v6656_v57 = vrot.slane %v6655_v24, 1  ;;  %v6674_v45 = vadd.f32 %v6673_v19, %v6672_v41  ;;  %v5360_v9 = vadd.f32 %v12675_v51, %v12766_v58  ;;  %v6628_v5 = vrot.slane %v12812_v32, 1  ;;  %v15877_v60 = vld [vmem:[#allocation29_spill] sm:$0xff] }
 0x2d5   : > { %10703 = vmatprep.mubr.msk.bf16.mxu1 %vm3041_vm1, %v15876_v4  ;;  %v6693_v13 = vsel %vm6587_vm2, %v6346_v62, 0.0  ;;  %v4602_v1 = vmax.f32 %v3936_v14, 0.0  ;;  %v3928_v10 = vadd.f32 %v12680_v2, %v12771_v56  ;;  %v6650_v18 = vadd.f32 %v6649_v34, %v6648_v3  ;;  %v15878_v4 = vld [vmem:[#allocation32_spill] sm:$0xff] }
 0x2d6   : > { %v12831_v33 = vpop.f32.mrf.mxu1  ;;  %v12833_v28 = vpop.f32.mrf.mxu0  ;;  %v4601_v12 = vmax.f32 %v3933_v15, 0.0  ;;  %v6675_v27 = vrot.slane %v6674_v45, 2  ;;  %v6694_v48 = vrot.slane %v6693_v13, 4  ;;  %v12843_v6 = vmul.f32 0.125, %v6664_v37 }
 0x2d7   : > { %v4599_v17 = vmax.f32 %v3925_v46, 0.0  ;;  %v6344_v31 = vmax.f32 %v5360_v9, 0.0  ;;  %v4600_v55 = vmax.f32 %v3928_v10, 0.0  ;;  %v6671_v49 = vadd.f32 %v6670_v52, %v6669_v42 }
 0x2d8   : > { %v12839_v54 = vpop.f32.mrf.mxu1  ;;  %v12841_v58 = vpop.f32.mrf.mxu0  ;;  %v6657_v50 = vadd.f32 %v6656_v57, %v6655_v24  ;;  %v12845_v38 = vadd.f32 %v6689_v23, %v6688_v8  ;;  %v5381_v56 = vadd.f32 %v12773_v30, %v12675_v51  ;;  %v4798_v15 = vpack.c.bf16 %v4602_v1, %v4601_v12 }
 0x2d9   : > { %v6679_v41 = vsel %vm6587_vm2, %v6344_v31, 0.0  ;;  %v4797_v34 = vpack.c.bf16 %v4600_v55, %v4599_v17  ;;  %v5373_v19 = vadd.f32 %v12675_v51, %v12781_v21  ;;  %v6676_v42 = vadd.f32 %v6675_v27, %v6674_v45 }
 0x2da   : > { %v12849_v3 = vpop.f32.mrf.mxu1  ;;  %v12851_v61 = vpop.f32.mrf.mxu0  ;;  %v12856_v24 = vadd.f32 %v6694_v48, %v6693_v13  ;;  %v6680_v8 = vrot.slane %v6679_v41, 4  ;;  %v6349_v46 = vmax.f32 %v5381_v56, 0.0  ;;  %v12864_v23 = vmul.f32 0.125, %v6650_v18 }
 0x2db   : > { %v12868_v62 = vadd.f32 %v12680_v2, %v12777_v26  ;;  %v6347_v21 = vmax.f32 %v5373_v19, 0.0  ;;  %v5384_v14 = vadd.f32 %v12788_v35, %v12675_v51  ;;  %10855 = vmatprep.mubr.msk.bf16.mxu0 %vm3041_vm1, %v4797_v34  ;;  %v12875_v52 = vmul.f32 0.125, %v6671_v49 }
 0x2dc   : > { %v12858_v30 = vpop.f32.mrf.mxu1  ;;  %10704 = vmatmul.mubr.msk.bf16.gmra.mxu1 %vm3041_vm1, %v15877_v60  ;;  %v12862_v37 = vpop.f32.mrf.mxu0  ;;  %v6681_v45 = vadd.f32 %v6680_v8, %v6679_v41  ;;  %v6714_v9 = vsel %vm6587_vm2, %v6349_v46, 0.0  ;;  %10856 = vmatmul.mubr.msk.bf16.gmra.mxu0 %vm3041_vm1, %v4798_v15  ;;  %v12884_v35 = vmul.f32 0.125, %v6657_v50  ;;  %v6677_v12 = vrot.slane %v6676_v42, 1 }
 0x2dd   : > { %10707 = vmatprep.mubr.msk.bf16.mxu1 %vm3041_vm1, %v15878_v4  ;;  %v6715_v1 = vrot.slane %v6714_v9, 4  ;;  %v6700_v10 = vsel %vm6587_vm2, %v6347_v21, 0.0  ;;  %v6350_v18 = vmax.f32 %v5384_v14, 0.0  ;;  %v6696_v27 = vrot.slane %v12856_v24, 2 }
 0x2de   : > { %v12880_v26 = vpop.f32.mrf.mxu1  ;;  %v12882_v13 = vpop.f32.mrf.mxu0  ;;  %v6701_v48 = vrot.slane %v6700_v10, 4  ;;  %v6629_v17 = vadd.f32 %v6628_v5, %v12812_v32  ;;  %v4605_v56 = vmax.f32 %v12868_v62, 0.0  ;;  %v6642_v15 = vrot.slane %v12801_v0, 1 }
 0x2df   : > { %v6716_v49 = vadd.f32 %v6715_v1, %v6714_v9  ;;  %v6721_v50 = vsel %vm6587_vm2, %v6350_v18, 0.0  ;;  %v6682_v41 = vrot.slane %v6681_v45, 2  ;;  %v6636_v8 = vadd.f32 %v6635_v36, %v12731_v7  ;;  %v15879_v1 = vld [vmem:[#allocation31_spill] sm:$0xff] }
 0x2e0   : > { %v12889_v31 = vpop.f32.mrf.mxu1  ;;  %v12891_v55 = vpop.f32.mrf.mxu0  ;;  %v6702_v34 = vadd.f32 %v6701_v48, %v6700_v10  ;;  %v6722_v19 = vrot.slane %v6721_v50, 4  ;;  %v6643_v60 = vadd.f32 %v6642_v15, %v12801_v0  ;;  %v8385_v21 = vmul.f32 0.125, %v6629_v17 }
 0x2e1   : > { %v6717_v5 = vrot.slane %v6716_v49, 2  ;;  %v8893_v62 = vsel %vm8892_vm3, %v12793_v25, %v12738_v29  ;;  %v3941_v4 = vadd.f32 %v12680_v2, %v12786_v59  ;;  %v12917_v0 = vadd.f32 %v6677_v12, %v6676_v42  ;;  %v15880_v25 = vld [vmem:[#allocation34_spill] sm:$0xff] }
 0x2e2   : > { %v12899_v46 = vpop.f32.mrf.mxu1  ;;  %v12901_v32 = vpop.f32.mrf.mxu0  ;;  %v6703_v14 = vrot.slane %v6702_v34, 2  ;;  %v6723_v9 = vadd.f32 %v6722_v19, %v6721_v50  ;;  %v8895_v7 = vsel %vm8894_vm4, %v12729_v16, %v8893_v62  ;;  %v3952_v59 = vadd.f32 %v12680_v2, %v12796_v44 }
 0x2e3   : > { %v6718_v18 = vadd.f32 %v6717_v5, %v6716_v49  ;;  %v8897_v29 = vsel %vm8896_vm5, %v12747_v47, %v8895_v7  ;;  %v8386_v17 = vmul.f32 0.125, %v6636_v8  ;;  %v12931_v12 = vadd.f32 %v6682_v41, %v6681_v45 }
 0x2e4   : > { %v12911_v36 = vpop.f32.mrf.mxu1  ;;  %10708 = vmatmul.mubr.msk.bf16.gmra.mxu1 %vm3041_vm1, %v15879_v1  ;;  %v12915_v10 = vpop.f32.mrf.mxu0  ;;  %v6704_v16 = vadd.f32 %v6703_v14, %v6702_v34  ;;  %v6724_v48 = vrot.slane %v6723_v9, 2  ;;  %v8899_v50 = vsel %vm8898_vm6, %v12804_v53, %v8897_v29  ;;  %v8387_v49 = vmul.f32 0.125, %v6643_v60 }
 0x2e5   : > { %10711 = vmatprep.mubr.msk.bf16.mxu1 %vm3041_vm1, %v15880_v25  ;;  %v8901_v47 = vsel %vm8900_vm7, %v8385_v21, %v8899_v50  ;;  %v5376_v44 = vadd.f32 %v12675_v51, %v12798_v20  ;;  %v6719_v19 = vrot.slane %v6718_v18, 1  ;;  %v4606_v5 = vmax.f32 %v3952_v59, 0.0  ;;  %v15881_v50 = vld [vmem:[#allocation33_spill] sm:$0xff] }
 0x2e6   : > { %v12927_v15 = vpop.f32.mrf.mxu1  ;;  %v12929_v42 = vpop.f32.mrf.mxu0  ;;  %v8903_v34 = vsel %vm8902_vm8, %v8386_v17, %v8901_v47  ;;  %v3944_v8 = vadd.f32 %v12680_v2, %v12808_v40  ;;  %v6705_v14 = vrot.slane %v6704_v16, 1  ;;  %v6725_v45 = vadd.f32 %v6724_v48, %v6723_v9 }
 0x2e7   : > { %v8905_v41 = vsel %vm8904_vm9, %v8387_v49, %v8903_v34  ;;  %v6348_v60 = vmax.f32 %v5376_v44, 0.0  ;;  %v12945_v21 = vadd.f32 %v6696_v27, %v12856_v24  ;;  %v4603_v20 = vmax.f32 %v3941_v4, 0.0 }
 0x2e8   : > { %v12939_v53 = vpop.f32.mrf.mxu1  ;;  %v12941_v62 = vpop.f32.mrf.mxu0  ;;  %9155 = vxpose.xlu0.b32.start [1/16] (narrow) %v8905_v41, 8  ;;  %v4604_v7 = vmax.f32 %v3944_v8, 0.0  ;;  %v5397_v1 = vadd.f32 %v12810_v39, %v12675_v51  ;;  %v3965_v25 = vadd.f32 %v12680_v2, %v12819_v11  ;;  %v5389_v24 = vadd.f32 %v12675_v51, %v12823_v63  ;;  %v15882_v11 = vld [vmem:[#allocation36_spill] sm:$0xff] }
 0x2e9   : > { %v6707_v9 = vsel %vm6587_vm2, %v6348_v60, 0.0  ;;  %v12959_v27 = vadd.f32 %v6719_v19, %v6718_v18  ;;  %v4800_v4 = vpack.c.bf16 %v4606_v5, %v4605_v56  ;;  %v6706_v47 = vadd.f32 %v6705_v14, %v6704_v16 }
 0x2ea   : > { %v12949_v29 = vpop.f32.mrf.mxu1  ;;  %v12951_v40 = vpop.f32.mrf.mxu0  ;;  %v6708_v48 = vrot.slane %v6707_v9, 4  ;;  %v4799_v17 = vpack.c.bf16 %v4604_v7, %v4603_v20  ;;  %v6726_v44 = vrot.slane %v6725_v45, 1  ;;  %v6353_v34 = vmax.f32 %v5397_v1, 0.0 }
 0x2eb   : > { %v6351_v8 = vmax.f32 %v5389_v24, 0.0  ;;  %v4609_v18 = vmax.f32 %v3965_v25, 0.0  ;;  %v5400_v56 = vadd.f32 %v12833_v28, %v12675_v51  ;;  %v3968_v19 = vadd.f32 %v12680_v2, %v12839_v54 }
 0x2ec   : > { %v12961_v39 = vpop.f32.mrf.mxu1  ;;  %10712 = vmatmul.mubr.msk.bf16.gmra.mxu1 %vm3041_vm1, %v15881_v50  ;;  %v12965_v49 = vpop.f32.mrf.mxu0  ;;  %v6709_v63 = vadd.f32 %v6708_v48, %v6707_v9  ;;  %10859 = vmatprep.mubr.msk.bf16.mxu0 %vm3041_vm1, %v4799_v17  ;;  %v6742_v16 = vsel %vm6587_vm2, %v6353_v34, 0.0  ;;  %v3957_v60 = vadd.f32 %v12680_v2, %v12831_v33  ;;  %v5392_v20 = vadd.f32 %v12675_v51, %v12841_v58 }
 0x2ed   : > { %10715 = vmatprep.mubr.msk.bf16.mxu1 %vm3041_vm1, %v15882_v11  ;;  %v6728_v14 = vsel %vm6587_vm2, %v6351_v8, 0.0  ;;  %10860 = vmatmul.mubr.msk.bf16.gmra.mxu0 %vm3041_vm1, %v4800_v4  ;;  %v6743_v54 = vrot.slane %v6742_v16, 4  ;;  %v6354_v1 = vmax.f32 %v5400_v56, 0.0  ;;  %v4610_v24 = vmax.f32 %v3968_v19, 0.0 }
 0x2ee   : > { %v12974_v5 = vpop.f32.mrf.mxu1  ;;  %v12976_v41 = vpop.f32.mrf.mxu0  ;;  %v6710_v28 = vrot.slane %v6709_v63, 2  ;;  %v6729_v7 = vrot.slane %v6728_v14, 4  ;;  %v6352_v48 = vmax.f32 %v5392_v20, 0.0  ;;  %v3960_v17 = vadd.f32 %v12680_v2, %v12849_v3 }
 0x2ef   : > { %15883 = vst [vmem:[#allocation6_spill] sm:$0xff] %v12974_v5  ;;  %v5413_v33 = vadd.f32 %v12851_v61, %v12675_v51  ;;  %v6744_v58 = vadd.f32 %v6743_v54, %v6742_v16  ;;  %v6749_v4 = vsel %vm6587_vm2, %v6354_v1, 0.0  ;;  %v4607_v56 = vmax.f32 %v3957_v60, 0.0  ;;  %v15886_v61 = vld [vmem:[#allocation35_spill] sm:$0xff]  ;;  %v15887_v54 = vld [vmem:[#allocation38_spill] sm:$0xff] }
 0x2f0   : > { %v12985_v9 = vpop.f32.mrf.mxu1  ;;  %v12987_v25 = vpop.f32.mrf.mxu0  ;;  %v6711_v50 = vadd.f32 %v6710_v28, %v6709_v63  ;;  %v6730_v34 = vadd.f32 %v6729_v7, %v6728_v14  ;;  %v6750_v57 = vrot.slane %v6749_v4, 4  ;;  %v6735_v19 = vsel %vm6587_vm2, %v6352_v48, 0.0 }
 0x2f1   : > { %15884 = vst [vmem:[#allocation5_spill] sm:$0xff] %v12985_v9  ;;  %15885 = vst [vmem:[#allocation8_spill] sm:$0xff] %v12987_v25  ;;  %v4608_v20 = vmax.f32 %v3960_v17, 0.0  ;;  %v6727_v59 = vadd.f32 %v6726_v44, %v6725_v45  ;;  %v6736_v9 = vrot.slane %v6735_v19, 4  ;;  %v13006_v16 = vmul.f32 0.125, %v12917_v0 }
 0x2f2   : > { %v12994_v8 = vpop.f32.mrf.mxu1  ;;  %v12996_v11 = vpop.f32.mrf.mxu0  ;;  %v6712_v25 = vrot.slane %v6711_v50, 1  ;;  %v6731_v3 = vrot.slane %v6730_v34, 2  ;;  %v4802_v14 = vpack.c.bf16 %v4610_v24, %v4609_v18  ;;  %v6357_v28 = vmax.f32 %v5413_v33, 0.0 }
 0x2f3   : > { %v4801_v60 = vpack.c.bf16 %v4608_v20, %v4607_v56  ;;  %v6745_v45 = vrot.slane %v6744_v58, 2  ;;  %v13010_v7 = vadd.f32 %v6750_v57, %v6749_v4  ;;  %v6737_v1 = vadd.f32 %v6736_v9, %v6735_v19 }
 0x2f4   : > { %v12999_v5 = vpop.f32.mrf.mxu1  ;;  %10716 = vmatmul.mubr.msk.bf16.gmra.mxu1 %vm3041_vm1, %v15886_v61  ;;  %v13003_v63 = vpop.f32.mrf.mxu0  ;;  %v6732_v44 = vadd.f32 %v6731_v3, %v6730_v34  ;;  %v15888_v61 = vrot.slane %v12931_v12, 1  ;;  %v13020_v18 = vmul.f32 0.125, %v12959_v27  ;;  %v6770_v24 = vsel %vm6587_vm2, %v6357_v28, 0.0 }
 0x2f5   : > { %10719 = vmatprep.mubr.msk.bf16.mxu1 %vm3041_vm1, %v15887_v54  ;;  %v5405_v33 = vadd.f32 %v12675_v51, %v12862_v37  ;;  %10863 = vmatprep.mubr.msk.bf16.mxu0 %vm3041_vm1, %v4801_v60  ;;  %v13026_v57 = vmul.f32 0.125, %v6706_v47  ;;  %v13028_v9 = vmul.f32 0.125, %v6727_v59  ;;  %v6713_v34 = vadd.f32 %v6712_v25, %v6711_v50 }
 0x2f6   : > { %v13012_v48 = vpop.f32.mrf.mxu1  ;;  %v13014_v17 = vpop.f32.mrf.mxu0  ;;  %v6685_v0 = vadd.f32 %v15888_v61, %v12931_v12  ;;  %v13032_v4 = vadd.f32 %v12680_v2, %v12858_v30  ;;  %10864 = vmatmul.mubr.msk.bf16.gmra.mxu0 %vm3041_vm1, %v4802_v14  ;;  %v6733_v56 = vrot.slane %v6732_v44, 1  ;;  %v6738_v19 = vrot.slane %v6737_v1, 2 }
 0x2f7   : > { %v6771_v37 = vrot.slane %v6770_v24, 4  ;;  %v6355_v20 = vmax.f32 %v5405_v33, 0.0  ;;  %v13039_v3 = vadd.f32 %v6745_v45, %v6744_v58  ;;  %v6752_v59 = vrot.slane %v13010_v7, 2 }
 0x2f8   : > { %v13035_v12 = vpop.f32.mrf.mxu1  ;;  %v13037_v27 = vpop.f32.mrf.mxu0  ;;  %v3973_v47 = vadd.f32 %v12680_v2, %v12880_v26  ;;  %v5416_v30 = vadd.f32 %v12882_v13, %v12675_v51  ;;  %v15891_v28 = vrot.slane %v12845_v38, 1  ;;  %v6698_v54 = vrot.slane %v12945_v21, 1 }
 0x2f9   : > { %v6772_v14 = vadd.f32 %v6771_v37, %v6770_v24  ;;  %v6756_v60 = vsel %vm6587_vm2, %v6355_v20, 0.0  ;;  %v13055_v45 = vmul.f32 0.125, %v6713_v34  ;;  %v4613_v26 = vmax.f32 %v13032_v4, 0.0 }
 0x2fa   : > { %v13046_v25 = vpop.f32.mrf.mxu1  ;;  %v13048_v50 = vpop.f32.mrf.mxu0  ;;  %v6692_v58 = vadd.f32 %v15891_v28, %v12845_v38  ;;  %v6757_v61 = vrot.slane %v6756_v60, 4  ;;  %v6358_v33 = vmax.f32 %v5416_v30, 0.0  ;;  %v6734_v37 = vadd.f32 %v6733_v56, %v6732_v44 }
 0x2fb   : > { %15889 = vst [vmem:[#allocation7_spill] sm:$0xff] %v13046_v25  ;;  %15890 = vst [vmem:[#allocation10_spill] sm:$0xff] %v13048_v50  ;;  %v15893_v25 = vld [vmem:[#allocation37_spill] sm:$0xff]  ;;  %v6739_v20 = vadd.f32 %v6738_v19, %v6737_v1  ;;  %v6773_v50 = vrot.slane %v6772_v14, 2  ;;  %v6699_v38 = vadd.f32 %v6698_v54, %v12945_v21  ;;  %v8393_v28 = vmul.f32 0.125, %v6685_v0 }
 0x2fc   : > { %v13058_v13 = vpop.f32.mrf.mxu1  ;;  %10720 = vmatmul.mubr.msk.bf16.gmra.mxu1 %vm3041_vm1, %v15893_v25  ;;  %v13062_v24 = vpop.f32.mrf.mxu0  ;;  %v6758_v34 = vadd.f32 %v6757_v61, %v6756_v60  ;;  %v6777_v4 = vsel %vm6587_vm2, %v6358_v33, 0.0  ;;  %v8906_v30 = vsel %vm8892_vm3, %v12884_v35, %v12864_v23  ;;  %v4611_v44 = vmax.f32 %v3973_v47, 0.0 }
 0x2fd   : > { %15892 = vst [vmem:[#allocation9_spill] sm:$0xff] %v13058_v13  ;;  %10723 = vmatprep.mubr.msk.bf16.mxu1 %vm3041_vm1, %v12333_v43  ;;  %v6778_v1 = vrot.slane %v6777_v4, 4  ;;  %v8394_v56 = vmul.f32 0.125, %v6692_v58  ;;  %v8907_v21 = vsel %vm8894_vm4, %v12843_v6, %v8906_v30  ;;  %v6774_v19 = vadd.f32 %v6773_v50, %v6772_v14 }
 0x2fe   : > { %v13071_v13 = vpop.f32.mrf.mxu1  ;;  %v13073_v25 = vpop.f32.mrf.mxu0  ;;  %v8908_v43 = vsel %vm8896_vm5, %v12875_v52, %v8907_v21  ;;  %v3984_v0 = vadd.f32 %v12680_v2, %v12889_v31  ;;  %v5408_v23 = vadd.f32 %v12675_v51, %v12891_v55  ;;  %v6759_v47 = vrot.slane %v6758_v34, 2 }
 0x2ff   : > { %v6779_v54 = vadd.f32 %v6778_v1, %v6777_v4  ;;  %v8909_v58 = vsel %vm8898_vm6, %v13006_v16, %v8908_v43  ;;  %v3976_v6 = vadd.f32 %v12680_v2, %v12899_v46  ;;  %v8395_v50 = vmul.f32 0.125, %v6699_v38 }
 0x300   : > { %v13083_v35 = vpop.f32.mrf.mxu1  ;;  %v13085_v60 = vpop.f32.mrf.mxu0  ;;  %v8910_v52 = vsel %vm8900_vm7, %v8393_v28, %v8909_v58  ;;  %v4614_v14 = vmax.f32 %v3984_v0, 0.0  ;;  %v6356_v31 = vmax.f32 %v5408_v23, 0.0  ;;  %v6740_v33 = vrot.slane %v6739_v20, 1  ;;  %v15894_v28 = vld [vmem:[#allocation39_spill] sm:$0xff] }
 0x301   : > { %v6780_v30 = vrot.slane %v6779_v54, 2  ;;  %v8911_v21 = vsel %vm8902_vm8, %v8394_v56, %v8910_v52  ;;  %v4612_v4 = vmax.f32 %v3976_v6, 0.0  ;;  %v6775_v16 = vrot.slane %v6774_v19, 1 }
 0x302   : > { %v13092_v61 = vpop.f32.mrf.mxu1  ;;  %v13094_v55 = vpop.f32.mrf.mxu0  ;;  %v8912_v43 = vsel %vm8904_vm9, %v8395_v50, %v8911_v21  ;;  %v6763_v46 = vsel %vm6587_vm2, %v6356_v31, 0.0  ;;  %v13107_v23 = vadd.f32 %v6752_v59, %v13010_v7  ;;  %v6760_v58 = vadd.f32 %v6759_v47, %v6758_v34 }
 0x303   : > { %9156 = vxpose.xlu0.b32.cont [2/16] (narrow) %v8912_v43, 8  ;;  %v6764_v56 = vrot.slane %v6763_v46, 4  ;;  %v4803_v6 = vpack.c.bf16 %v4612_v4, %v4611_v44  ;;  %v13111_v50 = vmul.f32 0.125, %v6734_v37  ;;  %v4804_v52 = vpack.c.bf16 %v4614_v14, %v4613_v26 }
 0x304   : > { %v13100_v38 = vpop.f32.mrf.mxu1  ;;  %10724 = vmatmul.mubr.msk.bf16.gmra.mxu1 %vm3041_vm1, %v15894_v28  ;;  %v13104_v0 = vpop.f32.mrf.mxu0  ;;  %v5429_v31 = vadd.f32 %v12901_v32, %v12675_v51  ;;  %v5421_v21 = vadd.f32 %v12675_v51, %v12915_v10  ;;  %v13121_v59 = vadd.f32 %v6740_v33, %v6739_v20  ;;  %v6781_v34 = vadd.f32 %v6780_v30, %v6779_v54  ;;  %v13147_v30 = vld [vmem:[%s15810_s6] ss:$0 sm:$0xff] }
 0x305   : > { %10727 = vmatprep.mubr.msk.bf16.mxu1 %vm3041_vm1, %v12355_v22  ;;  %v6765_v44 = vadd.f32 %v6764_v56, %v6763_v46  ;;  %v5432_v22 = vadd.f32 %v12929_v42, %v12675_v51  ;;  %10867 = vmatprep.mubr.msk.bf16.mxu0 %vm3041_vm1, %v4803_v6  ;;  %v6776_v26 = vadd.f32 %v6775_v16, %v6774_v19  ;;  %v6761_v20 = vrot.slane %v6760_v58, 1  ;;  %v13136_v51 = vld [vmem:[%s15808_s4] ss:$0 sm:$0xff] }
 0x306   : > { %v13117_v28 = vpop.f32.mrf.mxu1  ;;  %v13119_v7 = vpop.f32.mrf.mxu0  ;;  %v6361_v37 = vmax.f32 %v5429_v31, 0.0  ;;  %v6359_v47 = vmax.f32 %v5421_v21, 0.0  ;;  %v3989_v32 = vadd.f32 %v12680_v2, %v12927_v15  ;;  %10868 = vmatmul.mubr.msk.bf16.gmra.mxu0 %vm3041_vm1, %v4804_v52  ;;  %v3997_v42 = vadd.f32 %v13136_v51, %v12911_v36 }
 0x307   : > { %15895 = vst [vmem:[#allocation12_spill] sm:$0xff] %v13117_v28  ;;  %v6766_v54 = vrot.slane %v6765_v44, 2  ;;  %v6362_v19 = vmax.f32 %v5432_v22, 0.0  ;;  %v4000_v15 = vadd.f32 %v13136_v51, %v12939_v53  ;;  %v5424_v4 = vadd.f32 %v13147_v30, %v12941_v62 }
 0x308   : > { %v13129_v10 = vpop.f32.mrf.mxu1  ;;  %v13131_v14 = vpop.f32.mrf.mxu0  ;;  %v6798_v33 = vsel %vm6587_vm2, %v6361_v37, 0.0  ;;  %v6784_v2 = vsel %vm6587_vm2, %v6359_v47, 0.0  ;;  %v6782_v36 = vrot.slane %v6781_v34, 1  ;;  %v4615_v52 = vmax.f32 %v3989_v32, 0.0  ;;  %v15901_v37 = vld [vmem:[#allocation40_spill] sm:$0xff] }
 0x309   : > { %15896 = vst [vmem:[#allocation11_spill] sm:$0xff] %v13129_v10  ;;  %15897 = vst [vmem:[#allocation14_spill] sm:$0xff] %v13131_v14  ;;  %v6767_v46 = vadd.f32 %v6766_v54, %v6765_v44  ;;  %v6799_v56 = vrot.slane %v6798_v33, 4  ;;  %v6785_v6 = vrot.slane %v6784_v2, 4  ;;  %v6805_v31 = vsel %vm6587_vm2, %v6362_v19, 0.0  ;;  %v15903_v54 = vld [vmem:[#allocation42_spill] sm:$0xff] }
 0x30a   : > { %v13151_v16 = vpop.f32.mrf.mxu1  ;;  %v13153_v43 = vpop.f32.mrf.mxu0  ;;  %v6360_v53 = vmax.f32 %v5424_v4, 0.0  ;;  %v3992_v21 = vadd.f32 %v13136_v51, %v12949_v29  ;;  %v4618_v44 = vmax.f32 %v4000_v15, 0.0  ;;  %v6806_v32 = vrot.slane %v6805_v31, 4 }
 0x30b   : > { %15898 = vst [vmem:[#allocation13_spill] sm:$0xff] %v13151_v16  ;;  %15899 = vst [vmem:[#allocation16_spill] sm:$0xff] %v13153_v43  ;;  %v6768_v47 = vrot.slane %v6767_v46, 1  ;;  %v6800_v1 = vadd.f32 %v6799_v56, %v6798_v33  ;;  %v6786_v43 = vadd.f32 %v6785_v6, %v6784_v2  ;;  %v5445_v29 = vadd.f32 %v13147_v30, %v12951_v40 }
 0x30c   : > { %v13158_v22 = vpop.f32.mrf.mxu1  ;;  %10728 = vmatmul.mubr.msk.bf16.gmra.mxu1 %vm3041_vm1, %v15901_v37  ;;  %v13162_v62 = vpop.f32.mrf.mxu0  ;;  %v6791_v19 = vsel %vm6587_vm2, %v6360_v53, 0.0  ;;  %v4616_v4 = vmax.f32 %v3992_v21, 0.0  ;;  %v6762_v37 = vadd.f32 %v6761_v20, %v6760_v58  ;;  %v4617_v14 = vmax.f32 %v3997_v42, 0.0 }
 0x30d   : > { %15900 = vst [vmem:[#allocation15_spill] sm:$0xff] %v13158_v22  ;;  %15902 = vst [vmem:[#allocation18_spill] sm:$0xff] %v13162_v62  ;;  %10731 = vmatprep.mubr.msk.bf16.mxu1 %vm3041_vm1, %v15903_v54  ;;  %v6801_v62 = vrot.slane %v6800_v1, 2  ;;  %v6787_v33 = vrot.slane %v6786_v43, 2  ;;  %v13173_v2 = vmul.f32 0.125, %v6776_v26  ;;  %v6792_v15 = vrot.slane %v6791_v19, 4 }
 0x30e   : > { %v13169_v22 = vpop.f32.mrf.mxu1  ;;  %v13171_v16 = vpop.f32.mrf.mxu0  ;;  %v4805_v56 = vpack.c.bf16 %v4616_v4, %v4615_v52  ;;  %v6365_v6 = vmax.f32 %v5445_v29, 0.0  ;;  %v6783_v21 = vadd.f32 %v6782_v36, %v6781_v34  ;;  %v6769_v10 = vadd.f32 %v6768_v47, %v6767_v46 }
 0x30f   : > { %15904 = vst [vmem:[#allocation17_spill] sm:$0xff] %v13169_v22  ;;  %15905 = vst [vmem:[#allocation20_spill] sm:$0xff] %v13171_v16  ;;  %v6788_v40 = vadd.f32 %v6787_v33, %v6786_v43  ;;  %v4806_v28 = vpack.c.bf16 %v4618_v44, %v4617_v14  ;;  %v13179_v22 = vadd.f32 %v6806_v32, %v6805_v31  ;;  %v13189_v52 = vmul.f32 0.125, %v6762_v37  ;;  %v15907_v44 = vld [vmem:[#allocation41_spill] sm:$0xff] }
 0x310   : > { %v13175_v54 = vpop.f32.mrf.mxu1  ;;  %v13177_v53 = vpop.f32.mrf.mxu0  ;;  %v6793_v16 = vadd.f32 %v6792_v15, %v6791_v19  ;;  %v6826_v58 = vsel %vm6587_vm2, %v6365_v6, 0.0  ;;  %v5437_v26 = vadd.f32 %v13147_v30, %v12965_v49  ;;  %10871 = vmatprep.mubr.msk.bf16.mxu0 %vm3041_vm1, %v4805_v56  ;;  %v13191_v34 = vadd.f32 %v6801_v62, %v6800_v1 }
 0x311   : > { %v6827_v43 = vrot.slane %v6826_v58, 4  ;;  %v13195_v14 = vadd.f32 %v13136_v51, %v12961_v39  ;;  %10872 = vmatmul.mubr.msk.bf16.gmra.mxu0 %vm3041_vm1, %v4806_v28  ;;  %v6789_v36 = vrot.slane %v6788_v40, 1  ;;  %v5448_v31 = vadd.f32 %v13147_v30, %v12976_v41  ;;  %v15908_v39 = vld [vmem:[#allocation6_spill] sm:$0xff] }
 0x312   : > { %v13185_v20 = vpop.f32.mrf.mxu1  ;;  %v13187_v42 = vpop.f32.mrf.mxu0  ;;  %v6794_v46 = vrot.slane %v6793_v16, 2  ;;  %v6363_v49 = vmax.f32 %v5437_v26, 0.0  ;;  %v13206_v62 = vmul.f32 0.125, %v6783_v21  ;;  %v4005_v19 = vadd.f32 %v13136_v51, %v15908_v39 }
 0x313   : > { %v6828_v32 = vadd.f32 %v6827_v43, %v6826_v58  ;;  %v6754_v28 = vrot.slane %v13107_v23, 1  ;;  %v13211_v4 = vmul.f32 0.125, %v6769_v10  ;;  %v6808_v29 = vrot.slane %v13179_v22, 2 }
 0x314   : > { %v13200_v47 = vpop.f32.mrf.mxu1  ;;  %10732 = vmatmul.mubr.msk.bf16.gmra.mxu1 %vm3041_vm1, %v15907_v44  ;;  %v13204_v1 = vpop.f32.mrf.mxu0  ;;  %v6812_v41 = vsel %vm6587_vm2, %v6363_v49, 0.0  ;;  %v6366_v37 = vmax.f32 %v5448_v31, 0.0  ;;  %v4621_v21 = vmax.f32 %v13195_v14, 0.0  ;;  %v6790_v26 = vadd.f32 %v6789_v36, %v6788_v40  ;;  %v15913_v40 = vld [vmem:[#allocation5_spill] sm:$0xff] }
 0x315   : > { %15906 = vst [vmem:[#allocation19_spill] sm:$0xff] %v13200_v47  ;;  %v6829_v6 = vrot.slane %v6828_v32, 2  ;;  %v6813_v58 = vrot.slane %v6812_v41, 4  ;;  %v6795_v43 = vadd.f32 %v6794_v46, %v6793_v16  ;;  %v15911_v44 = vrot.slane %v13039_v3, 1  ;;  %v15914_v46 = vld [vmem:[#allocation8_spill] sm:$0xff] }
 0x316   : > { %v13215_v33 = vpop.f32.mrf.mxu1  ;;  %v13217_v15 = vpop.f32.mrf.mxu0  ;;  %v6833_v10 = vsel %vm6587_vm2, %v6366_v37, 0.0  ;;  %v6755_v56 = vadd.f32 %v6754_v28, %v13107_v23  ;;  %v8401_v14 = vmul.f32 0.125, %v13121_v59  ;;  %v8913_v16 = vsel %vm8892_vm3, %v13055_v45, %v13026_v57 }
 0x317   : > { %15909 = vst [vmem:[#allocation22_spill] sm:$0xff] %v13215_v33  ;;  %15910 = vst [vmem:[#allocation21_spill] sm:$0xff] %v13217_v15  ;;  %v6748_v39 = vadd.f32 %v15911_v44, %v13039_v3  ;;  %v6814_v47 = vadd.f32 %v6813_v58, %v6812_v41  ;;  %v4619_v33 = vmax.f32 %v4005_v19, 0.0  ;;  %v6834_v15 = vrot.slane %v6833_v10, 4 }
 0x318   : > { %v13225_v49 = vpop.f32.mrf.mxu1  ;;  %v13227_v31 = vpop.f32.mrf.mxu0  ;;  %v4016_v36 = vadd.f32 %v13136_v51, %v15913_v40  ;;  %v5440_v3 = vadd.f32 %v13147_v30, %v15914_v46  ;;  %v6830_v19 = vadd.f32 %v6829_v6, %v6828_v32  ;;  %v8914_v23 = vsel %vm8894_vm4, %v13020_v18, %v8913_v16 }
 0x319   : > { %15912 = vst [vmem:[#allocation24_spill] sm:$0xff] %v13227_v31  ;;  %v6815_v41 = vrot.slane %v6814_v47, 2  ;;  %v6835_v58 = vadd.f32 %v6834_v15, %v6833_v10  ;;  %v6796_v59 = vrot.slane %v6795_v43, 1  ;;  %v8915_v57 = vsel %vm8896_vm5, %v13028_v9, %v8914_v23 }
 0x31a   : > { %v13238_v37 = vpop.f32.mrf.mxu1  ;;  %v13240_v44 = vpop.f32.mrf.mxu0  ;;  %v6364_v45 = vmax.f32 %v5440_v3, 0.0  ;;  %v4008_v28 = vadd.f32 %v13136_v51, %v12994_v8  ;;  %v8916_v32 = vsel %vm8898_vm6, %v13111_v50, %v8915_v57  ;;  %v4622_v6 = vmax.f32 %v4016_v36, 0.0 }
 0x31b   : > { %15915 = vst [vmem:[#allocation23_spill] sm:$0xff] %v13238_v37  ;;  %15916 = vst [vmem:[#allocation26_spill] sm:$0xff] %v13240_v44  ;;  %v6836_v46 = vrot.slane %v6835_v58, 2  ;;  %v8402_v37 = vmul.f32 0.125, %v6748_v39  ;;  %v8403_v15 = vmul.f32 0.125, %v6755_v56  ;;  %v8917_v10 = vsel %vm8900_vm7, %v8401_v14, %v8916_v32 }
 0x31c   : > { %v13248_v40 = vpop.f32.mrf.mxu0  ;;  %v6819_v18 = vsel %vm6587_vm2, %v6364_v45, 0.0  ;;  %v4620_v16 = vmax.f32 %v4008_v28, 0.0  ;;  %v13254_v44 = vpop.f32.mrf.mxu1  ;;  %v6831_v3 = vrot.slane %v6830_v19, 1  ;;  %v6816_v8 = vadd.f32 %v6815_v41, %v6814_v47 }
 0x31d   : > { %15917 = vst [vmem:[#allocation25_spill] sm:$0xff] %v13248_v40  ;;  %v6837_v23 = vadd.f32 %v6836_v46, %v6835_v58  ;;  %v8918_v40 = vsel %vm8902_vm8, %v8402_v37, %v8917_v10  ;;  %v6820_v31 = vrot.slane %v6819_v18, 4  ;;  %v5461_v56 = vadd.f32 %v13147_v30, %v12996_v11 }
 0x31e   : > { %v13256_v9 = vpop.f32.mrf.mxu0  ;;  %v8919_v39 = vsel %vm8904_vm9, %v8403_v15, %v8918_v40  ;;  %v4807_v50 = vpack.c.bf16 %v4620_v16, %v4619_v33  ;;  %v13264_v36 = vmul.f32 0.125, %v6790_v26  ;;  %v13267_v57 = vadd.f32 %v6808_v29, %v13179_v22  ;;  %v13276_v11 = vpop.f32.mrf.mxu1 }
 0x31f   : > { %9157 = vxpose.xlu0.b32.cont [3/16] (narrow) %v8919_v39, 8  ;;  %v4808_v45 = vpack.c.bf16 %v4622_v6, %v4621_v21  ;;  %v5453_v47 = vadd.f32 %v13147_v30, %v13003_v63  ;;  %v13271_v37 = vadd.f32 %v6796_v59, %v6795_v43  ;;  %v6821_v41 = vadd.f32 %v6820_v31, %v6819_v18 }
 0x320   : > { %v13262_v14 = vpop.f32.mrf.mxu0  ;;  %v6369_v58 = vmax.f32 %v5461_v56, 0.0  ;;  %v5464_v33 = vadd.f32 %v13147_v30, %v13014_v17  ;;  %10875 = vmatprep.mubr.msk.bf16.mxu0 %vm3041_vm1, %v4807_v50  ;;  %v6832_v22 = vadd.f32 %v6831_v3, %v6830_v19  ;;  %v6817_v29 = vrot.slane %v6816_v8, 1  ;;  %v15921_v56 = vld [vmem:[#allocation7_spill] sm:$0xff] }
 0x321   : > { %v6838_v28 = vrot.slane %v6837_v23, 1  ;;  %v6367_v21 = vmax.f32 %v5453_v47, 0.0  ;;  %10876 = vmatmul.mubr.msk.bf16.gmra.mxu0 %vm3041_vm1, %v4808_v45  ;;  %v6822_v63 = vrot.slane %v6821_v41, 2  ;;  %v4029_v31 = vadd.f32 %v13136_v51, %v12999_v5  ;;  %v13294_v5 = vpop.f32.mrf.mxu1 }
 0x322   : > { %v13278_v26 = vpop.f32.mrf.mxu0  ;;  %v6854_v43 = vsel %vm6587_vm2, %v6369_v58, 0.0  ;;  %v6370_v59 = vmax.f32 %v5464_v33, 0.0  ;;  %v4021_v19 = vadd.f32 %v13136_v51, %v13012_v48  ;;  %v4032_v32 = vadd.f32 %v13136_v51, %v13035_v12 }
 0x323   : > { %15918 = vst [vmem:[#allocation28_spill] sm:$0xff] %v13278_v26  ;;  %v6855_v40 = vrot.slane %v6854_v43, 4  ;;  %v6840_v46 = vsel %vm6587_vm2, %v6367_v21, 0.0  ;;  %v6823_v6 = vadd.f32 %v6822_v63, %v6821_v41  ;;  %v5456_v18 = vadd.f32 %v13147_v30, %v13037_v27  ;;  %v15922_v41 = vld [vmem:[#allocation10_spill] sm:$0xff] }
 0x324   : > { %v13284_v17 = vpop.f32.mrf.mxu0  ;;  %v6841_v15 = vrot.slane %v6840_v46, 4  ;;  %v6861_v10 = vsel %vm6587_vm2, %v6370_v59, 0.0  ;;  %v4626_v50 = vmax.f32 %v4032_v32, 0.0  ;;  %v4024_v48 = vadd.f32 %v13136_v51, %v15921_v56  ;;  %v13305_v32 = vpop.f32.mrf.mxu1 }
 0x325   : > { %15919 = vst [vmem:[#allocation27_spill] sm:$0xff] %v13284_v17  ;;  %v6856_v3 = vadd.f32 %v6855_v40, %v6854_v43  ;;  %v6862_v39 = vrot.slane %v6861_v10, 4  ;;  %v6824_v45 = vrot.slane %v6823_v6, 1  ;;  %v6368_v12 = vmax.f32 %v5456_v18, 0.0 }
 0x326   : > { %v13296_v16 = vpop.f32.mrf.mxu0  ;;  %v6842_v47 = vadd.f32 %v6841_v15, %v6840_v46  ;;  %v5477_v58 = vadd.f32 %v13147_v30, %v15922_v41  ;;  %v6818_v21 = vadd.f32 %v6817_v29, %v6816_v8  ;;  %v6839_v27 = vadd.f32 %v6838_v28, %v6837_v23 }
 0x327   : > { %15920 = vst [vmem:[#allocation30_spill] sm:$0xff] %v13296_v16  ;;  %v4623_v63 = vmax.f32 %v4021_v19, 0.0  ;;  %v4624_v59 = vmax.f32 %v4024_v48, 0.0  ;;  %v4625_v17 = vmax.f32 %v4029_v31, 0.0  ;;  %v6847_v43 = vsel %vm6587_vm2, %v6368_v12, 0.0  ;;  %v15924_v48 = vld [vmem:[#allocation9_spill] sm:$0xff] }
 0x328   : > { %v13302_v33 = vpop.f32.mrf.mxu0  ;;  %v6843_v16 = vrot.slane %v6842_v47, 2  ;;  %v6373_v40 = vmax.f32 %v5477_v58, 0.0  ;;  %v6857_v46 = vrot.slane %v6856_v3, 2  ;;  %v13309_v15 = vadd.f32 %v6862_v39, %v6861_v10 }
 0x329   : > { %15923 = vst [vmem:[#allocation29_spill] sm:$0xff] %v13302_v33  ;;  %v6848_v18 = vrot.slane %v6847_v43, 4  ;;  %v4809_v41 = vpack.c.bf16 %v4624_v59, %v4623_v63  ;;  %v6825_v26 = vadd.f32 %v6824_v45, %v6823_v6  ;;  %v4810_v8 = vpack.c.bf16 %v4626_v50, %v4625_v17 }
 0x32a   : > { %v13307_v56 = vpop.f32.mrf.mxu0  ;;  %v6844_v33 = vadd.f32 %v6843_v16, %v6842_v47  ;;  %v6882_v23 = vsel %vm6587_vm2, %v6373_v40, 0.0  ;;  %v13314_v28 = vmul.f32 0.125, %v6832_v22  ;;  %v13318_v12 = vadd.f32 %v13136_v51, %v15924_v48  ;;  %v13328_v22 = vpop.f32.mrf.mxu1 }
 0x32b   : > { %v6849_v31 = vadd.f32 %v6848_v18, %v6847_v43  ;;  %v6883_v19 = vrot.slane %v6882_v23, 4  ;;  %10879 = vmatprep.mubr.msk.bf16.mxu0 %vm3041_vm1, %v4809_v41  ;;  %v13321_v10 = vmul.f32 0.125, %v6818_v21  ;;  %v13323_v39 = vmul.f32 0.125, %v6839_v27 }
 0x32c   : > { %v13312_v29 = vpop.f32.mrf.mxu0  ;;  %v6845_v6 = vrot.slane %v6844_v33, 1  ;;  %v5469_v17 = vadd.f32 %v13147_v30, %v13062_v24  ;;  %10880 = vmatmul.mubr.msk.bf16.gmra.mxu0 %vm3041_vm1, %v4810_v8  ;;  %v13332_v50 = vadd.f32 %v6857_v46, %v6856_v3  ;;  %v5480_v58 = vadd.f32 %v13147_v30, %v13073_v25 }
 0x32d   : > { %v6850_v45 = vrot.slane %v6849_v31, 2  ;;  %v6884_v47 = vadd.f32 %v6883_v19, %v6882_v23  ;;  %v13336_v21 = vmul.f32 0.125, %v6825_v26  ;;  %v6864_v27 = vrot.slane %v13309_v15, 2  ;;  %v13349_v23 = vpop.f32.mrf.mxu1 }
 0x32e   : > { %v13330_v16 = vpop.f32.mrf.mxu0  ;;  %v6371_v63 = vmax.f32 %v5469_v17, 0.0  ;;  %v6810_v24 = vrot.slane %v13267_v57, 1  ;;  %v4629_v40 = vmax.f32 %v13318_v12, 0.0  ;;  %v4037_v3 = vadd.f32 %v13136_v51, %v13071_v13 }
 0x32f   : > { %v6885_v43 = vrot.slane %v6884_v47, 2  ;;  %v6374_v46 = vmax.f32 %v5480_v58, 0.0  ;;  %v6846_v18 = vadd.f32 %v6845_v6, %v6844_v33  ;;  %v6851_v41 = vadd.f32 %v6850_v45, %v6849_v31 }
 0x330   : > { %v13340_v59 = vpop.f32.mrf.mxu0  ;;  %v6868_v25 = vsel %vm6587_vm2, %v6371_v63, 0.0  ;;  %v15926_v26 = vrot.slane %v13191_v34, 1  ;;  %v6811_v33 = vadd.f32 %v6810_v24, %v13267_v57  ;;  %v8920_v31 = vsel %vm8892_vm3, %v13211_v4, %v13189_v52  ;;  %v13369_v52 = vpop.f32.mrf.mxu1 }
 0x331   : > { %15925 = vst [vmem:[#allocation32_spill] sm:$0xff] %v13340_v59  ;;  %v6886_v48 = vadd.f32 %v6885_v43, %v6884_v47  ;;  %v6869_v17 = vrot.slane %v6868_v25, 4  ;;  %v6889_v12 = vsel %vm6587_vm2, %v6374_v46, 0.0  ;;  %v8409_v59 = vmul.f32 0.125, %v13271_v37 }
 0x332   : > { %v6804_v8 = vadd.f32 %v15926_v26, %v13191_v34  ;;  %v13351_v19 = vpop.f32.mrf.mxu0  ;;  %v6890_v13 = vrot.slane %v6889_v12, 4  ;;  %v4048_v34 = vadd.f32 %v13136_v51, %v13083_v35  ;;  %v4627_v47 = vmax.f32 %v4037_v3, 0.0 }
 0x333   : > { %15927 = vst [vmem:[#allocation31_spill] sm:$0xff] %v13351_v19  ;;  %v6887_v45 = vrot.slane %v6886_v48, 1  ;;  %v6870_v58 = vadd.f32 %v6869_v17, %v6868_v25  ;;  %v8921_v63 = vsel %vm8894_vm4, %v13173_v2, %v8920_v31  ;;  %v5472_v24 = vadd.f32 %v13147_v30, %v13085_v60 }
 0x334   : > { %v13361_v6 = vpop.f32.mrf.mxu0  ;;  %v6891_v43 = vadd.f32 %v6890_v13, %v6889_v12  ;;  %v8410_v37 = vmul.f32 0.125, %v6804_v8  ;;  %v8922_v57 = vsel %vm8896_vm5, %v13206_v62, %v8921_v63  ;;  %v6852_v35 = vrot.slane %v6851_v41, 1 }
 0x335   : > { %15928 = vst [vmem:[#allocation34_spill] sm:$0xff] %v13361_v6  ;;  %v6871_v46 = vrot.slane %v6870_v58, 2  ;;  %v8923_v3 = vsel %vm8898_vm6, %v13264_v36, %v8922_v57  ;;  %v4040_v2 = vadd.f32 %v13136_v51, %v13092_v61  ;;  %v8411_v25 = vmul.f32 0.125, %v6811_v33  ;;  %v13385_v33 = vpop.f32.mrf.mxu1 }
 0x336   : > { %v13371_v4 = vpop.f32.mrf.mxu0  ;;  %v8924_v26 = vsel %vm8900_vm7, %v8409_v59, %v8923_v3  ;;  %v4630_v8 = vmax.f32 %v4048_v34, 0.0  ;;  %v6372_v62 = vmax.f32 %v5472_v24, 0.0  ;;  %v6888_v60 = vadd.f32 %v6887_v45, %v6886_v48 }
 0x337   : > { %15929 = vst [vmem:[#allocation33_spill] sm:$0xff] %v13371_v4  ;;  %v6892_v12 = vrot.slane %v6891_v43, 2  ;;  %v8925_v13 = vsel %vm8902_vm8, %v8410_v37, %v8924_v26  ;;  %v4628_v31 = vmax.f32 %v4040_v2, 0.0  ;;  %v6872_v63 = vadd.f32 %v6871_v46, %v6870_v58 }
 0x338   : > { %v13378_v17 = vpop.f32.mrf.mxu0  ;;  %v8926_v4 = vsel %vm8904_vm9, %v8411_v25, %v8925_v13  ;;  %v6875_v36 = vsel %vm6587_vm2, %v6372_v62, 0.0  ;;  %v5493_v61 = vadd.f32 %v13147_v30, %v13094_v55  ;;  %v13391_v48 = vadd.f32 %v6864_v27, %v13309_v15  ;;  %v15936_v13 = vld [vmem:[#allocation14_spill] sm:$0xff] }
 0x339   : > { %15930 = vst [vmem:[#allocation36_spill] sm:$0xff] %v13378_v17  ;;  %9158 = vxpose.xlu0.b32.cont [4/16] (narrow) %v8926_v4, 8  ;;  %v6876_v45 = vrot.slane %v6875_v36, 4  ;;  %v4811_v37 = vpack.c.bf16 %v4628_v31, %v4627_v47  ;;  %v13393_v58 = vmul.f32 0.125, %v6846_v18  ;;  %v4812_v57 = vpack.c.bf16 %v4630_v8, %v4629_v40  ;;  %v15934_v8 = vld [vmem:[#allocation12_spill] sm:$0xff] }
 0x33a   : > { %v13387_v59 = vpop.f32.mrf.mxu0  ;;  %v6377_v24 = vmax.f32 %v5493_v61, 0.0  ;;  %v5485_v46 = vadd.f32 %v13147_v30, %v13104_v0  ;;  %v13399_v3 = vadd.f32 %v6852_v35, %v6851_v41  ;;  %v6893_v2 = vadd.f32 %v6892_v12, %v6891_v43  ;;  %v13408_v0 = vpop.f32.mrf.mxu1 }
 0x33b   : > { %15931 = vst [vmem:[#allocation35_spill] sm:$0xff] %v13387_v59  ;;  %v6877_v25 = vadd.f32 %v6876_v45, %v6875_v36  ;;  %v5496_v15 = vadd.f32 %v13147_v30, %v13119_v7  ;;  %10883 = vmatprep.mubr.msk.bf16.mxu0 %vm3041_vm1, %v4811_v37  ;;  %v13404_v27 = vmul.f32 0.125, %v6888_v60  ;;  %v6873_v18 = vrot.slane %v6872_v63, 1  ;;  %v15935_v60 = vld [vmem:[#allocation11_spill] sm:$0xff] }
 0x33c   : > { %v13397_v55 = vpop.f32.mrf.mxu0  ;;  %v6910_v40 = vsel %vm6587_vm2, %v6377_v24, 0.0  ;;  %v6375_v47 = vmax.f32 %v5485_v46, 0.0  ;;  %10884 = vmatmul.mubr.msk.bf16.gmra.mxu0 %vm3041_vm1, %v4812_v57  ;;  %v4061_v35 = vadd.f32 %v13136_v51, %v13100_v38  ;;  %v4053_v62 = vadd.f32 %v13136_v51, %v15934_v8  ;;  %v13426_v8 = vpop.f32.mrf.mxu1 }
 0x33d   : > { %15932 = vst [vmem:[#allocation38_spill] sm:$0xff] %v13397_v55  ;;  %v6878_v41 = vrot.slane %v6877_v25, 2  ;;  %v6911_v43 = vrot.slane %v6910_v40, 4  ;;  %v6378_v7 = vmax.f32 %v5496_v15, 0.0  ;;  %v4064_v12 = vadd.f32 %v13136_v51, %v15935_v60  ;;  %v15938_v15 = vld [vmem:[#allocation13_spill] sm:$0xff]  ;;  %v15940_v55 = vld [vmem:[#allocation16_spill] sm:$0xff] }
 0x33e   : > { %v13410_v4 = vpop.f32.mrf.mxu0  ;;  %v6896_v26 = vsel %vm6587_vm2, %v6375_v47, 0.0  ;;  %v5488_v31 = vadd.f32 %v13147_v30, %v15936_v13  ;;  %v6894_v61 = vrot.slane %v6893_v2, 1  ;;  %v6874_v38 = vadd.f32 %v6873_v18, %v6872_v63 }
 0x33f   : > { %15933 = vst [vmem:[#allocation37_spill] sm:$0xff] %v13410_v4  ;;  %v6879_v45 = vadd.f32 %v6878_v41, %v6877_v25  ;;  %v6897_v37 = vrot.slane %v6896_v26, 4  ;;  %v6917_v57 = vsel %vm6587_vm2, %v6378_v7, 0.0  ;;  %v6912_v24 = vadd.f32 %v6911_v43, %v6910_v40 }
 0x340   : > { %v13421_v36 = vpop.f32.mrf.mxu0  ;;  %v6376_v46 = vmax.f32 %v5488_v31, 0.0  ;;  %v4056_v47 = vadd.f32 %v13136_v51, %v15938_v15  ;;  %v6918_v4 = vrot.slane %v6917_v57, 4  ;;  %v4634_v13 = vmax.f32 %v4064_v12, 0.0  ;;  %v13437_v12 = vpop.f32.mrf.mxu1 }
 0x341   : > { %15937 = vst [vmem:[#allocation39_spill] sm:$0xff] %v13421_v36  ;;  %v6898_v60 = vadd.f32 %v6897_v37, %v6896_v26  ;;  %v5509_v36 = vadd.f32 %v13147_v30, %v15940_v55  ;;  %v6880_v25 = vrot.slane %v6879_v45, 1  ;;  %v4631_v41 = vmax.f32 %v4053_v62, 0.0 }
 0x342   : > { %v13428_v34 = vpop.f32.mrf.mxu0  ;;  %v6903_v7 = vsel %vm6587_vm2, %v6376_v46, 0.0  ;;  %v4632_v63 = vmax.f32 %v4056_v47, 0.0  ;;  %v6895_v40 = vadd.f32 %v6894_v61, %v6893_v2  ;;  %v4633_v43 = vmax.f32 %v4061_v35, 0.0  ;;  %v15943_v35 = vld [vmem:[#allocation15_spill] sm:$0xff] }
 0x343   : > { %15939 = vst [vmem:[#allocation40_spill] sm:$0xff] %v13428_v34  ;;  %v6899_v31 = vrot.slane %v6898_v60, 2  ;;  %v6904_v15 = vrot.slane %v6903_v7, 4  ;;  %v13435_v59 = vmul.f32 0.125, %v6874_v38  ;;  %v6913_v34 = vrot.slane %v6912_v24, 2  ;;  %v15944_v38 = vld [vmem:[#allocation18_spill] sm:$0xff] }
 0x344   : > { %v13433_v18 = vpop.f32.mrf.mxu0  ;;  %v4813_v26 = vpack.c.bf16 %v4632_v63, %v4631_v41  ;;  %v6381_v37 = vmax.f32 %v5509_v36, 0.0  ;;  %v13441_v62 = vadd.f32 %v6918_v4, %v6917_v57  ;;  %v4814_v46 = vpack.c.bf16 %v4634_v13, %v4633_v43  ;;  %v15946_v13 = vld [vmem:[#allocation17_spill] sm:$0xff] }
 0x345   : > { %15941 = vst [vmem:[#allocation42_spill] sm:$0xff] %v13433_v18  ;;  %v6900_v55 = vadd.f32 %v6899_v31, %v6898_v60  ;;  %v6905_v47 = vadd.f32 %v6904_v15, %v6903_v7  ;;  %v6881_v6 = vadd.f32 %v6880_v25, %v6879_v45  ;;  %v13446_v61 = vadd.f32 %v13136_v51, %v15943_v35  ;;  %v15947_v7 = vld [vmem:[#allocation20_spill] sm:$0xff]  ;;  %v13461_v15 = vpop.f32.mrf.mxu1 }
 0x346   : > { %v13439_v17 = vpop.f32.mrf.mxu0  ;;  %v6938_v2 = vsel %vm6587_vm2, %v6381_v37, 0.0  ;;  %v5501_v41 = vadd.f32 %v13147_v30, %v15944_v38  ;;  %10887 = vmatprep.mubr.msk.bf16.mxu0 %vm3041_vm1, %v4813_v26  ;;  %v13453_v63 = vmul.f32 0.125, %v6895_v40  ;;  %v4069_v25 = vadd.f32 %v13136_v51, %v15946_v13 }
 0x347   : > { %15942 = vst [vmem:[#allocation41_spill] sm:$0xff] %v13439_v17  ;;  %v6901_v4 = vrot.slane %v6900_v55, 1  ;;  %v6906_v57 = vrot.slane %v6905_v47, 2  ;;  %v6939_v60 = vrot.slane %v6938_v2, 4  ;;  %10888 = vmatmul.mubr.msk.bf16.gmra.mxu0 %vm3041_vm1, %v4814_v46  ;;  %v5512_v43 = vadd.f32 %v13147_v30, %v15947_v7 }
 0x348   : > { %v13451_v36 = vpop.f32.mrf.mxu0  ;;  %v6379_v45 = vmax.f32 %v5501_v41, 0.0  ;;  %v6866_v31 = vrot.slane %v13391_v48, 1  ;;  %v13465_v40 = vadd.f32 %v6913_v34, %v6912_v24  ;;  %v6920_v37 = vrot.slane %v13441_v62, 2 }
 0x349   : > { %15945 = vst [vmem:[#allocation6_spill] sm:$0xff] %v13451_v36  ;;  %v6940_v35 = vadd.f32 %v6939_v60, %v6938_v2  ;;  %v15949_v46 = vrot.slane %v13332_v50, 1  ;;  %v13471_v41 = vmul.f32 0.125, %v6881_v6  ;;  %v4637_v13 = vmax.f32 %v13446_v61, 0.0  ;;  %v13482_v6 = vpop.f32.mrf.mxu1 }
 0x34a   : > { %v13463_v26 = vpop.f32.mrf.mxu0  ;;  %v6924_v7 = vsel %vm6587_vm2, %v6379_v45, 0.0  ;;  %v6382_v36 = vmax.f32 %v5512_v43, 0.0  ;;  %v6902_v18 = vadd.f32 %v6901_v4, %v6900_v55  ;;  %v4635_v19 = vmax.f32 %v4069_v25, 0.0 }
 0x34b   : > { %15948 = vst [vmem:[#allocation5_spill] sm:$0xff] %v13463_v26  ;;  %v6860_v38 = vadd.f32 %v15949_v46, %v13332_v50  ;;  %v6907_v26 = vadd.f32 %v6906_v57, %v6905_v47  ;;  %v6941_v34 = vrot.slane %v6940_v35, 2  ;;  %v6925_v24 = vrot.slane %v6924_v7, 4 }
 0x34c   : > { %v13475_v17 = vpop.f32.mrf.mxu0  ;;  %v6945_v2 = vsel %vm6587_vm2, %v6382_v36, 0.0  ;;  %v6867_v60 = vadd.f32 %v6866_v31, %v13391_v48  ;;  %v8927_v50 = vsel %vm8892_vm3, %v13336_v21, %v13321_v10  ;;  %v8417_v55 = vmul.f32 0.125, %v13399_v3 }
 0x34d   : > { %15950 = vst [vmem:[#allocation8_spill] sm:$0xff] %v13475_v17  ;;  %v6926_v45 = vadd.f32 %v6925_v24, %v6924_v7  ;;  %v6946_v43 = vrot.slane %v6945_v2, 4  ;;  %v8418_v47 = vmul.f32 0.125, %v6860_v38  ;;  %v8928_v4 = vsel %vm8894_vm4, %v13314_v28, %v8927_v50  ;;  %v13501_v7 = vpop.f32.mrf.mxu1 }
 0x34e   : > { %v13484_v61 = vpop.f32.mrf.mxu0  ;;  %v4080_v36 = vadd.f32 %v13136_v51, %v13175_v54  ;;  %v5504_v48 = vadd.f32 %v13147_v30, %v13177_v53  ;;  %v4072_v10 = vadd.f32 %v13136_v51, %v13185_v20  ;;  %v6942_v57 = vadd.f32 %v6941_v34, %v6940_v35 }
 0x34f   : > { %15951 = vst [vmem:[#allocation7_spill] sm:$0xff] %v13484_v61  ;;  %v6927_v25 = vrot.slane %v6926_v45, 2  ;;  %v6947_v31 = vadd.f32 %v6946_v43, %v6945_v2  ;;  %v8929_v3 = vsel %vm8896_vm5, %v13323_v39, %v8928_v4  ;;  %v6908_v24 = vrot.slane %v6907_v26, 1 }
 0x350   : > { %v13495_v21 = vpop.f32.mrf.mxu0  ;;  %v8930_v28 = vsel %vm8898_vm6, %v13393_v58, %v8929_v3  ;;  %v4638_v46 = vmax.f32 %v4080_v36, 0.0  ;;  %v6380_v38 = vmax.f32 %v5504_v48, 0.0  ;;  %v4636_v54 = vmax.f32 %v4072_v10, 0.0 }
 0x351   : > { %15952 = vst [vmem:[#allocation10_spill] sm:$0xff] %v13495_v21  ;;  %v6948_v20 = vrot.slane %v6947_v31, 2  ;;  %v8419_v50 = vmul.f32 0.125, %v6867_v60  ;;  %v8931_v35 = vsel %vm8900_vm7, %v8417_v55, %v8930_v28  ;;  %v6943_v4 = vrot.slane %v6942_v57, 1 }
 0x352   : > { %v13503_v53 = vpop.f32.mrf.mxu0  ;;  %v8932_v2 = vsel %vm8902_vm8, %v8418_v47, %v8931_v35  ;;  %v6931_v39 = vsel %vm6587_vm2, %v6380_v38, 0.0  ;;  %v4815_v43 = vpack.c.bf16 %v4636_v54, %v4635_v19  ;;  %v6928_v36 = vadd.f32 %v6927_v25, %v6926_v45  ;;  %v13520_v19 = vpop.f32.mrf.mxu1 }
 0x353   : > { %15953 = vst [vmem:[#allocation9_spill] sm:$0xff] %v13503_v53  ;;  %v8933_v48 = vsel %vm8904_vm9, %v8419_v50, %v8932_v2  ;;  %v4816_v10 = vpack.c.bf16 %v4638_v46, %v4637_v13  ;;  %v13513_v3 = vadd.f32 %v6920_v37, %v13441_v62  ;;  %v6932_v60 = vrot.slane %v6931_v39, 4  ;;  %v15956_v37 = vld [vmem:[#allocation21_spill] sm:$0xff] }
 0x354   : > { %v13509_v58 = vpop.f32.mrf.mxu0  ;;  %9159 = vxpose.xlu0.b32.cont [5/16] (narrow) %v8933_v48, 8  ;;  %v5525_v55 = vadd.f32 %v13147_v30, %v13187_v42  ;;  %v5517_v47 = vadd.f32 %v13147_v30, %v13204_v1  ;;  %10891 = vmatprep.mubr.msk.bf16.mxu0 %vm3041_vm1, %v4815_v43  ;;  %v13524_v45 = vmul.f32 0.125, %v6902_v18  ;;  %v13526_v13 = vadd.f32 %v6908_v24, %v6907_v26  ;;  %v15957_v1 = vld [vmem:[#allocation22_spill] sm:$0xff]  ;;  %v15959_v18 = vld [vmem:[#allocation19_spill] sm:$0xff]  ;;  %v13541_v48 = vpop.f32.mrf.mxu1 }
 0x355   : > { %15954 = vst [vmem:[#allocation12_spill] sm:$0xff] %v13509_v58  ;;  %v6949_v62 = vadd.f32 %v6948_v20, %v6947_v31  ;;  %v5528_v25 = vadd.f32 %v13147_v30, %v15956_v37  ;;  %10892 = vmatmul.mubr.msk.bf16.gmra.mxu0 %vm3041_vm1, %v4816_v10  ;;  %v6933_v42 = vadd.f32 %v6932_v60, %v6931_v39  ;;  %v6929_v2 = vrot.slane %v6928_v36, 1 }
 0x356   : > { %v13522_v28 = vpop.f32.mrf.mxu0  ;;  %v6385_v46 = vmax.f32 %v5525_v55, 0.0  ;;  %v6383_v38 = vmax.f32 %v5517_v47, 0.0  ;;  %v4085_v54 = vadd.f32 %v13136_v51, %v15957_v1  ;;  %v6944_v35 = vadd.f32 %v6943_v4, %v6942_v57  ;;  %v15961_v1 = vld [vmem:[#allocation24_spill] sm:$0xff] }
 0x357   : > { %15955 = vst [vmem:[#allocation11_spill] sm:$0xff] %v13522_v28  ;;  %v4093_v26 = vadd.f32 %v13136_v51, %v15959_v18  ;;  %v6386_v24 = vmax.f32 %v5528_v25, 0.0  ;;  %v6934_v31 = vrot.slane %v6933_v42, 2  ;;  %v4096_v39 = vadd.f32 %v13136_v51, %v13225_v49  ;;  %v15963_v49 = vld [vmem:[#allocation23_spill] sm:$0xff]  ;;  %v15964_v28 = vld [vmem:[#allocation26_spill] sm:$0xff] }
 0x358   : > { %v13533_v50 = vpop.f32.mrf.mxu0  ;;  %v6966_v20 = vsel %vm6587_vm2, %v6385_v46, 0.0  ;;  %v6952_v43 = vsel %vm6587_vm2, %v6383_v38, 0.0  ;;  %v6950_v60 = vrot.slane %v6949_v62, 1  ;;  %v4639_v37 = vmax.f32 %v4085_v54, 0.0 }
 0x359   : > { %15958 = vst [vmem:[#allocation14_spill] sm:$0xff] %v13533_v50  ;;  %v6967_v55 = vrot.slane %v6966_v20, 4  ;;  %v6953_v57 = vrot.slane %v6952_v43, 4  ;;  %v6973_v4 = vsel %vm6587_vm2, %v6386_v24, 0.0  ;;  %v6935_v47 = vadd.f32 %v6934_v31, %v6933_v42  ;;  %v13554_v42 = vpop.f32.mrf.mxu1 }
 0x35a   : > { %v13543_v10 = vpop.f32.mrf.mxu0  ;;  %v6974_v25 = vrot.slane %v6973_v4, 4  ;;  %v5520_v46 = vadd.f32 %v13147_v30, %v15961_v1  ;;  %v4088_v50 = vadd.f32 %v13136_v51, %v15963_v49  ;;  %v4642_v21 = vmax.f32 %v4096_v39, 0.0 }
 0x35b   : > { %15960 = vst [vmem:[#allocation13_spill] sm:$0xff] %v13543_v10  ;;  %v6968_v38 = vadd.f32 %v6967_v55, %v6966_v20  ;;  %v6954_v34 = vadd.f32 %v6953_v57, %v6952_v43  ;;  %v5541_v10 = vadd.f32 %v13147_v30, %v15964_v28  ;;  %v6936_v58 = vrot.slane %v6935_v47, 1 }
 0x35c   : > { %v13548_v18 = vpop.f32.mrf.mxu0  ;;  %v6975_v53 = vadd.f32 %v6974_v25, %v6973_v4  ;;  %v6384_v24 = vmax.f32 %v5520_v46, 0.0  ;;  %v4640_v61 = vmax.f32 %v4088_v50, 0.0  ;;  %v6930_v20 = vadd.f32 %v6929_v2, %v6928_v36  ;;  %v13568_v36 = vpop.f32.mrf.mxu1 }
 0x35d   : > { %15962 = vst [vmem:[#allocation16_spill] sm:$0xff] %v13548_v18  ;;  %v6969_v31 = vrot.slane %v6968_v38, 2  ;;  %v6955_v1 = vrot.slane %v6954_v34, 2  ;;  %v6389_v18 = vmax.f32 %v5541_v10, 0.0  ;;  %v6951_v43 = vadd.f32 %v6950_v60, %v6949_v62  ;;  %v15966_v10 = vld [vmem:[#allocation25_spill] sm:$0xff] }
 0x35e   : > { %v13556_v54 = vpop.f32.mrf.mxu0  ;;  %v4641_v55 = vmax.f32 %v4093_v26, 0.0  ;;  %v6959_v57 = vsel %vm6587_vm2, %v6384_v24, 0.0  ;;  %v6937_v28 = vadd.f32 %v6936_v58, %v6935_v47  ;;  %v6976_v17 = vrot.slane %v6975_v53, 2 }
 0x35f   : > { %15965 = vst [vmem:[#allocation15_spill] sm:$0xff] %v13556_v54  ;;  %v6960_v4 = vrot.slane %v6959_v57, 4  ;;  %v4817_v39 = vpack.c.bf16 %v4640_v61, %v4639_v37  ;;  %v13561_v25 = vmul.f32 0.125, %v6944_v35  ;;  %v6994_v54 = vsel %vm6587_vm2, %v6389_v18, 0.0 }
 0x360   : > { %v13559_v49 = vpop.f32.mrf.mxu0  ;;  %v4818_v46 = vpack.c.bf16 %v4642_v21, %v4641_v55  ;;  %v13566_v50 = vadd.f32 %v13136_v51, %v13254_v44  ;;  %v13570_v62 = vadd.f32 %v6969_v31, %v6968_v38  ;;  %v13572_v2 = vadd.f32 %v6955_v1, %v6954_v34 }
 0x361   : > { %v6961_v26 = vadd.f32 %v6960_v4, %v6959_v57  ;;  %v6995_v58 = vrot.slane %v6994_v54, 4  ;;  %10895 = vmatprep.mubr.msk.bf16.mxu0 %vm3041_vm1, %v4817_v39  ;;  %v13577_v35 = vmul.f32 0.125, %v6930_v20  ;;  %v13579_v21 = vmul.f32 0.125, %v6951_v43  ;;  %v13596_v43 = vpop.f32.mrf.mxu1 }
 0x362   : > { %v13575_v61 = vpop.f32.mrf.mxu0  ;;  %v5533_v44 = vadd.f32 %v13147_v30, %v15966_v10  ;;  %v5544_v60 = vadd.f32 %v13147_v30, %v13256_v9  ;;  %10896 = vmatmul.mubr.msk.bf16.gmra.mxu0 %vm3041_vm1, %v4818_v46  ;;  %v13586_v34 = vmul.f32 0.125, %v6937_v28  ;;  %v13588_v47 = vadd.f32 %v6976_v17, %v6975_v53 }
 0x363   : > { %v6996_v37 = vadd.f32 %v6995_v58, %v6994_v54  ;;  %v4101_v18 = vadd.f32 %v13136_v51, %v13276_v11  ;;  %v4645_v24 = vmax.f32 %v13566_v50, 0.0  ;;  %v6922_v20 = vrot.slane %v13513_v3, 1 }
 0x364   : > { %v13592_v38 = vpop.f32.mrf.mxu0  ;;  %v6387_v31 = vmax.f32 %v5533_v44, 0.0  ;;  %v6390_v1 = vmax.f32 %v5544_v60, 0.0  ;;  %v6957_v55 = vrot.slane %v13572_v2, 1  ;;  %v6962_v17 = vrot.slane %v6961_v26, 2 }
 0x365   : > { %15967 = vst [vmem:[#allocation18_spill] sm:$0xff] %v13592_v38  ;;  %v6997_v53 = vrot.slane %v6996_v37, 2  ;;  %v15969_v28 = vrot.slane %v13465_v40, 1  ;;  %v8934_v39 = vsel %vm8892_vm3, %v13471_v41, %v13435_v59  ;;  %v4643_v50 = vmax.f32 %v4101_v18, 0.0 }
 0x366   : > { %v13600_v54 = vpop.f32.mrf.mxu0  ;;  %v6980_v11 = vsel %vm6587_vm2, %v6387_v31, 0.0  ;;  %v7001_v57 = vsel %vm6587_vm2, %v6390_v1, 0.0  ;;  %v8425_v10 = vmul.f32 0.125, %v13526_v13  ;;  %v6923_v44 = vadd.f32 %v6922_v20, %v13513_v3  ;;  %v13618_v1 = vpop.f32.mrf.mxu1 }
 0x367   : > { %15968 = vst [vmem:[#allocation17_spill] sm:$0xff] %v13600_v54  ;;  %v6916_v4 = vadd.f32 %v15969_v28, %v13465_v40  ;;  %v6981_v46 = vrot.slane %v6980_v11, 4  ;;  %v7002_v58 = vrot.slane %v7001_v57, 4  ;;  %v8935_v60 = vsel %vm8894_vm4, %v13404_v27, %v8934_v39 }
 0x368   : > { %v4112_v31 = vadd.f32 %v13136_v51, %v13294_v5  ;;  %v5536_v40 = vadd.f32 %v13147_v30, %v13262_v14  ;;  %v13620_v28 = vadd.f32 %v6962_v17, %v6961_v26  ;;  %v6998_v59 = vadd.f32 %v6997_v53, %v6996_v37  ;;  %v13622_v9 = vpop.f32.mrf.mxu0 }
 0x369   : > { %v6982_v41 = vadd.f32 %v6981_v46, %v6980_v11  ;;  %v7003_v18 = vadd.f32 %v7002_v58, %v7001_v57  ;;  %15970 = vst [vmem:[#allocation20_spill] sm:$0xff] %v13622_v9  ;;  %v8426_v13 = vmul.f32 0.125, %v6916_v4  ;;  %v8936_v3 = vsel %vm8896_vm5, %v13453_v63, %v8935_v60  ;;  %v13632_v57 = vpop.f32.mrf.mxu1 }
 0x36a   : > { %v6388_v27 = vmax.f32 %v5536_v40, 0.0  ;;  %v4104_v5 = vadd.f32 %v13136_v51, %v13305_v32  ;;  %v8937_v14 = vsel %vm8898_vm6, %v13524_v45, %v8936_v3  ;;  %v4646_v26 = vmax.f32 %v4112_v31, 0.0  ;;  %v13635_v51 = vpop.f32.mrf.mxu0  ;;  %v15972_v31 = vld [vmem:[#allocation28_spill] sm:$0xff] }
 0x36b   : > { %v6983_v20 = vrot.slane %v6982_v41, 2  ;;  %v7004_v39 = vrot.slane %v7003_v18, 2  ;;  %v8427_v17 = vmul.f32 0.125, %v6923_v44  ;;  %v8938_v37 = vsel %vm8900_vm7, %v8425_v10, %v8937_v14  ;;  %15971 = vst [vmem:[#allocation21_spill] sm:$0xff] %v13635_v51 }
 0x36c   : > { %v6987_v53 = vsel %vm6587_vm2, %v6388_v27, 0.0  ;;  %v4644_v11 = vmax.f32 %v4104_v5, 0.0  ;;  %v6999_v4 = vrot.slane %v6998_v59, 1  ;;  %v8939_v58 = vsel %vm8902_vm8, %v8426_v13, %v8938_v37  ;;  %v13651_v13 = vld [vmem:[%s15810_s6] ss:$0 sm:$0xff]  ;;  %v13660_v5 = vpop.f32.mrf.mxu1 }
 0x36d   : > { %v6984_v63 = vadd.f32 %v6983_v20, %v6982_v41  ;;  %v7005_v46 = vadd.f32 %v7004_v39, %v7003_v18  ;;  %v8940_v32 = vsel %vm8904_vm9, %v8427_v17, %v8939_v58  ;;  %v6988_v60 = vrot.slane %v6987_v53, 4  ;;  %v13644_v41 = vld [vmem:[%s15808_s4] ss:$0 sm:$0xff] }
 0x36e   : > { %v4819_v45 = vpack.c.bf16 %v4644_v11, %v4643_v50  ;;  %v5557_v44 = vadd.f32 %v13147_v30, %v15972_v31  ;;  %v6958_v10 = vadd.f32 %v6957_v55, %v13572_v2  ;;  %9160 = vxpose.xlu0.b32.cont [6/16] (narrow) %v8940_v32, 8  ;;  %v4820_v40 = vpack.c.bf16 %v4646_v26, %v4645_v24  ;;  %v15973_v50 = vld [vmem:[#allocation27_spill] sm:$0xff]  ;;  %v15974_v55 = vld [vmem:[#allocation30_spill] sm:$0xff]  ;;  %v13664_v26 = vpop.f32.mrf.mxu0 }
 0x36f   : > { %v4125_v18 = vadd.f32 %v13644_v41, %v13328_v22  ;;  %v5549_v30 = vadd.f32 %v13651_v13, %v15973_v50  ;;  %v6989_v3 = vadd.f32 %v6988_v60, %v6987_v53  ;;  %v4117_v24 = vadd.f32 %v13644_v41, %v13349_v23  ;;  %15975 = vst [vmem:[#allocation22_spill] sm:$0xff] %v13664_v26 }
 0x370   : > { %v6393_v2 = vmax.f32 %v5557_v44, 0.0  ;;  %v5560_v27 = vadd.f32 %v13651_v13, %v15974_v55  ;;  %10899 = vmatprep.mubr.msk.bf16.mxu0 %vm3041_vm1, %v4819_v45  ;;  %v6964_v22 = vrot.slane %v13620_v28, 1  ;;  %v7000_v20 = vadd.f32 %v6999_v4, %v6998_v59  ;;  %v13671_v44 = vpop.f32.mrf.mxu1  ;;  %v13677_v55 = vpop.f32.mrf.mxu0 }
 0x371   : > { %v6985_v39 = vrot.slane %v6984_v63, 1  ;;  %v6391_v14 = vmax.f32 %v5549_v30, 0.0  ;;  %10900 = vmatmul.mubr.msk.bf16.gmra.mxu0 %vm3041_vm1, %v4820_v40  ;;  %v7006_v17 = vrot.slane %v7005_v46, 1  ;;  %v6990_v37 = vrot.slane %v6989_v3, 2  ;;  %v15976_v30 = vld [vmem:[#allocation29_spill] sm:$0xff]  ;;  %15977 = vst [vmem:[#allocation19_spill] sm:$0xff] %v13677_v55 }
 0x372   : > { %v7022_v23 = vsel %vm6587_vm2, %v6393_v2, 0.0  ;;  %v6394_v53 = vmax.f32 %v5560_v27, 0.0  ;;  %v4649_v58 = vmax.f32 %v4125_v18, 0.0  ;;  %v4647_v60 = vmax.f32 %v4117_v24, 0.0 }
 0x373   : > { %v7023_v11 = vrot.slane %v7022_v23, 4  ;;  %v7008_v32 = vsel %vm6587_vm2, %v6391_v14, 0.0  ;;  %v6991_v45 = vadd.f32 %v6990_v37, %v6989_v3  ;;  %v4128_v4 = vadd.f32 %v13644_v41, %v13369_v52 }
 0x374   : > { %v7009_v31 = vrot.slane %v7008_v32, 4  ;;  %v7029_v59 = vsel %vm6587_vm2, %v6394_v53, 0.0  ;;  %v5552_v2 = vadd.f32 %v13651_v13, %v15976_v30  ;;  %v4120_v18 = vadd.f32 %v13644_v41, %v13385_v33  ;;  %v13681_v30 = vpop.f32.mrf.mxu1 }
 0x375   : > { %v7024_v40 = vadd.f32 %v7023_v11, %v7022_v23  ;;  %v7030_v50 = vrot.slane %v7029_v59, 4  ;;  %v6992_v24 = vrot.slane %v6991_v45, 1  ;;  %v4650_v27 = vmax.f32 %v4128_v4, 0.0 }
 0x376   : > { %v7010_v3 = vadd.f32 %v7009_v31, %v7008_v32  ;;  %v5573_v14 = vadd.f32 %v13651_v13, %v13307_v56  ;;  %v6392_v53 = vmax.f32 %v5552_v2, 0.0  ;;  %v4648_v26 = vmax.f32 %v4120_v18, 0.0  ;;  %v13684_v32 = vpop.f32.mrf.mxu0 }
 0x377   : > { %v7025_v37 = vrot.slane %v7024_v40, 2  ;;  %v7031_v52 = vadd.f32 %v7030_v50, %v7029_v59  ;;  %v6986_v23 = vadd.f32 %v6985_v39, %v6984_v63  ;;  %v7007_v11 = vadd.f32 %v7006_v17, %v7005_v46 }
 0x378   : > { %v7011_v51 = vrot.slane %v7010_v3, 2  ;;  %v6397_v9 = vmax.f32 %v5573_v14, 0.0  ;;  %v6993_v54 = vadd.f32 %v6992_v24, %v6991_v45  ;;  %v4822_v33 = vpack.c.bf16 %v4650_v27, %v4649_v58  ;;  %v13691_v17 = vpop.f32.mrf.mxu0 }
 0x379   : > { %v7015_v55 = vsel %vm6587_vm2, %v6392_v53, 0.0  ;;  %v4821_v38 = vpack.c.bf16 %v4648_v26, %v4647_v60  ;;  %v13686_v31 = vadd.f32 %v7025_v37, %v7024_v40  ;;  %v8432_v50 = vmul.f32 0.125, %v6958_v10 }
 0x37a   : > { %v7012_v56 = vadd.f32 %v7011_v51, %v7010_v3  ;;  %v7016_v4 = vrot.slane %v7015_v55, 4  ;;  %v7050_v59 = vsel %vm6587_vm2, %v6397_v9, 0.0  ;;  %v6965_v63 = vadd.f32 %v6964_v22, %v13620_v28  ;;  %v13700_v9 = vpop.f32.mrf.mxu1  ;;  %v13706_v45 = vpop.f32.mrf.mxu0 }
 0x37b   : > { %v7032_v46 = vrot.slane %v7031_v52, 2  ;;  %v7051_v39 = vrot.slane %v7050_v59, 4  ;;  %10903 = vmatprep.mubr.msk.bf16.mxu0 %vm3041_vm1, %v4821_v38  ;;  %v13693_v58 = vmul.f32 0.125, %v7000_v20  ;;  %v13695_v26 = vmul.f32 0.125, %v6986_v23 }
 0x37c   : > { %v7017_v60 = vadd.f32 %v7016_v4, %v7015_v55  ;;  %v5565_v51 = vadd.f32 %v13651_v13, %v13312_v29  ;;  %10904 = vmatmul.mubr.msk.bf16.gmra.mxu0 %vm3041_vm1, %v4822_v33  ;;  %v13702_v10 = vmul.f32 0.125, %v7007_v11  ;;  %v7013_v28 = vrot.slane %v7012_v56, 1  ;;  %v13722_v53 = vpop.f32.mrf.mxu1 }
 0x37d   : > { %v7052_v22 = vadd.f32 %v7051_v39, %v7050_v59  ;;  %v5576_v38 = vadd.f32 %v13651_v13, %v13330_v16  ;;  %v13708_v20 = vmul.f32 0.125, %v6993_v54  ;;  %v13711_v29 = vadd.f32 %v7032_v46, %v7031_v52  ;;  %v13724_v52 = vpop.f32.mrf.mxu0 }
 0x37e   : > { %v7018_v2 = vrot.slane %v7017_v60, 2  ;;  %v6395_v18 = vmax.f32 %v5565_v51, 0.0  ;;  %v6978_v3 = vrot.slane %v13588_v47, 1  ;;  %v4141_v27 = vadd.f32 %v13644_v41, %v13408_v0 }
 0x37f   : > { %v7053_v55 = vrot.slane %v7052_v22, 2  ;;  %v6398_v24 = vmax.f32 %v5576_v38, 0.0  ;;  %v4133_v16 = vadd.f32 %v13644_v41, %v13426_v8  ;;  %v15978_v54 = vrot.slane %v13570_v62, 1 }
 0x380   : > { %v7036_v14 = vsel %vm6587_vm2, %v6395_v18, 0.0  ;;  %v7014_v23 = vadd.f32 %v7013_v28, %v7012_v56  ;;  %v7019_v11 = vadd.f32 %v7018_v2, %v7017_v60  ;;  %v6979_v0 = vadd.f32 %v6978_v3, %v13588_v47  ;;  %v13737_v47 = vpop.f32.mrf.mxu1 }
 0x381   : > { %v6972_v37 = vadd.f32 %v15978_v54, %v13570_v62  ;;  %v7037_v33 = vrot.slane %v7036_v14, 4  ;;  %v7057_v4 = vsel %vm6587_vm2, %v6398_v24, 0.0  ;;  %v8433_v46 = vmul.f32 0.125, %v6965_v63  ;;  %v13739_v63 = vpop.f32.mrf.mxu0 }
 0x382   : > { %v7058_v59 = vrot.slane %v7057_v4, 4  ;;  %v8941_v8 = vsel %vm8892_vm3, %v13586_v34, %v13577_v35  ;;  %v7054_v39 = vadd.f32 %v7053_v55, %v7052_v22  ;;  %v4144_v56 = vadd.f32 %v13644_v41, %v13437_v12  ;;  %15979 = vst [vmem:[#allocation24_spill] sm:$0xff] %v13739_v63  ;;  %v15980_v22 = vld [vmem:[#allocation32_spill] sm:$0xff] }
 0x383   : > { %v7038_v51 = vadd.f32 %v7037_v33, %v7036_v14  ;;  %v8942_v62 = vsel %vm8894_vm4, %v13561_v25, %v8941_v8  ;;  %v4651_v60 = vmax.f32 %v4133_v16, 0.0  ;;  %v8434_v38 = vmul.f32 0.125, %v6972_v37  ;;  %v13751_v8 = vpop.f32.mrf.mxu1 }
 0x384   : > { %v7059_v28 = vadd.f32 %v7058_v59, %v7057_v4  ;;  %v8943_v2 = vsel %vm8896_vm5, %v13579_v21, %v8942_v62  ;;  %v7020_v18 = vrot.slane %v7019_v11, 1  ;;  %v5568_v25 = vadd.f32 %v13651_v13, %v15980_v22 }
 0x385   : > { %v7039_v35 = vrot.slane %v7038_v51, 2  ;;  %v8944_v34 = vsel %vm8898_vm6, %v8432_v50, %v8943_v2  ;;  %v8435_v24 = vmul.f32 0.125, %v6979_v0  ;;  %v4136_v3 = vadd.f32 %v13644_v41, %v13461_v15  ;;  %v15981_v50 = vld [vmem:[#allocation31_spill] sm:$0xff]  ;;  %v13753_v0 = vpop.f32.mrf.mxu0  ;;  %v15983_v2 = vld [vmem:[#allocation34_spill] sm:$0xff] }
 0x386   : > { %v7060_v55 = vrot.slane %v7059_v28, 2  ;;  %v8945_v12 = vsel %vm8900_vm7, %v8433_v46, %v8944_v34  ;;  %v7055_v14 = vrot.slane %v7054_v39, 1  ;;  %v4654_v16 = vmax.f32 %v4144_v56, 0.0  ;;  %15982 = vst [vmem:[#allocation23_spill] sm:$0xff] %v13753_v0 }
 0x387   : > { %v8946_v21 = vsel %vm8902_vm8, %v8434_v38, %v8945_v12  ;;  %v6396_v54 = vmax.f32 %v5568_v25, 0.0  ;;  %v7040_v37 = vadd.f32 %v7039_v35, %v7038_v51  ;;  %v4652_v4 = vmax.f32 %v4136_v3, 0.0 }
 0x388   : > { %v8947_v33 = vsel %vm8904_vm9, %v8435_v24, %v8946_v21  ;;  %v5589_v59 = vadd.f32 %v13651_v13, %v15981_v50  ;;  %v4653_v46 = vmax.f32 %v4141_v27, 0.0  ;;  %v7061_v62 = vadd.f32 %v7060_v55, %v7059_v28  ;;  %v15984_v28 = vld [vmem:[#allocation33_spill] sm:$0xff] }
 0x389   : > { %9161 = vxpose.xlu0.b32.cont [7/16] (narrow) %v8947_v33, 8  ;;  %v7043_v15 = vsel %vm6587_vm2, %v6396_v54, 0.0  ;;  %v5581_v56 = vadd.f32 %v13651_v13, %v15983_v2  ;;  %v13758_v38 = vmul.f32 0.125, %v7014_v23  ;;  %v4823_v35 = vpack.c.bf16 %v4652_v4, %v4651_v60  ;;  %v13766_v54 = vpop.f32.mrf.mxu1  ;;  %v13768_v23 = vpop.f32.mrf.mxu0 }
 0x38a   : > { %v7044_v51 = vrot.slane %v7043_v15, 4  ;;  %v6401_v34 = vmax.f32 %v5589_v59, 0.0  ;;  %v13760_v22 = vadd.f32 %v7020_v18, %v7019_v11  ;;  %v7056_v25 = vadd.f32 %v7055_v14, %v7054_v39  ;;  %15985 = vst [vmem:[#allocation26_spill] sm:$0xff] %v13768_v23 }
 0x38b   : > { %v4824_v24 = vpack.c.bf16 %v4654_v16, %v4653_v46  ;;  %v6399_v12 = vmax.f32 %v5581_v56, 0.0  ;;  %v7041_v3 = vrot.slane %v7040_v37, 1  ;;  %v5592_v55 = vadd.f32 %v13651_v13, %v15984_v28  ;;  %10907 = vmatprep.mubr.msk.bf16.mxu0 %vm3041_vm1, %v4823_v35  ;;  %v15986_v46 = vld [vmem:[#allocation36_spill] sm:$0xff]  ;;  %v15987_v35 = vld [vmem:[#allocation35_spill] sm:$0xff] }
 0x38c   : > { %v7045_v21 = vadd.f32 %v7044_v51, %v7043_v15  ;;  %v7078_v27 = vsel %vm6587_vm2, %v6401_v34, 0.0  ;;  %v7062_v60 = vrot.slane %v7061_v62, 1  ;;  %v4157_v11 = vadd.f32 %v13644_v41, %v13482_v6 }
 0x38d   : > { %v7079_v33 = vrot.slane %v7078_v27, 4  ;;  %v7064_v39 = vsel %vm6587_vm2, %v6399_v12, 0.0  ;;  %10908 = vmatmul.mubr.msk.bf16.gmra.mxu0 %vm3041_vm1, %v4824_v24  ;;  %v4149_v16 = vadd.f32 %v13644_v41, %v13501_v7  ;;  %v6402_v4 = vmax.f32 %v5592_v55, 0.0  ;;  %v13785_v24 = vpop.f32.mrf.mxu1  ;;  %v13787_v7 = vpop.f32.mrf.mxu0 }
 0x38e   : > { %v7046_v18 = vrot.slane %v7045_v21, 2  ;;  %v7065_v14 = vrot.slane %v7064_v39, 4  ;;  %v4160_v59 = vadd.f32 %v13644_v41, %v13520_v19  ;;  %v5584_v15 = vadd.f32 %v13651_v13, %v15986_v46  ;;  %15988 = vst [vmem:[#allocation25_spill] sm:$0xff] %v13787_v7 }
 0x38f   : > { %v7080_v50 = vadd.f32 %v7079_v33, %v7078_v27  ;;  %v4152_v6 = vadd.f32 %v13644_v41, %v13541_v48  ;;  %v7085_v51 = vsel %vm6587_vm2, %v6402_v4, 0.0  ;;  %v5605_v34 = vadd.f32 %v13651_v13, %v15987_v35  ;;  %v13790_v0 = vpop.f32.mrf.mxu1  ;;  %v13792_v7 = vpop.f32.mrf.mxu0 }
 0x390   : > { %v7047_v2 = vadd.f32 %v7046_v18, %v7045_v21  ;;  %v7066_v56 = vadd.f32 %v7065_v14, %v7064_v39  ;;  %v7086_v27 = vrot.slane %v7085_v51, 4  ;;  %v4658_v19 = vmax.f32 %v4160_v59, 0.0 }
 0x391   : > { %v7081_v12 = vrot.slane %v7080_v50, 2  ;;  %v6400_v28 = vmax.f32 %v5584_v15, 0.0  ;;  %v4655_v33 = vmax.f32 %v4149_v16, 0.0  ;;  %v4656_v46 = vmax.f32 %v4152_v6, 0.0 }
 0x392   : > { %v7067_v55 = vrot.slane %v7066_v56, 2  ;;  %v6405_v40 = vmax.f32 %v5605_v34, 0.0  ;;  %v7042_v48 = vadd.f32 %v7041_v3, %v7040_v37  ;;  %v7063_v21 = vadd.f32 %v7062_v60, %v7061_v62 }
 0x393   : > { %v4657_v39 = vmax.f32 %v4157_v11, 0.0  ;;  %v7071_v18 = vsel %vm6587_vm2, %v6400_v28, 0.0  ;;  %v7048_v14 = vrot.slane %v7047_v2, 1  ;;  %v4825_v23 = vpack.c.bf16 %v4656_v46, %v4655_v33  ;;  %v13806_v11 = vpop.f32.mrf.mxu0 }
 0x394   : > { %v7068_v4 = vadd.f32 %v7067_v55, %v7066_v56  ;;  %v7072_v35 = vrot.slane %v7071_v18, 4  ;;  %v13794_v63 = vadd.f32 %v7081_v12, %v7080_v50  ;;  %v13796_v59 = vadd.f32 %v7086_v27, %v7085_v51  ;;  %v15989_v51 = vld [vmem:[#allocation38_spill] sm:$0xff]  ;;  %v15990_v27 = vld [vmem:[#allocation37_spill] sm:$0xff] }
 0x395   : > { %v4826_v16 = vpack.c.bf16 %v4658_v19, %v4657_v39  ;;  %v7106_v15 = vsel %vm6587_vm2, %v6405_v40, 0.0  ;;  %v13799_v37 = vmul.f32 0.125, %v7056_v25  ;;  %v13803_v60 = vadd.f32 %v13644_v41, %v13554_v42  ;;  %10911 = vmatprep.mubr.msk.bf16.mxu0 %vm3041_vm1, %v4825_v23  ;;  %v13817_v19 = vpop.f32.mrf.mxu1  ;;  %v13819_v23 = vpop.f32.mrf.mxu0 }
 0x396   : > { %v7073_v62 = vadd.f32 %v7072_v35, %v7071_v18  ;;  %v7107_v3 = vrot.slane %v7106_v15, 4  ;;  %v13808_v6 = vmul.f32 0.125, %v7042_v48  ;;  %v13810_v50 = vmul.f32 0.125, %v7063_v21 }
 0x397   : > { %v7069_v56 = vrot.slane %v7068_v4, 1  ;;  %v5597_v40 = vadd.f32 %v13651_v13, %v15989_v51  ;;  %10912 = vmatmul.mubr.msk.bf16.gmra.mxu0 %vm3041_vm1, %v4826_v16  ;;  %v7049_v25 = vadd.f32 %v7048_v14, %v7047_v2  ;;  %v5608_v42 = vadd.f32 %v13651_v13, %v15990_v27  ;;  %v13835_v28 = vpop.f32.mrf.mxu1 }
 0x398   : > { %v7074_v34 = vrot.slane %v7073_v62, 2  ;;  %v7108_v12 = vadd.f32 %v7107_v3, %v7106_v15  ;;  %v7088_v55 = vrot.slane %v13796_v59, 2  ;;  %v7034_v46 = vrot.slane %v13711_v29, 1  ;;  %v13831_v3 = vpop.f32.mrf.mxu0 }
 0x399   : > { %v6403_v33 = vmax.f32 %v5597_v40, 0.0  ;;  %v4661_v21 = vmax.f32 %v13803_v60, 0.0  ;;  %v4165_v2 = vadd.f32 %v13644_v41, %v13568_v36  ;;  %v6406_v39 = vmax.f32 %v5608_v42, 0.0  ;;  %15992 = vst [vmem:[#allocation28_spill] sm:$0xff] %v13831_v3 }
 0x39a   : > { %v7109_v48 = vrot.slane %v7108_v12, 2  ;;  %v7070_v18 = vadd.f32 %v7069_v56, %v7068_v4  ;;  %v7075_v14 = vadd.f32 %v7074_v34, %v7073_v62  ;;  %v15991_v16 = vrot.slane %v13686_v31, 1 }
 0x39b   : > { %v7092_v35 = vsel %vm6587_vm2, %v6403_v33, 0.0  ;;  %v7113_v27 = vsel %vm6587_vm2, %v6406_v39, 0.0  ;;  %v7035_v60 = vadd.f32 %v7034_v46, %v13711_v29  ;;  %v8441_v4 = vmul.f32 0.125, %v13760_v22  ;;  %v13849_v39 = vpop.f32.mrf.mxu0 }
 0x39c   : > { %v7028_v15 = vadd.f32 %v15991_v16, %v13686_v31  ;;  %v7110_v51 = vadd.f32 %v7109_v48, %v7108_v12  ;;  %v7093_v40 = vrot.slane %v7092_v35, 4  ;;  %v7114_v36 = vrot.slane %v7113_v27, 4  ;;  %v15993_v48 = vld [vmem:[#allocation39_spill] sm:$0xff]  ;;  %15994 = vst [vmem:[#allocation27_spill] sm:$0xff] %v13849_v39 }
 0x39d   : > { %v8948_v62 = vsel %vm8892_vm3, %v13708_v20, %v13695_v26  ;;  %v4176_v31 = vadd.f32 %v13644_v41, %v13596_v43  ;;  %v4659_v12 = vmax.f32 %v4165_v2, 0.0  ;;  %v5600_v22 = vadd.f32 %v13651_v13, %v15993_v48  ;;  %v13863_v39 = vpop.f32.mrf.mxu0 }
 0x39e   : > { %v7111_v56 = vrot.slane %v7110_v51, 1  ;;  %v7094_v34 = vadd.f32 %v7093_v40, %v7092_v35  ;;  %v8949_v42 = vsel %vm8894_vm4, %v13693_v58, %v8948_v62  ;;  %v7115_v33 = vadd.f32 %v7114_v36, %v7113_v27  ;;  %v13855_v35 = vpop.f32.mrf.mxu1  ;;  %15996 = vst [vmem:[#allocation30_spill] sm:$0xff] %v13863_v39 }
 0x39f   : > { %v8442_v29 = vmul.f32 0.125, %v7028_v15  ;;  %v8950_v46 = vsel %vm8896_vm5, %v13702_v10, %v8949_v42  ;;  %v7076_v26 = vrot.slane %v7075_v14, 1  ;;  %v4168_v2 = vadd.f32 %v13644_v41, %v13618_v1 }
 0x3a0   : > { %v7095_v20 = vrot.slane %v7094_v34, 2  ;;  %v8951_v43 = vsel %vm8898_vm6, %v13758_v38, %v8950_v46  ;;  %v8443_v58 = vmul.f32 0.125, %v7035_v60  ;;  %v4662_v15 = vmax.f32 %v4176_v31, 0.0  ;;  %v15995_v46 = vld [vmem:[#allocation40_spill] sm:$0xff] }
 0x3a1   : > { %v8952_v16 = vsel %vm8900_vm7, %v8441_v4, %v8951_v43  ;;  %v6404_v10 = vmax.f32 %v5600_v22, 0.0  ;;  %v7112_v40 = vadd.f32 %v7111_v56, %v7110_v51  ;;  %v7116_v27 = vrot.slane %v7115_v33, 2  ;;  %v13870_v56 = vpop.f32.mrf.mxu1 }
 0x3a2   : > { %v8953_v36 = vsel %vm8902_vm8, %v8442_v29, %v8952_v16  ;;  %v4660_v62 = vmax.f32 %v4168_v2, 0.0  ;;  %v7096_v42 = vadd.f32 %v7095_v20, %v7094_v34  ;;  %v5621_v1 = vadd.f32 %v13651_v13, %v15995_v46  ;;  %v15997_v20 = vld [vmem:[#allocation42_spill] sm:$0xff]  ;;  %v15998_v16 = vld [vmem:[#allocation41_spill] sm:$0xff] }
 0x3a3   : > { %v8954_v48 = vsel %vm8904_vm9, %v8443_v58, %v8953_v36  ;;  %v7099_v38 = vsel %vm6587_vm2, %v6404_v10, 0.0  ;;  %v13865_v60 = vmul.f32 0.125, %v7049_v25  ;;  %v13868_v4 = vadd.f32 %v7088_v55, %v13796_v59 }
 0x3a4   : > { %9162 = vxpose.xlu0.b32.cont [8/16] (narrow) %v8954_v48, 8  ;;  %v7100_v51 = vrot.slane %v7099_v38, 4  ;;  %v4827_v31 = vpack.c.bf16 %v4660_v62, %v4659_v12  ;;  %v13872_v34 = vmul.f32 0.125, %v7070_v18  ;;  %v4828_v29 = vpack.c.bf16 %v4662_v15, %v4661_v21  ;;  %v13885_v21 = vpop.f32.mrf.mxu0  ;;  %v16000_v48 = vld [vmem:[#allocation6_spill] sm:$0xff] }
 0x3a5   : > { %v6409_v22 = vmax.f32 %v5621_v1, 0.0  ;;  %v5613_v43 = vadd.f32 %v13651_v13, %v15997_v20  ;;  %v13876_v2 = vadd.f32 %v7076_v26, %v7075_v14  ;;  %v7117_v58 = vadd.f32 %v7116_v27, %v7115_v33  ;;  %15999 = vst [vmem:[#allocation29_spill] sm:$0xff] %v13885_v21  ;;  %v13889_v27 = vpop.f32.mrf.mxu1 }
 0x3a6   : > { %v7101_v25 = vadd.f32 %v7100_v51, %v7099_v38  ;;  %v5624_v59 = vadd.f32 %v13651_v13, %v15998_v16  ;;  %10915 = vmatprep.mubr.msk.bf16.mxu0 %vm3041_vm1, %v4827_v31  ;;  %v13881_v55 = vmul.f32 0.125, %v7112_v40  ;;  %v7097_v12 = vrot.slane %v7096_v42, 1 }
 0x3a7   : > { %v7134_v18 = vsel %vm6587_vm2, %v6409_v22, 0.0  ;;  %v6407_v10 = vmax.f32 %v5613_v43, 0.0  ;;  %10916 = vmatmul.mubr.msk.bf16.gmra.mxu0 %vm3041_vm1, %v4828_v29  ;;  %v4189_v33 = vadd.f32 %v13644_v41, %v13632_v57  ;;  %v4181_v40 = vadd.f32 %v13644_v41, %v13660_v5  ;;  %v13901_v43 = vpop.f32.mrf.mxu0 }
 0x3a8   : > { %v7102_v15 = vrot.slane %v7101_v25, 2  ;;  %v7135_v14 = vrot.slane %v7134_v18, 4  ;;  %v6410_v26 = vmax.f32 %v5624_v59, 0.0  ;;  %v4192_v62 = vadd.f32 %v13644_v41, %v13671_v44  ;;  %16001 = vst [vmem:[#allocation32_spill] sm:$0xff] %v13901_v43  ;;  %v16002_v44 = vld [vmem:[#allocation5_spill] sm:$0xff] }
 0x3a9   : > { %v7120_v36 = vsel %vm6587_vm2, %v6407_v10, 0.0  ;;  %v5616_v38 = vadd.f32 %v13651_v13, %v16000_v48  ;;  %v7118_v46 = vrot.slane %v7117_v58, 1  ;;  %v7098_v57 = vadd.f32 %v7097_v12, %v7096_v42  ;;  %v13905_v48 = vpop.f32.mrf.mxu1 }
 0x3aa   : > { %v7103_v1 = vadd.f32 %v7102_v15, %v7101_v25  ;;  %v7121_v51 = vrot.slane %v7120_v36, 4  ;;  %v7141_v31 = vsel %vm6587_vm2, %v6410_v26, 0.0  ;;  %v7136_v29 = vadd.f32 %v7135_v14, %v7134_v18 }
 0x3ab   : > { %v6408_v22 = vmax.f32 %v5616_v38, 0.0  ;;  %v4184_v20 = vadd.f32 %v13644_v41, %v13681_v30  ;;  %v7142_v16 = vrot.slane %v7141_v31, 4  ;;  %v4666_v59 = vmax.f32 %v4192_v62, 0.0  ;;  %v13910_v62 = vpop.f32.mrf.mxu0 }
 0x3ac   : > { %v7122_v5 = vadd.f32 %v7121_v51, %v7120_v36  ;;  %v5637_v10 = vadd.f32 %v13651_v13, %v16002_v44  ;;  %v7104_v25 = vrot.slane %v7103_v1, 1  ;;  %v4663_v15 = vmax.f32 %v4181_v40, 0.0  ;;  %16003 = vst [vmem:[#allocation31_spill] sm:$0xff] %v13910_v62  ;;  %v13914_v40 = vpop.f32.mrf.mxu1 }
 0x3ad   : > { %v7127_v26 = vsel %vm6587_vm2, %v6408_v22, 0.0  ;;  %v4664_v42 = vmax.f32 %v4184_v20, 0.0  ;;  %v7119_v12 = vadd.f32 %v7118_v46, %v7117_v58  ;;  %v4665_v18 = vmax.f32 %v4189_v33, 0.0  ;;  %v16004_v46 = vld [vmem:[#allocation8_spill] sm:$0xff]  ;;  %v13924_v20 = vpop.f32.mrf.mxu0 }
 0x3ae   : > { %v7123_v14 = vrot.slane %v7122_v5, 2  ;;  %v7128_v38 = vrot.slane %v7127_v26, 4  ;;  %v13908_v30 = vmul.f32 0.125, %v7098_v57  ;;  %v7137_v43 = vrot.slane %v7136_v29, 2  ;;  %16005 = vst [vmem:[#allocation34_spill] sm:$0xff] %v13924_v20 }
 0x3af   : > { %v4829_v36 = vpack.c.bf16 %v4664_v42, %v4663_v15  ;;  %v6413_v51 = vmax.f32 %v5637_v10, 0.0  ;;  %v13912_v44 = vadd.f32 %v7142_v16, %v7141_v31  ;;  %v4830_v39 = vpack.c.bf16 %v4666_v59, %v4665_v18 }
 0x3b0   : > { %v7124_v21 = vadd.f32 %v7123_v14, %v7122_v5  ;;  %v7129_v3 = vadd.f32 %v7128_v38, %v7127_v26  ;;  %v7105_v22 = vadd.f32 %v7104_v25, %v7103_v1  ;;  %v13919_v33 = vadd.f32 %v13644_v41, %v13700_v9  ;;  %v16006_v9 = vld [vmem:[#allocation7_spill] sm:$0xff]  ;;  %v13934_v26 = vpop.f32.mrf.mxu0  ;;  %v13942_v38 = vpop.f32.mrf.mxu1 }
 0x3b1   : > { %v7162_v58 = vsel %vm6587_vm2, %v6413_v51, 0.0  ;;  %v5629_v57 = vadd.f32 %v13651_v13, %v16004_v46  ;;  %10919 = vmatprep.mubr.msk.bf16.mxu0 %vm3041_vm1, %v4829_v36  ;;  %v13926_v31 = vmul.f32 0.125, %v7119_v12  ;;  %v4197_v10 = vadd.f32 %v13644_v41, %v13722_v53  ;;  %16007 = vst [vmem:[#allocation33_spill] sm:$0xff] %v13934_v26 }
 0x3b2   : > { %v7125_v5 = vrot.slane %v7124_v21, 1  ;;  %v7130_v16 = vrot.slane %v7129_v3, 2  ;;  %v7163_v59 = vrot.slane %v7162_v58, 4  ;;  %10920 = vmatmul.mubr.msk.bf16.gmra.mxu0 %vm3041_vm1, %v4830_v39  ;;  %v5640_v25 = vadd.f32 %v13651_v13, %v16006_v9  ;;  %v13956_v20 = vpop.f32.mrf.mxu1 }
 0x3b3   : > { %v6411_v1 = vmax.f32 %v5629_v57, 0.0  ;;  %v7090_v15 = vrot.slane %v13868_v4, 1  ;;  %v13936_v42 = vadd.f32 %v7137_v43, %v7136_v29  ;;  %v7144_v12 = vrot.slane %v13912_v44, 2  ;;  %v13948_v57 = vpop.f32.mrf.mxu0 }
 0x3b4   : > { %v7164_v18 = vadd.f32 %v7163_v59, %v7162_v58  ;;  %v16008_v14 = vrot.slane %v13794_v63, 1  ;;  %v13944_v36 = vmul.f32 0.125, %v7105_v22  ;;  %v4669_v53 = vmax.f32 %v13919_v33, 0.0  ;;  %16009 = vst [vmem:[#allocation36_spill] sm:$0xff] %v13948_v57 }
 0x3b5   : > { %v7148_v51 = vsel %vm6587_vm2, %v6411_v1, 0.0  ;;  %v6414_v46 = vmax.f32 %v5640_v25, 0.0  ;;  %v7126_v29 = vadd.f32 %v7125_v5, %v7124_v21  ;;  %v7131_v43 = vadd.f32 %v7130_v16, %v7129_v3  ;;  %v16010_v5 = vld [vmem:[#allocation10_spill] sm:$0xff] }
 0x3b6   : > { %v7084_v39 = vadd.f32 %v16008_v14, %v13794_v63  ;;  %v7165_v9 = vrot.slane %v7164_v18, 2  ;;  %v7149_v26 = vrot.slane %v7148_v51, 4  ;;  %v4667_v58 = vmax.f32 %v4197_v10, 0.0 }
 0x3b7   : > { %v7169_v59 = vsel %vm6587_vm2, %v6414_v46, 0.0  ;;  %v7091_v63 = vadd.f32 %v7090_v15, %v13868_v4  ;;  %v8955_v22 = vsel %vm8892_vm3, %v13865_v60, %v13808_v6  ;;  %v8449_v1 = vmul.f32 0.125, %v13876_v2  ;;  %v13966_v6 = vpop.f32.mrf.mxu0 }
 0x3b8   : > { %v7150_v14 = vadd.f32 %v7149_v26, %v7148_v51  ;;  %v7170_v33 = vrot.slane %v7169_v59, 4  ;;  %v8450_v25 = vmul.f32 0.125, %v7084_v39  ;;  %v8956_v3 = vsel %vm8894_vm4, %v13799_v37, %v8955_v22  ;;  %16011 = vst [vmem:[#allocation35_spill] sm:$0xff] %v13966_v6 }
 0x3b9   : > { %v4208_v21 = vadd.f32 %v13644_v41, %v13737_v47  ;;  %v5632_v4 = vadd.f32 %v13651_v13, %v16010_v5  ;;  %v4200_v16 = vadd.f32 %v13644_v41, %v13751_v8  ;;  %v7166_v60 = vadd.f32 %v7165_v9, %v7164_v18  ;;  %v13973_v8 = vpop.f32.mrf.mxu1 }
 0x3ba   : > { %v7151_v10 = vrot.slane %v7150_v14, 2  ;;  %v7171_v2 = vadd.f32 %v7170_v33, %v7169_v59  ;;  %v8957_v15 = vsel %vm8896_vm5, %v13810_v50, %v8956_v3  ;;  %v7132_v51 = vrot.slane %v7131_v43, 1  ;;  %v13978_v33 = vpop.f32.mrf.mxu0 }
 0x3bb   : > { %v8958_v37 = vsel %vm8898_vm6, %v13872_v34, %v8957_v15  ;;  %v4670_v26 = vmax.f32 %v4208_v21, 0.0  ;;  %v6412_v39 = vmax.f32 %v5632_v4, 0.0  ;;  %v4668_v47 = vmax.f32 %v4200_v16, 0.0  ;;  %16012 = vst [vmem:[#allocation38_spill] sm:$0xff] %v13978_v33  ;;  %v16013_v16 = vld [vmem:[#allocation9_spill] sm:$0xff] }
 0x3bc   : > { %v7172_v46 = vrot.slane %v7171_v2, 2  ;;  %v8451_v22 = vmul.f32 0.125, %v7091_v63  ;;  %v8959_v5 = vsel %vm8900_vm7, %v8449_v1, %v8958_v37  ;;  %v7167_v34 = vrot.slane %v7166_v60, 1  ;;  %v16014_v37 = vld [vmem:[#allocation12_spill] sm:$0xff] }
 0x3bd   : > { %v8960_v9 = vsel %vm8902_vm8, %v8450_v25, %v8959_v5  ;;  %v7155_v59 = vsel %vm6587_vm2, %v6412_v39, 0.0  ;;  %v4831_v50 = vpack.c.bf16 %v4668_v47, %v4667_v58  ;;  %v7152_v3 = vadd.f32 %v7151_v10, %v7150_v14  ;;  %v16015_v10 = vld [vmem:[#allocation11_spill] sm:$0xff]  ;;  %v14000_v5 = vpop.f32.mrf.mxu0 }
 0x3be   : > { %v8961_v21 = vsel %vm8904_vm9, %v8451_v22, %v8960_v9  ;;  %v4832_v4 = vpack.c.bf16 %v4670_v26, %v4669_v53  ;;  %v13982_v63 = vadd.f32 %v7144_v12, %v13912_v44  ;;  %v7156_v1 = vrot.slane %v7155_v59, 4  ;;  %v13996_v44 = vpop.f32.mrf.mxu1  ;;  %16016 = vst [vmem:[#allocation37_spill] sm:$0xff] %v14000_v5 }
 0x3bf   : > { %9163 = vxpose.xlu0.b32.cont [9/16] (narrow) %v8961_v21, 8  ;;  %v5653_v15 = vadd.f32 %v13651_v13, %v16013_v16  ;;  %v5645_v25 = vadd.f32 %v13651_v13, %v16014_v37  ;;  %10923 = vmatprep.mubr.msk.bf16.mxu0 %vm3041_vm1, %v4831_v50  ;;  %v13989_v58 = vmul.f32 0.125, %v7126_v29  ;;  %v13991_v39 = vadd.f32 %v7132_v51, %v7131_v43 }
 0x3c0   : > { %v7173_v14 = vadd.f32 %v7172_v46, %v7171_v2  ;;  %v5656_v53 = vadd.f32 %v13651_v13, %v16015_v10  ;;  %10924 = vmatmul.mubr.msk.bf16.gmra.mxu0 %vm3041_vm1, %v4832_v4  ;;  %v7157_v12 = vadd.f32 %v7156_v1, %v7155_v59  ;;  %v4213_v22 = vadd.f32 %v13644_v41, %v13785_v24  ;;  %v14009_v16 = vpop.f32.mrf.mxu1 }
 0x3c1   : > { %v6417_v26 = vmax.f32 %v5653_v15, 0.0  ;;  %v6415_v47 = vmax.f32 %v5645_v25, 0.0  ;;  %v7168_v29 = vadd.f32 %v7167_v34, %v7166_v60  ;;  %v7153_v9 = vrot.slane %v7152_v3, 1  ;;  %v14013_v25 = vpop.f32.mrf.mxu0 }
 0x3c2   : > { %v4221_v43 = vadd.f32 %v13644_v41, %v13766_v54  ;;  %v6418_v2 = vmax.f32 %v5656_v53, 0.0  ;;  %v7158_v51 = vrot.slane %v7157_v12, 2  ;;  %v4224_v59 = vadd.f32 %v13644_v41, %v13790_v0  ;;  %v16017_v54 = vld [vmem:[#allocation14_spill] sm:$0xff]  ;;  %16018 = vst [vmem:[#allocation39_spill] sm:$0xff] %v14013_v25  ;;  %v14019_v57 = vpop.f32.mrf.mxu1 }
 0x3c3   : > { %v7190_v46 = vsel %vm6587_vm2, %v6417_v26, 0.0  ;;  %v7176_v50 = vsel %vm6587_vm2, %v6415_v47, 0.0  ;;  %v7174_v21 = vrot.slane %v7173_v14, 1  ;;  %v4671_v34 = vmax.f32 %v4213_v22, 0.0  ;;  %v16019_v26 = vld [vmem:[#allocation13_spill] sm:$0xff] }
 0x3c4   : > { %v7191_v4 = vrot.slane %v7190_v46, 4  ;;  %v7177_v1 = vrot.slane %v7176_v50, 4  ;;  %v7197_v24 = vsel %vm6587_vm2, %v6418_v2, 0.0  ;;  %v7159_v60 = vadd.f32 %v7158_v51, %v7157_v12 }
 0x3c5   : > { %v7198_v15 = vrot.slane %v7197_v24, 4  ;;  %v5648_v37 = vadd.f32 %v13651_v13, %v16017_v54  ;;  %v4216_v0 = vadd.f32 %v13644_v41, %v13817_v19  ;;  %v5669_v47 = vadd.f32 %v13651_v13, %v16019_v26 }
 0x3c6   : > { %v7192_v10 = vadd.f32 %v7191_v4, %v7190_v46  ;;  %v7178_v53 = vadd.f32 %v7177_v1, %v7176_v50  ;;  %v7160_v18 = vrot.slane %v7159_v60, 1  ;;  %v4674_v5 = vmax.f32 %v4224_v59, 0.0  ;;  %v14022_v4 = vpop.f32.mrf.mxu0 }
 0x3c7   : > { %v7199_v2 = vadd.f32 %v7198_v15, %v7197_v24  ;;  %v6416_v33 = vmax.f32 %v5648_v37, 0.0  ;;  %v4672_v51 = vmax.f32 %v4216_v0, 0.0  ;;  %v6421_v6 = vmax.f32 %v5669_v47, 0.0 }
 0x3c8   : > { %v7193_v12 = vrot.slane %v7192_v10, 2  ;;  %v7179_v22 = vrot.slane %v7178_v53, 2  ;;  %v7154_v54 = vadd.f32 %v7153_v9, %v7152_v3  ;;  %v7175_v25 = vadd.f32 %v7174_v21, %v7173_v14  ;;  %v16021_v21 = vld [vmem:[#allocation15_spill] sm:$0xff] }
 0x3c9   : > { %v4673_v46 = vmax.f32 %v4221_v43, 0.0  ;;  %v7183_v50 = vsel %vm6587_vm2, %v6416_v33, 0.0  ;;  %v7161_v19 = vadd.f32 %v7160_v18, %v7159_v60  ;;  %v7200_v1 = vrot.slane %v7199_v2, 2  ;;  %v14036_v18 = vpop.f32.mrf.mxu1  ;;  %v14038_v43 = vpop.f32.mrf.mxu0 }
 0x3ca   : > { %v7184_v26 = vrot.slane %v7183_v50, 4  ;;  %v4833_v62 = vpack.c.bf16 %v4672_v51, %v4671_v34  ;;  %v14024_v24 = vmul.f32 0.125, %v7168_v29  ;;  %v7218_v15 = vsel %vm6587_vm2, %v6421_v6, 0.0  ;;  %v16020_v6 = vld [vmem:[#allocation16_spill] sm:$0xff] }
 0x3cb   : > { %v4834_v59 = vpack.c.bf16 %v4674_v5, %v4673_v46  ;;  %v14029_v37 = vadd.f32 %v13644_v41, %v13835_v28  ;;  %v14031_v3 = vadd.f32 %v7193_v12, %v7192_v10  ;;  %v14033_v14 = vadd.f32 %v7179_v22, %v7178_v53  ;;  %v14055_v0 = vpop.f32.mrf.mxu0 }
 0x3cc   : > { %v7185_v33 = vadd.f32 %v7184_v26, %v7183_v50  ;;  %v7219_v9 = vrot.slane %v7218_v15, 4  ;;  %10927 = vmatprep.mubr.msk.bf16.mxu0 %vm3041_vm1, %v4833_v62  ;;  %v14040_v29 = vmul.f32 0.125, %v7154_v54  ;;  %v14042_v5 = vmul.f32 0.125, %v7175_v25  ;;  %16022 = vst [vmem:[#allocation40_spill] sm:$0xff] %v14055_v0 }
 0x3cd   : > { %v5661_v28 = vadd.f32 %v13651_v13, %v16020_v6  ;;  %v5672_v60 = vadd.f32 %v13651_v13, %v16021_v21  ;;  %10928 = vmatmul.mubr.msk.bf16.gmra.mxu0 %vm3041_vm1, %v4834_v59  ;;  %v14049_v34 = vmul.f32 0.125, %v7161_v19  ;;  %v14051_v10 = vadd.f32 %v7200_v1, %v7199_v2  ;;  %v14061_v2 = vpop.f32.mrf.mxu1  ;;  %v14063_v19 = vpop.f32.mrf.mxu0 }
 0x3ce   : > { %v7220_v62 = vadd.f32 %v7219_v9, %v7218_v15  ;;  %v4229_v53 = vadd.f32 %v13644_v41, %v13855_v35  ;;  %v4677_v25 = vmax.f32 %v14029_v37, 0.0  ;;  %v7146_v22 = vrot.slane %v13982_v63, 1  ;;  %16023 = vst [vmem:[#allocation42_spill] sm:$0xff] %v14063_v19 }
 0x3cf   : > { %v6419_v47 = vmax.f32 %v5661_v28, 0.0  ;;  %v6422_v12 = vmax.f32 %v5672_v60, 0.0  ;;  %v7181_v54 = vrot.slane %v14033_v14, 1  ;;  %v7186_v46 = vrot.slane %v7185_v33, 2  ;;  %v14085_v51 = vpop.f32.mrf.mxu0 }
 0x3d0   : > { %v7221_v50 = vrot.slane %v7220_v62, 2  ;;  %v16024_v26 = vrot.slane %v13936_v42, 1  ;;  %v8962_v15 = vsel %vm8892_vm3, %v13944_v36, %v13908_v30  ;;  %v4675_v9 = vmax.f32 %v4229_v53, 0.0  ;;  %v14083_v53 = vpop.f32.mrf.mxu1  ;;  %16025 = vst [vmem:[#allocation41_spill] sm:$0xff] %v14085_v51 }
 0x3d1   : > { %v7204_v35 = vsel %vm6587_vm2, %v6419_v47, 0.0  ;;  %v7225_v1 = vsel %vm6587_vm2, %v6422_v12, 0.0  ;;  %v8457_v28 = vmul.f32 0.125, %v13991_v39  ;;  %v7147_v21 = vadd.f32 %v7146_v22, %v13982_v63 }
 0x3d2   : > { %v7140_v59 = vadd.f32 %v16024_v26, %v13936_v42  ;;  %v7205_v37 = vrot.slane %v7204_v35, 4  ;;  %v7226_v6 = vrot.slane %v7225_v1, 4  ;;  %v8963_v60 = vsel %vm8894_vm4, %v13881_v55, %v8962_v15 }
 0x3d3   : > { %v4240_v47 = vadd.f32 %v13644_v41, %v13870_v56  ;;  %v5664_v42 = vadd.f32 %v13651_v13, %v13559_v49  ;;  %v14081_v12 = vadd.f32 %v7186_v46, %v7185_v33  ;;  %v7222_v26 = vadd.f32 %v7221_v50, %v7220_v62 }
 0x3d4   : > { %v7206_v30 = vadd.f32 %v7205_v37, %v7204_v35  ;;  %v7227_v36 = vadd.f32 %v7226_v6, %v7225_v1  ;;  %v8458_v39 = vmul.f32 0.125, %v7140_v59  ;;  %v8964_v63 = vsel %vm8896_vm5, %v13926_v31, %v8963_v60  ;;  %v14096_v6 = vpop.f32.mrf.mxu1 }
 0x3d5   : > { %v6420_v55 = vmax.f32 %v5664_v42, 0.0  ;;  %v4232_v56 = vadd.f32 %v13644_v41, %v13889_v27  ;;  %v8965_v49 = vsel %vm8898_vm6, %v13989_v58, %v8964_v63  ;;  %v4678_v33 = vmax.f32 %v4240_v47, 0.0  ;;  %v14098_v27 = vpop.f32.mrf.mxu0 }
 0x3d6   : > { %v7207_v22 = vrot.slane %v7206_v30, 2  ;;  %v7228_v15 = vrot.slane %v7227_v36, 2  ;;  %v8459_v62 = vmul.f32 0.125, %v7147_v21  ;;  %v8966_v46 = vsel %vm8900_vm7, %v8457_v28, %v8965_v49  ;;  %16026 = vst [vmem:[#allocation6_spill] sm:$0xff] %v14098_v27 }
 0x3d7   : > { %v7211_v50 = vsel %vm6587_vm2, %v6420_v55, 0.0  ;;  %v4676_v35 = vmax.f32 %v4232_v56, 0.0  ;;  %v7223_v1 = vrot.slane %v7222_v26, 1  ;;  %v8967_v31 = vsel %vm8902_vm8, %v8458_v39, %v8966_v46 }
 0x3d8   : > { %v7208_v59 = vadd.f32 %v7207_v22, %v7206_v30  ;;  %v7229_v37 = vadd.f32 %v7228_v15, %v7227_v36  ;;  %v8968_v60 = vsel %vm8904_vm9, %v8459_v62, %v8967_v31  ;;  %v7212_v42 = vrot.slane %v7211_v50, 4  ;;  %v16027_v36 = vld [vmem:[#allocation18_spill] sm:$0xff]  ;;  %v16028_v22 = vld [vmem:[#allocation17_spill] sm:$0xff]  ;;  %v14117_v15 = vpop.f32.mrf.mxu0 }
 0x3d9   : > { %v4835_v58 = vpack.c.bf16 %v4676_v35, %v4675_v9  ;;  %v5685_v21 = vadd.f32 %v13651_v13, %v13575_v61  ;;  %v7182_v28 = vadd.f32 %v7181_v54, %v14033_v14  ;;  %9164 = vxpose.xlu0.b32.cont [10/16] (narrow) %v8968_v60, 8  ;;  %v4836_v47 = vpack.c.bf16 %v4678_v33, %v4677_v25  ;;  %v14125_v31 = vld [vmem:[%s15808_s4] ss:$0 sm:$0xff] }
 0x3da   : > { %v4253_v30 = vadd.f32 %v13644_v41, %v13905_v48  ;;  %v5677_v39 = vadd.f32 %v13651_v13, %v16027_v36  ;;  %v7213_v63 = vadd.f32 %v7212_v42, %v7211_v50  ;;  %v4245_v56 = vadd.f32 %v13644_v41, %v13914_v40  ;;  %v14115_v48 = vpop.f32.mrf.mxu1  ;;  %16029 = vst [vmem:[#allocation5_spill] sm:$0xff] %v14117_v15 }
 0x3db   : > { %v6425_v55 = vmax.f32 %v5685_v21, 0.0  ;;  %v5688_v9 = vadd.f32 %v13651_v13, %v16028_v22  ;;  %10931 = vmatprep.mubr.msk.bf16.mxu0 %vm3041_vm1, %v4835_v58  ;;  %v7188_v61 = vrot.slane %v14081_v12, 1  ;;  %v7224_v14 = vadd.f32 %v7223_v1, %v7222_v26  ;;  %v14132_v21 = vld [vmem:[%s15810_s6] ss:$0 sm:$0xff] }
 0x3dc   : > { %v7209_v25 = vrot.slane %v7208_v59, 1  ;;  %v6423_v54 = vmax.f32 %v5677_v39, 0.0  ;;  %10932 = vmatmul.mubr.msk.bf16.gmra.mxu0 %vm3041_vm1, %v4836_v47  ;;  %v7230_v49 = vrot.slane %v7229_v37, 1  ;;  %v7214_v33 = vrot.slane %v7213_v63, 2  ;;  %v16030_v47 = vld [vmem:[#allocation20_spill] sm:$0xff]  ;;  %v14138_v39 = vpop.f32.mrf.mxu1  ;;  %v16032_v22 = vld [vmem:[#allocation21_spill] sm:$0xff] }
 0x3dd   : > { %v7246_v41 = vsel %vm6587_vm2, %v6425_v55, 0.0  ;;  %v6426_v40 = vmax.f32 %v5688_v9, 0.0  ;;  %v4681_v13 = vmax.f32 %v4253_v30, 0.0  ;;  %v4679_v50 = vmax.f32 %v4245_v56, 0.0 }
 0x3de   : > { %v7247_v62 = vrot.slane %v7246_v41, 4  ;;  %v7232_v46 = vsel %vm6587_vm2, %v6423_v54, 0.0  ;;  %v7215_v35 = vadd.f32 %v7214_v33, %v7213_v63  ;;  %v4256_v60 = vadd.f32 %v14125_v31, %v13942_v38  ;;  %v14140_v63 = vpop.f32.mrf.mxu0 }
 0x3df   : > { %v7233_v26 = vrot.slane %v7232_v46, 4  ;;  %v7253_v1 = vsel %vm6587_vm2, %v6426_v40, 0.0  ;;  %v5680_v30 = vadd.f32 %v14132_v21, %v16030_v47  ;;  %v4248_v36 = vadd.f32 %v14125_v31, %v13956_v20  ;;  %16031 = vst [vmem:[#allocation8_spill] sm:$0xff] %v14140_v63  ;;  %v14145_v63 = vpop.f32.mrf.mxu1 }
 0x3e0   : > { %v7248_v42 = vadd.f32 %v7247_v62, %v7246_v41  ;;  %v7254_v58 = vrot.slane %v7253_v1, 4  ;;  %v7216_v55 = vrot.slane %v7215_v35, 1  ;;  %v4682_v38 = vmax.f32 %v4256_v60, 0.0 }
 0x3e1   : > { %v7234_v56 = vadd.f32 %v7233_v26, %v7232_v46  ;;  %v5701_v9 = vadd.f32 %v14132_v21, %v16032_v22  ;;  %v6424_v41 = vmax.f32 %v5680_v30, 0.0  ;;  %v4680_v40 = vmax.f32 %v4248_v36, 0.0  ;;  %v14147_v46 = vpop.f32.mrf.mxu0 }
 0x3e2   : > { %v7249_v54 = vrot.slane %v7248_v42, 2  ;;  %v7255_v33 = vadd.f32 %v7254_v58, %v7253_v1  ;;  %v7210_v62 = vadd.f32 %v7209_v25, %v7208_v59  ;;  %v7231_v15 = vadd.f32 %v7230_v49, %v7229_v37 }
 0x3e3   : > { %v7235_v47 = vrot.slane %v7234_v56, 2  ;;  %v6429_v27 = vmax.f32 %v5701_v9, 0.0  ;;  %v7217_v51 = vadd.f32 %v7216_v55, %v7215_v35  ;;  %v4838_v20 = vpack.c.bf16 %v4682_v38, %v4681_v13  ;;  %v14154_v49 = vpop.f32.mrf.mxu0 }
 0x3e4   : > { %v7239_v19 = vsel %vm6587_vm2, %v6424_v41, 0.0  ;;  %v4837_v0 = vpack.c.bf16 %v4680_v40, %v4679_v50  ;;  %v14149_v26 = vadd.f32 %v7249_v54, %v7248_v42  ;;  %v8464_v58 = vmul.f32 0.125, %v7182_v28  ;;  %v16033_v42 = vld [vmem:[#allocation22_spill] sm:$0xff] }
 0x3e5   : > { %v7236_v60 = vadd.f32 %v7235_v47, %v7234_v56  ;;  %v7240_v22 = vrot.slane %v7239_v19, 4  ;;  %v7274_v1 = vsel %vm6587_vm2, %v6429_v27, 0.0  ;;  %v7189_v59 = vadd.f32 %v7188_v61, %v14081_v12  ;;  %v16034_v61 = vld [vmem:[#allocation19_spill] sm:$0xff]  ;;  %v14169_v55 = vpop.f32.mrf.mxu0 }
 0x3e6   : > { %v7256_v37 = vrot.slane %v7255_v33, 2  ;;  %v7275_v25 = vrot.slane %v7274_v1, 4  ;;  %10935 = vmatprep.mubr.msk.bf16.mxu0 %vm3041_vm1, %v4837_v0  ;;  %v14156_v13 = vmul.f32 0.125, %v7224_v14  ;;  %v14158_v50 = vmul.f32 0.125, %v7210_v62  ;;  %v14167_v0 = vpop.f32.mrf.mxu1 }
 0x3e7   : > { %v7241_v35 = vadd.f32 %v7240_v22, %v7239_v19  ;;  %v5693_v30 = vadd.f32 %v14132_v21, %v16033_v42  ;;  %10936 = vmatmul.mubr.msk.bf16.gmra.mxu0 %vm3041_vm1, %v4838_v20  ;;  %v14163_v27 = vmul.f32 0.125, %v7231_v15  ;;  %v7237_v28 = vrot.slane %v7236_v60, 1  ;;  %v14185_v22 = vpop.f32.mrf.mxu0 }
 0x3e8   : > { %v7276_v12 = vadd.f32 %v7275_v25, %v7274_v1  ;;  %v5704_v36 = vadd.f32 %v14132_v21, %v16034_v61  ;;  %v14171_v14 = vmul.f32 0.125, %v7217_v51  ;;  %v14174_v9 = vadd.f32 %v7256_v37, %v7255_v33  ;;  %v14188_v42 = vpop.f32.mrf.mxu1 }
 0x3e9   : > { %v7242_v56 = vrot.slane %v7241_v35, 2  ;;  %v6427_v38 = vmax.f32 %v5693_v30, 0.0  ;;  %v7202_v41 = vrot.slane %v14051_v10, 1  ;;  %v4269_v40 = vadd.f32 %v14125_v31, %v13973_v8 }
 0x3ea   : > { %v7277_v54 = vrot.slane %v7276_v12, 2  ;;  %v6430_v15 = vmax.f32 %v5704_v36, 0.0  ;;  %v4261_v47 = vadd.f32 %v14125_v31, %v13996_v44  ;;  %v16035_v51 = vrot.slane %v14031_v3, 1 }
 0x3eb   : > { %v7260_v62 = vsel %vm6587_vm2, %v6427_v38, 0.0  ;;  %v7238_v33 = vadd.f32 %v7237_v28, %v7236_v60  ;;  %v7243_v1 = vadd.f32 %v7242_v56, %v7241_v35  ;;  %v7203_v8 = vadd.f32 %v7202_v41, %v14051_v10  ;;  %v14200_v10 = vpop.f32.mrf.mxu0 }
 0x3ec   : > { %v7196_v20 = vadd.f32 %v16035_v51, %v14031_v3  ;;  %v7261_v37 = vrot.slane %v7260_v62, 4  ;;  %v7281_v25 = vsel %vm6587_vm2, %v6430_v15, 0.0  ;;  %v8465_v61 = vmul.f32 0.125, %v7189_v59 }
 0x3ed   : > { %v7282_v30 = vrot.slane %v7281_v25, 4  ;;  %v8969_v44 = vsel %vm8892_vm3, %v14049_v34, %v14040_v29  ;;  %v7278_v36 = vadd.f32 %v7277_v54, %v7276_v12  ;;  %v4272_v60 = vadd.f32 %v14125_v31, %v14009_v16  ;;  %v14205_v12 = vpop.f32.mrf.mxu1 }
 0x3ee   : > { %v7262_v38 = vadd.f32 %v7261_v37, %v7260_v62  ;;  %v8970_v3 = vsel %vm8894_vm4, %v14024_v24, %v8969_v44  ;;  %v4683_v35 = vmax.f32 %v4261_v47, 0.0  ;;  %v8466_v56 = vmul.f32 0.125, %v7196_v20 }
 0x3ef   : > { %v7283_v28 = vadd.f32 %v7282_v30, %v7281_v25  ;;  %v8971_v15 = vsel %vm8896_vm5, %v14042_v5, %v8970_v3  ;;  %v7244_v59 = vrot.slane %v7243_v1, 1  ;;  %v5696_v34 = vadd.f32 %v14132_v21, %v13684_v32  ;;  %v14214_v30 = vpop.f32.mrf.mxu0  ;;  %v14219_v3 = vpop.f32.mrf.mxu1 }
 0x3f0   : > { %v7263_v41 = vrot.slane %v7262_v38, 2  ;;  %v8972_v29 = vsel %vm8898_vm6, %v8464_v58, %v8971_v15  ;;  %v8467_v54 = vmul.f32 0.125, %v7203_v8  ;;  %v4264_v62 = vadd.f32 %v14125_v31, %v14019_v57 }
 0x3f1   : > { %v7284_v24 = vrot.slane %v7283_v28, 2  ;;  %v8973_v16 = vsel %vm8900_vm7, %v8465_v61, %v8972_v29  ;;  %v7279_v47 = vrot.slane %v7278_v36, 1  ;;  %v4686_v51 = vmax.f32 %v4272_v60, 0.0 }
 0x3f2   : > { %v8974_v5 = vsel %vm8902_vm8, %v8466_v56, %v8973_v16  ;;  %v6428_v20 = vmax.f32 %v5696_v34, 0.0  ;;  %v7264_v37 = vadd.f32 %v7263_v41, %v7262_v38  ;;  %v4684_v25 = vmax.f32 %v4264_v62, 0.0 }
 0x3f3   : > { %v8975_v58 = vsel %vm8904_vm9, %v8467_v54, %v8974_v5  ;;  %v5717_v32 = vadd.f32 %v14132_v21, %v13691_v17  ;;  %v4685_v8 = vmax.f32 %v4269_v40, 0.0  ;;  %v7285_v44 = vadd.f32 %v7284_v24, %v7283_v28 }
 0x3f4   : > { %9165 = vxpose.xlu0.b32.cont [11/16] (narrow) %v8975_v58, 8  ;;  %v7267_v61 = vsel %vm6587_vm2, %v6428_v20, 0.0  ;;  %v5709_v57 = vadd.f32 %v14132_v21, %v13706_v45  ;;  %v14221_v60 = vmul.f32 0.125, %v7238_v33  ;;  %v4839_v56 = vpack.c.bf16 %v4684_v25, %v4683_v35  ;;  %v14229_v45 = vpop.f32.mrf.mxu0  ;;  %v14235_v35 = vpop.f32.mrf.mxu1  ;;  %v16036_v20 = vld [vmem:[#allocation24_spill] sm:$0xff] }
 0x3f5   : > { %v7268_v38 = vrot.slane %v7267_v61, 4  ;;  %v6433_v15 = vmax.f32 %v5717_v32, 0.0  ;;  %v14223_v41 = vadd.f32 %v7244_v59, %v7243_v1  ;;  %v7280_v17 = vadd.f32 %v7279_v47, %v7278_v36 }
 0x3f6   : > { %v4840_v29 = vpack.c.bf16 %v4686_v51, %v4685_v8  ;;  %v6431_v34 = vmax.f32 %v5709_v57, 0.0  ;;  %v7265_v40 = vrot.slane %v7264_v37, 1  ;;  %v5720_v54 = vadd.f32 %v14132_v21, %v13724_v52  ;;  %10939 = vmatprep.mubr.msk.bf16.mxu0 %vm3041_vm1, %v4839_v56 }
 0x3f7   : > { %v7269_v28 = vadd.f32 %v7268_v38, %v7267_v61  ;;  %v7302_v24 = vsel %vm6587_vm2, %v6433_v15, 0.0  ;;  %v7286_v33 = vrot.slane %v7285_v44, 1  ;;  %v4285_v1 = vadd.f32 %v14125_v31, %v14036_v18  ;;  %v16037_v61 = vld [vmem:[#allocation23_spill] sm:$0xff]  ;;  %v14248_v38 = vpop.f32.mrf.mxu0 }
 0x3f8   : > { %v7303_v16 = vrot.slane %v7302_v24, 4  ;;  %v7288_v36 = vsel %vm6587_vm2, %v6431_v34, 0.0  ;;  %10940 = vmatmul.mubr.msk.bf16.gmra.mxu0 %vm3041_vm1, %v4840_v29  ;;  %v4277_v52 = vadd.f32 %v14125_v31, %v14061_v2  ;;  %v6434_v47 = vmax.f32 %v5720_v54, 0.0  ;;  %16038 = vst [vmem:[#allocation7_spill] sm:$0xff] %v14248_v38 }
 0x3f9   : > { %v7270_v59 = vrot.slane %v7269_v28, 2  ;;  %v7289_v62 = vrot.slane %v7288_v36, 4  ;;  %v4288_v51 = vadd.f32 %v14125_v31, %v14083_v53  ;;  %v5712_v58 = vadd.f32 %v14132_v21, %v16036_v20  ;;  %v14250_v53 = vpop.f32.mrf.mxu1  ;;  %v14253_v19 = vpop.f32.mrf.mxu0 }
 0x3fa   : > { %v7304_v5 = vadd.f32 %v7303_v16, %v7302_v24  ;;  %v4280_v18 = vadd.f32 %v14125_v31, %v14096_v6  ;;  %v7309_v8 = vsel %vm6587_vm2, %v6434_v47, 0.0  ;;  %v5733_v57 = vadd.f32 %v14132_v21, %v16037_v61 }
 0x3fb   : > { %v7271_v25 = vadd.f32 %v7270_v59, %v7269_v28  ;;  %v7290_v32 = vadd.f32 %v7289_v62, %v7288_v36  ;;  %v7310_v56 = vrot.slane %v7309_v8, 4  ;;  %v4690_v15 = vmax.f32 %v4288_v51, 0.0 }
 0x3fc   : > { %v7305_v2 = vrot.slane %v7304_v5, 2  ;;  %v6432_v29 = vmax.f32 %v5712_v58, 0.0  ;;  %v4687_v24 = vmax.f32 %v4277_v52, 0.0  ;;  %v4688_v54 = vmax.f32 %v4280_v18, 0.0  ;;  %v14260_v18 = vpop.f32.mrf.mxu1 }
 0x3fd   : > { %v7291_v34 = vrot.slane %v7290_v32, 2  ;;  %v6437_v16 = vmax.f32 %v5733_v57, 0.0  ;;  %v7266_v6 = vadd.f32 %v7265_v40, %v7264_v37  ;;  %v7287_v28 = vadd.f32 %v7286_v33, %v7285_v44  ;;  %v16039_v57 = vld [vmem:[#allocation26_spill] sm:$0xff] }
 0x3fe   : > { %v4689_v36 = vmax.f32 %v4285_v1, 0.0  ;;  %v7295_v59 = vsel %vm6587_vm2, %v6432_v29, 0.0  ;;  %v7272_v62 = vrot.slane %v7271_v25, 1  ;;  %v4841_v61 = vpack.c.bf16 %v4688_v54, %v4687_v24  ;;  %v14269_v1 = vpop.f32.mrf.mxu0  ;;  %v16040_v29 = vld [vmem:[#allocation25_spill] sm:$0xff] }
 0x3ff   : > { %v7292_v47 = vadd.f32 %v7291_v34, %v7290_v32  ;;  %v7296_v20 = vrot.slane %v7295_v59, 4  ;;  %v14255_v38 = vadd.f32 %v7305_v2, %v7304_v5  ;;  %v14257_v51 = vadd.f32 %v7310_v56, %v7309_v8 }
 0x400   : > { %v4842_v58 = vpack.c.bf16 %v4690_v15, %v4689_v36  ;;  %v7330_v52 = vsel %vm6587_vm2, %v6437_v16, 0.0  ;;  %v14262_v37 = vmul.f32 0.125, %v7280_v17  ;;  %v14266_v33 = vadd.f32 %v14125_v31, %v14115_v48  ;;  %10943 = vmatprep.mubr.msk.bf16.mxu0 %vm3041_vm1, %v4841_v61  ;;  %v14280_v34 = vpop.f32.mrf.mxu0 }
 0x401   : > { %v7297_v44 = vadd.f32 %v7296_v20, %v7295_v59  ;;  %v7331_v40 = vrot.slane %v7330_v52, 4  ;;  %v14271_v5 = vmul.f32 0.125, %v7266_v6  ;;  %v14273_v32 = vmul.f32 0.125, %v7287_v28  ;;  %16041 = vst [vmem:[#allocation10_spill] sm:$0xff] %v14280_v34  ;;  %v14285_v28 = vpop.f32.mrf.mxu1 }
 0x402   : > { %v7293_v8 = vrot.slane %v7292_v47, 1  ;;  %v5725_v2 = vadd.f32 %v14132_v21, %v16039_v57  ;;  %10944 = vmatmul.mubr.msk.bf16.gmra.mxu0 %vm3041_vm1, %v4842_v58  ;;  %v7273_v17 = vadd.f32 %v7272_v62, %v7271_v25  ;;  %v5736_v48 = vadd.f32 %v14132_v21, %v16040_v29  ;;  %v14290_v20 = vpop.f32.mrf.mxu0 }
 0x403   : > { %v7298_v56 = vrot.slane %v7297_v44, 2  ;;  %v7332_v15 = vadd.f32 %v7331_v40, %v7330_v52  ;;  %v7312_v54 = vrot.slane %v14257_v51, 2  ;;  %v7258_v6 = vrot.slane %v14174_v9, 1 }
 0x404   : > { %v6435_v16 = vmax.f32 %v5725_v2, 0.0  ;;  %v4693_v59 = vmax.f32 %v14266_v33, 0.0  ;;  %v4293_v25 = vadd.f32 %v14125_v31, %v14138_v39  ;;  %v6438_v62 = vmax.f32 %v5736_v48, 0.0 }
 0x405   : > { %v7333_v36 = vrot.slane %v7332_v15, 2  ;;  %v7294_v61 = vadd.f32 %v7293_v8, %v7292_v47  ;;  %v7299_v58 = vadd.f32 %v7298_v56, %v7297_v44  ;;  %v16042_v40 = vrot.slane %v14149_v26, 1  ;;  %v14304_v8 = vpop.f32.mrf.mxu1 }
 0x406   : > { %v7316_v52 = vsel %vm6587_vm2, %v6435_v16, 0.0  ;;  %v7337_v24 = vsel %vm6587_vm2, %v6438_v62, 0.0  ;;  %v7259_v33 = vadd.f32 %v7258_v6, %v14174_v9  ;;  %v8473_v39 = vmul.f32 0.125, %v14223_v41  ;;  %v14308_v16 = vpop.f32.mrf.mxu0 }
 0x407   : > { %v7252_v57 = vadd.f32 %v16042_v40, %v14149_v26  ;;  %v7334_v2 = vadd.f32 %v7333_v36, %v7332_v15  ;;  %v7317_v29 = vrot.slane %v7316_v52, 4  ;;  %v7338_v34 = vrot.slane %v7337_v24, 4 }
 0x408   : > { %v8976_v47 = vsel %vm8892_vm3, %v14171_v14, %v14158_v50  ;;  %v4304_v44 = vadd.f32 %v14125_v31, %v14145_v63  ;;  %v4691_v15 = vmax.f32 %v4293_v25, 0.0  ;;  %v5728_v50 = vadd.f32 %v14132_v21, %v13792_v7 }
 0x409   : > { %v7335_v56 = vrot.slane %v7334_v2, 1  ;;  %v7318_v26 = vadd.f32 %v7317_v29, %v7316_v52  ;;  %v8977_v48 = vsel %vm8894_vm4, %v14156_v13, %v8976_v47  ;;  %v7339_v9 = vadd.f32 %v7338_v34, %v7337_v24  ;;  %v14319_v24 = vpop.f32.mrf.mxu1  ;;  %v14322_v29 = vpop.f32.mrf.mxu0 }
 0x40a   : > { %v8474_v6 = vmul.f32 0.125, %v7252_v57  ;;  %v8978_v41 = vsel %vm8896_vm5, %v14163_v27, %v8977_v48  ;;  %v7300_v14 = vrot.slane %v7299_v58, 1  ;;  %v4296_v25 = vadd.f32 %v14125_v31, %v14167_v0 }
 0x40b   : > { %v7319_v63 = vrot.slane %v7318_v26, 2  ;;  %v8979_v36 = vsel %vm8898_vm6, %v14221_v60, %v8978_v41  ;;  %v8475_v62 = vmul.f32 0.125, %v7259_v33  ;;  %v4694_v52 = vmax.f32 %v4304_v44, 0.0 }
 0x40c   : > { %v8980_v13 = vsel %vm8900_vm7, %v8473_v39, %v8979_v36  ;;  %v6436_v34 = vmax.f32 %v5728_v50, 0.0  ;;  %v7336_v40 = vadd.f32 %v7335_v56, %v7334_v2  ;;  %v7340_v27 = vrot.slane %v7339_v9, 2  ;;  %v14337_v50 = vpop.f32.mrf.mxu1  ;;  %v16043_v36 = vld [vmem:[#allocation28_spill] sm:$0xff] }
 0x40d   : > { %v8981_v57 = vsel %vm8902_vm8, %v8474_v6, %v8980_v13  ;;  %v4692_v7 = vmax.f32 %v4296_v25, 0.0  ;;  %v7320_v47 = vadd.f32 %v7319_v63, %v7318_v26  ;;  %v5749_v0 = vadd.f32 %v14132_v21, %v13806_v11 }
 0x40e   : > { %v8982_v60 = vsel %vm8904_vm9, %v8475_v62, %v8981_v57  ;;  %v7323_v48 = vsel %vm6587_vm2, %v6436_v34, 0.0  ;;  %v14328_v33 = vmul.f32 0.125, %v7273_v17  ;;  %v14331_v39 = vadd.f32 %v7312_v54, %v14257_v51  ;;  %v14344_v54 = vpop.f32.mrf.mxu0  ;;  %v16045_v34 = vld [vmem:[#allocation27_spill] sm:$0xff] }
 0x40f   : > { %9166 = vxpose.xlu0.b32.cont [12/16] (narrow) %v8982_v60, 8  ;;  %v7324_v2 = vrot.slane %v7323_v48, 4  ;;  %v4843_v44 = vpack.c.bf16 %v4692_v7, %v4691_v15  ;;  %v14333_v56 = vmul.f32 0.125, %v7294_v61  ;;  %v4844_v6 = vpack.c.bf16 %v4694_v52, %v4693_v59  ;;  %16044 = vst [vmem:[#allocation9_spill] sm:$0xff] %v14344_v54 }
 0x410   : > { %v6441_v41 = vmax.f32 %v5749_v0, 0.0  ;;  %v5741_v26 = vadd.f32 %v14132_v21, %v13819_v23  ;;  %v14339_v63 = vadd.f32 %v7300_v14, %v7299_v58  ;;  %v7341_v11 = vadd.f32 %v7340_v27, %v7339_v9  ;;  %v14359_v27 = vpop.f32.mrf.mxu1 }
 0x411   : > { %v7325_v17 = vadd.f32 %v7324_v2, %v7323_v48  ;;  %v5752_v51 = vadd.f32 %v14132_v21, %v16043_v36  ;;  %10947 = vmatprep.mubr.msk.bf16.mxu0 %vm3041_vm1, %v4843_v44  ;;  %v14346_v61 = vmul.f32 0.125, %v7336_v40  ;;  %v7321_v59 = vrot.slane %v7320_v47, 1 }
 0x412   : > { %v7358_v15 = vsel %vm6587_vm2, %v6441_v41, 0.0  ;;  %v6439_v25 = vmax.f32 %v5741_v26, 0.0  ;;  %10948 = vmatmul.mubr.msk.bf16.gmra.mxu0 %vm3041_vm1, %v4844_v6  ;;  %v4317_v9 = vadd.f32 %v14125_v31, %v14188_v42  ;;  %v4309_v13 = vadd.f32 %v14125_v31, %v14205_v12  ;;  %v14362_v42 = vpop.f32.mrf.mxu0  ;;  %v16047_v26 = vld [vmem:[#allocation30_spill] sm:$0xff] }
 0x413   : > { %v7326_v23 = vrot.slane %v7325_v17, 2  ;;  %v7359_v58 = vrot.slane %v7358_v15, 4  ;;  %v6442_v14 = vmax.f32 %v5752_v51, 0.0  ;;  %v4320_v52 = vadd.f32 %v14125_v31, %v14219_v3  ;;  %16046 = vst [vmem:[#allocation12_spill] sm:$0xff] %v14362_v42 }
 0x414   : > { %v7344_v62 = vsel %vm6587_vm2, %v6439_v25, 0.0  ;;  %v5744_v40 = vadd.f32 %v14132_v21, %v16045_v34  ;;  %v7342_v57 = vrot.slane %v7341_v11, 1  ;;  %v7322_v0 = vadd.f32 %v7321_v59, %v7320_v47 }
 0x415   : > { %v7327_v7 = vadd.f32 %v7326_v23, %v7325_v17  ;;  %v7345_v60 = vrot.slane %v7344_v62, 4  ;;  %v7365_v48 = vsel %vm6587_vm2, %v6442_v14, 0.0  ;;  %v7360_v2 = vadd.f32 %v7359_v58, %v7358_v15  ;;  %v14369_v14 = vpop.f32.mrf.mxu1  ;;  %v14371_v58 = vpop.f32.mrf.mxu0 }
 0x416   : > { %v6440_v44 = vmax.f32 %v5744_v40, 0.0  ;;  %v4312_v12 = vadd.f32 %v14125_v31, %v14235_v35  ;;  %v7366_v3 = vrot.slane %v7365_v48, 4  ;;  %v4698_v41 = vmax.f32 %v4320_v52, 0.0  ;;  %16048 = vst [vmem:[#allocation11_spill] sm:$0xff] %v14371_v58 }
 0x417   : > { %v7346_v6 = vadd.f32 %v7345_v60, %v7344_v62  ;;  %v5765_v36 = vadd.f32 %v14132_v21, %v16047_v26  ;;  %v7328_v51 = vrot.slane %v7327_v7, 1  ;;  %v4695_v25 = vmax.f32 %v4309_v13, 0.0 }
 0x418   : > { %v7351_v17 = vsel %vm6587_vm2, %v6440_v44, 0.0  ;;  %v4696_v23 = vmax.f32 %v4312_v12, 0.0  ;;  %v7343_v34 = vadd.f32 %v7342_v57, %v7341_v11  ;;  %v4697_v47 = vmax.f32 %v4317_v9, 0.0  ;;  %v16049_v9 = vld [vmem:[#allocation29_spill] sm:$0xff] }
 0x419   : > { %v7347_v59 = vrot.slane %v7346_v6, 2  ;;  %v7352_v15 = vrot.slane %v7351_v17, 4  ;;  %v14373_v35 = vmul.f32 0.125, %v7322_v0  ;;  %v7361_v62 = vrot.slane %v7360_v2, 2  ;;  %v14385_v0 = vpop.f32.mrf.mxu1 }
 0x41a   : > { %v4845_v52 = vpack.c.bf16 %v4696_v23, %v4695_v25  ;;  %v6445_v40 = vmax.f32 %v5765_v36, 0.0  ;;  %v14375_v26 = vadd.f32 %v7366_v3, %v7365_v48  ;;  %v4846_v13 = vpack.c.bf16 %v4698_v41, %v4697_v47 }
 0x41b   : > { %v7348_v60 = vadd.f32 %v7347_v59, %v7346_v6  ;;  %v7353_v42 = vadd.f32 %v7352_v15, %v7351_v17  ;;  %v7329_v44 = vadd.f32 %v7328_v51, %v7327_v7  ;;  %v14380_v11 = vadd.f32 %v14125_v31, %v14250_v53  ;;  %v14390_v7 = vpop.f32.mrf.mxu0  ;;  %v16051_v51 = vld [vmem:[#allocation32_spill] sm:$0xff] }
 0x41c   : > { %v7386_v12 = vsel %vm6587_vm2, %v6445_v40, 0.0  ;;  %v5757_v57 = vadd.f32 %v14132_v21, %v16049_v9  ;;  %10951 = vmatprep.mubr.msk.bf16.mxu0 %vm3041_vm1, %v4845_v52  ;;  %v14387_v36 = vmul.f32 0.125, %v7343_v34  ;;  %16050 = vst [vmem:[#allocation14_spill] sm:$0xff] %v14390_v7  ;;  %v4325_v53 = vadd.f32 %v14125_v31, %v14260_v18 }
 0x41d   : > { %v7349_v48 = vrot.slane %v7348_v60, 1  ;;  %v7354_v6 = vrot.slane %v7353_v42, 2  ;;  %v7387_v3 = vrot.slane %v7386_v12, 4  ;;  %10952 = vmatmul.mubr.msk.bf16.gmra.mxu0 %vm3041_vm1, %v4846_v13  ;;  %v5768_v25 = vadd.f32 %v14132_v21, %v16051_v51  ;;  %v14403_v52 = vpop.f32.mrf.mxu0 }
 0x41e   : > { %v6443_v41 = vmax.f32 %v5757_v57, 0.0  ;;  %v7314_v17 = vrot.slane %v14331_v39, 1  ;;  %v14397_v23 = vadd.f32 %v7361_v62, %v7360_v2  ;;  %v7368_v34 = vrot.slane %v14375_v26, 2  ;;  %16053 = vst [vmem:[#allocation13_spill] sm:$0xff] %v14403_v52  ;;  %v14409_v57 = vpop.f32.mrf.mxu1 }
 0x41f   : > { %v7388_v47 = vadd.f32 %v7387_v3, %v7386_v12  ;;  %v16052_v59 = vrot.slane %v14255_v38, 1  ;;  %v14405_v40 = vmul.f32 0.125, %v7329_v44  ;;  %v4701_v18 = vmax.f32 %v14380_v11, 0.0  ;;  %v14411_v12 = vpop.f32.mrf.mxu0 }
 0x420   : > { %v7372_v13 = vsel %vm6587_vm2, %v6443_v41, 0.0  ;;  %v6446_v9 = vmax.f32 %v5768_v25, 0.0  ;;  %v7350_v2 = vadd.f32 %v7349_v48, %v7348_v60  ;;  %v7355_v62 = vadd.f32 %v7354_v6, %v7353_v42  ;;  %16054 = vst [vmem:[#allocation16_spill] sm:$0xff] %v14411_v12  ;;  %v16056_v6 = vld [vmem:[#allocation31_spill] sm:$0xff] }
 0x421   : > { %v7308_v15 = vadd.f32 %v16052_v59, %v14255_v38  ;;  %v7389_v51 = vrot.slane %v7388_v47, 2  ;;  %v7373_v7 = vrot.slane %v7372_v13, 4  ;;  %v4699_v3 = vmax.f32 %v4325_v53, 0.0  ;;  %v14419_v60 = vpop.f32.mrf.mxu0 }
 0x422   : > { %v7393_v38 = vsel %vm6587_vm2, %v6446_v9, 0.0  ;;  %v7315_v59 = vadd.f32 %v7314_v17, %v14331_v39  ;;  %v8983_v44 = vsel %vm8892_vm3, %v14328_v33, %v14271_v5  ;;  %v8481_v25 = vmul.f32 0.125, %v14339_v63  ;;  %16055 = vst [vmem:[#allocation15_spill] sm:$0xff] %v14419_v60  ;;  %v14429_v5 = vpop.f32.mrf.mxu1 }
 0x423   : > { %v7374_v11 = vadd.f32 %v7373_v7, %v7372_v13  ;;  %v7394_v41 = vrot.slane %v7393_v38, 4  ;;  %v8482_v52 = vmul.f32 0.125, %v7308_v15  ;;  %v8984_v42 = vsel %vm8894_vm4, %v14262_v37, %v8983_v44 }
 0x424   : > { %v4336_v48 = vadd.f32 %v14125_v31, %v14285_v28  ;;  %v5760_v39 = vadd.f32 %v14132_v21, %v16056_v6  ;;  %v4328_v53 = vadd.f32 %v14125_v31, %v14304_v8  ;;  %v7390_v33 = vadd.f32 %v7389_v51, %v7388_v47  ;;  %v14436_v8 = vpop.f32.mrf.mxu0 }
 0x425   : > { %v7375_v7 = vrot.slane %v7374_v11, 2  ;;  %v7395_v63 = vadd.f32 %v7394_v41, %v7393_v38  ;;  %v8985_v17 = vsel %vm8896_vm5, %v14273_v32, %v8984_v42  ;;  %v7356_v9 = vrot.slane %v7355_v62, 1  ;;  %16057 = vst [vmem:[#allocation18_spill] sm:$0xff] %v14436_v8  ;;  %v14441_v41 = vpop.f32.mrf.mxu1 }
 0x426   : > { %v8986_v37 = vsel %vm8898_vm6, %v14333_v56, %v8985_v17  ;;  %v4702_v15 = vmax.f32 %v4336_v48, 0.0  ;;  %v6444_v13 = vmax.f32 %v5760_v39, 0.0  ;;  %v4700_v28 = vmax.f32 %v4328_v53, 0.0  ;;  %v16058_v53 = vld [vmem:[#allocation34_spill] sm:$0xff] }
 0x427   : > { %v7396_v44 = vrot.slane %v7395_v63, 2  ;;  %v8483_v6 = vmul.f32 0.125, %v7315_v59  ;;  %v8987_v60 = vsel %vm8900_vm7, %v8481_v25, %v8986_v37  ;;  %v7391_v56 = vrot.slane %v7390_v33, 1  ;;  %v16059_v37 = vld [vmem:[#allocation33_spill] sm:$0xff] }
 0x428   : > { %v8988_v51 = vsel %vm8902_vm8, %v8482_v52, %v8987_v60  ;;  %v7379_v38 = vsel %vm6587_vm2, %v6444_v13, 0.0  ;;  %v4847_v32 = vpack.c.bf16 %v4700_v28, %v4699_v3  ;;  %v7376_v42 = vadd.f32 %v7375_v7, %v7374_v11  ;;  %v16060_v7 = vld [vmem:[#allocation36_spill] sm:$0xff] }
 0x429   : > { %v8989_v48 = vsel %vm8904_vm9, %v8483_v6, %v8988_v51  ;;  %v4848_v39 = vpack.c.bf16 %v4702_v15, %v4701_v18  ;;  %v14445_v59 = vadd.f32 %v7368_v34, %v14375_v26  ;;  %v7380_v25 = vrot.slane %v7379_v38, 4  ;;  %v14459_v26 = vpop.f32.mrf.mxu0  ;;  %v14463_v6 = vpop.f32.mrf.mxu1 }
 0x42a   : > { %9167 = vxpose.xlu0.b32.cont [13/16] (narrow) %v8989_v48, 8  ;;  %v5781_v17 = vadd.f32 %v14132_v21, %v16058_v53  ;;  %v5773_v52 = vadd.f32 %v14132_v21, %v16059_v37  ;;  %10955 = vmatprep.mubr.msk.bf16.mxu0 %vm3041_vm1, %v4847_v32  ;;  %v14452_v3 = vmul.f32 0.125, %v7350_v2  ;;  %v14454_v60 = vadd.f32 %v7356_v9, %v7355_v62 }
 0x42b   : > { %v7397_v11 = vadd.f32 %v7396_v44, %v7395_v63  ;;  %v5784_v18 = vadd.f32 %v14132_v21, %v16060_v7  ;;  %10956 = vmatmul.mubr.msk.bf16.gmra.mxu0 %vm3041_vm1, %v4848_v39  ;;  %16061 = vst [vmem:[#allocation17_spill] sm:$0xff] %v14459_v26  ;;  %v7381_v34 = vadd.f32 %v7380_v25, %v7379_v38  ;;  %v7377_v51 = vrot.slane %v7376_v42, 1  ;;  %v14472_v53 = vpop.f32.mrf.mxu0 }
 0x42c   : > { %v6449_v15 = vmax.f32 %v5781_v17, 0.0  ;;  %v6447_v13 = vmax.f32 %v5773_v52, 0.0  ;;  %v4341_v28 = vadd.f32 %v14125_v31, %v14337_v50  ;;  %v7392_v2 = vadd.f32 %v7391_v56, %v7390_v33  ;;  %16062 = vst [vmem:[#allocation20_spill] sm:$0xff] %v14472_v53  ;;  %v14476_v52 = vpop.f32.mrf.mxu1 }
 0x42d   : > { %v4349_v62 = vadd.f32 %v14125_v31, %v14319_v24  ;;  %v6450_v63 = vmax.f32 %v5784_v18, 0.0  ;;  %v7382_v9 = vrot.slane %v7381_v34, 2  ;;  %v4352_v38 = vadd.f32 %v14125_v31, %v14359_v27  ;;  %v16063_v24 = vld [vmem:[#allocation35_spill] sm:$0xff]  ;;  %v14482_v12 = vpop.f32.mrf.mxu0 }
 0x42e   : > { %v7414_v44 = vsel %vm6587_vm2, %v6449_v15, 0.0  ;;  %v7400_v32 = vsel %vm6587_vm2, %v6447_v13, 0.0  ;;  %v7398_v48 = vrot.slane %v7397_v11, 1  ;;  %v4703_v56 = vmax.f32 %v4341_v28, 0.0  ;;  %v16064_v15 = vld [vmem:[#allocation38_spill] sm:$0xff] }
 0x42f   : > { %v7415_v39 = vrot.slane %v7414_v44, 4  ;;  %v7401_v25 = vrot.slane %v7400_v32, 4  ;;  %v7421_v50 = vsel %vm6587_vm2, %v6450_v63, 0.0  ;;  %v7383_v33 = vadd.f32 %v7382_v9, %v7381_v34 }
 0x430   : > { %v7422_v17 = vrot.slane %v7421_v50, 4  ;;  %v5776_v37 = vadd.f32 %v14132_v21, %v16063_v24  ;;  %v4344_v27 = vadd.f32 %v14125_v31, %v14369_v14  ;;  %v5797_v13 = vadd.f32 %v14132_v21, %v16064_v15 }
 0x431   : > { %v7416_v7 = vadd.f32 %v7415_v39, %v7414_v44  ;;  %v7402_v18 = vadd.f32 %v7401_v25, %v7400_v32  ;;  %v7384_v47 = vrot.slane %v7383_v33, 1  ;;  %v4706_v26 = vmax.f32 %v4352_v38, 0.0  ;;  %v14485_v39 = vpop.f32.mrf.mxu1 }
 0x432   : > { %v7423_v63 = vadd.f32 %v7422_v17, %v7421_v50  ;;  %v6448_v53 = vmax.f32 %v5776_v37, 0.0  ;;  %v4704_v9 = vmax.f32 %v4344_v27, 0.0  ;;  %v6453_v8 = vmax.f32 %v5797_v13, 0.0 }
 0x433   : > { %v7417_v34 = vrot.slane %v7416_v7, 2  ;;  %v7403_v28 = vrot.slane %v7402_v18, 2  ;;  %v7378_v24 = vadd.f32 %v7377_v51, %v7376_v42  ;;  %v7399_v58 = vadd.f32 %v7398_v48, %v7397_v11  ;;  %v14494_v42 = vpop.f32.mrf.mxu0 }
 0x434   : > { %v4705_v44 = vmax.f32 %v4349_v62, 0.0  ;;  %v7407_v32 = vsel %vm6587_vm2, %v6448_v53, 0.0  ;;  %v7385_v14 = vadd.f32 %v7384_v47, %v7383_v33  ;;  %v7424_v25 = vrot.slane %v7423_v63, 2  ;;  %v16066_v53 = vld [vmem:[#allocation39_spill] sm:$0xff]  ;;  %v14510_v33 = vpop.f32.mrf.mxu1 }
 0x435   : > { %v7408_v15 = vrot.slane %v7407_v32, 4  ;;  %v4849_v54 = vpack.c.bf16 %v4704_v9, %v4703_v56  ;;  %v14487_v50 = vmul.f32 0.125, %v7392_v2  ;;  %v7442_v17 = vsel %vm6587_vm2, %v6453_v8, 0.0  ;;  %v14512_v56 = vpop.f32.mrf.mxu0 }
 0x436   : > { %v4850_v38 = vpack.c.bf16 %v4706_v26, %v4705_v44  ;;  %v14492_v37 = vadd.f32 %v14125_v31, %v14385_v0  ;;  %v14496_v11 = vadd.f32 %v7417_v34, %v7416_v7  ;;  %v14498_v51 = vadd.f32 %v7403_v28, %v7402_v18  ;;  %v16065_v26 = vld [vmem:[#allocation37_spill] sm:$0xff]  ;;  %16067 = vst [vmem:[#allocation21_spill] sm:$0xff] %v14512_v56 }
 0x437   : > { %v7409_v62 = vadd.f32 %v7408_v15, %v7407_v32  ;;  %v7443_v47 = vrot.slane %v7442_v17, 4  ;;  %10959 = vmatprep.mubr.msk.bf16.mxu0 %vm3041_vm1, %v4849_v54  ;;  %v14501_v48 = vmul.f32 0.125, %v7378_v24  ;;  %v14503_v2 = vmul.f32 0.125, %v7399_v58  ;;  %v14522_v9 = vpop.f32.mrf.mxu0 }
 0x438   : > { %v5789_v8 = vadd.f32 %v14132_v21, %v16065_v26  ;;  %v5800_v0 = vadd.f32 %v14132_v21, %v16066_v53  ;;  %10960 = vmatmul.mubr.msk.bf16.gmra.mxu0 %vm3041_vm1, %v4850_v38  ;;  %v14514_v7 = vmul.f32 0.125, %v7385_v14  ;;  %v14516_v18 = vadd.f32 %v7424_v25, %v7423_v63  ;;  %16068 = vst [vmem:[#allocation22_spill] sm:$0xff] %v14522_v9 }
 0x439   : > { %v7444_v54 = vadd.f32 %v7443_v47, %v7442_v17  ;;  %v4357_v58 = vadd.f32 %v14125_v31, %v14409_v57  ;;  %v4709_v27 = vmax.f32 %v14492_v37, 0.0  ;;  %v7370_v28 = vrot.slane %v14445_v59, 1  ;;  %v14534_v17 = vpop.f32.mrf.mxu1  ;;  %v14536_v37 = vpop.f32.mrf.mxu0 }
 0x43a   : > { %v6451_v13 = vmax.f32 %v5789_v8, 0.0  ;;  %v6454_v34 = vmax.f32 %v5800_v0, 0.0  ;;  %v7405_v44 = vrot.slane %v14498_v51, 1  ;;  %v7410_v32 = vrot.slane %v7409_v62, 2  ;;  %16070 = vst [vmem:[#allocation19_spill] sm:$0xff] %v14536_v37 }
 0x43b   : > { %v7445_v14 = vrot.slane %v7444_v54, 2  ;;  %v16069_v57 = vrot.slane %v14397_v23, 1  ;;  %v8990_v38 = vsel %vm8892_vm3, %v14405_v40, %v14373_v35  ;;  %v4707_v26 = vmax.f32 %v4357_v58, 0.0  ;;  %v14546_v40 = vpop.f32.mrf.mxu0 }
 0x43c   : > { %v7428_v63 = vsel %vm6587_vm2, %v6451_v13, 0.0  ;;  %v7449_v25 = vsel %vm6587_vm2, %v6454_v34, 0.0  ;;  %v8489_v53 = vmul.f32 0.125, %v14454_v60  ;;  %v7371_v0 = vadd.f32 %v7370_v28, %v14445_v59  ;;  %16071 = vst [vmem:[#allocation24_spill] sm:$0xff] %v14546_v40  ;;  %v14554_v28 = vpop.f32.mrf.mxu1 }
 0x43d   : > { %v7364_v15 = vadd.f32 %v16069_v57, %v14397_v23  ;;  %v7429_v47 = vrot.slane %v7428_v63, 4  ;;  %v7450_v8 = vrot.slane %v7449_v25, 4  ;;  %v8991_v13 = vsel %vm8894_vm4, %v14346_v61, %v8990_v38 }
 0x43e   : > { %v4368_v23 = vadd.f32 %v14125_v31, %v14429_v5  ;;  %v5792_v35 = vadd.f32 %v14132_v21, %v14022_v4  ;;  %v14548_v34 = vadd.f32 %v7410_v32, %v7409_v62  ;;  %v7446_v57 = vadd.f32 %v7445_v14, %v7444_v54  ;;  %v14556_v5 = vpop.f32.mrf.mxu0 }
 0x43f   : > { %v7430_v58 = vadd.f32 %v7429_v47, %v7428_v63  ;;  %v7451_v24 = vadd.f32 %v7450_v8, %v7449_v25  ;;  %v8490_v37 = vmul.f32 0.125, %v7364_v15  ;;  %v8992_v59 = vsel %vm8896_vm5, %v14387_v36, %v8991_v13  ;;  %16072 = vst [vmem:[#allocation23_spill] sm:$0xff] %v14556_v5 }
 0x440   : > { %v6452_v60 = vmax.f32 %v5792_v35, 0.0  ;;  %v4360_v61 = vadd.f32 %v14125_v31, %v14441_v41  ;;  %v8993_v62 = vsel %vm8898_vm6, %v14452_v3, %v8992_v59  ;;  %v4710_v54 = vmax.f32 %v4368_v23, 0.0  ;;  %v14566_v3 = vpop.f32.mrf.mxu1 }
 0x441   : > { %v7431_v4 = vrot.slane %v7430_v58, 2  ;;  %v7452_v38 = vrot.slane %v7451_v24, 2  ;;  %v8491_v32 = vmul.f32 0.125, %v7371_v0  ;;  %v8994_v14 = vsel %vm8900_vm7, %v8489_v53, %v8993_v62  ;;  %v14568_v0 = vpop.f32.mrf.mxu0 }
 0x442   : > { %v7435_v63 = vsel %vm6587_vm2, %v6452_v60, 0.0  ;;  %v4708_v36 = vmax.f32 %v4360_v61, 0.0  ;;  %v7447_v25 = vrot.slane %v7446_v57, 1  ;;  %v8995_v41 = vsel %vm8902_vm8, %v8490_v37, %v8994_v14  ;;  %16073 = vst [vmem:[#allocation26_spill] sm:$0xff] %v14568_v0 }
 0x443   : > { %v7432_v15 = vadd.f32 %v7431_v4, %v7430_v58  ;;  %v7453_v47 = vadd.f32 %v7452_v38, %v7451_v24  ;;  %v8996_v8 = vsel %vm8904_vm9, %v8491_v32, %v8995_v41  ;;  %v7436_v13 = vrot.slane %v7435_v63, 4  ;;  %v16074_v58 = vld [vmem:[#allocation40_spill] sm:$0xff] }
 0x444   : > { %v4851_v35 = vpack.c.bf16 %v4708_v36, %v4707_v26  ;;  %v5813_v5 = vadd.f32 %v14132_v21, %v14038_v43  ;;  %v7406_v53 = vadd.f32 %v7405_v44, %v14498_v51  ;;  %9168 = vxpose.xlu0.b32.cont [14/16] (narrow) %v8996_v8, 8  ;;  %v4852_v23 = vpack.c.bf16 %v4710_v54, %v4709_v27  ;;  %v16075_v43 = vld [vmem:[#allocation42_spill] sm:$0xff]  ;;  %v14583_v54 = vpop.f32.mrf.mxu1 }
 0x445   : > { %v4381_v24 = vadd.f32 %v14125_v31, %v14463_v6  ;;  %v5805_v37 = vadd.f32 %v14132_v21, %v16074_v58  ;;  %v7437_v59 = vadd.f32 %v7436_v13, %v7435_v63  ;;  %v4373_v26 = vadd.f32 %v14125_v31, %v14476_v52  ;;  %v14585_v52 = vpop.f32.mrf.mxu0 }
 0x446   : > { %v6457_v60 = vmax.f32 %v5813_v5, 0.0  ;;  %v5816_v61 = vadd.f32 %v14132_v21, %v16075_v43  ;;  %10963 = vmatprep.mubr.msk.bf16.mxu0 %vm3041_vm1, %v4851_v35  ;;  %v7412_v51 = vrot.slane %v14548_v34, 1  ;;  %v7448_v44 = vadd.f32 %v7447_v25, %v7446_v57  ;;  %16076 = vst [vmem:[#allocation25_spill] sm:$0xff] %v14585_v52 }
 0x447   : > { %v7433_v27 = vrot.slane %v7432_v15, 1  ;;  %v6455_v4 = vmax.f32 %v5805_v37, 0.0  ;;  %10964 = vmatmul.mubr.msk.bf16.gmra.mxu0 %vm3041_vm1, %v4852_v23  ;;  %v7454_v6 = vrot.slane %v7453_v47, 1  ;;  %v7438_v38 = vrot.slane %v7437_v59, 2  ;;  %v16077_v23 = vld [vmem:[#allocation41_spill] sm:$0xff] }
 0x448   : > { %v7470_v62 = vsel %vm6587_vm2, %v6457_v60, 0.0  ;;  %v6458_v5 = vmax.f32 %v5816_v61, 0.0  ;;  %v4713_v14 = vmax.f32 %v4381_v24, 0.0  ;;  %v4711_v36 = vmax.f32 %v4373_v26, 0.0  ;;  %v14596_v37 = vld [vmem:[%s15808_s4] ss:$0 sm:$0xff]  ;;  %v14609_v61 = vpop.f32.mrf.mxu1 }
 0x449   : > { %v7471_v32 = vrot.slane %v7470_v62, 4  ;;  %v7456_v63 = vsel %vm6587_vm2, %v6455_v4, 0.0  ;;  %v7439_v41 = vadd.f32 %v7438_v38, %v7437_v59  ;;  %v4384_v8 = vadd.f32 %v14125_v31, %v14485_v39  ;;  %v14600_v59 = vpop.f32.mrf.mxu0  ;;  %v14605_v31 = vld [vmem:[%s15810_s6] ss:$0 sm:$0xff]  ;;  %v16079_v39 = vld [vmem:[#allocation6_spill] sm:$0xff] }
 0x44a   : > { %v7457_v57 = vrot.slane %v7456_v63, 4  ;;  %v7477_v25 = vsel %vm6587_vm2, %v6458_v5, 0.0  ;;  %v5808_v58 = vadd.f32 %v14132_v21, %v16077_v23  ;;  %v4376_v24 = vadd.f32 %v14596_v37, %v14510_v33  ;;  %16078 = vst [vmem:[#allocation28_spill] sm:$0xff] %v14600_v59 }
 0x44b   : > { %v7472_v13 = vadd.f32 %v7471_v32, %v7470_v62  ;;  %v7478_v35 = vrot.slane %v7477_v25, 4  ;;  %v7440_v60 = vrot.slane %v7439_v41, 1  ;;  %v4714_v43 = vmax.f32 %v4384_v8, 0.0  ;;  %v14611_v33 = vpop.f32.mrf.mxu0 }
 0x44c   : > { %v7458_v26 = vadd.f32 %v7457_v57, %v7456_v63  ;;  %v5829_v21 = vadd.f32 %v14605_v31, %v16079_v39  ;;  %v6456_v62 = vmax.f32 %v5808_v58, 0.0  ;;  %v4712_v5 = vmax.f32 %v4376_v24, 0.0 }
 0x44d   : > { %v7473_v4 = vrot.slane %v7472_v13, 2  ;;  %v7479_v38 = vadd.f32 %v7478_v35, %v7477_v25  ;;  %v7434_v32 = vadd.f32 %v7433_v27, %v7432_v15  ;;  %v7455_v23 = vadd.f32 %v7454_v6, %v7453_v47  ;;  %v14614_v40 = vpop.f32.mrf.mxu0  ;;  %v14619_v35 = vpop.f32.mrf.mxu1 }
 0x44e   : > { %v7459_v63 = vrot.slane %v7458_v26, 2  ;;  %v6461_v57 = vmax.f32 %v5829_v21, 0.0  ;;  %v7441_v8 = vadd.f32 %v7440_v60, %v7439_v41  ;;  %v4854_v59 = vpack.c.bf16 %v4714_v43, %v4713_v14  ;;  %v16080_v41 = vld [vmem:[#allocation5_spill] sm:$0xff]  ;;  %v16081_v60 = vld [vmem:[#allocation8_spill] sm:$0xff] }
 0x44f   : > { %v7463_v52 = vsel %vm6587_vm2, %v6456_v62, 0.0  ;;  %v4853_v0 = vpack.c.bf16 %v4712_v5, %v4711_v36  ;;  %v14616_v39 = vadd.f32 %v7473_v4, %v7472_v13  ;;  %v8496_v58 = vmul.f32 0.125, %v7406_v53  ;;  %v14632_v24 = vpop.f32.mrf.mxu0 }
 0x450   : > { %v7460_v9 = vadd.f32 %v7459_v63, %v7458_v26  ;;  %v7464_v56 = vrot.slane %v7463_v52, 4  ;;  %v7498_v25 = vsel %vm6587_vm2, %v6461_v57, 0.0  ;;  %v7413_v15 = vadd.f32 %v7412_v51, %v14548_v34  ;;  %v14643_v26 = vpop.f32.mrf.mxu1 }
 0x451   : > { %v7480_v47 = vrot.slane %v7479_v38, 2  ;;  %v7499_v27 = vrot.slane %v7498_v25, 4  ;;  %10967 = vmatprep.mubr.msk.bf16.mxu0 %vm3041_vm1, %v4853_v0  ;;  %v14623_v6 = vmul.f32 0.125, %v7448_v44  ;;  %v14627_v36 = vadd.f32 %v14596_v37, %v14534_v17  ;;  %v14652_v63 = vpop.f32.mrf.mxu0 }
 0x452   : > { %v7465_v14 = vadd.f32 %v7464_v56, %v7463_v52  ;;  %v5821_v13 = vadd.f32 %v14605_v31, %v16080_v41  ;;  %10968 = vmatmul.mubr.msk.bf16.gmra.mxu0 %vm3041_vm1, %v4854_v59  ;;  %v14634_v53 = vmul.f32 0.125, %v7434_v32  ;;  %v7461_v34 = vrot.slane %v7460_v9, 1 }
 0x453   : > { %v7500_v51 = vadd.f32 %v7499_v27, %v7498_v25  ;;  %v5832_v0 = vadd.f32 %v14605_v31, %v16081_v60  ;;  %v14638_v44 = vmul.f32 0.125, %v7455_v23  ;;  %v14640_v56 = vmul.f32 0.125, %v7441_v8  ;;  %v4407_v60 = vpop.f32.mrf.mxu1 }
 0x454   : > { %v6459_v52 = vmax.f32 %v5821_v13, 0.0  ;;  %v14645_v43 = vadd.f32 %v7480_v47, %v7479_v38  ;;  %v7426_v4 = vrot.slane %v14516_v18, 1  ;;  %v7466_v62 = vrot.slane %v7465_v14, 2 }
 0x455   : > { %v7501_v59 = vrot.slane %v7500_v51, 2  ;;  %v6462_v21 = vmax.f32 %v5832_v0, 0.0  ;;  %v4717_v5 = vmax.f32 %v14627_v36, 0.0  ;;  %v4389_v23 = vadd.f32 %v14596_v37, %v14554_v28 }
 0x456   : > { %v7484_v32 = vsel %vm6587_vm2, %v6459_v52, 0.0  ;;  %v7462_v57 = vadd.f32 %v7461_v34, %v7460_v9  ;;  %v16082_v38 = vrot.slane %v14496_v11, 1  ;;  %v7427_v41 = vadd.f32 %v7426_v4, %v14516_v18 }
 0x457   : > { %v7485_v8 = vrot.slane %v7484_v32, 4  ;;  %v7505_v25 = vsel %vm6587_vm2, %v6462_v21, 0.0  ;;  %v8497_v13 = vmul.f32 0.125, %v7413_v15  ;;  %v8997_v36 = vsel %vm8892_vm3, %v14514_v7, %v14501_v48  ;;  %v14670_v15 = vpop.f32.mrf.mxu0 }
 0x458   : > { %v7420_v47 = vadd.f32 %v16082_v38, %v14496_v11  ;;  %v7506_v27 = vrot.slane %v7505_v25, 4  ;;  %v7502_v28 = vadd.f32 %v7501_v59, %v7500_v51  ;;  %v8998_v9 = vsel %vm8894_vm4, %v14487_v50, %v8997_v36 }
 0x459   : > { %v7486_v0 = vadd.f32 %v7485_v8, %v7484_v32  ;;  %v4400_v34 = vadd.f32 %v14596_v37, %v14566_v3  ;;  %v14666_v52 = vadd.f32 %v7466_v62, %v7465_v14  ;;  %v4715_v11 = vmax.f32 %v4389_v23, 0.0  ;;  %v14678_v62 = vpop.f32.mrf.mxu1 }
 0x45a   : > { %v7507_v21 = vadd.f32 %v7506_v27, %v7505_v25  ;;  %v8999_v18 = vsel %vm8896_vm5, %v14503_v2, %v8998_v9  ;;  %v8498_v48 = vmul.f32 0.125, %v7420_v47  ;;  %v5824_v51 = vadd.f32 %v14605_v31, %v14147_v46  ;;  %v14684_v47 = vpop.f32.mrf.mxu0 }
 0x45b   : > { %v7487_v4 = vrot.slane %v7486_v0, 2  ;;  %v9000_v7 = vsel %vm8898_vm6, %v8496_v58, %v8999_v18  ;;  %v8499_v59 = vmul.f32 0.125, %v7427_v41  ;;  %v4392_v14 = vadd.f32 %v14596_v37, %v14583_v54  ;;  %v14692_v18 = vpop.f32.mrf.mxu1 }
 0x45c   : > { %v7508_v50 = vrot.slane %v7507_v21, 2  ;;  %v9001_v3 = vsel %vm8900_vm7, %v8497_v13, %v9000_v7  ;;  %v7503_v32 = vrot.slane %v7502_v28, 1  ;;  %v4718_v23 = vmax.f32 %v4400_v34, 0.0 }
 0x45d   : > { %v9002_v2 = vsel %vm8902_vm8, %v8498_v48, %v9001_v3  ;;  %v6460_v8 = vmax.f32 %v5824_v51, 0.0  ;;  %v7488_v25 = vadd.f32 %v7487_v4, %v7486_v0  ;;  %v4716_v38 = vmax.f32 %v4392_v14, 0.0 }
 0x45e   : > { %v9003_v58 = vsel %vm8904_vm9, %v8499_v59, %v9002_v2  ;;  %v5845_v46 = vadd.f32 %v14605_v31, %v14154_v49  ;;  %v14686_v27 = vmul.f32 0.125, %v7462_v57  ;;  %v7509_v41 = vadd.f32 %v7508_v50, %v7507_v21  ;;  %v14700_v50 = vpop.f32.mrf.mxu0  ;;  %v14706_v2 = vpop.f32.mrf.mxu1 }
 0x45f   : > { %9169 = vxpose.xlu0.b32.cont [15/16] (narrow) %v9003_v58, 8  ;;  %v7491_v54 = vsel %vm6587_vm2, %v6460_v8, 0.0  ;;  %v5837_v13 = vadd.f32 %v14605_v31, %v14169_v55  ;;  %v7468_v36 = vrot.slane %v14666_v52, 1  ;;  %v4855_v9 = vpack.c.bf16 %v4716_v38, %v4715_v11 }
 0x460   : > { %v7492_v0 = vrot.slane %v7491_v54, 4  ;;  %v6465_v34 = vmax.f32 %v5845_v46, 0.0  ;;  %v7504_v4 = vadd.f32 %v7503_v32, %v7502_v28  ;;  %v4856_v49 = vpack.c.bf16 %v4718_v23, %v4717_v5 }
 0x461   : > { %v6463_v48 = vmax.f32 %v5837_v13, 0.0  ;;  %v4405_v57 = vadd.f32 %v14596_v37, %v14619_v35  ;;  %v7489_v21 = vrot.slane %v7488_v25, 1  ;;  %v5848_v55 = vadd.f32 %v14605_v31, %v14185_v22  ;;  %10971 = vmatprep.mubr.msk.bf16.mxu0 %vm3041_vm1, %v4855_v9  ;;  %v14716_v13 = vpop.f32.mrf.mxu0 }
 0x462   : > { %v7493_v7 = vadd.f32 %v7492_v0, %v7491_v54  ;;  %v7526_v51 = vsel %vm6587_vm2, %v6465_v34, 0.0  ;;  %v7510_v11 = vrot.slane %v7509_v41, 1  ;;  %v4413_v5 = vadd.f32 %v14596_v37, %v14609_v61  ;;  %10972 = vmatmul.mubr.msk.bf16.gmra.mxu0 %vm3041_vm1, %v4856_v49 }
 0x463   : > { %v7527_v59 = vrot.slane %v7526_v51, 4  ;;  %v7512_v28 = vsel %vm6587_vm2, %v6463_v48, 0.0  ;;  %v4719_v14 = vmax.f32 %v4405_v57, 0.0  ;;  %v6466_v32 = vmax.f32 %v5848_v55, 0.0 }
 0x464   : > { %v7494_v35 = vrot.slane %v7493_v7, 2  ;;  %v7513_v3 = vrot.slane %v7512_v28, 4  ;;  %v4416_v23 = vadd.f32 %v14596_v37, %v14643_v26  ;;  %v5840_v8 = vadd.f32 %v14605_v31, %v14200_v10  ;;  %v4423_v10 = vpop.f32.mrf.mxu1 }
 0x465   : > { %v7528_v22 = vadd.f32 %v7527_v59, %v7526_v51  ;;  %v4408_v58 = vadd.f32 %v14596_v37, %v4407_v60  ;;  %v7533_v46 = vsel %vm6587_vm2, %v6466_v32, 0.0  ;;  %v5861_v54 = vadd.f32 %v14605_v31, %v14214_v30  ;;  %v14720_v32 = vpop.f32.mrf.mxu0 }
 0x466   : > { %v7495_v61 = vadd.f32 %v7494_v35, %v7493_v7  ;;  %v7514_v38 = vadd.f32 %v7513_v3, %v7512_v28  ;;  %v7534_v9 = vrot.slane %v7533_v46, 4  ;;  %v4722_v34 = vmax.f32 %v4416_v23, 0.0 }
 0x467   : > { %v7529_v0 = vrot.slane %v7528_v22, 2  ;;  %v6464_v49 = vmax.f32 %v5840_v8, 0.0  ;;  %v4720_v57 = vmax.f32 %v4408_v58, 0.0  ;;  %v6469_v51 = vmax.f32 %v5861_v54, 0.0 }
 0x468   : > { %v7496_v48 = vrot.slane %v7495_v61, 1  ;;  %v7515_v26 = vrot.slane %v7514_v38, 2  ;;  %v7469_v60 = vadd.f32 %v7468_v36, %v14666_v52  ;;  %v7490_v7 = vadd.f32 %v7489_v21, %v7488_v25 }
 0x469   : > { %v4721_v55 = vmax.f32 %v4413_v5, 0.0  ;;  %v7519_v59 = vsel %vm6587_vm2, %v6464_v49, 0.0  ;;  %v7511_v28 = vadd.f32 %v7510_v11, %v7509_v41  ;;  %v4857_v3 = vpack.c.bf16 %v4720_v57, %v4719_v14  ;;  %v14734_v41 = vpop.f32.mrf.mxu1 }
 0x46a   : > { %v7516_v35 = vadd.f32 %v7515_v26, %v7514_v38  ;;  %v7520_v30 = vrot.slane %v7519_v59, 4  ;;  %v14722_v17 = vadd.f32 %v7529_v0, %v7528_v22  ;;  %v14724_v23 = vadd.f32 %v7534_v9, %v7533_v46  ;;  %v14747_v46 = vpop.f32.mrf.mxu0 }
 0x46b   : > { %v4858_v8 = vpack.c.bf16 %v4722_v34, %v4721_v55  ;;  %v7554_v58 = vsel %vm6587_vm2, %v6469_v51, 0.0  ;;  %v14727_v54 = vmul.f32 0.125, %v7504_v4  ;;  %v7497_v52 = vadd.f32 %v7496_v48, %v7495_v61  ;;  %10975 = vmatprep.mubr.msk.bf16.mxu0 %vm3041_vm1, %v4857_v3  ;;  %v16083_v61 = vld [vmem:[#allocation7_spill] sm:$0xff]  ;;  %v14755_v51 = vpop.f32.mrf.mxu1 }
 0x46c   : > { %v7555_v25 = vrot.slane %v7554_v58, 4  ;;  %v14731_v36 = vadd.f32 %v14596_v37, %v14678_v62  ;;  %v14736_v21 = vmul.f32 0.125, %v7490_v7  ;;  %v7517_v11 = vrot.slane %v7516_v35, 1 }
 0x46d   : > { %v7521_v5 = vadd.f32 %v7520_v30, %v7519_v59  ;;  %v5853_v14 = vadd.f32 %v14605_v31, %v14229_v45  ;;  %10976 = vmatmul.mubr.msk.bf16.gmra.mxu0 %vm3041_vm1, %v4858_v8  ;;  %v14741_v4 = vmul.f32 0.125, %v7511_v28  ;;  %v4421_v62 = vadd.f32 %v14596_v37, %v14692_v18 }
 0x46e   : > { %v7556_v22 = vadd.f32 %v7555_v25, %v7554_v58  ;;  %v5864_v38 = vadd.f32 %v14605_v31, %v16083_v61  ;;  %v7531_v0 = vrot.slane %v14722_v17, 1  ;;  %v7536_v9 = vrot.slane %v14724_v23, 2 }
 0x46f   : > { %v6467_v34 = vmax.f32 %v5853_v14, 0.0  ;;  %v7482_v45 = vrot.slane %v14645_v43, 1  ;;  %v14752_v49 = vmul.f32 0.125, %v7497_v52  ;;  %v4725_v26 = vmax.f32 %v14731_v36, 0.0  ;;  %v14763_v52 = vpop.f32.mrf.mxu0 }
 0x470   : > { %v7557_v48 = vrot.slane %v7556_v22, 2  ;;  %v6470_v57 = vmax.f32 %v5864_v38, 0.0  ;;  %v7518_v18 = vadd.f32 %v7517_v11, %v7516_v35  ;;  %v7522_v7 = vrot.slane %v7521_v5, 2 }
 0x471   : > { %v7540_v55 = vsel %vm6587_vm2, %v6467_v34, 0.0  ;;  %v16084_v59 = vrot.slane %v14616_v39, 1  ;;  %v4723_v3 = vmax.f32 %v4421_v62, 0.0  ;;  %v7483_v58 = vadd.f32 %v7482_v45, %v14645_v43  ;;  %v10726_v43 = vpop.f32.mrf.mxu1 }
 0x472   : > { %v7541_v30 = vrot.slane %v7540_v55, 4  ;;  %v7561_v8 = vsel %vm6587_vm2, %v6470_v57, 0.0  ;;  %v8505_v36 = vmul.f32 0.125, %v7469_v60  ;;  %v9004_v35 = vsel %vm8892_vm3, %v14640_v56, %v14634_v53 }
 0x473   : > { %v7476_v28 = vadd.f32 %v16084_v59, %v14616_v39  ;;  %v7562_v25 = vrot.slane %v7561_v8, 4  ;;  %v4432_v11 = vadd.f32 %v14596_v37, %v14706_v2  ;;  %v7558_v14 = vadd.f32 %v7557_v48, %v7556_v22  ;;  %v14779_v48 = vpop.f32.mrf.mxu0 }
 0x474   : > { %v7542_v61 = vadd.f32 %v7541_v30, %v7540_v55  ;;  %v9005_v39 = vsel %vm8894_vm4, %v14623_v6, %v9004_v35  ;;  %v5856_v62 = vadd.f32 %v14605_v31, %v14253_v19  ;;  %v4424_v45 = vadd.f32 %v14596_v37, %v4423_v10  ;;  %v4439_v30 = vpop.f32.mrf.mxu1 }
 0x475   : > { %v7563_v38 = vadd.f32 %v7562_v25, %v7561_v8  ;;  %v8506_v34 = vmul.f32 0.125, %v7476_v28  ;;  %v9006_v60 = vsel %vm8896_vm5, %v14638_v44, %v9005_v39  ;;  %v4726_v2 = vmax.f32 %v4432_v11, 0.0  ;;  %v14794_v39 = vpop.f32.mrf.mxu0 }
 0x476   : > { %v7543_v53 = vrot.slane %v7542_v61, 2  ;;  %v9007_v56 = vsel %vm8898_vm6, %v14686_v27, %v9006_v60  ;;  %v6468_v22 = vmax.f32 %v5856_v62, 0.0  ;;  %v8507_v57 = vmul.f32 0.125, %v7483_v58 }
 0x477   : > { %v7564_v6 = vrot.slane %v7563_v38, 2  ;;  %v9008_v19 = vsel %vm8900_vm7, %v8505_v36, %v9007_v56  ;;  %v4724_v55 = vmax.f32 %v4424_v45, 0.0  ;;  %v14782_v59 = vadd.f32 %v7522_v7, %v7521_v5  ;;  %v16085_v7 = vld [vmem:[#allocation10_spill] sm:$0xff] }
 0x478   : > { %v7559_v28 = vrot.slane %v7558_v14, 1  ;;  %v9009_v44 = vsel %vm8902_vm8, %v8506_v34, %v9008_v19  ;;  %v7547_v10 = vsel %vm6587_vm2, %v6468_v22, 0.0  ;;  %v7544_v8 = vadd.f32 %v7543_v53, %v7542_v61  ;;  %v14810_v22 = vpop.f32.mrf.mxu0 }
 0x479   : > { %v9010_v27 = vsel %vm8904_vm9, %v8507_v57, %v9009_v44  ;;  %v7548_v25 = vrot.slane %v7547_v10, 4  ;;  %v4859_v35 = vpack.c.bf16 %v4724_v55, %v4723_v3  ;;  %v14788_v11 = vadd.f32 %v7536_v9, %v14724_v23 }
 0x47a   : > { %9170 = vxpose.xlu0.b32.end [16/16] (narrow) %v9010_v27, 8  ;;  %v4860_v58 = vpack.c.bf16 %v4726_v2, %v4725_v26  ;;  %v5877_v5 = vadd.f32 %v14605_v31, %v14269_v1  ;;  %v5869_v36 = vadd.f32 %v14605_v31, %v16085_v7  ;;  %v14796_v62 = vmul.f32 0.125, %v7518_v18  ;;  %v10729_v1 = vpop.f32.mrf.mxu1 }
 0x47b   : > { %v7565_v61 = vadd.f32 %v7564_v6, %v7563_v38  ;;  %v7549_v34 = vadd.f32 %v7548_v25, %v7547_v10  ;;  %v5880_v3 = vadd.f32 %v14605_v31, %v14290_v20  ;;  %10979 = vmatprep.mubr.msk.bf16.mxu0 %vm3041_vm1, %v4859_v35  ;;  %v7524_v23 = vrot.slane %v14782_v59, 1 }
 0x47c   : > { %v7560_v9 = vadd.f32 %v7559_v28, %v7558_v14  ;;  %v6473_v26 = vmax.f32 %v5877_v5, 0.0  ;;  %v6471_v60 = vmax.f32 %v5869_v36, 0.0  ;;  %10980 = vmatmul.mubr.msk.bf16.gmra.mxu0 %vm3041_vm1, %v4860_v58  ;;  %v7545_v45 = vrot.slane %v7544_v8, 1  ;;  %v4452_v27 = vpop.f32.mrf.mxu1 }
 0x47d   : > { %v7550_v53 = vrot.slane %v7549_v34, 2  ;;  %v4445_v18 = vadd.f32 %v14596_v37, %v14734_v41  ;;  %v6474_v38 = vmax.f32 %v5880_v3, 0.0  ;;  %v4437_v2 = vadd.f32 %v14596_v37, %v14755_v51 }
 0x47e   : > { %v7582_v56 = vsel %vm6587_vm2, %v6473_v26, 0.0  ;;  %v7568_v20 = vsel %vm6587_vm2, %v6471_v60, 0.0  ;;  %v4448_v14 = vadd.f32 %v14596_v37, %v10726_v43  ;;  %v7566_v6 = vrot.slane %v7565_v61, 1 }
 0x47f   : > { %v7551_v57 = vadd.f32 %v7550_v53, %v7549_v34  ;;  %v7583_v19 = vrot.slane %v7582_v56, 4  ;;  %v7569_v55 = vrot.slane %v7568_v20, 4  ;;  %v7589_v28 = vsel %vm6587_vm2, %v6474_v38, 0.0  ;;  %v14818_v34 = vpop.f32.mrf.mxu0 }
 0x480   : > { %v4730_v44 = vmax.f32 %v4448_v14, 0.0  ;;  %v5872_v41 = vadd.f32 %v14605_v31, %v14308_v16  ;;  %v4440_v10 = vadd.f32 %v14596_v37, %v4439_v30  ;;  %v7590_v58 = vrot.slane %v7589_v28, 4 }
 0x481   : > { %v7552_v25 = vrot.slane %v7551_v57, 1  ;;  %v7584_v35 = vadd.f32 %v7583_v19, %v7582_v56  ;;  %v7570_v51 = vadd.f32 %v7569_v55, %v7568_v20  ;;  %v4727_v43 = vmax.f32 %v4437_v2, 0.0  ;;  %v10730_v56 = vpop.f32.mrf.mxu1 }
 0x482   : > { %v6472_v5 = vmax.f32 %v5872_v41, 0.0  ;;  %v4728_v7 = vmax.f32 %v4440_v10, 0.0  ;;  %v5893_v36 = vadd.f32 %v14605_v31, %v14322_v29  ;;  %v7546_v3 = vadd.f32 %v7545_v45, %v7544_v8  ;;  %v16086_v8 = vld [vmem:[#allocation9_spill] sm:$0xff] }
 0x483   : > { %v7585_v26 = vrot.slane %v7584_v35, 2  ;;  %v4729_v60 = vmax.f32 %v4445_v18, 0.0  ;;  %v7571_v53 = vrot.slane %v7570_v51, 2  ;;  %v7591_v16 = vadd.f32 %v7590_v58, %v7589_v28  ;;  %v14828_v18 = vpop.f32.mrf.mxu0 }
 0x484   : > { %v7575_v30 = vsel %vm6587_vm2, %v6472_v5, 0.0  ;;  %v4861_v38 = vpack.c.bf16 %v4728_v7, %v4727_v43  ;;  %v6477_v14 = vmax.f32 %v5893_v36, 0.0  ;;  %v7567_v20 = vadd.f32 %v7566_v6, %v7565_v61  ;;  %v4455_v43 = vpop.f32.mrf.mxu1 }
 0x485   : > { %v7553_v19 = vadd.f32 %v7552_v25, %v7551_v57  ;;  %v7572_v2 = vadd.f32 %v7571_v53, %v7570_v51  ;;  %v4862_v55 = vpack.c.bf16 %v4730_v44, %v4729_v60  ;;  %v7576_v41 = vrot.slane %v7575_v30, 4  ;;  %v16087_v25 = vld [vmem:[#allocation12_spill] sm:$0xff]  ;;  %v14848_v53 = vpop.f32.mrf.mxu0 }
 0x486   : > { %v7610_v10 = vsel %vm6587_vm2, %v6477_v14, 0.0  ;;  %v14823_v29 = vadd.f32 %v14596_v37, %v10729_v1  ;;  %v5885_v45 = vadd.f32 %v14605_v31, %v16086_v8  ;;  %10983 = vmatprep.mubr.msk.bf16.mxu0 %vm3041_vm1, %v4861_v38  ;;  %v14830_v28 = vmul.f32 0.125, %v7560_v9 }
 0x487   : > { %v14832_v58 = vmul.f32 0.125, %v7546_v3  ;;  %v14834_v61 = vadd.f32 %v7585_v26, %v7584_v35  ;;  %v7611_v6 = vrot.slane %v7610_v10, 4  ;;  %10984 = vmatmul.mubr.msk.bf16.gmra.mxu0 %vm3041_vm1, %v4862_v55  ;;  %v7592_v57 = vrot.slane %v7591_v16, 2 }
 0x488   : > { %v7577_v44 = vadd.f32 %v7576_v41, %v7575_v30  ;;  %v6475_v1 = vmax.f32 %v5885_v45, 0.0  ;;  %v5896_v51 = vadd.f32 %v14605_v31, %v16087_v25  ;;  %v14839_v5 = vmul.f32 0.125, %v7567_v20 }
 0x489   : > { %v14841_v7 = vmul.f32 0.125, %v7553_v19  ;;  %v7573_v9 = vrot.slane %v7572_v2, 1  ;;  %v7612_v36 = vadd.f32 %v7611_v6, %v7610_v10  ;;  %v4733_v3 = vmax.f32 %v14823_v29, 0.0  ;;  %v10733_v29 = vpop.f32.mrf.mxu1 }
 0x48a   : > { %v7596_v35 = vsel %vm6587_vm2, %v6475_v1, 0.0  ;;  %v6478_v26 = vmax.f32 %v5896_v51, 0.0  ;;  %v7525_v60 = vadd.f32 %v7524_v23, %v14782_v59  ;;  %v7538_v20 = vrot.slane %v14788_v11, 1 }
 0x48b   : > { %v7613_v38 = vrot.slane %v7612_v36, 2  ;;  %v7597_v14 = vrot.slane %v7596_v35, 4  ;;  %v14852_v19 = vadd.f32 %v7592_v57, %v7591_v16  ;;  %v7578_v55 = vrot.slane %v7577_v44, 2  ;;  %v16088_v57 = vld [vmem:[#allocation11_spill] sm:$0xff] }
 0x48c   : > { %v4453_v41 = vadd.f32 %v14596_v37, %v4452_v27  ;;  %v7617_v10 = vsel %vm6587_vm2, %v6478_v26, 0.0  ;;  %v7574_v8 = vadd.f32 %v7573_v9, %v7572_v2  ;;  %v7532_v59 = vadd.f32 %v7531_v0, %v14722_v17  ;;  %v14864_v27 = vpop.f32.mrf.mxu0 }
 0x48d   : > { %v7598_v45 = vadd.f32 %v7597_v14, %v7596_v35  ;;  %v7618_v6 = vrot.slane %v7617_v10, 4  ;;  %v7614_v23 = vadd.f32 %v7613_v38, %v7612_v36  ;;  %v8513_v1 = vmul.f32 0.125, %v7525_v60  ;;  %v4468_v60 = vpop.f32.mrf.mxu1 }
 0x48e   : > { %v9011_v16 = vsel %vm8892_vm3, %v14752_v49, %v14736_v21  ;;  %v5888_v25 = vadd.f32 %v14605_v31, %v16088_v57  ;;  %v7539_v2 = vadd.f32 %v7538_v20, %v14788_v11  ;;  %v4464_v9 = vadd.f32 %v14596_v37, %v10730_v56  ;;  %v14878_v20 = vpop.f32.mrf.mxu0 }
 0x48f   : > { %v7599_v51 = vrot.slane %v7598_v45, 2  ;;  %v7619_v26 = vadd.f32 %v7618_v6, %v7617_v10  ;;  %v14868_v35 = vadd.f32 %v7578_v55, %v7577_v44  ;;  %v4731_v17 = vmax.f32 %v4453_v41, 0.0 }
 0x490   : > { %v9012_v0 = vsel %vm8894_vm4, %v14727_v54, %v9011_v16  ;;  %v6476_v36 = vmax.f32 %v5888_v25, 0.0  ;;  %v8514_v38 = vmul.f32 0.125, %v7532_v59  ;;  %v7615_v57 = vrot.slane %v7614_v23, 1  ;;  %v10734_v25 = vpop.f32.mrf.mxu1 }
 0x491   : > { %v7600_v21 = vadd.f32 %v7599_v51, %v7598_v45  ;;  %v7620_v49 = vrot.slane %v7619_v26, 2  ;;  %v9013_v14 = vsel %vm8896_vm5, %v14741_v4, %v9012_v0  ;;  %v4456_v44 = vadd.f32 %v14596_v37, %v4455_v43  ;;  %v16089_v4 = vld [vmem:[#allocation14_spill] sm:$0xff] }
 0x492   : > { %v9014_v11 = vsel %vm8898_vm6, %v14796_v62, %v9013_v14  ;;  %v7603_v56 = vsel %vm6587_vm2, %v6476_v36, 0.0  ;;  %v8515_v54 = vmul.f32 0.125, %v7539_v2  ;;  %v4734_v10 = vmax.f32 %v4464_v9, 0.0  ;;  %v16090_v9 = vld [vmem:[#allocation13_spill] sm:$0xff]  ;;  %v14890_v14 = vpop.f32.mrf.mxu0 }
 0x493   : > { %v7601_v55 = vrot.slane %v7600_v21, 1  ;;  %v9015_v41 = vsel %vm8900_vm7, %v8513_v1, %v9014_v11  ;;  %v7604_v6 = vrot.slane %v7603_v56, 4  ;;  %v4732_v59 = vmax.f32 %v4456_v44, 0.0 }
 0x494   : > { %v9016_v45 = vsel %vm8902_vm8, %v8514_v38, %v9015_v41  ;;  %v5909_v16 = vadd.f32 %v14605_v31, %v16089_v4  ;;  %v14884_v62 = vmul.f32 0.125, %v7574_v8  ;;  %v7621_v43 = vadd.f32 %v7620_v49, %v7619_v26  ;;  %v16091_v49 = vld [vmem:[#allocation16_spill] sm:$0xff] }
 0x495   : > { %v9017_v0 = vsel %vm8904_vm9, %v8515_v54, %v9016_v45  ;;  %v7605_v2 = vadd.f32 %v7604_v6, %v7603_v56  ;;  %v4863_v36 = vpack.c.bf16 %v4732_v59, %v4731_v17  ;;  %v5901_v38 = vadd.f32 %v14605_v31, %v16090_v9  ;;  %v4471_v17 = vpop.f32.mrf.mxu1  ;;  %v16094_v9 = vld [vmem:[#allocation18_spill] sm:$0xff] }
 0x496   : > { %9187 = vxpose.xlu1.b32.start [1/16] (narrow) %v9017_v0, 8  ;;  %v6481_v1 = vmax.f32 %v5909_v16, 0.0  ;;  %v7616_v11 = vadd.f32 %v7615_v57, %v7614_v23  ;;  %v7602_v44 = vadd.f32 %v7601_v55, %v7600_v21  ;;  %v4864_v41 = vpack.c.bf16 %v4734_v10, %v4733_v3  ;;  %v16092_v57 = vld [vmem:[#allocation15_spill] sm:$0xff]  ;;  %v14903_v10 = vpop.f32.mrf.mxu0 }
 0x497   : > { %v4469_v8 = vadd.f32 %v14596_v37, %v4468_v60  ;;  %v7606_v4 = vrot.slane %v7605_v2, 2  ;;  %v6479_v26 = vmax.f32 %v5901_v38, 0.0  ;;  %v5912_v54 = vadd.f32 %v14605_v31, %v16091_v49  ;;  %10987 = vmatprep.mubr.msk.bf16.mxu0 %vm3041_vm1, %v4863_v36  ;;  %16093 = vst [vmem:[#allocation27_spill] sm:$0xff] %v14903_v10 }
 0x498   : > { %v7638_v30 = vsel %vm6587_vm2, %v6481_v1, 0.0  ;;  %v7622_v56 = vrot.slane %v7621_v43, 1  ;;  %v4477_v6 = vadd.f32 %v14596_v37, %v10733_v29  ;;  %v4480_v23 = vadd.f32 %v14596_v37, %v10734_v25  ;;  %10988 = vmatmul.mubr.msk.bf16.gmra.mxu0 %vm3041_vm1, %v4864_v41 }
 0x499   : > { %v7639_v45 = vrot.slane %v7638_v30, 4  ;;  %v7607_v3 = vadd.f32 %v7606_v4, %v7605_v2  ;;  %v7624_v60 = vsel %vm6587_vm2, %v6479_v26, 0.0  ;;  %v6482_v21 = vmax.f32 %v5912_v54, 0.0 }
 0x49a   : > { %v5904_v55 = vadd.f32 %v14605_v31, %v16092_v57  ;;  %v7625_v16 = vrot.slane %v7624_v60, 4  ;;  %v4735_v0 = vmax.f32 %v4469_v8, 0.0  ;;  %v4472_v36 = vadd.f32 %v14596_v37, %v4471_v17 }
 0x49b   : > { %v7640_v59 = vadd.f32 %v7639_v45, %v7638_v30  ;;  %v7608_v1 = vrot.slane %v7607_v3, 1  ;;  %v7645_v29 = vsel %vm6587_vm2, %v6482_v21, 0.0  ;;  %v5925_v2 = vadd.f32 %v14605_v31, %v16094_v9  ;;  %v14910_v45 = vpop.f32.mrf.mxu0  ;;  %v16096_v9 = vld [vmem:[#allocation17_spill] sm:$0xff] }
 0x49c   : > { %v6480_v25 = vmax.f32 %v5904_v55, 0.0  ;;  %v7626_v41 = vadd.f32 %v7625_v16, %v7624_v60  ;;  %v7646_v4 = vrot.slane %v7645_v29, 4  ;;  %v4738_v26 = vmax.f32 %v4480_v23, 0.0  ;;  %16095 = vst [vmem:[#allocation30_spill] sm:$0xff] %v14910_v45  ;;  %v16097_v45 = vld [vmem:[#allocation20_spill] sm:$0xff] }
 0x49d   : > { %v7641_v38 = vrot.slane %v7640_v59, 2  ;;  %v7609_v49 = vadd.f32 %v7608_v1, %v7607_v3  ;;  %v4736_v57 = vmax.f32 %v4472_v36, 0.0  ;;  %v6485_v30 = vmax.f32 %v5925_v2, 0.0 }
 0x49e   : > { %v7631_v54 = vsel %vm6587_vm2, %v6480_v25, 0.0  ;;  %v4737_v8 = vmax.f32 %v4477_v6, 0.0  ;;  %v7627_v37 = vrot.slane %v7626_v41, 2  ;;  %v7647_v17 = vadd.f32 %v7646_v4, %v7645_v29 }
 0x49f   : > { %v7632_v51 = vrot.slane %v7631_v54, 4  ;;  %v7623_v21 = vadd.f32 %v7622_v56, %v7621_v43  ;;  %v4865_v55 = vpack.c.bf16 %v4736_v57, %v4735_v0  ;;  %v7666_v10 = vsel %vm6587_vm2, %v6485_v30, 0.0  ;;  %v14920_v43 = vpop.f32.mrf.mxu0 }
 0x4a0   : > { %v5917_v60 = vadd.f32 %v14605_v31, %v16096_v9  ;;  %v8525_v16 = vmul.f32 0.125, %v7609_v49  ;;  %v14915_v23 = vadd.f32 %v7641_v38, %v7640_v59  ;;  %v4866_v3 = vpack.c.bf16 %v4738_v26, %v4737_v8  ;;  %16098 = vst [vmem:[#allocation29_spill] sm:$0xff] %v14920_v43 }
 0x4a1   : > { %v7633_v1 = vadd.f32 %v7632_v51, %v7631_v54  ;;  %v7628_v36 = vadd.f32 %v7627_v37, %v7626_v41  ;;  %v7667_v25 = vrot.slane %v7666_v10, 4  ;;  %v5928_v6 = vadd.f32 %v14605_v31, %v16097_v45  ;;  %10991 = vmatprep.mubr.msk.bf16.mxu0 %vm3041_vm1, %v4865_v55  ;;  %v14937_v37 = vpop.f32.mrf.mxu0 }
 0x4a2   : > { %v6483_v2 = vmax.f32 %v5917_v60, 0.0  ;;  %v16099_v56 = vrot.slane %v14868_v35, 1  ;;  %v14925_v29 = vmul.f32 0.125, %v7616_v11  ;;  %v7648_v59 = vrot.slane %v7647_v17, 2  ;;  %10992 = vmatmul.mubr.msk.bf16.gmra.mxu0 %vm3041_vm1, %v4866_v3  ;;  %16100 = vst [vmem:[#allocation32_spill] sm:$0xff] %v14937_v37 }
 0x4a3   : > { %v7634_v38 = vrot.slane %v7633_v1, 2  ;;  %v8524_v51 = vmul.f32 0.125, %v7602_v44  ;;  %v6486_v4 = vmax.f32 %v5928_v6, 0.0  ;;  %v7594_v26 = vrot.slane %v14852_v19, 1 }
 0x4a4   : > { %v7581_v0 = vadd.f32 %v16099_v56, %v14868_v35  ;;  %v7652_v41 = vsel %vm6587_vm2, %v6483_v2, 0.0  ;;  %v14930_v49 = vmul.f32 0.125, %v7623_v21  ;;  %v7668_v57 = vadd.f32 %v7667_v25, %v7666_v10 }
 0x4a5   : > { %v7635_v54 = vadd.f32 %v7634_v38, %v7633_v1  ;;  %v7653_v30 = vrot.slane %v7652_v41, 4  ;;  %v14933_v45 = vsel %vm8892_vm3, %v8525_v16, %v8524_v51  ;;  %v7629_v11 = vrot.slane %v7628_v36, 1 }
 0x4a6   : > { %v7673_v8 = vsel %vm6587_vm2, %v6486_v4, 0.0  ;;  %v14939_v44 = vadd.f32 %v7648_v59, %v7647_v17  ;;  %v16101_v21 = vrot.slane %v14834_v61, 1  ;;  %v7595_v10 = vadd.f32 %v7594_v26, %v14852_v19 }
 0x4a7   : > { %v7654_v55 = vadd.f32 %v7653_v30, %v7652_v41  ;;  %v7674_v9 = vrot.slane %v7673_v8, 4  ;;  %v8521_v3 = vmul.f32 0.125, %v7581_v0  ;;  %v9018_v16 = vsel %vm8892_vm3, %v14841_v7, %v14832_v58  ;;  %v14956_v0 = vpop.f32.mrf.mxu0 }
 0x4a8   : > { %v7588_v60 = vadd.f32 %v16101_v21, %v14834_v61  ;;  %v5920_v1 = vadd.f32 %v14605_v31, %v14482_v12  ;;  %v7636_v25 = vrot.slane %v7635_v54, 1  ;;  %v7669_v2 = vrot.slane %v7668_v57, 2  ;;  %16102 = vst [vmem:[#allocation31_spill] sm:$0xff] %v14956_v0 }
 0x4a9   : > { %v7675_v17 = vadd.f32 %v7674_v9, %v7673_v8  ;;  %v9019_v6 = vsel %vm8894_vm4, %v14830_v28, %v9018_v16  ;;  %v7630_v56 = vadd.f32 %v7629_v11, %v7628_v36  ;;  %v5941_v19 = vadd.f32 %v14605_v31, %v14494_v42  ;;  %v16103_v9 = vld [vmem:[#allocation21_spill] sm:$0xff]  ;;  %v14969_v21 = vpop.f32.mrf.mxu0  ;;  %v16105_v16 = vld [vmem:[#allocation22_spill] sm:$0xff] }
 0x4aa   : > { %v9020_v61 = vsel %vm8896_vm5, %v14839_v5, %v9019_v6  ;;  %v6484_v59 = vmax.f32 %v5920_v1, 0.0  ;;  %v7655_v58 = vrot.slane %v7654_v55, 2  ;;  %v8522_v38 = vmul.f32 0.125, %v7588_v60  ;;  %16104 = vst [vmem:[#allocation34_spill] sm:$0xff] %v14969_v21  ;;  %v16107_v6 = vld [vmem:[#allocation24_spill] sm:$0xff] }
 0x4ab   : > { %v7676_v7 = vrot.slane %v7675_v17, 2  ;;  %v9021_v12 = vsel %vm8898_vm6, %v14884_v62, %v9020_v61  ;;  %v8523_v51 = vmul.f32 0.125, %v7595_v10  ;;  %v6489_v36 = vmax.f32 %v5941_v19, 0.0 }
 0x4ac   : > { %v9022_v41 = vsel %vm8900_vm7, %v8521_v3, %v9021_v12  ;;  %v7659_v28 = vsel %vm6587_vm2, %v6484_v59, 0.0  ;;  %v7637_v4 = vadd.f32 %v7636_v25, %v7635_v54  ;;  %v7670_v5 = vadd.f32 %v7669_v2, %v7668_v57  ;;  %v16106_v25 = vld [vmem:[#allocation19_spill] sm:$0xff]  ;;  %v14980_v12 = vpop.f32.mrf.mxu0 }
 0x4ad   : > { %v9023_v26 = vsel %vm8902_vm8, %v8522_v38, %v9022_v41  ;;  %v7660_v30 = vrot.slane %v7659_v28, 4  ;;  %v14963_v42 = vmul.f32 0.125, %v7630_v56  ;;  %v7694_v8 = vsel %vm6587_vm2, %v6489_v36, 0.0  ;;  %16108 = vst [vmem:[#allocation33_spill] sm:$0xff] %v14980_v12 }
 0x4ae   : > { %v9024_v11 = vsel %vm8904_vm9, %v8523_v51, %v9023_v26  ;;  %v5933_v62 = vadd.f32 %v14605_v31, %v16103_v9  ;;  %v7656_v60 = vadd.f32 %v7655_v58, %v7654_v55  ;;  %v7677_v10 = vadd.f32 %v7676_v7, %v7675_v17 }
 0x4af   : > { %9188 = vxpose.xlu1.b32.cont [2/16] (narrow) %v9024_v11, 8  ;;  %v7661_v3 = vadd.f32 %v7660_v30, %v7659_v28  ;;  %v7695_v54 = vrot.slane %v7694_v8, 4  ;;  %v5944_v1 = vadd.f32 %v14605_v31, %v16105_v16  ;;  %v5936_v2 = vadd.f32 %v14605_v31, %v16106_v25  ;;  %v16109_v11 = vld [vmem:[#allocation23_spill] sm:$0xff] }
 0x4b0   : > { %v6487_v57 = vmax.f32 %v5933_v62, 0.0  ;;  %v5957_v56 = vadd.f32 %v14605_v31, %v16107_v6  ;;  %v14977_v61 = vmul.f32 0.125, %v7637_v4  ;;  %v7671_v59 = vrot.slane %v7670_v5, 1  ;;  %v14989_v6 = vpop.f32.mrf.mxu0 }
 0x4b1   : > { %v7662_v19 = vrot.slane %v7661_v3, 2  ;;  %v7696_v38 = vadd.f32 %v7695_v54, %v7694_v8  ;;  %v6490_v17 = vmax.f32 %v5944_v1, 0.0  ;;  %v6488_v58 = vmax.f32 %v5936_v2, 0.0  ;;  %v16110_v2 = vld [vmem:[#allocation26_spill] sm:$0xff] }
 0x4b2   : > { %v7680_v55 = vsel %vm6587_vm2, %v6487_v57, 0.0  ;;  %v6493_v7 = vmax.f32 %v5957_v56, 0.0  ;;  %v7657_v51 = vrot.slane %v7656_v60, 1  ;;  %v7678_v41 = vrot.slane %v7677_v10, 1 }
 0x4b3   : > { %v7663_v28 = vadd.f32 %v7662_v19, %v7661_v3  ;;  %v7681_v36 = vrot.slane %v7680_v55, 4  ;;  %v7701_v26 = vsel %vm6587_vm2, %v6490_v17, 0.0  ;;  %v7687_v30 = vsel %vm6587_vm2, %v6488_v58, 0.0 }
 0x4b4   : > { %v7722_v4 = vsel %vm6587_vm2, %v6493_v7, 0.0  ;;  %v5949_v8 = vadd.f32 %v14605_v31, %v16109_v11  ;;  %v7697_v62 = vrot.slane %v7696_v38, 2  ;;  %v7702_v57 = vrot.slane %v7701_v26, 4 }
 0x4b5   : > { %v7664_v9 = vrot.slane %v7663_v28, 1  ;;  %v7682_v54 = vadd.f32 %v7681_v36, %v7680_v55  ;;  %v7688_v16 = vrot.slane %v7687_v30, 4  ;;  %v7723_v1 = vrot.slane %v7722_v4, 4 }
 0x4b6   : > { %v6491_v25 = vmax.f32 %v5949_v8, 0.0  ;;  %v5960_v3 = vadd.f32 %v14605_v31, %v16110_v2  ;;  %v7672_v56 = vadd.f32 %v7671_v59, %v7670_v5  ;;  %v7703_v58 = vadd.f32 %v7702_v57, %v7701_v26  ;;  %v14995_v2 = vpop.f32.mrf.mxu0 }
 0x4b7   : > { %v7665_v19 = vadd.f32 %v7664_v9, %v7663_v28  ;;  %v7683_v17 = vrot.slane %v7682_v54, 2  ;;  %v7689_v7 = vadd.f32 %v7688_v16, %v7687_v30  ;;  %v7724_v35 = vadd.f32 %v7723_v1, %v7722_v4 }
 0x4b8   : > { %v7708_v11 = vsel %vm6587_vm2, %v6491_v25, 0.0  ;;  %v6494_v12 = vmax.f32 %v5960_v3, 0.0  ;;  %v7658_v21 = vadd.f32 %v7657_v51, %v7656_v60  ;;  %v7679_v55 = vadd.f32 %v7678_v41, %v7677_v10  ;;  %v15009_v16 = vpop.f32.mrf.mxu0 }
 0x4b9   : > { %v7684_v36 = vadd.f32 %v7683_v17, %v7682_v54  ;;  %v7709_v0 = vrot.slane %v7708_v11, 4  ;;  %v14992_v37 = vadd.f32 %v7697_v62, %v7696_v38  ;;  %v7690_v8 = vrot.slane %v7689_v7, 2  ;;  %v16113_v17 = vld [vmem:[#allocation28_spill] sm:$0xff] }
 0x4ba   : > { %v7725_v43 = vrot.slane %v7724_v35, 2  ;;  %v7729_v31 = vsel %vm6587_vm2, %v6494_v12, 0.0  ;;  %v8533_v5 = vmul.f32 0.125, %v7665_v19  ;;  %v7704_v28 = vrot.slane %v7703_v58, 2 }
 0x4bb   : > { %v7685_v59 = vrot.slane %v7684_v36, 1  ;;  %v7710_v26 = vadd.f32 %v7709_v0, %v7708_v11  ;;  %v7691_v30 = vadd.f32 %v7690_v8, %v7689_v7  ;;  %v7730_v4 = vrot.slane %v7729_v31, 4 }
 0x4bc   : > { %v16111_v60 = vrot.slane %v14915_v23, 1  ;;  %v7650_v51 = vrot.slane %v14939_v44, 1  ;;  %v15001_v38 = vmul.f32 0.125, %v7672_v56  ;;  %v8532_v41 = vmul.f32 0.125, %v7658_v21 }
 0x4bd   : > { %v7726_v9 = vadd.f32 %v7725_v43, %v7724_v35  ;;  %v9026_v12 = vsel %vm8894_vm4, %v14925_v29, %v14933_v45  ;;  %v15006_v62 = vmul.f32 0.125, %v7679_v55  ;;  %v7686_v54 = vadd.f32 %v7685_v59, %v7684_v36  ;;  %v15017_v43 = vld [vmem:[%s15810_s6] ss:$0 sm:$0xff] }
 0x4be   : > { %v7644_v10 = vadd.f32 %v16111_v60, %v14915_v23  ;;  %v7731_v0 = vadd.f32 %v7730_v4, %v7729_v31  ;;  %v7651_v57 = vadd.f32 %v7650_v51, %v14939_v44  ;;  %v7699_v23 = vrot.slane %v14992_v37, 1  ;;  %v16112_v29 = vld [vmem:[#allocation25_spill] sm:$0xff]  ;;  %v15034_v31 = vpop.f32.mrf.mxu0 }
 0x4bf   : > { %v7711_v1 = vrot.slane %v7710_v26, 2  ;;  %v9027_v25 = vsel %vm8896_vm5, %v14930_v49, %v9026_v12  ;;  %v5952_v45 = vadd.f32 %v15017_v43, %v16112_v29  ;;  %v15022_v35 = vsel %vm8892_vm3, %v8533_v5, %v8532_v41 }
 0x4c0   : > { %v15024_v44 = vadd.f32 %v7704_v28, %v7703_v58  ;;  %v7692_v21 = vrot.slane %v7691_v30, 1  ;;  %v8530_v3 = vmul.f32 0.125, %v7644_v10  ;;  %v7727_v56 = vrot.slane %v7726_v9, 1 }
 0x4c1   : > { %v9028_v19 = vsel %vm8898_vm6, %v14963_v42, %v9027_v25  ;;  %v6492_v49 = vmax.f32 %v5952_v45, 0.0  ;;  %v5973_v7 = vadd.f32 %v15017_v43, %v16113_v17  ;;  %v15030_v11 = vmul.f32 0.125, %v7686_v54 }
 0x4c2   : > { %v7732_v55 = vrot.slane %v7731_v0, 2  ;;  %v8531_v36 = vmul.f32 0.125, %v7651_v57  ;;  %v9029_v8 = vsel %vm8900_vm7, %v14977_v61, %v9028_v19  ;;  %v7712_v58 = vadd.f32 %v7711_v1, %v7710_v26  ;;  %v15046_v1 = vpop.f32.mrf.mxu0 }
 0x4c3   : > { %v9030_v5 = vsel %vm8902_vm8, %v8530_v3, %v9029_v8  ;;  %v7715_v59 = vsel %vm6587_vm2, %v6492_v49, 0.0  ;;  %v6497_v28 = vmax.f32 %v5973_v7, 0.0  ;;  %v7693_v42 = vadd.f32 %v7692_v21, %v7691_v30 }
 0x4c4   : > { %v9031_v4 = vsel %vm8904_vm9, %v8531_v36, %v9030_v5  ;;  %v7716_v60 = vrot.slane %v7715_v59, 4  ;;  %v5965_v10 = vadd.f32 %v15017_v43, %v14611_v33  ;;  %v7728_v51 = vadd.f32 %v7727_v56, %v7726_v9  ;;  %v15055_v36 = vpop.f32.mrf.mxu0 }
 0x4c5   : > { %9189 = vxpose.xlu1.b32.cont [3/16] (narrow) %v9031_v4, 8  ;;  %v7750_v41 = vsel %vm6587_vm2, %v6497_v28, 0.0  ;;  %v5976_v61 = vadd.f32 %v15017_v43, %v14614_v40  ;;  %v5968_v26 = vadd.f32 %v15017_v43, %v14632_v24  ;;  %v7733_v12 = vadd.f32 %v7732_v55, %v7731_v0 }
 0x4c6   : > { %v7717_v54 = vadd.f32 %v7716_v60, %v7715_v59  ;;  %v7751_v57 = vrot.slane %v7750_v41, 4  ;;  %v6495_v30 = vmax.f32 %v5965_v10, 0.0  ;;  %v5989_v33 = vadd.f32 %v15017_v43, %v14652_v63 }
 0x4c7   : > { %v6498_v25 = vmax.f32 %v5976_v61, 0.0  ;;  %v6496_v29 = vmax.f32 %v5968_v26, 0.0  ;;  %v5981_v9 = vadd.f32 %v15017_v43, %v14670_v15  ;;  %v7713_v45 = vrot.slane %v7712_v58, 1 }
 0x4c8   : > { %v7718_v21 = vrot.slane %v7717_v54, 2  ;;  %v7752_v40 = vadd.f32 %v7751_v57, %v7750_v41  ;;  %v7736_v3 = vsel %vm6587_vm2, %v6495_v30, 0.0  ;;  %v6501_v19 = vmax.f32 %v5989_v33, 0.0 }
 0x4c9   : > { %v7737_v24 = vrot.slane %v7736_v3, 4  ;;  %v7757_v0 = vsel %vm6587_vm2, %v6498_v25, 0.0  ;;  %v7743_v56 = vsel %vm6587_vm2, %v6496_v29, 0.0  ;;  %v7734_v49 = vrot.slane %v7733_v12, 1  ;;  %v15061_v29 = vpop.f32.mrf.mxu0 }
 0x4ca   : > { %v7719_v17 = vadd.f32 %v7718_v21, %v7717_v54  ;;  %v7758_v7 = vrot.slane %v7757_v0, 4  ;;  %v7744_v55 = vrot.slane %v7743_v56, 4  ;;  %v7778_v15 = vsel %vm6587_vm2, %v6501_v19, 0.0 }
 0x4cb   : > { %v7738_v63 = vadd.f32 %v7737_v24, %v7736_v3  ;;  %v6499_v8 = vmax.f32 %v5981_v9, 0.0  ;;  %v5992_v5 = vadd.f32 %v15017_v43, %v14684_v47  ;;  %v7753_v28 = vrot.slane %v7752_v40, 2 }
 0x4cc   : > { %v7720_v59 = vrot.slane %v7719_v17, 1  ;;  %v7759_v4 = vadd.f32 %v7758_v7, %v7757_v0  ;;  %v7745_v60 = vadd.f32 %v7744_v55, %v7743_v56  ;;  %v7779_v41 = vrot.slane %v7778_v15, 4 }
 0x4cd   : > { %v7739_v10 = vrot.slane %v7738_v63, 2  ;;  %v7764_v61 = vsel %vm6587_vm2, %v6499_v8, 0.0  ;;  %v6502_v26 = vmax.f32 %v5992_v5, 0.0  ;;  %v7714_v54 = vadd.f32 %v7713_v45, %v7712_v58 }
 0x4ce   : > { %v7735_v57 = vadd.f32 %v7734_v49, %v7733_v12  ;;  %v7721_v30 = vadd.f32 %v7720_v59, %v7719_v17  ;;  %v7746_v25 = vrot.slane %v7745_v60, 2  ;;  %v7780_v9 = vadd.f32 %v7779_v41, %v7778_v15  ;;  %v15070_v17 = vpop.f32.mrf.mxu0 }
 0x4cf   : > { %v7740_v33 = vadd.f32 %v7739_v10, %v7738_v63  ;;  %v7765_v21 = vrot.slane %v7764_v61, 4  ;;  %v7785_v47 = vsel %vm6587_vm2, %v6502_v26, 0.0  ;;  %v8537_v3 = vmul.f32 0.125, %v7693_v42 }
 0x4d0   : > { %v15064_v24 = vadd.f32 %v7753_v28, %v7752_v40  ;;  %v7760_v0 = vrot.slane %v7759_v4, 2  ;;  %v7786_v56 = vrot.slane %v7785_v47, 4  ;;  %v8541_v19 = vmul.f32 0.125, %v7721_v30 }
 0x4d1   : > { %v7741_v7 = vrot.slane %v7740_v33, 1  ;;  %v7747_v55 = vadd.f32 %v7746_v25, %v7745_v60  ;;  %v7766_v8 = vadd.f32 %v7765_v21, %v7764_v61  ;;  %v7781_v58 = vrot.slane %v7780_v9, 2 }
 0x4d2   : > { %v7787_v12 = vadd.f32 %v7786_v56, %v7785_v47  ;;  %v7700_v45 = vadd.f32 %v7699_v23, %v14992_v37  ;;  %v7706_v49 = vrot.slane %v15024_v44, 1  ;;  %v15072_v63 = vmul.f32 0.125, %v7728_v51 }
 0x4d3   : > { %v8540_v42 = vmul.f32 0.125, %v7714_v54  ;;  %v15074_v40 = vmul.f32 0.125, %v7735_v57  ;;  %v7767_v15 = vrot.slane %v7766_v8, 2  ;;  %v7755_v5 = vrot.slane %v15064_v24, 1 }
 0x4d4   : > { %v7788_v59 = vrot.slane %v7787_v12, 2  ;;  %v7707_v28 = vadd.f32 %v7706_v49, %v15024_v44  ;;  %v9033_v60 = vsel %vm8894_vm4, %v15001_v38, %v15022_v35  ;;  %v7742_v37 = vadd.f32 %v7741_v7, %v7740_v33  ;;  %v15090_v44 = vpop.f32.mrf.mxu0 }
 0x4d5   : > { %v15081_v23 = vadd.f32 %v7760_v0, %v7759_v4  ;;  %v7748_v10 = vrot.slane %v7747_v55, 1  ;;  %v9034_v51 = vsel %vm8896_vm5, %v15006_v62, %v9033_v60  ;;  %v15086_v41 = vsel %vm8892_vm3, %v8541_v19, %v8540_v42 }
 0x4d6   : > { %v7782_v61 = vadd.f32 %v7781_v58, %v7780_v9  ;;  %v8538_v26 = vmul.f32 0.125, %v7700_v45  ;;  %v9035_v54 = vsel %vm8898_vm6, %v15030_v11, %v9034_v51  ;;  %v7768_v57 = vadd.f32 %v7767_v15, %v7766_v8  ;;  %v15105_v19 = vpop.f32.mrf.mxu0 }
 0x4d7   : > { %v8539_v30 = vmul.f32 0.125, %v7707_v28  ;;  %v9036_v38 = vsel %vm8900_vm7, %v8537_v3, %v9035_v54  ;;  %v5984_v35 = vadd.f32 %v15017_v43, %v14700_v50  ;;  %v7789_v4 = vadd.f32 %v7788_v59, %v7787_v12 }
 0x4d8   : > { %v9037_v62 = vsel %vm8902_vm8, %v8538_v26, %v9036_v38  ;;  %v6005_v25 = vadd.f32 %v15017_v43, %v14716_v13  ;;  %v5997_v33 = vadd.f32 %v15017_v43, %v14720_v32  ;;  %v15100_v9 = vmul.f32 0.125, %v7742_v37  ;;  %v15118_v37 = vpop.f32.mrf.mxu0 }
 0x4d9   : > { %v7749_v11 = vadd.f32 %v7748_v10, %v7747_v55  ;;  %v9038_v21 = vsel %vm8904_vm9, %v8539_v30, %v9037_v62  ;;  %v6500_v47 = vmax.f32 %v5984_v35, 0.0  ;;  %v7783_v0 = vrot.slane %v7782_v61, 1 }
 0x4da   : > { %9190 = vxpose.xlu1.b32.cont [4/16] (narrow) %v9038_v21, 8  ;;  %v6505_v3 = vmax.f32 %v6005_v25, 0.0  ;;  %v6503_v56 = vmax.f32 %v5997_v33, 0.0  ;;  %v6008_v50 = vadd.f32 %v15017_v43, %v14747_v46  ;;  %v7769_v7 = vrot.slane %v7768_v57, 1 }
 0x4db   : > { %v7771_v13 = vsel %vm6587_vm2, %v6500_v47, 0.0  ;;  %v6000_v32 = vadd.f32 %v15017_v43, %v14763_v52  ;;  %v6021_v55 = vadd.f32 %v15017_v43, %v14779_v48  ;;  %v7790_v8 = vrot.slane %v7789_v4, 1 }
 0x4dc   : > { %v7772_v58 = vrot.slane %v7771_v13, 4  ;;  %v7806_v12 = vsel %vm6587_vm2, %v6505_v3, 0.0  ;;  %v7792_v45 = vsel %vm6587_vm2, %v6503_v56, 0.0  ;;  %v6506_v46 = vmax.f32 %v6008_v50, 0.0  ;;  %v15123_v56 = vpop.f32.mrf.mxu0 }
 0x4dd   : > { %v7807_v49 = vrot.slane %v7806_v12, 4  ;;  %v7793_v42 = vrot.slane %v7792_v45, 4  ;;  %v6504_v15 = vmax.f32 %v6000_v32, 0.0  ;;  %v6509_v28 = vmax.f32 %v6021_v55, 0.0 }
 0x4de   : > { %v7773_v59 = vadd.f32 %v7772_v58, %v7771_v13  ;;  %v6013_v60 = vadd.f32 %v15017_v43, %v14794_v39  ;;  %v6024_v52 = vadd.f32 %v15017_v43, %v14810_v22  ;;  %v7813_v51 = vsel %vm6587_vm2, %v6506_v46, 0.0 }
 0x4df   : > { %v7808_v48 = vadd.f32 %v7807_v49, %v7806_v12  ;;  %v7794_v10 = vadd.f32 %v7793_v42, %v7792_v45  ;;  %v7799_v26 = vsel %vm6587_vm2, %v6504_v15, 0.0  ;;  %v7814_v30 = vrot.slane %v7813_v51, 4 }
 0x4e0   : > { %v7774_v54 = vrot.slane %v7773_v59, 2  ;;  %v7800_v38 = vrot.slane %v7799_v26, 4  ;;  %v7834_v35 = vsel %vm6587_vm2, %v6509_v28, 0.0  ;;  %v6507_v39 = vmax.f32 %v6013_v60, 0.0 }
 0x4e1   : > { %v7809_v62 = vrot.slane %v7808_v48, 2  ;;  %v7795_v25 = vrot.slane %v7794_v10, 2  ;;  %v7835_v33 = vrot.slane %v7834_v35, 4  ;;  %v7815_v47 = vadd.f32 %v7814_v30, %v7813_v51 }
 0x4e2   : > { %v7775_v21 = vadd.f32 %v7774_v54, %v7773_v59  ;;  %v7801_v22 = vadd.f32 %v7800_v38, %v7799_v26  ;;  %v6510_v3 = vmax.f32 %v6024_v52, 0.0  ;;  %v7784_v50 = vadd.f32 %v7783_v0, %v7782_v61  ;;  %v15129_v26 = vpop.f32.mrf.mxu0 }
 0x4e3   : > { %v7796_v13 = vadd.f32 %v7795_v25, %v7794_v10  ;;  %v7836_v32 = vadd.f32 %v7835_v33, %v7834_v35  ;;  %v7820_v55 = vsel %vm6587_vm2, %v6507_v39, 0.0  ;;  %v7770_v58 = vadd.f32 %v7769_v7, %v7768_v57 }
 0x4e4   : > { %v7776_v12 = vrot.slane %v7775_v21, 1  ;;  %v7802_v45 = vrot.slane %v7801_v22, 2  ;;  %v7821_v49 = vrot.slane %v7820_v55, 4  ;;  %v7791_v42 = vadd.f32 %v7790_v8, %v7789_v4  ;;  %v15143_v39 = vpop.f32.mrf.mxu0 }
 0x4e5   : > { %v7797_v46 = vrot.slane %v7796_v13, 1  ;;  %v7837_v15 = vrot.slane %v7836_v32, 2  ;;  %v7841_v28 = vsel %vm6587_vm2, %v6510_v3, 0.0  ;;  %v15127_v60 = vadd.f32 %v7809_v62, %v7808_v48 }
 0x4e6   : > { %v7777_v59 = vadd.f32 %v7776_v12, %v7775_v21  ;;  %v7816_v52 = vrot.slane %v7815_v47, 2  ;;  %v7803_v51 = vadd.f32 %v7802_v45, %v7801_v22  ;;  %v8545_v61 = vmul.f32 0.125, %v7749_v11  ;;  %v15166_v45 = vpop.f32.mrf.mxu0 }
 0x4e7   : > { %v7798_v0 = vadd.f32 %v7797_v46, %v7796_v13  ;;  %v7822_v10 = vadd.f32 %v7821_v49, %v7820_v55  ;;  %v7842_v54 = vrot.slane %v7841_v28, 4  ;;  %v7838_v7 = vadd.f32 %v7837_v15, %v7836_v32 }
 0x4e8   : > { %v8549_v57 = vmul.f32 0.125, %v7777_v59  ;;  %v7756_v4 = vadd.f32 %v7755_v5, %v15064_v24  ;;  %v7762_v8 = vrot.slane %v15081_v23, 1  ;;  %v15135_v30 = vmul.f32 0.125, %v7784_v50 }
 0x4e9   : > { %v8548_v48 = vmul.f32 0.125, %v7770_v58  ;;  %v7804_v38 = vrot.slane %v7803_v51, 1  ;;  %v7843_v35 = vadd.f32 %v7842_v54, %v7841_v28  ;;  %v15137_v62 = vmul.f32 0.125, %v7791_v42  ;;  %v16114_v54 = vld [vmem:[#allocation27_spill] sm:$0xff] }
 0x4ea   : > { %v7811_v11 = vrot.slane %v15127_v60, 1  ;;  %v15140_v25 = vadd.f32 %v7816_v52, %v7815_v47  ;;  %v7763_v33 = vadd.f32 %v7762_v8, %v15081_v23  ;;  %v15145_v21 = vmul.f32 0.125, %v7798_v0 }
 0x4eb   : > { %v7823_v24 = vrot.slane %v7822_v10, 2  ;;  %v9040_v5 = vsel %vm8894_vm4, %v15072_v63, %v15086_v41  ;;  %v6016_v22 = vadd.f32 %v15017_v43, %v14818_v34  ;;  %v15153_v3 = vsel %vm8892_vm3, %v8549_v57, %v8548_v48  ;;  %v15180_v57 = vpop.f32.mrf.mxu0 }
 0x4ec   : > { %v7839_v50 = vrot.slane %v7838_v7, 1  ;;  %v8546_v47 = vmul.f32 0.125, %v7756_v4  ;;  %v9041_v23 = vsel %vm8896_vm5, %v15074_v40, %v9040_v5  ;;  %v15157_v13 = vadd.f32 %v7804_v38, %v7803_v51 }
 0x4ed   : > { %v7844_v32 = vrot.slane %v7843_v35, 2  ;;  %v9042_v55 = vsel %vm8898_vm6, %v15100_v9, %v9041_v23  ;;  %v6508_v58 = vmax.f32 %v6016_v22, 0.0  ;;  %v8547_v12 = vmul.f32 0.125, %v7763_v33 }
 0x4ee   : > { %v9043_v63 = vsel %vm8900_vm7, %v8545_v61, %v9042_v55  ;;  %v6037_v34 = vadd.f32 %v15017_v43, %v14828_v18  ;;  %v6029_v41 = vadd.f32 %v15017_v43, %v14848_v53  ;;  %v7824_v49 = vadd.f32 %v7823_v24, %v7822_v10 }
 0x4ef   : > { %v9044_v40 = vsel %vm8902_vm8, %v8546_v47, %v9043_v63  ;;  %v7827_v42 = vsel %vm6587_vm2, %v6508_v58, 0.0  ;;  %v6040_v9 = vadd.f32 %v15017_v43, %v14864_v27  ;;  %v7840_v46 = vadd.f32 %v7839_v50, %v7838_v7  ;;  %v16115_v50 = vld [vmem:[#allocation30_spill] sm:$0xff]  ;;  %v15187_v58 = vpop.f32.mrf.mxu0 }
 0x4f0   : > { %v9045_v15 = vsel %vm8904_vm9, %v8547_v12, %v9044_v40  ;;  %v7828_v28 = vrot.slane %v7827_v42, 4  ;;  %v6513_v59 = vmax.f32 %v6037_v34, 0.0  ;;  %v7845_v52 = vadd.f32 %v7844_v32, %v7843_v35 }
 0x4f1   : > { %9191 = vxpose.xlu1.b32.cont [5/16] (narrow) %v9045_v15, 8  ;;  %v6511_v18 = vmax.f32 %v6029_v41, 0.0  ;;  %v6514_v51 = vmax.f32 %v6040_v9, 0.0  ;;  %v6032_v53 = vadd.f32 %v15017_v43, %v14878_v20  ;;  %v6053_v10 = vadd.f32 %v15017_v43, %v14890_v14 }
 0x4f2   : > { %v7829_v61 = vadd.f32 %v7828_v28, %v7827_v42  ;;  %v7862_v0 = vsel %vm6587_vm2, %v6513_v59, 0.0  ;;  %v6045_v27 = vadd.f32 %v15017_v43, %v16114_v54  ;;  %v7825_v7 = vrot.slane %v7824_v49, 1  ;;  %v15191_v54 = vpop.f32.mrf.mxu0 }
 0x4f3   : > { %v7863_v4 = vrot.slane %v7862_v0, 4  ;;  %v7848_v8 = vsel %vm6587_vm2, %v6511_v18, 0.0  ;;  %v7869_v48 = vsel %vm6587_vm2, %v6514_v51, 0.0  ;;  %v6512_v33 = vmax.f32 %v6032_v53, 0.0 }
 0x4f4   : > { %v7830_v38 = vrot.slane %v7829_v61, 2  ;;  %v7849_v35 = vrot.slane %v7848_v8, 4  ;;  %v7870_v20 = vrot.slane %v7869_v48, 4  ;;  %v6517_v5 = vmax.f32 %v6053_v10, 0.0 }
 0x4f5   : > { %v7864_v24 = vadd.f32 %v7863_v4, %v7862_v0  ;;  %v6515_v22 = vmax.f32 %v6045_v27, 0.0  ;;  %v6056_v14 = vadd.f32 %v15017_v43, %v16115_v50  ;;  %v7846_v47 = vrot.slane %v7845_v52, 1 }
 0x4f6   : > { %v7831_v23 = vadd.f32 %v7830_v38, %v7829_v61  ;;  %v7850_v32 = vadd.f32 %v7849_v35, %v7848_v8  ;;  %v7855_v55 = vsel %vm6587_vm2, %v6512_v33, 0.0  ;;  %v7871_v12 = vadd.f32 %v7870_v20, %v7869_v48 }
 0x4f7   : > { %v7856_v63 = vrot.slane %v7855_v55, 4  ;;  %v7890_v34 = vsel %vm6587_vm2, %v6517_v5, 0.0  ;;  %v7876_v41 = vsel %vm6587_vm2, %v6515_v22, 0.0  ;;  %v7865_v42 = vrot.slane %v7864_v24, 2 }
 0x4f8   : > { %v7832_v40 = vrot.slane %v7831_v23, 1  ;;  %v7851_v9 = vrot.slane %v7850_v32, 2  ;;  %v7891_v15 = vrot.slane %v7890_v34, 4  ;;  %v7826_v28 = vadd.f32 %v7825_v7, %v7824_v49 }
 0x4f9   : > { %v7857_v59 = vadd.f32 %v7856_v63, %v7855_v55  ;;  %v7877_v18 = vrot.slane %v7876_v41, 4  ;;  %v6518_v51 = vmax.f32 %v6056_v14, 0.0  ;;  %v7847_v53 = vadd.f32 %v7846_v47, %v7845_v52 }
 0x4fa   : > { %v7833_v61 = vadd.f32 %v7832_v40, %v7831_v23  ;;  %v7852_v0 = vadd.f32 %v7851_v9, %v7850_v32  ;;  %v7892_v10 = vadd.f32 %v7891_v15, %v7890_v34  ;;  %v7872_v27 = vrot.slane %v7871_v12, 2  ;;  %v15203_v23 = vpop.f32.mrf.mxu0 }
 0x4fb   : > { %v7858_v4 = vrot.slane %v7857_v59, 2  ;;  %v7878_v8 = vadd.f32 %v7877_v18, %v7876_v41  ;;  %v7897_v48 = vsel %vm6587_vm2, %v6518_v51, 0.0  ;;  %v15194_v38 = vadd.f32 %v7865_v42, %v7864_v24  ;;  %v16117_v51 = vld [vmem:[#allocation32_spill] sm:$0xff] }
 0x4fc   : > { %v7853_v35 = vrot.slane %v7852_v0, 1  ;;  %v7893_v20 = vrot.slane %v7892_v10, 2  ;;  %v7898_v33 = vrot.slane %v7897_v48, 4  ;;  %v8557_v49 = vmul.f32 0.125, %v7833_v61 }
 0x4fd   : > { %v7859_v7 = vadd.f32 %v7858_v4, %v7857_v59  ;;  %v7879_v5 = vrot.slane %v7878_v8, 2  ;;  %v7818_v52 = vrot.slane %v15140_v25, 1  ;;  %v8553_v22 = vmul.f32 0.125, %v15157_v13  ;;  %v15223_v59 = vpop.f32.mrf.mxu0 }
 0x4fe   : > { %v15198_v50 = vmul.f32 0.125, %v7840_v46  ;;  %v7894_v14 = vadd.f32 %v7893_v20, %v7892_v10  ;;  %v7812_v47 = vadd.f32 %v7811_v11, %v15127_v60  ;;  %v8556_v24 = vmul.f32 0.125, %v7826_v28 }
 0x4ff   : > { %v15205_v32 = vmul.f32 0.125, %v7847_v53  ;;  %v7854_v55 = vadd.f32 %v7853_v35, %v7852_v0  ;;  %v7819_v63 = vadd.f32 %v7818_v52, %v15140_v25  ;;  %v15208_v34 = vadd.f32 %v7872_v27, %v7871_v12  ;;  %v16116_v12 = vld [vmem:[#allocation29_spill] sm:$0xff]  ;;  %v15239_v52 = vpop.f32.mrf.mxu0 }
 0x500   : > { %v7860_v41 = vrot.slane %v7859_v7, 1  ;;  %v7899_v40 = vadd.f32 %v7898_v33, %v7897_v48  ;;  %v9047_v13 = vsel %vm8894_vm4, %v15135_v30, %v15153_v3  ;;  %v15214_v46 = vsel %vm8892_vm3, %v8557_v49, %v8556_v24  ;;  %v16119_v33 = vld [vmem:[#allocation34_spill] sm:$0xff] }
 0x501   : > { %v7867_v60 = vrot.slane %v15194_v38, 1  ;;  %v7880_v11 = vadd.f32 %v7879_v5, %v7878_v8  ;;  %v9048_v42 = vsel %vm8896_vm5, %v15137_v62, %v9047_v13  ;;  %v7895_v9 = vrot.slane %v7894_v14, 1  ;;  %v16118_v8 = vld [vmem:[#allocation31_spill] sm:$0xff]  ;;  %v16120_v5 = vld [vmem:[#allocation33_spill] sm:$0xff] }
 0x502   : > { %v8554_v15 = vmul.f32 0.125, %v7812_v47  ;;  %v9049_v25 = vsel %vm8898_vm6, %v15145_v21, %v9048_v42  ;;  %v6048_v28 = vadd.f32 %v15017_v43, %v16116_v12  ;;  %v15225_v30 = vmul.f32 0.125, %v7854_v55 }
 0x503   : > { %v8555_v3 = vmul.f32 0.125, %v7819_v63  ;;  %v9050_v18 = vsel %vm8900_vm7, %v8553_v22, %v9049_v25  ;;  %v6069_v53 = vadd.f32 %v15017_v43, %v16117_v51  ;;  %v7861_v61 = vadd.f32 %v7860_v41, %v7859_v7  ;;  %v15249_v51 = vpop.f32.mrf.mxu0 }
 0x504   : > { %v7900_v62 = vrot.slane %v7899_v40, 2  ;;  %v9051_v0 = vsel %vm8902_vm8, %v8554_v15, %v9050_v18  ;;  %v6516_v10 = vmax.f32 %v6048_v28, 0.0  ;;  %v7881_v27 = vrot.slane %v7880_v11, 1 }
 0x505   : > { %v9052_v21 = vsel %vm8904_vm9, %v8555_v3, %v9051_v0  ;;  %v6521_v4 = vmax.f32 %v6069_v53, 0.0  ;;  %v6061_v48 = vadd.f32 %v15017_v43, %v16118_v8  ;;  %v7896_v35 = vadd.f32 %v7895_v9, %v7894_v14 }
 0x506   : > { %9192 = vxpose.xlu1.b32.cont [6/16] (narrow) %v9052_v21, 8  ;;  %v7883_v20 = vsel %vm6587_vm2, %v6516_v10, 0.0  ;;  %v6072_v49 = vadd.f32 %v15017_v43, %v16119_v33  ;;  %v6064_v7 = vadd.f32 %v15017_v43, %v16120_v5  ;;  %v6085_v55 = vadd.f32 %v15017_v43, %v14989_v6 }
 0x507   : > { %v7884_v22 = vrot.slane %v7883_v20, 4  ;;  %v7918_v47 = vsel %vm6587_vm2, %v6521_v4, 0.0  ;;  %v6519_v24 = vmax.f32 %v6061_v48, 0.0  ;;  %v7901_v63 = vadd.f32 %v7900_v62, %v7899_v40 }
 0x508   : > { %v7919_v14 = vrot.slane %v7918_v47, 4  ;;  %v6522_v41 = vmax.f32 %v6072_v49, 0.0  ;;  %v6520_v13 = vmax.f32 %v6064_v7, 0.0  ;;  %v6525_v15 = vmax.f32 %v6085_v55, 0.0 }
 0x509   : > { %v7885_v42 = vadd.f32 %v7884_v22, %v7883_v20  ;;  %v7904_v9 = vsel %vm6587_vm2, %v6519_v24, 0.0  ;;  %v6077_v25 = vadd.f32 %v15017_v43, %v14995_v2  ;;  %v7902_v0 = vrot.slane %v7901_v63, 1  ;;  %v15255_v22 = vpop.f32.mrf.mxu0 }
 0x50a   : > { %v7920_v12 = vadd.f32 %v7919_v14, %v7918_v47  ;;  %v7905_v28 = vrot.slane %v7904_v9, 4  ;;  %v7925_v3 = vsel %vm6587_vm2, %v6522_v41, 0.0  ;;  %v7911_v18 = vsel %vm6587_vm2, %v6520_v13, 0.0 }
 0x50b   : > { %v7886_v6 = vrot.slane %v7885_v42, 2  ;;  %v7926_v40 = vrot.slane %v7925_v3, 4  ;;  %v7912_v53 = vrot.slane %v7911_v18, 4  ;;  %v7946_v62 = vsel %vm6587_vm2, %v6525_v15, 0.0 }
 0x50c   : > { %v7906_v10 = vadd.f32 %v7905_v28, %v7904_v9  ;;  %v7947_v21 = vrot.slane %v7946_v62, 4  ;;  %v6523_v4 = vmax.f32 %v6077_v25, 0.0  ;;  %v7921_v48 = vrot.slane %v7920_v12, 2 }
 0x50d   : > { %v7887_v8 = vadd.f32 %v7886_v6, %v7885_v42  ;;  %v7913_v2 = vadd.f32 %v7912_v53, %v7911_v18  ;;  %v6088_v20 = vadd.f32 %v15017_v43, %v15009_v16  ;;  %v7927_v49 = vadd.f32 %v7926_v40, %v7925_v3  ;;  %v15260_v53 = vpop.f32.mrf.mxu0 }
 0x50e   : > { %v7907_v33 = vrot.slane %v7906_v10, 2  ;;  %v7948_v5 = vadd.f32 %v7947_v21, %v7946_v62  ;;  %v7932_v7 = vsel %vm6587_vm2, %v6523_v4, 0.0  ;;  %v7882_v47 = vadd.f32 %v7881_v27, %v7880_v11 }
 0x50f   : > { %v7888_v24 = vrot.slane %v7887_v8, 1  ;;  %v7914_v55 = vrot.slane %v7913_v2, 2  ;;  %v7933_v14 = vrot.slane %v7932_v7, 4  ;;  %v7903_v41 = vadd.f32 %v7902_v0, %v7901_v63 }
 0x510   : > { %v7908_v13 = vadd.f32 %v7907_v33, %v7906_v10  ;;  %v7949_v9 = vrot.slane %v7948_v5, 2  ;;  %v6526_v42 = vmax.f32 %v6088_v20, 0.0  ;;  %v15257_v25 = vadd.f32 %v7921_v48, %v7920_v12 }
 0x511   : > { %v7889_v15 = vadd.f32 %v7888_v24, %v7887_v8  ;;  %v7915_v28 = vadd.f32 %v7914_v55, %v7913_v2  ;;  %v7934_v16 = vadd.f32 %v7933_v14, %v7932_v7  ;;  %v8561_v18 = vmul.f32 0.125, %v7861_v61 }
 0x512   : > { %v7909_v3 = vrot.slane %v7908_v13, 1  ;;  %v7928_v6 = vrot.slane %v7927_v49, 2  ;;  %v7953_v40 = vsel %vm6587_vm2, %v6526_v42, 0.0  ;;  %v7950_v27 = vadd.f32 %v7949_v9, %v7948_v5 }
 0x513   : > { %v8565_v11 = vmul.f32 0.125, %v7889_v15  ;;  %v7954_v62 = vrot.slane %v7953_v40, 4  ;;  %v7868_v63 = vadd.f32 %v7867_v60, %v15194_v38  ;;  %v15265_v0 = vmul.f32 0.125, %v7896_v35  ;;  %v15277_v60 = vpop.f32.mrf.mxu0 }
 0x514   : > { %v7916_v12 = vrot.slane %v7915_v28, 1  ;;  %v7935_v10 = vrot.slane %v7934_v16, 2  ;;  %v7874_v21 = vrot.slane %v15208_v34, 1  ;;  %v8564_v61 = vmul.f32 0.125, %v7882_v47 }
 0x515   : > { %v15268_v4 = vmul.f32 0.125, %v7903_v41  ;;  %v7923_v8 = vrot.slane %v15257_v25, 1  ;;  %v7955_v48 = vadd.f32 %v7954_v62, %v7953_v40  ;;  %v7910_v2 = vadd.f32 %v7909_v3, %v7908_v13 }
 0x516   : > { %v15271_v20 = vadd.f32 %v7928_v6, %v7927_v49  ;;  %v7875_v33 = vadd.f32 %v7874_v21, %v15208_v34  ;;  %v9054_v38 = vsel %vm8894_vm4, %v15198_v50, %v15214_v46  ;;  %v15280_v35 = vsel %vm8892_vm3, %v8565_v11, %v8564_v61 }
 0x517   : > { %v7951_v5 = vrot.slane %v7950_v27, 1  ;;  %v8562_v7 = vmul.f32 0.125, %v7868_v63  ;;  %v9055_v47 = vsel %vm8896_vm5, %v15205_v32, %v9054_v38  ;;  %v15284_v24 = vadd.f32 %v7916_v12, %v7915_v28 }
 0x518   : > { %v7936_v49 = vadd.f32 %v7935_v10, %v7934_v16  ;;  %v9056_v34 = vsel %vm8898_vm6, %v15225_v30, %v9055_v47  ;;  %v6080_v55 = vadd.f32 %v15017_v43, %v15034_v31  ;;  %v7956_v50 = vrot.slane %v7955_v48, 2  ;;  %v15298_v30 = vpop.f32.mrf.mxu0 }
 0x519   : > { %v8563_v46 = vmul.f32 0.125, %v7875_v33  ;;  %v9057_v14 = vsel %vm8900_vm7, %v8561_v18, %v9056_v34  ;;  %v6101_v41 = vadd.f32 %v15017_v43, %v15046_v1  ;;  %v6093_v32 = vadd.f32 %v15017_v43, %v15055_v36 }
 0x51a   : > { %v9058_v13 = vsel %vm8902_vm8, %v8562_v7, %v9057_v14  ;;  %v6524_v9 = vmax.f32 %v6080_v55, 0.0  ;;  %v6104_v42 = vadd.f32 %v15017_v43, %v15061_v29  ;;  %v15300_v15 = vmul.f32 0.125, %v7910_v2  ;;  %v15311_v10 = vpop.f32.mrf.mxu0 }
 0x51b   : > { %v7952_v31 = vadd.f32 %v7951_v5, %v7950_v27  ;;  %v9059_v28 = vsel %vm8904_vm9, %v8563_v46, %v9058_v13  ;;  %v6529_v16 = vmax.f32 %v6101_v41, 0.0  ;;  %v6527_v18 = vmax.f32 %v6093_v32, 0.0 }
 0x51c   : > { %9193 = vxpose.xlu1.b32.cont [7/16] (narrow) %v9059_v28, 8  ;;  %v7939_v1 = vsel %vm6587_vm2, %v6524_v9, 0.0  ;;  %v6530_v3 = vmax.f32 %v6104_v42, 0.0  ;;  %v6096_v6 = vadd.f32 %v15017_v43, %v15070_v17  ;;  %v7957_v36 = vadd.f32 %v7956_v50, %v7955_v48  ;;  %v15319_v41 = vpop.f32.mrf.mxu0 }
 0x51d   : > { %v7940_v40 = vrot.slane %v7939_v1, 4  ;;  %v7974_v29 = vsel %vm6587_vm2, %v6529_v16, 0.0  ;;  %v6117_v11 = vadd.f32 %v15017_v43, %v15090_v44  ;;  %v7960_v27 = vsel %vm6587_vm2, %v6527_v18, 0.0 }
 0x51e   : > { %v7975_v62 = vrot.slane %v7974_v29, 4  ;;  %v7981_v63 = vsel %vm6587_vm2, %v6530_v3, 0.0  ;;  %v6528_v12 = vmax.f32 %v6096_v6, 0.0  ;;  %v7937_v21 = vrot.slane %v7936_v49, 1 }
 0x51f   : > { %v7941_v61 = vadd.f32 %v7940_v40, %v7939_v1  ;;  %v7961_v2 = vrot.slane %v7960_v27, 4  ;;  %v7982_v33 = vrot.slane %v7981_v63, 4  ;;  %v6533_v38 = vmax.f32 %v6117_v11, 0.0 }
 0x520   : > { %v7976_v17 = vadd.f32 %v7975_v62, %v7974_v29  ;;  %v7967_v48 = vsel %vm6587_vm2, %v6528_v12, 0.0  ;;  %v6109_v5 = vadd.f32 %v15017_v43, %v15105_v19  ;;  %v7958_v44 = vrot.slane %v7957_v36, 1 }
 0x521   : > { %v7942_v7 = vrot.slane %v7941_v61, 2  ;;  %v7962_v47 = vadd.f32 %v7961_v2, %v7960_v27  ;;  %v7968_v34 = vrot.slane %v7967_v48, 4  ;;  %v7983_v55 = vadd.f32 %v7982_v33, %v7981_v63  ;;  %v15323_v27 = vpop.f32.mrf.mxu0 }
 0x522   : > { %v8002_v50 = vsel %vm6587_vm2, %v6533_v38, 0.0  ;;  %v6531_v46 = vmax.f32 %v6109_v5, 0.0  ;;  %v6120_v14 = vadd.f32 %v15017_v43, %v15118_v37  ;;  %v7977_v9 = vrot.slane %v7976_v17, 2 }
 0x523   : > { %v7943_v13 = vadd.f32 %v7942_v7, %v7941_v61  ;;  %v7963_v32 = vrot.slane %v7962_v47, 2  ;;  %v7969_v42 = vadd.f32 %v7968_v34, %v7967_v48  ;;  %v7938_v28 = vadd.f32 %v7937_v21, %v7936_v49 }
 0x524   : > { %v8003_v16 = vrot.slane %v8002_v50, 4  ;;  %v7988_v19 = vsel %vm6587_vm2, %v6531_v46, 0.0  ;;  %v6534_v1 = vmax.f32 %v6120_v14, 0.0  ;;  %v7959_v18 = vadd.f32 %v7958_v44, %v7957_v36 }
 0x525   : > { %v7944_v3 = vrot.slane %v7943_v13, 1  ;;  %v7964_v6 = vadd.f32 %v7963_v32, %v7962_v47  ;;  %v7970_v40 = vrot.slane %v7969_v42, 2  ;;  %v7984_v29 = vrot.slane %v7983_v55, 2 }
 0x526   : > { %v8004_v11 = vadd.f32 %v8003_v16, %v8002_v50  ;;  %v7989_v62 = vrot.slane %v7988_v19, 4  ;;  %v8009_v37 = vsel %vm6587_vm2, %v6534_v1, 0.0  ;;  %v15325_v12 = vadd.f32 %v7977_v9, %v7976_v17  ;;  %v15335_v50 = vpop.f32.mrf.mxu0 }
 0x527   : > { %v7945_v63 = vadd.f32 %v7944_v3, %v7943_v13  ;;  %v7965_v61 = vrot.slane %v7964_v6, 1  ;;  %v8010_v49 = vrot.slane %v8009_v37, 4  ;;  %v7971_v21 = vadd.f32 %v7970_v40, %v7969_v42 }
 0x528   : > { %v8005_v2 = vrot.slane %v8004_v11, 2  ;;  %v7990_v33 = vadd.f32 %v7989_v62, %v7988_v19  ;;  %v7930_v36 = vrot.slane %v15271_v20, 1  ;;  %v8569_v48 = vmul.f32 0.125, %v15284_v24 }
 0x529   : > { %v15329_v38 = vmul.f32 0.125, %v7952_v31  ;;  %v8011_v5 = vadd.f32 %v8010_v49, %v8009_v37  ;;  %v7924_v44 = vadd.f32 %v7923_v8, %v15257_v25  ;;  %v8572_v7 = vmul.f32 0.125, %v7938_v28 }
 0x52a   : > { %v8006_v47 = vadd.f32 %v8005_v2, %v8004_v11  ;;  %v7991_v17 = vrot.slane %v7990_v33, 2  ;;  %v7931_v34 = vadd.f32 %v7930_v36, %v15271_v20  ;;  %v15337_v46 = vmul.f32 0.125, %v7959_v18  ;;  %v15355_v18 = vpop.f32.mrf.mxu0 }
 0x52b   : > { %v7979_v14 = vrot.slane %v15325_v12, 1  ;;  %v15340_v13 = vadd.f32 %v7984_v29, %v7983_v55  ;;  %v8012_v24 = vrot.slane %v8011_v5, 2  ;;  %v8573_v31 = vmul.f32 0.125, %v7945_v63 }
 0x52c   : > { %v15342_v9 = vadd.f32 %v7965_v61, %v7964_v6  ;;  %v7972_v32 = vrot.slane %v7971_v21, 1  ;;  %v9061_v25 = vsel %vm8894_vm4, %v15265_v0, %v15280_v35  ;;  %v8007_v8 = vrot.slane %v8006_v47, 1  ;;  %v15369_v49 = vpop.f32.mrf.mxu0 }
 0x52d   : > { %v8570_v42 = vmul.f32 0.125, %v7924_v44  ;;  %v9062_v20 = vsel %vm8896_vm5, %v15268_v4, %v9061_v25  ;;  %v6112_v28 = vadd.f32 %v15017_v43, %v15123_v56  ;;  %v7992_v16 = vadd.f32 %v7991_v17, %v7990_v33 }
 0x52e   : > { %v8571_v55 = vmul.f32 0.125, %v7931_v34  ;;  %v9063_v19 = vsel %vm8898_vm6, %v15300_v15, %v9062_v20  ;;  %v6133_v1 = vadd.f32 %v15017_v43, %v15129_v26  ;;  %v8013_v3 = vadd.f32 %v8012_v24, %v8011_v5 }
 0x52f   : > { %v9064_v0 = vsel %vm8900_vm7, %v8569_v48, %v9063_v19  ;;  %v6532_v35 = vmax.f32 %v6112_v28, 0.0  ;;  %v6125_v4 = vadd.f32 %v15017_v43, %v15143_v39  ;;  %v15361_v6 = vsel %vm8892_vm3, %v8573_v31, %v8572_v7 }
 0x530   : > { %v7973_v56 = vadd.f32 %v7972_v32, %v7971_v21  ;;  %v9065_v40 = vsel %vm8902_vm8, %v8570_v42, %v9064_v0  ;;  %v6537_v29 = vmax.f32 %v6133_v1, 0.0  ;;  %v8008_v15 = vadd.f32 %v8007_v8, %v8006_v47 }
 0x531   : > { %v9066_v11 = vsel %vm8904_vm9, %v8571_v55, %v9065_v40  ;;  %v7995_v26 = vsel %vm6587_vm2, %v6532_v35, 0.0  ;;  %v6535_v62 = vmax.f32 %v6125_v4, 0.0  ;;  %v7993_v37 = vrot.slane %v7992_v16, 1 }
 0x532   : > { %9194 = vxpose.xlu1.b32.cont [8/16] (narrow) %v9066_v11, 8  ;;  %v7996_v63 = vrot.slane %v7995_v26, 4  ;;  %v8030_v61 = vsel %vm6587_vm2, %v6537_v29, 0.0  ;;  %v6136_v39 = vadd.f32 %v15017_v43, %v15166_v45  ;;  %v8014_v21 = vrot.slane %v8013_v3, 1 }
 0x533   : > { %v8031_v2 = vrot.slane %v8030_v61, 4  ;;  %v8016_v33 = vsel %vm6587_vm2, %v6535_v62, 0.0  ;;  %v6128_v36 = vadd.f32 %v15017_v43, %v15180_v57  ;;  %v6149_v7 = vadd.f32 %v15017_v43, %v15187_v58  ;;  %v15381_v57 = vpop.f32.mrf.mxu0 }
 0x534   : > { %v7997_v48 = vadd.f32 %v7996_v63, %v7995_v26  ;;  %v8017_v5 = vrot.slane %v8016_v33, 4  ;;  %v6538_v44 = vmax.f32 %v6136_v39, 0.0  ;;  %v6141_v45 = vadd.f32 %v15017_v43, %v15191_v54 }
 0x535   : > { %v8032_v47 = vadd.f32 %v8031_v2, %v8030_v61  ;;  %v6536_v17 = vmax.f32 %v6128_v36, 0.0  ;;  %v6152_v34 = vadd.f32 %v15017_v43, %v15203_v23  ;;  %v6541_v25 = vmax.f32 %v6149_v7, 0.0  ;;  %v15386_v11 = vpop.f32.mrf.mxu0 }
 0x536   : > { %v7998_v24 = vrot.slane %v7997_v48, 2  ;;  %v8018_v31 = vadd.f32 %v8017_v5, %v8016_v33  ;;  %v8037_v32 = vsel %vm6587_vm2, %v6538_v44, 0.0  ;;  %v6539_v58 = vmax.f32 %v6141_v45, 0.0 }
 0x537   : > { %v8033_v8 = vrot.slane %v8032_v47, 2  ;;  %v8038_v42 = vrot.slane %v8037_v32, 4  ;;  %v8023_v20 = vsel %vm6587_vm2, %v6536_v17, 0.0  ;;  %v8058_v54 = vsel %vm6587_vm2, %v6541_v25, 0.0 }
 0x538   : > { %v7999_v28 = vadd.f32 %v7998_v24, %v7997_v48  ;;  %v8019_v55 = vrot.slane %v8018_v31, 2  ;;  %v8024_v19 = vrot.slane %v8023_v20, 4  ;;  %v7994_v1 = vadd.f32 %v7993_v37, %v7992_v16 }
 0x539   : > { %v8039_v0 = vadd.f32 %v8038_v42, %v8037_v32  ;;  %v8059_v43 = vrot.slane %v8058_v54, 4  ;;  %v8044_v23 = vsel %vm6587_vm2, %v6539_v58, 0.0  ;;  %v8015_v26 = vadd.f32 %v8014_v21, %v8013_v3  ;;  %v15394_v3 = vpop.f32.mrf.mxu0  ;;  %v15416_v58 = vld [vmem:[%s15810_s6] ss:$0 sm:$0xff] }
 0x53a   : > { %v8000_v35 = vrot.slane %v7999_v28, 1  ;;  %v8020_v4 = vadd.f32 %v8019_v55, %v8018_v31  ;;  %v8025_v40 = vadd.f32 %v8024_v19, %v8023_v20  ;;  %v8045_v29 = vrot.slane %v8044_v23, 4 }
 0x53b   : > { %v15388_v62 = vadd.f32 %v8033_v8, %v8032_v47  ;;  %v8060_v63 = vadd.f32 %v8059_v43, %v8058_v54  ;;  %v6542_v61 = vmax.f32 %v6152_v34, 0.0  ;;  %v8576_v16 = vmul.f32 0.125, %v15342_v9  ;;  %v15420_v55 = vpop.f32.mrf.mxu0 }
 0x53c   : > { %v8001_v39 = vadd.f32 %v8000_v35, %v7999_v28  ;;  %v8021_v2 = vrot.slane %v8020_v4, 1  ;;  %v8026_v33 = vrot.slane %v8025_v40, 2  ;;  %v8046_v36 = vadd.f32 %v8045_v29, %v8044_v23 }
 0x53d   : > { %v8577_v37 = vmul.f32 0.125, %v7973_v56  ;;  %v8061_v48 = vrot.slane %v8060_v63, 2  ;;  %v8065_v5 = vsel %vm6587_vm2, %v6542_v61, 0.0  ;;  %v15392_v44 = vmul.f32 0.125, %v8008_v15 }
 0x53e   : > { %v8580_v7 = vmul.f32 0.125, %v7994_v1  ;;  %v8040_v17 = vrot.slane %v8039_v0, 2  ;;  %v8027_v45 = vadd.f32 %v8026_v33, %v8025_v40  ;;  %v8581_v21 = vmul.f32 0.125, %v8001_v39 }
 0x53f   : > { %v8066_v47 = vrot.slane %v8065_v5, 4  ;;  %v7980_v34 = vadd.f32 %v7979_v14, %v15325_v12  ;;  %v7986_v24 = vrot.slane %v15340_v13, 1  ;;  %v15400_v9 = vmul.f32 0.125, %v8015_v26 }
 0x540   : > { %v8035_v56 = vrot.slane %v15388_v62, 1  ;;  %v8022_v31 = vadd.f32 %v8021_v2, %v8020_v4  ;;  %v8047_v15 = vrot.slane %v8046_v36, 2  ;;  %v15403_v32 = vadd.f32 %v8061_v48, %v8060_v63  ;;  %v15439_v63 = vpop.f32.mrf.mxu0 }
 0x541   : > { %v8067_v25 = vadd.f32 %v8066_v47, %v8065_v5  ;;  %v7987_v8 = vadd.f32 %v7986_v24, %v15340_v13  ;;  %v9068_v42 = vsel %vm8894_vm4, %v15329_v38, %v15361_v6  ;;  %v15409_v20 = vadd.f32 %v8040_v17, %v8039_v0 }
 0x542   : > { %v8028_v12 = vrot.slane %v8027_v45, 1  ;;  %v9069_v14 = vsel %vm8896_vm5, %v15337_v46, %v9068_v42  ;;  %v6144_v28 = vadd.f32 %v15416_v58, %v15223_v59  ;;  %v15423_v13 = vsel %vm8892_vm3, %v8581_v21, %v8580_v7  ;;  %v15451_v47 = vpop.f32.mrf.mxu0 }
 0x543   : > { %v8068_v38 = vrot.slane %v8067_v25, 2  ;;  %v8578_v6 = vmul.f32 0.125, %v7980_v34  ;;  %v9070_v19 = vsel %vm8898_vm6, %v8576_v16, %v9069_v14  ;;  %v8048_v54 = vadd.f32 %v8047_v15, %v8046_v36 }
 0x544   : > { %v8579_v1 = vmul.f32 0.125, %v7987_v8  ;;  %v9071_v46 = vsel %vm8900_vm7, %v8577_v37, %v9070_v19  ;;  %v6540_v0 = vmax.f32 %v6144_v28, 0.0  ;;  %v15427_v43 = vmul.f32 0.125, %v8022_v31 }
 0x545   : > { %v8063_v23 = vrot.slane %v15403_v32, 1  ;;  %v9072_v59 = vsel %vm8902_vm8, %v8578_v6, %v9071_v46  ;;  %v6165_v35 = vadd.f32 %v15416_v58, %v15239_v52  ;;  %v15433_v4 = vadd.f32 %v8028_v12, %v8027_v45 }
 0x546   : > { %v9073_v40 = vsel %vm8904_vm9, %v8579_v1, %v9072_v59  ;;  %v8051_v29 = vsel %vm6587_vm2, %v6540_v0, 0.0  ;;  %v6157_v26 = vadd.f32 %v15416_v58, %v15249_v51  ;;  %v8069_v61 = vadd.f32 %v8068_v38, %v8067_v25  ;;  %v15458_v1 = vpop.f32.mrf.mxu0 }
 0x547   : > { %9195 = vxpose.xlu1.b32.cont [9/16] (narrow) %v9073_v40, 8  ;;  %v8052_v39 = vrot.slane %v8051_v29, 4  ;;  %v6545_v2 = vmax.f32 %v6165_v35, 0.0  ;;  %v6168_v33 = vadd.f32 %v15416_v58, %v15255_v22  ;;  %v8049_v36 = vrot.slane %v8048_v54, 1 }
 0x548   : > { %v6543_v52 = vmax.f32 %v6157_v26, 0.0  ;;  %v6160_v16 = vadd.f32 %v15416_v58, %v15260_v53  ;;  %v6181_v37 = vadd.f32 %v15416_v58, %v15277_v60  ;;  %v6173_v7 = vadd.f32 %v15416_v58, %v15298_v30 }
 0x549   : > { %v8053_v48 = vadd.f32 %v8052_v39, %v8051_v29  ;;  %v8086_v51 = vsel %vm6587_vm2, %v6545_v2, 0.0  ;;  %v6546_v5 = vmax.f32 %v6168_v33, 0.0  ;;  %v8070_v34 = vrot.slane %v8069_v61, 1 }
 0x54a   : > { %v8087_v17 = vrot.slane %v8086_v51, 4  ;;  %v8072_v45 = vsel %vm6587_vm2, %v6543_v52, 0.0  ;;  %v6544_v21 = vmax.f32 %v6160_v16, 0.0  ;;  %v6549_v22 = vmax.f32 %v6181_v37, 0.0 }
 0x54b   : > { %v8054_v24 = vrot.slane %v8053_v48, 2  ;;  %v8073_v53 = vrot.slane %v8072_v45, 4  ;;  %v8093_v31 = vsel %vm6587_vm2, %v6546_v5, 0.0  ;;  %v6547_v6 = vmax.f32 %v6173_v7, 0.0  ;;  %v15465_v5 = vpop.f32.mrf.mxu0 }
 0x54c   : > { %v8088_v60 = vadd.f32 %v8087_v17, %v8086_v51  ;;  %v8094_v15 = vrot.slane %v8093_v31, 4  ;;  %v8079_v25 = vsel %vm6587_vm2, %v6544_v21, 0.0  ;;  %v8114_v8 = vsel %vm6587_vm2, %v6549_v22, 0.0 }
 0x54d   : > { %v8055_v42 = vadd.f32 %v8054_v24, %v8053_v48  ;;  %v8074_v30 = vadd.f32 %v8073_v53, %v8072_v45  ;;  %v8080_v12 = vrot.slane %v8079_v25, 4  ;;  %v8115_v14 = vrot.slane %v8114_v8, 4 }
 0x54e   : > { %v8089_v28 = vrot.slane %v8088_v60, 2  ;;  %v8095_v38 = vadd.f32 %v8094_v15, %v8093_v31  ;;  %v6184_v19 = vadd.f32 %v15416_v58, %v15311_v10  ;;  %v8064_v40 = vadd.f32 %v8063_v23, %v15403_v32 }
 0x54f   : > { %v8056_v46 = vrot.slane %v8055_v42, 1  ;;  %v8075_v0 = vrot.slane %v8074_v30, 2  ;;  %v8081_v59 = vadd.f32 %v8080_v12, %v8079_v25  ;;  %v8116_v35 = vadd.f32 %v8115_v14, %v8114_v8  ;;  %v15477_v25 = vpop.f32.mrf.mxu0 }
 0x550   : > { %v8050_v29 = vadd.f32 %v8049_v36, %v8048_v54  ;;  %v8100_v26 = vsel %vm6587_vm2, %v6547_v6, 0.0  ;;  %v6550_v39 = vmax.f32 %v6184_v19, 0.0  ;;  %v8071_v37 = vadd.f32 %v8070_v34, %v8069_v61 }
 0x551   : > { %v8057_v2 = vadd.f32 %v8056_v46, %v8055_v42  ;;  %v8076_v33 = vadd.f32 %v8075_v0, %v8074_v30  ;;  %v8082_v52 = vrot.slane %v8081_v59, 2  ;;  %v8117_v16 = vrot.slane %v8116_v35, 2 }
 0x552   : > { %v15462_v48 = vadd.f32 %v8089_v28, %v8088_v60  ;;  %v8101_v10 = vrot.slane %v8100_v26, 4  ;;  %v8121_v51 = vsel %vm6587_vm2, %v6550_v39, 0.0  ;;  %v8096_v45 = vrot.slane %v8095_v38, 2 }
 0x553   : > { %v8589_v7 = vmul.f32 0.125, %v8057_v2  ;;  %v8077_v17 = vrot.slane %v8076_v33, 1  ;;  %v8083_v32 = vadd.f32 %v8082_v52, %v8081_v59  ;;  %v8118_v54 = vadd.f32 %v8117_v16, %v8116_v35 }
 0x554   : > { %v8102_v23 = vadd.f32 %v8101_v10, %v8100_v26  ;;  %v8122_v36 = vrot.slane %v8121_v51, 4  ;;  %v8042_v21 = vrot.slane %v15409_v20, 1  ;;  %v8585_v22 = vmul.f32 0.125, %v15433_v4 }
 0x555   : > { %v8588_v24 = vmul.f32 0.125, %v8050_v29  ;;  %v8078_v61 = vadd.f32 %v8077_v17, %v8076_v33  ;;  %v8036_v34 = vadd.f32 %v8035_v56, %v15388_v62  ;;  %v15472_v53 = vmul.f32 0.125, %v8064_v40 }
 0x556   : > { %v15474_v31 = vmul.f32 0.125, %v8071_v37  ;;  %v8123_v60 = vadd.f32 %v8122_v36, %v8121_v51  ;;  %v8043_v15 = vadd.f32 %v8042_v21, %v15409_v20  ;;  %v8091_v4 = vrot.slane %v15462_v48, 1 }
 0x557   : > { %v15480_v8 = vsel %vm8892_vm3, %v8589_v7, %v8588_v24  ;;  %v15483_v42 = vadd.f32 %v8096_v45, %v8095_v38  ;;  %v9075_v62 = vsel %vm8894_vm4, %v15392_v44, %v15423_v13  ;;  %v8084_v56 = vrot.slane %v8083_v32, 1  ;;  %v15499_v13 = vpop.f32.mrf.mxu0 }
 0x558   : > { %v8119_v30 = vrot.slane %v8118_v54, 1  ;;  %v8103_v12 = vrot.slane %v8102_v23, 2  ;;  %v9076_v14 = vsel %vm8896_vm5, %v15400_v9, %v9075_v62  ;;  %v15490_v20 = vmul.f32 0.125, %v8078_v61 }
 0x559   : > { %v8586_v28 = vmul.f32 0.125, %v8036_v34  ;;  %v9077_v6 = vsel %vm8898_vm6, %v15427_v43, %v9076_v14  ;;  %v6176_v38 = vadd.f32 %v15416_v58, %v15319_v41  ;;  %v8124_v19 = vrot.slane %v8123_v60, 2  ;;  %v15511_v10 = vpop.f32.mrf.mxu0 }
 0x55a   : > { %v8587_v46 = vmul.f32 0.125, %v8043_v15  ;;  %v9078_v0 = vsel %vm8900_vm7, %v8585_v22, %v9077_v6  ;;  %v6197_v44 = vadd.f32 %v15416_v58, %v15323_v27  ;;  %v6189_v35 = vadd.f32 %v15416_v58, %v15335_v50 }
 0x55b   : > { %v9079_v9 = vsel %vm8902_vm8, %v8586_v28, %v9078_v0  ;;  %v6548_v59 = vmax.f32 %v6176_v38, 0.0  ;;  %v6200_v43 = vadd.f32 %v15416_v58, %v15355_v18  ;;  %v8085_v40 = vadd.f32 %v8084_v56, %v8083_v32  ;;  %v15520_v15 = vpop.f32.mrf.mxu0 }
 0x55c   : > { %v8104_v41 = vadd.f32 %v8103_v12, %v8102_v23  ;;  %v9080_v29 = vsel %vm8904_vm9, %v8587_v46, %v9079_v9  ;;  %v6553_v26 = vmax.f32 %v6197_v44, 0.0  ;;  %v6551_v27 = vmax.f32 %v6189_v35, 0.0 }
 0x55d   : > { %9196 = vxpose.xlu1.b32.cont [10/16] (narrow) %v9080_v29, 8  ;;  %v8107_v39 = vsel %vm6587_vm2, %v6548_v59, 0.0  ;;  %v6554_v2 = vmax.f32 %v6200_v43, 0.0  ;;  %v6192_v33 = vadd.f32 %v15416_v58, %v15369_v49  ;;  %v8120_v52 = vadd.f32 %v8119_v30, %v8118_v54  ;;  %v15526_v35 = vpop.f32.mrf.mxu0 }
 0x55e   : > { %v8125_v16 = vadd.f32 %v8124_v19, %v8123_v60  ;;  %v8108_v37 = vrot.slane %v8107_v39, 4  ;;  %v8142_v50 = vsel %vm6587_vm2, %v6553_v26, 0.0  ;;  %v8128_v51 = vsel %vm6587_vm2, %v6551_v27, 0.0 }
 0x55f   : > { %v8143_v18 = vrot.slane %v8142_v50, 4  ;;  %v8149_v7 = vsel %vm6587_vm2, %v6554_v2, 0.0  ;;  %v6552_v17 = vmax.f32 %v6192_v33, 0.0  ;;  %v8105_v45 = vrot.slane %v8104_v41, 1 }
 0x560   : > { %v8109_v32 = vadd.f32 %v8108_v37, %v8107_v39  ;;  %v8129_v23 = vrot.slane %v8128_v51, 4  ;;  %v8150_v36 = vrot.slane %v8149_v7, 4  ;;  %v6213_v54 = vadd.f32 %v15416_v58, %v15381_v57 }
 0x561   : > { %v8144_v21 = vadd.f32 %v8143_v18, %v8142_v50  ;;  %v8135_v49 = vsel %vm6587_vm2, %v6552_v17, 0.0  ;;  %v6205_v22 = vadd.f32 %v15416_v58, %v15386_v11  ;;  %v8126_v24 = vrot.slane %v8125_v16, 1 }
 0x562   : > { %v8110_v61 = vrot.slane %v8109_v32, 2  ;;  %v8130_v34 = vadd.f32 %v8129_v23, %v8128_v51  ;;  %v8136_v60 = vrot.slane %v8135_v49, 4  ;;  %v8151_v62 = vadd.f32 %v8150_v36, %v8149_v7 }
 0x563   : > { %v6557_v56 = vmax.f32 %v6213_v54, 0.0  ;;  %v6555_v30 = vmax.f32 %v6205_v22, 0.0  ;;  %v6216_v12 = vadd.f32 %v15416_v58, %v15394_v3  ;;  %v8145_v28 = vrot.slane %v8144_v21, 2 }
 0x564   : > { %v8111_v14 = vadd.f32 %v8110_v61, %v8109_v32  ;;  %v8131_v6 = vrot.slane %v8130_v34, 2  ;;  %v8137_v38 = vadd.f32 %v8136_v60, %v8135_v49  ;;  %v8106_v57 = vadd.f32 %v8105_v45, %v8104_v41  ;;  %v15537_v45 = vpop.f32.mrf.mxu0 }
 0x565   : > { %v8170_v19 = vsel %vm6587_vm2, %v6557_v56, 0.0  ;;  %v8156_v11 = vsel %vm6587_vm2, %v6555_v30, 0.0  ;;  %v6558_v46 = vmax.f32 %v6216_v12, 0.0  ;;  %v8127_v0 = vadd.f32 %v8126_v24, %v8125_v16 }
 0x566   : > { %v8112_v44 = vrot.slane %v8111_v14, 1  ;;  %v8132_v9 = vadd.f32 %v8131_v6, %v8130_v34  ;;  %v8138_v59 = vrot.slane %v8137_v38, 2  ;;  %v8152_v43 = vrot.slane %v8151_v62, 2  ;;  %v15552_v56 = vpop.f32.mrf.mxu0 }
 0x567   : > { %v8171_v29 = vrot.slane %v8170_v19, 4  ;;  %v8157_v26 = vrot.slane %v8156_v11, 4  ;;  %v8177_v3 = vsel %vm6587_vm2, %v6558_v46, 0.0  ;;  %v15529_v27 = vadd.f32 %v8145_v28, %v8144_v21 }
 0x568   : > { %v8113_v39 = vadd.f32 %v8112_v44, %v8111_v14  ;;  %v8133_v41 = vrot.slane %v8132_v9, 1  ;;  %v8178_v2 = vrot.slane %v8177_v3, 4  ;;  %v8139_v33 = vadd.f32 %v8138_v59, %v8137_v38  ;;  %v15569_v46 = vpop.f32.mrf.mxu0 }
 0x569   : > { %v8172_v37 = vadd.f32 %v8171_v29, %v8170_v19  ;;  %v8158_v50 = vadd.f32 %v8157_v26, %v8156_v11  ;;  %v8098_v16 = vrot.slane %v15483_v42, 1  ;;  %v8593_v18 = vmul.f32 0.125, %v8085_v40 }
 0x56a   : > { %v15532_v51 = vmul.f32 0.125, %v8120_v52  ;;  %v8179_v7 = vadd.f32 %v8178_v2, %v8177_v3  ;;  %v8092_v17 = vadd.f32 %v8091_v4, %v15462_v48  ;;  %v8596_v32 = vmul.f32 0.125, %v8106_v57 }
 0x56b   : > { %v8173_v23 = vrot.slane %v8172_v37, 2  ;;  %v8159_v36 = vrot.slane %v8158_v50, 2  ;;  %v8099_v21 = vadd.f32 %v8098_v16, %v15483_v42  ;;  %v15540_v49 = vmul.f32 0.125, %v8127_v0 }
 0x56c   : > { %v8147_v54 = vrot.slane %v15529_v27, 1  ;;  %v15543_v22 = vadd.f32 %v8152_v43, %v8151_v62  ;;  %v8180_v40 = vrot.slane %v8179_v7, 2  ;;  %v8597_v52 = vmul.f32 0.125, %v8113_v39 }
 0x56d   : > { %v8134_v24 = vadd.f32 %v8133_v41, %v8132_v9  ;;  %v8140_v61 = vrot.slane %v8139_v33, 1  ;;  %v9082_v48 = vsel %vm8894_vm4, %v15472_v53, %v15480_v8  ;;  %v8174_v4 = vadd.f32 %v8173_v23, %v8172_v37 }
 0x56e   : > { %v8594_v34 = vmul.f32 0.125, %v8092_v17  ;;  %v9083_v60 = vsel %vm8896_vm5, %v15474_v31, %v9082_v48  ;;  %v6208_v42 = vadd.f32 %v15416_v58, %v15420_v55  ;;  %v8160_v62 = vadd.f32 %v8159_v36, %v8158_v50 }
 0x56f   : > { %v8595_v30 = vmul.f32 0.125, %v8099_v21  ;;  %v9084_v12 = vsel %vm8898_vm6, %v15490_v20, %v9083_v60  ;;  %v6229_v14 = vadd.f32 %v15416_v58, %v15439_v63  ;;  %v8181_v28 = vadd.f32 %v8180_v40, %v8179_v7 }
 0x570   : > { %v9085_v53 = vsel %vm8900_vm7, %v8593_v18, %v9084_v12  ;;  %v6556_v8 = vmax.f32 %v6208_v42, 0.0  ;;  %v6221_v31 = vadd.f32 %v15416_v58, %v15451_v47  ;;  %v15562_v6 = vsel %vm8892_vm3, %v8597_v52, %v8596_v32  ;;  %v15583_v18 = vpop.f32.mrf.mxu0 }
 0x571   : > { %v15564_v55 = vmul.f32 0.125, %v8134_v24  ;;  %v9086_v38 = vsel %vm8902_vm8, %v8594_v34, %v9085_v53  ;;  %v6561_v57 = vmax.f32 %v6229_v14, 0.0  ;;  %v8141_v19 = vadd.f32 %v8140_v61, %v8139_v33 }
 0x572   : > { %v9087_v20 = vsel %vm8904_vm9, %v8595_v30, %v9086_v38  ;;  %v8163_v63 = vsel %vm6587_vm2, %v6556_v8, 0.0  ;;  %v6559_v11 = vmax.f32 %v6221_v31, 0.0  ;;  %v8175_v0 = vrot.slane %v8174_v4, 1  ;;  %v15589_v34 = vpop.f32.mrf.mxu0 }
 0x573   : > { %v8161_v44 = vrot.slane %v8160_v62, 1  ;;  %9197 = vxpose.xlu1.b32.cont [11/16] (narrow) %v9087_v20, 8  ;;  %v8164_v47 = vrot.slane %v8163_v63, 4  ;;  %v8198_v9 = vsel %vm6587_vm2, %v6561_v57, 0.0  ;;  %v8182_v59 = vrot.slane %v8181_v28, 1 }
 0x574   : > { %v8199_v43 = vrot.slane %v8198_v9, 4  ;;  %v8184_v29 = vsel %vm6587_vm2, %v6559_v11, 0.0  ;;  %v6232_v26 = vadd.f32 %v15416_v58, %v15458_v1  ;;  %v6224_v41 = vadd.f32 %v15416_v58, %v15465_v5 }
 0x575   : > { %v8165_v3 = vadd.f32 %v8164_v47, %v8163_v63  ;;  %v8185_v39 = vrot.slane %v8184_v29, 4  ;;  %v6245_v2 = vadd.f32 %v15416_v58, %v15477_v25  ;;  %v6237_v50 = vadd.f32 %v15416_v58, %v15499_v13 }
 0x576   : > { %v8200_v33 = vadd.f32 %v8199_v43, %v8198_v9  ;;  %v6562_v37 = vmax.f32 %v6232_v26, 0.0  ;;  %v6248_v16 = vadd.f32 %v15416_v58, %v15511_v10  ;;  %v6560_v17 = vmax.f32 %v6224_v41, 0.0  ;;  %v15594_v9 = vpop.f32.mrf.mxu0 }
 0x577   : > { %v8166_v7 = vrot.slane %v8165_v3, 2  ;;  %v8186_v1 = vadd.f32 %v8185_v39, %v8184_v29  ;;  %v6565_v32 = vmax.f32 %v6245_v2, 0.0  ;;  %v8176_v23 = vadd.f32 %v8175_v0, %v8174_v4 }
 0x578   : > { %v8205_v5 = vsel %vm6587_vm2, %v6562_v37, 0.0  ;;  %v6563_v36 = vmax.f32 %v6237_v50, 0.0  ;;  %v6566_v21 = vmax.f32 %v6248_v16, 0.0  ;;  %v8191_v24 = vsel %vm6587_vm2, %v6560_v17, 0.0 }
 0x579   : > { %v8167_v25 = vadd.f32 %v8166_v7, %v8165_v3  ;;  %v8187_v40 = vrot.slane %v8186_v1, 2  ;;  %v8206_v52 = vrot.slane %v8205_v5, 4  ;;  %v8201_v13 = vrot.slane %v8200_v33, 2  ;;  %v15605_v7 = vpop.f32.mrf.mxu0 }
 0x57a   : > { %v8192_v61 = vrot.slane %v8191_v24, 4  ;;  %v8226_v10 = vsel %vm6587_vm2, %v6565_v32, 0.0  ;;  %v8212_v48 = vsel %vm6587_vm2, %v6563_v36, 0.0  ;;  %v8162_v12 = vadd.f32 %v8161_v44, %v8160_v62 }
 0x57b   : > { %v8168_v60 = vrot.slane %v8167_v25, 1  ;;  %v8188_v42 = vadd.f32 %v8187_v40, %v8186_v1  ;;  %v8207_v4 = vadd.f32 %v8206_v52, %v8205_v5  ;;  %v8227_v30 = vrot.slane %v8226_v10, 4  ;;  %v15628_v52 = vpop.f32.mrf.mxu0 }
 0x57c   : > { %v8193_v14 = vadd.f32 %v8192_v61, %v8191_v24  ;;  %v8213_v53 = vrot.slane %v8212_v48, 4  ;;  %v8233_v8 = vsel %vm6587_vm2, %v6566_v21, 0.0  ;;  %v8183_v31 = vadd.f32 %v8182_v59, %v8181_v28 }
 0x57d   : > { %v8169_v38 = vadd.f32 %v8168_v60, %v8167_v25  ;;  %v8189_v57 = vrot.slane %v8188_v42, 1  ;;  %v8228_v20 = vadd.f32 %v8227_v30, %v8226_v10  ;;  %v15592_v63 = vadd.f32 %v8201_v13, %v8200_v33 }
 0x57e   : > { %v8194_v11 = vrot.slane %v8193_v14, 2  ;;  %v8214_v0 = vadd.f32 %v8213_v53, %v8212_v48  ;;  %v8234_v47 = vrot.slane %v8233_v8, 4  ;;  %v8601_v43 = vmul.f32 0.125, %v8141_v19 }
 0x57f   : > { %v8605_v29 = vmul.f32 0.125, %v8169_v38  ;;  %v8208_v26 = vrot.slane %v8207_v4, 2  ;;  %v8229_v3 = vrot.slane %v8228_v20, 2  ;;  %v8154_v41 = vrot.slane %v15543_v22, 1  ;;  %v15644_v38 = vpop.f32.mrf.mxu0 }
 0x580   : > { %v8195_v62 = vadd.f32 %v8194_v11, %v8193_v14  ;;  %v8215_v44 = vrot.slane %v8214_v0, 2  ;;  %v8235_v39 = vadd.f32 %v8234_v47, %v8233_v8  ;;  %v15597_v28 = vmul.f32 0.125, %v8176_v23 }
 0x581   : > { %v8604_v59 = vmul.f32 0.125, %v8162_v12  ;;  %v15599_v2 = vmul.f32 0.125, %v8183_v31  ;;  %v8190_v33 = vadd.f32 %v8189_v57, %v8188_v42  ;;  %v8203_v37 = vrot.slane %v15592_v63, 1 }
 0x582   : > { %v8196_v50 = vrot.slane %v8195_v62, 1  ;;  %v8230_v16 = vadd.f32 %v8229_v3, %v8228_v20  ;;  %v8148_v19 = vadd.f32 %v8147_v54, %v15529_v27  ;;  %v8155_v1 = vadd.f32 %v8154_v41, %v15543_v22  ;;  %v9171_v3 = vpop.trf.xlu0  ;;  %v15656_v41 = vpop.f32.mrf.mxu0 }
 0x583   : > { %v9089_v17 = vsel %vm8894_vm4, %v15532_v51, %v15562_v6  ;;  %v6240_v32 = vadd.f32 %v15416_v58, %v15520_v15  ;;  %v6261_v23 = vadd.f32 %v15416_v58, %v15526_v35  ;;  %v15616_v5 = vsel %vm8892_vm3, %v8605_v29, %v8604_v59  ;;  %9219 = vst [vmem:[%s15660_s21] sm:$0xff] %v9171_v3 }
 0x584   : > { %v15618_v36 = vadd.f32 %v8208_v26, %v8207_v4  ;;  %v15620_v27 = vadd.f32 %v8215_v44, %v8214_v0  ;;  %v8236_v54 = vrot.slane %v8235_v39, 2  ;;  %v15622_v21 = vmul.f32 0.125, %v8190_v33 }
 0x585   : > { %v9090_v22 = vsel %vm8896_vm5, %v15540_v49, %v9089_v17  ;;  %v6564_v51 = vmax.f32 %v6240_v32, 0.0  ;;  %v6569_v6 = vmax.f32 %v6261_v23, 0.0  ;;  %v8197_v25 = vadd.f32 %v8196_v50, %v8195_v62 }
 0x586   : > { %v8231_v15 = vrot.slane %v8230_v16, 1  ;;  %v8602_v40 = vmul.f32 0.125, %v8148_v19  ;;  %v9091_v35 = vsel %vm8898_vm6, %v15564_v55, %v9090_v22  ;;  %v8603_v24 = vmul.f32 0.125, %v8155_v1 }
 0x587   : > { %v9092_v13 = vsel %vm8900_vm7, %v8601_v43, %v9091_v35  ;;  %v8219_v61 = vsel %vm6587_vm2, %v6564_v51, 0.0  ;;  %v8254_v10 = vsel %vm6587_vm2, %v6569_v6, 0.0  ;;  %v8217_v48 = vrot.slane %v15620_v27, 1  ;;  %v6287_v35 = vpop.f32.mrf.mxu0 }
 0x588   : > { %v8237_v49 = vadd.f32 %v8236_v54, %v8235_v39  ;;  %v9093_v60 = vsel %vm8902_vm8, %v8602_v40, %v9092_v13  ;;  %v8220_v42 = vrot.slane %v8219_v61, 4  ;;  %v8255_v30 = vrot.slane %v8254_v10, 4 }
 0x589   : > { %v9094_v4 = vsel %vm8904_vm9, %v8603_v24, %v9093_v60  ;;  %v6253_v55 = vadd.f32 %v15416_v58, %v15537_v45  ;;  %v6264_v12 = vadd.f32 %v15416_v58, %v15552_v56  ;;  %v8232_v14 = vadd.f32 %v8231_v15, %v8230_v16 }
 0x58a   : > { %9198 = vxpose.xlu1.b32.cont [12/16] (narrow) %v9094_v4, 8  ;;  %v8221_v53 = vadd.f32 %v8220_v42, %v8219_v61  ;;  %v6256_v8 = vadd.f32 %v15416_v58, %v15569_v46  ;;  %v6277_v31 = vadd.f32 %v15416_v58, %v15583_v18  ;;  %v8256_v57 = vadd.f32 %v8255_v30, %v8254_v10 }
 0x58b   : > { %v6567_v20 = vmax.f32 %v6253_v55, 0.0  ;;  %v6570_v11 = vmax.f32 %v6264_v12, 0.0  ;;  %v6269_v45 = vadd.f32 %v15416_v58, %v15589_v34  ;;  %v8238_v0 = vrot.slane %v8237_v49, 1 }
 0x58c   : > { %v8222_v56 = vrot.slane %v8221_v53, 2  ;;  %v6568_v47 = vmax.f32 %v6256_v8, 0.0  ;;  %v6573_v43 = vmax.f32 %v6277_v31, 0.0  ;;  %v6280_v18 = vadd.f32 %v15416_v58, %v15594_v9  ;;  %v10989_v31 = vpop.f32.mrf.mxu0 }
 0x58d   : > { %v8240_v29 = vsel %vm6587_vm2, %v6567_v20, 0.0  ;;  %v8261_v46 = vsel %vm6587_vm2, %v6570_v11, 0.0  ;;  %v6571_v26 = vmax.f32 %v6269_v45, 0.0  ;;  %v8257_v59 = vrot.slane %v8256_v57, 2 }
 0x58e   : > { %v8223_v62 = vadd.f32 %v8222_v56, %v8221_v53  ;;  %v8241_v44 = vrot.slane %v8240_v29, 4  ;;  %v8262_v39 = vrot.slane %v8261_v46, 4  ;;  %v8247_v34 = vsel %vm6587_vm2, %v6568_v47, 0.0  ;;  %v6300_v3 = vpop.f32.mrf.mxu0 }
 0x58f   : > { %v8248_v33 = vrot.slane %v8247_v34, 4  ;;  %v8282_v50 = vsel %vm6587_vm2, %v6573_v43, 0.0  ;;  %v8268_v16 = vsel %vm6587_vm2, %v6571_v26, 0.0  ;;  %v8609_v32 = vmul.f32 0.125, %v8197_v25 }
 0x590   : > { %v8224_v9 = vrot.slane %v8223_v62, 1  ;;  %v8242_v19 = vadd.f32 %v8241_v44, %v8240_v29  ;;  %v8263_v1 = vadd.f32 %v8262_v39, %v8261_v46  ;;  %v8283_v17 = vrot.slane %v8282_v50, 4 }
 0x591   : > { %v8249_v23 = vadd.f32 %v8248_v33, %v8247_v34  ;;  %v8269_v54 = vrot.slane %v8268_v16, 4  ;;  %v6574_v22 = vmax.f32 %v6280_v18, 0.0  ;;  %v8218_v51 = vadd.f32 %v8217_v48, %v15620_v27 }
 0x592   : > { %v8225_v6 = vadd.f32 %v8224_v9, %v8223_v62  ;;  %v8243_v15 = vrot.slane %v8242_v19, 2  ;;  %v8284_v40 = vadd.f32 %v8283_v17, %v8282_v50  ;;  %v8239_v24 = vadd.f32 %v8238_v0, %v8237_v49  ;;  %v10990_v17 = vpop.f32.mrf.mxu0 }
 0x593   : > { %v8250_v13 = vrot.slane %v8249_v23, 2  ;;  %v8270_v61 = vadd.f32 %v8269_v54, %v8268_v16  ;;  %v8289_v10 = vsel %vm6587_vm2, %v6574_v22, 0.0  ;;  %v15665_v60 = vadd.f32 %v8257_v59, %v8256_v57 }
 0x594   : > { %v8244_v42 = vadd.f32 %v8243_v15, %v8242_v19  ;;  %v8264_v4 = vrot.slane %v8263_v1, 2  ;;  %v8285_v30 = vrot.slane %v8284_v40, 2  ;;  %v8290_v12 = vrot.slane %v8289_v10, 4 }
 0x595   : > { %v8251_v25 = vadd.f32 %v8250_v13, %v8249_v23  ;;  %v8271_v55 = vrot.slane %v8270_v61, 2  ;;  %v8210_v53 = vrot.slane %v15618_v36, 1  ;;  %v15668_v27 = vmul.f32 0.125, %v8232_v14 }
 0x596   : > { %v8613_v48 = vmul.f32 0.125, %v8225_v6  ;;  %v8245_v8 = vrot.slane %v8244_v42, 1  ;;  %v8204_v49 = vadd.f32 %v8203_v37, %v15592_v63  ;;  %v8612_v20 = vmul.f32 0.125, %v8218_v51 }
 0x597   : > { %v8252_v57 = vrot.slane %v8251_v25, 1  ;;  %v8286_v11 = vadd.f32 %v8285_v30, %v8284_v40  ;;  %v15673_v45 = vadd.f32 %v8271_v55, %v8270_v61  ;;  %v15675_v0 = vmul.f32 0.125, %v8239_v24 }
 0x598   : > { %v8211_v56 = vadd.f32 %v8210_v53, %v15618_v36  ;;  %v9096_v14 = vsel %vm8894_vm4, %v15597_v28, %v15616_v5  ;;  %v6272_v47 = vadd.f32 %v15416_v58, %v15605_v7  ;;  %v8259_v43 = vrot.slane %v15665_v60, 1 }
 0x599   : > { %v8246_v63 = vadd.f32 %v8245_v8, %v8244_v42  ;;  %v15684_v37 = vadd.f32 %v8264_v4, %v8263_v1  ;;  %v8291_v29 = vadd.f32 %v8290_v12, %v8289_v10  ;;  %v15687_v46 = vsel %vm8892_vm3, %v8613_v48, %v8612_v20  ;;  %v6303_v4 = vpop.f32.mrf.mxu0 }
 0x59a   : > { %v8610_v26 = vmul.f32 0.125, %v8204_v49  ;;  %v9097_v36 = vsel %vm8896_vm5, %v15599_v2, %v9096_v14  ;;  %v6572_v18 = vmax.f32 %v6272_v47, 0.0  ;;  %v8253_v62 = vadd.f32 %v8252_v57, %v8251_v25 }
 0x59b   : > { %v8287_v28 = vrot.slane %v8286_v11, 1  ;;  %v8273_v5 = vrot.slane %v15673_v45, 1  ;;  %v9098_v7 = vsel %vm8898_vm6, %v15622_v21, %v9097_v36  ;;  %v8611_v44 = vmul.f32 0.125, %v8211_v56 }
 0x59c   : > { %v9099_v39 = vsel %vm8900_vm7, %v8609_v32, %v9098_v7  ;;  %v8275_v34 = vsel %vm6587_vm2, %v6572_v18, 0.0  ;;  %v6293_v59 = vadd.f32 %v15416_v58, %v15628_v52  ;;  %v15698_v33 = vmul.f32 0.125, %v8246_v63  ;;  %v10993_v63 = vpop.f32.mrf.mxu0 }
 0x59d   : > { %v8292_v2 = vrot.slane %v8291_v29, 2  ;;  %v9100_v50 = vsel %vm8902_vm8, %v8610_v26, %v9099_v39  ;;  %v8276_v16 = vrot.slane %v8275_v34, 4  ;;  %v6285_v21 = vadd.f32 %v15416_v58, %v15644_v38 }
 0x59e   : > { %v9101_v9 = vsel %vm8904_vm9, %v8611_v44, %v9100_v50  ;;  %v6577_v19 = vmax.f32 %v6293_v59, 0.0  ;;  %v6296_v1 = vadd.f32 %v15416_v58, %v15656_v41  ;;  %v8288_v32 = vadd.f32 %v8287_v28, %v8286_v11 }
 0x59f   : > { %9199 = vxpose.xlu1.b32.cont [13/16] (narrow) %v9101_v9, 8  ;;  %v8277_v23 = vadd.f32 %v8276_v16, %v8275_v34  ;;  %v6288_v52 = vadd.f32 %v15416_v58, %v6287_v35  ;;  %v6309_v54 = vadd.f32 %v15416_v58, %v10989_v31  ;;  %v6575_v51 = vmax.f32 %v6285_v21, 0.0  ;;  %v6316_v21 = vpop.f32.mrf.mxu0 }
 0x5a0   : > { %v8310_v22 = vsel %vm6587_vm2, %v6577_v19, 0.0  ;;  %v6578_v6 = vmax.f32 %v6296_v1, 0.0  ;;  %v6301_v15 = vadd.f32 %v15416_v58, %v6300_v3  ;;  %v8293_v40 = vadd.f32 %v8292_v2, %v8291_v29 }
 0x5a1   : > { %v8278_v24 = vrot.slane %v8277_v23, 2  ;;  %v8311_v38 = vrot.slane %v8310_v22, 4  ;;  %v6576_v13 = vmax.f32 %v6288_v52, 0.0  ;;  %v8296_v41 = vsel %vm6587_vm2, %v6575_v51, 0.0 }
 0x5a2   : > { %v8317_v61 = vsel %vm6587_vm2, %v6578_v6, 0.0  ;;  %v6581_v10 = vmax.f32 %v6309_v54, 0.0  ;;  %v6579_v42 = vmax.f32 %v6301_v15, 0.0  ;;  %v8297_v25 = vrot.slane %v8296_v41, 4 }
 0x5a3   : > { %v8279_v35 = vadd.f32 %v8278_v24, %v8277_v23  ;;  %v8312_v30 = vadd.f32 %v8311_v38, %v8310_v22  ;;  %v8318_v55 = vrot.slane %v8317_v61, 4  ;;  %v8303_v12 = vsel %vm6587_vm2, %v6576_v13, 0.0 }
 0x5a4   : > { %v8338_v53 = vsel %vm6587_vm2, %v6581_v10, 0.0  ;;  %v8324_v48 = vsel %vm6587_vm2, %v6579_v42, 0.0  ;;  %v6312_v8 = vadd.f32 %v15416_v58, %v10990_v17  ;;  %v8294_v49 = vrot.slane %v8293_v40, 1 }
 0x5a5   : > { %v8280_v31 = vrot.slane %v8279_v35, 1  ;;  %v8313_v20 = vrot.slane %v8312_v30, 2  ;;  %v8298_v57 = vadd.f32 %v8297_v25, %v8296_v41  ;;  %v8304_v11 = vrot.slane %v8303_v12, 4  ;;  %v10994_v41 = vpop.f32.mrf.mxu0 }
 0x5a6   : > { %v8339_v56 = vrot.slane %v8338_v53, 4  ;;  %v8325_v14 = vrot.slane %v8324_v48, 4  ;;  %v6582_v47 = vmax.f32 %v6312_v8, 0.0  ;;  %v8617_v29 = vmul.f32 0.125, %v8253_v62 }
 0x5a7   : > { %v8281_v26 = vadd.f32 %v8280_v31, %v8279_v35  ;;  %v8299_v36 = vrot.slane %v8298_v57, 2  ;;  %v8319_v18 = vadd.f32 %v8318_v55, %v8317_v61  ;;  %v8305_v3 = vadd.f32 %v8304_v11, %v8303_v12 }
 0x5a8   : > { %v8340_v28 = vadd.f32 %v8339_v56, %v8338_v53  ;;  %v8326_v7 = vadd.f32 %v8325_v14, %v8324_v48  ;;  %v8345_v44 = vsel %vm6587_vm2, %v6582_v47, 0.0  ;;  %v8274_v39 = vadd.f32 %v8273_v5, %v15673_v45 }
 0x5a9   : > { %v8295_v34 = vadd.f32 %v8294_v49, %v8293_v40  ;;  %v15718_v59 = vadd.f32 %v8313_v20, %v8312_v30  ;;  %v8300_v2 = vadd.f32 %v8299_v36, %v8298_v57  ;;  %v8306_v50 = vrot.slane %v8305_v3, 2 }
 0x5aa   : > { %v8341_v16 = vrot.slane %v8340_v28, 2  ;;  %v8327_v9 = vrot.slane %v8326_v7, 2  ;;  %v8346_v19 = vrot.slane %v8345_v44, 4  ;;  %v8621_v62 = vmul.f32 0.125, %v8281_v26 }
 0x5ab   : > { %v8301_v1 = vrot.slane %v8300_v2, 1  ;;  %v8320_v17 = vrot.slane %v8319_v18, 2  ;;  %v8266_v23 = vrot.slane %v15684_v37, 1  ;;  %v8307_v52 = vadd.f32 %v8306_v50, %v8305_v3 }
 0x5ac   : > { %v8342_v54 = vadd.f32 %v8341_v16, %v8340_v28  ;;  %v8347_v22 = vadd.f32 %v8346_v19, %v8345_v44  ;;  %v8260_v45 = vadd.f32 %v8259_v43, %v15665_v60  ;;  %v8622_v5 = vmul.f32 0.125, %v8288_v32 }
 0x5ad   : > { %v8620_v51 = vmul.f32 0.125, %v8274_v39  ;;  %v8328_v6 = vadd.f32 %v8327_v9, %v8326_v7  ;;  %v9103_v15 = vsel %vm8894_vm4, %v15668_v27, %v15687_v46  ;;  %v8623_v40 = vmul.f32 0.125, %v8295_v34 }
 0x5ae   : > { %v8302_v24 = vadd.f32 %v8301_v1, %v8300_v2  ;;  %v8308_v38 = vrot.slane %v8307_v52, 1  ;;  %v8267_v13 = vadd.f32 %v8266_v23, %v15684_v37  ;;  %v8315_v61 = vrot.slane %v15718_v59, 1 }
 0x5af   : > { %v8321_v10 = vadd.f32 %v8320_v17, %v8319_v18  ;;  %v9104_v42 = vsel %vm8896_vm5, %v15675_v0, %v9103_v15  ;;  %v6304_v60 = vadd.f32 %v15416_v58, %v6303_v4  ;;  %v9109_v43 = vsel %vm8892_vm3, %v8621_v62, %v8620_v51  ;;  %v6319_v0 = vpop.f32.mrf.mxu0 }
 0x5b0   : > { %v8343_v32 = vrot.slane %v8342_v54, 1  ;;  %v8348_v35 = vrot.slane %v8347_v22, 2  ;;  %v8618_v30 = vmul.f32 0.125, %v8260_v45  ;;  %v8329_v27 = vrot.slane %v8328_v6, 1 }
 0x5b1   : > { %v6580_v46 = vmax.f32 %v6304_v60, 0.0  ;;  %v6325_v25 = vadd.f32 %v15416_v58, %v10993_v63  ;;  %v6317_v37 = vadd.f32 %v15416_v58, %v6316_v21  ;;  %v8624_v55 = vmul.f32 0.125, %v8302_v24 }
 0x5b2   : > { %v8309_v12 = vadd.f32 %v8308_v38, %v8307_v52  ;;  %v8619_v53 = vmul.f32 0.125, %v8267_v13  ;;  %v9105_v48 = vsel %vm8898_vm6, %v15698_v33, %v9104_v42  ;;  %v8349_v20 = vadd.f32 %v8348_v35, %v8347_v22 }
 0x5b3   : > { %v9106_v4 = vsel %vm8900_vm7, %v8617_v29, %v9105_v48  ;;  %v8331_v8 = vsel %vm6587_vm2, %v6580_v46, 0.0  ;;  %v6585_v49 = vmax.f32 %v6325_v25, 0.0  ;;  %v6583_v31 = vmax.f32 %v6317_v37, 0.0 }
 0x5b4   : > { %v9107_v57 = vsel %vm8902_vm8, %v8618_v30, %v9106_v4  ;;  %v8332_v11 = vrot.slane %v8331_v8, 4  ;;  %v6328_v56 = vadd.f32 %v15416_v58, %v10994_v41  ;;  %v6320_v33 = vadd.f32 %v15416_v58, %v6319_v0 }
 0x5b5   : > { %v9108_v14 = vsel %vm8904_vm9, %v8619_v53, %v9107_v57  ;;  %v8366_v47 = vsel %vm6587_vm2, %v6585_v49, 0.0  ;;  %v8352_v63 = vsel %vm6587_vm2, %v6583_v31, 0.0  ;;  %v8344_v26 = vadd.f32 %v8343_v32, %v8342_v54 }
 0x5b6   : > { %9200 = vxpose.xlu1.b32.cont [14/16] (narrow) %v9108_v14, 8  ;;  %v8333_v29 = vadd.f32 %v8332_v11, %v8331_v8  ;;  %v8367_v36 = vrot.slane %v8366_v47, 4  ;;  %v8353_v18 = vrot.slane %v8352_v63, 4  ;;  %v8330_v3 = vadd.f32 %v8329_v27, %v8328_v6 }
 0x5b7   : > { %v6586_v28 = vmax.f32 %v6328_v56, 0.0  ;;  %v6584_v7 = vmax.f32 %v6320_v33, 0.0  ;;  %v8322_v44 = vrot.slane %v8321_v10, 1  ;;  %v9110_v50 = vsel %vm8894_vm4, %v8622_v5, %v9109_v43 }
 0x5b8   : > { %v8334_v39 = vrot.slane %v8333_v29, 2  ;;  %v8368_v34 = vadd.f32 %v8367_v36, %v8366_v47  ;;  %v8354_v2 = vadd.f32 %v8353_v18, %v8352_v63  ;;  %v8350_v16 = vrot.slane %v8349_v20, 1 }
 0x5b9   : > { %v8373_v9 = vsel %vm6587_vm2, %v6586_v28, 0.0  ;;  %v8359_v19 = vsel %vm6587_vm2, %v6584_v7, 0.0  ;;  %v8316_v58 = vadd.f32 %v8315_v61, %v15718_v59  ;;  %v8625_v23 = vmul.f32 0.125, %v8309_v12 }
 0x5ba   : > { %v8335_v21 = vadd.f32 %v8334_v39, %v8333_v29  ;;  %v8369_v62 = vrot.slane %v8368_v34, 2  ;;  %v8355_v1 = vrot.slane %v8354_v2, 2  ;;  %v8374_v17 = vrot.slane %v8373_v9, 4 }
 0x5bb   : > { %v8360_v52 = vrot.slane %v8359_v19, 4  ;;  %v8323_v54 = vadd.f32 %v8322_v44, %v8321_v10  ;;  %v9111_v22 = vsel %vm8896_vm5, %v8623_v40, %v9110_v50  ;;  %v8628_v15 = vmul.f32 0.125, %v8330_v3 }
 0x5bc   : > { %v8336_v45 = vrot.slane %v8335_v21, 1  ;;  %v8370_v51 = vadd.f32 %v8369_v62, %v8368_v34  ;;  %v8356_v6 = vadd.f32 %v8355_v1, %v8354_v2  ;;  %v8375_v5 = vadd.f32 %v8374_v17, %v8373_v9 }
 0x5bd   : > { %v8351_v24 = vadd.f32 %v8350_v16, %v8349_v20  ;;  %v8361_v38 = vadd.f32 %v8360_v52, %v8359_v19  ;;  %v8626_v13 = vmul.f32 0.125, %v8316_v58  ;;  %v9112_v61 = vsel %vm8898_vm6, %v8624_v55, %v9111_v22 }
 0x5be   : > { %v8337_v41 = vadd.f32 %v8336_v45, %v8335_v21  ;;  %v8357_v42 = vrot.slane %v8356_v6, 1  ;;  %v8376_v59 = vrot.slane %v8375_v5, 2  ;;  %v8371_v60 = vrot.slane %v8370_v51, 1 }
 0x5bf   : > { %v8362_v43 = vrot.slane %v8361_v38, 2  ;;  %v8627_v32 = vmul.f32 0.125, %v8323_v54  ;;  %v9113_v10 = vsel %vm8900_vm7, %v8625_v23, %v9112_v61  ;;  %v8630_v46 = vmul.f32 0.125, %v8344_v26 }
 0x5c0   : > { %v8629_v35 = vmul.f32 0.125, %v8337_v41  ;;  %v8358_v40 = vadd.f32 %v8357_v42, %v8356_v6  ;;  %v8377_v30 = vadd.f32 %v8376_v59, %v8375_v5  ;;  %v9114_v27 = vsel %vm8902_vm8, %v8626_v13, %v9113_v10 }
 0x5c1   : > { %v8363_v25 = vadd.f32 %v8362_v43, %v8361_v38  ;;  %v9115_v37 = vsel %vm8904_vm9, %v8627_v32, %v9114_v27  ;;  %v8631_v48 = vmul.f32 0.125, %v8351_v24  ;;  %v8372_v8 = vadd.f32 %v8371_v60, %v8370_v51 }
 0x5c2   : > { %v9116_v12 = vsel %vm8892_vm3, %v8629_v35, %v8628_v15  ;;  %9201 = vxpose.xlu1.b32.cont [15/16] (narrow) %v9115_v37, 8  ;;  %v8378_v53 = vrot.slane %v8377_v30, 1  ;;  %v8632_v4 = vmul.f32 0.125, %v8358_v40 }
 0x5c3   : > { %v8364_v55 = vrot.slane %v8363_v25, 1  ;;  %v9117_v0 = vsel %vm8894_vm4, %v8630_v46, %v9116_v12  ;;  %v8634_v11 = vmul.f32 0.125, %v8372_v8 }
 0x5c4   : > { %v8379_v31 = vadd.f32 %v8378_v53, %v8377_v30  ;;  %v9118_v20 = vsel %vm8896_vm5, %v8631_v48, %v9117_v0 }
 0x5c5   : > { %v8365_v49 = vadd.f32 %v8364_v55, %v8363_v25  ;;  %v9119_v56 = vsel %vm8898_vm6, %v8632_v4, %v9118_v20 }
 0x5c6   : > { %v8635_v14 = vmul.f32 0.125, %v8379_v31 }
 0x5c7   : > { %v8633_v57 = vmul.f32 0.125, %v8365_v49 }
 0x5c9   : > { %v9120_v47 = vsel %vm8900_vm7, %v8633_v57, %v9119_v56 }
 0x5ca   : > { %v9121_v63 = vsel %vm8902_vm8, %v8634_v11, %v9120_v47 }
 0x5cb   : > { %v9122_v33 = vsel %vm8904_vm9, %v8635_v14, %v9121_v63 }
 0x5cc   : > { %9202 = vxpose.xlu1.b32.end [16/16] (narrow) %v9122_v33, 8 }
 0x60c   : > { %v9203_v26 = vpop.trf.xlu1 }
 0x60d   : > { %9220 = vst [vmem:[%s15660_s21 + $0x8] sm:$0xff] %v9203_v26 }
 0x60e   : > { %11195 = shalt.err (!%p11192_p3)
}
 0x60f   : > { %s11196_s17 = scalar_lea.hbm %s9234_s29, 256  ;;  %s11200_s19 = scalar_lea.hbm %s15811_s7, 1024 }
 0x610   : > { %p11197_p4 = scmp.ne.s32.totalorder %s9234_s29, %s11196_s17  ;;  %p11201_p9 = scmp.lt.s32.totalorder %s9234_s29, %s15811_s7 }
 0x611   : > { %p11202_p10 = scmp.lt.s32.totalorder %s11200_s19, %s11196_s17 }
 0x612   : > { %p11198_p7 = pnand %p11197_p4, %p11320_p5 }
 0x613   : > { %p11203_p11 = por %p11202_p10, %p11201_p9 }
 0x614   : > { %p11199_p8 = pneg %p11198_p7 }
 0x616   : > { %p11204_p12 = pnand %p11203_p11, %p11199_p8 }
 0x618   : > { %11207 = shalt.err (!%p11204_p12)
}
 0x619   : > { %10997 = dma.vmem_to_hbm [thread:$0]  (%p11320_p5), %s15762_s22, 256, %s9234_s29, %s9222_s8  }
 0x61a PF: > { %p11003_p13 = scmp.ge.s32.totalorder %s11242_s27, 2  ;;  %s9248_s23 = sand.u32 1, %s11230_s24  }
 0x61b   : > { %s9249_s28 = scalar_lea.sflag [#allocation3], %s9248_s23 }
 0x61c   : > { %p11000_p0 = pnand %p11003_p13, %p11324_p6 }
 0x61e   : > { %p11001_p1 = pneg %p11000_p0 }
 0x620   : > { %11225 = dma.done.wait (%p11001_p1), %s9249_s28, 256  }
 0x621   : > { %11227 = vsyncadd (%p11001_p1), %s9249_s28, 4294967040  ;;  %p17_p2 = scmp.ge.s32.totalorder %s11308_s30, 6   ;;  %s16121_s24 = smov %s11234_s25 }
 0x622   : > { %s16122_s25 = smov %s11238_s26  ;;  %s16123_s26 = smov %s11318_s10 }
 0x623   : > { %s16124_s27 = smov %s11308_s30  ;;  %19 = sbr.rel (!%p17_p2) target bundleno = 3 (0x3), region = 83 }
 0x628   :  { %9254 = vsyncpa [#allocation3], 1 }
 0x629   :  { %9256 = vsyncpa [#allocation3 + $0x1], 1 }

</bundles_post_ra>
